<compile_context>
chip_gen: v7x
topology: tpu7x:2x2x1
jax: 0.10.0
libtpu: 0.0.40
codegen_flags: <defaults>
</compile_context>

<pallas_src>
import jax
import jax.numpy as jnp
from jax import lax
from jax.experimental import pallas as pl
from jax.experimental.pallas import tpu as pltpu


def _round_up(a, m):
    return ((a + m - 1) // m) * m


def _sublane(dtype):
    # Minimum sublane multiple for a block of this dtype (8 for 4-byte, 16 for 2-byte).
    return max(8, 32 // jnp.dtype(dtype).itemsize)


def titanic_mlp_forward(x, params, *, batch_tile=16384, chunk=2048,
                        out_dtype=jnp.float32,
                        vmem_limit_bytes=48 * 1024 * 1024):
    """Fused MLP forward.  x: (B, 4) -> (B, 1) probabilities.

    x is streamed as-is (f32 or bf16, numerical contract of the caller) in its native
    (B, in_dim) layout; the ragged tail is handled as a masked partial last block.
    batch_tile / vmem_limit_bytes should be swept per chip (see module docstring).
    """
    B, in_dim = x.shape
    w1, b1, w2, b2, w3, b3 = params
    h1_dim, h2_dim = w1.shape[0], w2.shape[0]
    assert w1.shape == (h1_dim, in_dim) and w2.shape == (h2_dim, h1_dim)
    assert w3.shape == (1, h2_dim)

    # ---- tile sizing --------------------------------------------------------------
    sub = max(_sublane(x.dtype), _sublane(out_dtype))
    chunk = max(sub, min(chunk, batch_tile))
    if B < 2 * batch_tile:
        # Shrink so the grid still has >= 2 steps when B allows it: v7x's two
        # TensorCores each take half via dimension_semantics=("parallel",).
        target = _round_up(max(pl.cdiv(B, 2), 1), sub)
        chunk = min(chunk, target)
        batch_tile = _round_up(target, chunk)
    assert chunk % sub == 0 and batch_tile % chunk == 0
    n_tiles = pl.cdiv(B, batch_tile)
    n_chunks = batch_tile // chunk
    ragged = (B % batch_tile) != 0

    # ---- tiny per-layer constants (constant block index => fetched exactly once) ---
    w1t = w1.T.astype(x.dtype)                          # (in_dim, h1): matches streamed
    b1r = b1.reshape(1, h1_dim).astype(jnp.float32)     # dtype so bf16 x feeds the MXU
    w2t = w2.T.astype(jnp.float32)                      # (h1, h2): activations are f32
    b2r = b2.reshape(1, h2_dim).astype(jnp.float32)     # after layer 1
    w3r = w3.reshape(1, h2_dim).astype(jnp.float32)     # row: VPU multiply + XLU reduce
    b3r = b3.reshape(1, 1).astype(jnp.float32)

    def kernel(x_ref, w1_ref, b1_ref, w2_ref, b2_ref, w3_ref, b3_ref, o_ref):
        w1_ = w1_ref[...]
        b1_ = b1_ref[...]
        w2_ = w2_ref[...]
        b2_ = b2_ref[...]
        w3_ = w3_ref[...]
        b3_ = b3_ref[...]
        # Valid rows in this block (only relevant for a partial last block).
        limit = B - pl.program_id(0) * batch_tile if ragged else None

        def chunk_body(c):
            start = c * chunk
            if not isinstance(start, int):
                start = pl.multiple_of(start, chunk)

            def compute():
                xt = x_ref[pl.ds(start, chunk), :]        # (chunk, in_dim), streamed dtype
                if ragged:
                    # Zero tail rows of a partial block so no garbage reaches tanh;
                    # those output rows are never written back to HBM anyway.
                    rid = start + lax.broadcasted_iota(jnp.int32, (chunk, 1), 0)
                    xt = jnp.where(rid < limit, xt, jnp.zeros_like(xt))
                # Layers 1-2 on the MXU, f32 accumulation (no blanket up-cast of xt).
                h1 = jnp.dot(xt, w1_, preferred_element_type=jnp.float32) + b1_
                h1 = jnp.maximum(h1, 0.0)
                h2 = jnp.dot(h1, w2_, preferred_element_type=jnp.float32) + b2_
                h2 = jnp.maximum(h2, 0.0)
                # Layer 3 (out_dim = 1): VPU broadcast-multiply + XLU lane reduce
                # (keeps the N=1 matmul off the MXU dependency chain).
                z = jnp.sum(h2 * w3_, axis=1, keepdims=True) + b3_
                # Exact sigmoid: (1 + tanh(z/2)) / 2 — single EUP push, no approx.
                p = 0.5 * jnp.tanh(0.5 * z) + 0.5
                o_ref[pl.ds(start, chunk), :] = p.astype(o_ref.dtype)

            if ragged:
                pl.when(start < limit)(compute)           # skip fully-OOB tail chunks
            else:
                compute()

        if n_chunks == 1:
            chunk_body(0)
        else:
            def loop_body(c, carry):
                chunk_body(c)
                return carry
            lax.fori_loop(0, n_chunks, loop_body, None)

    def rep(a):  # replicated operand: constant block index => fetched exactly once
        return pl.BlockSpec(a.shape, lambda i: (0,) * a.ndim)

    weight_bytes = sum(int(a.size) * a.dtype.itemsize
                       for a in (w1t, b1r, w2t, b2r, w3r, b3r))
    cost = pl.CostEstimate(
        flops=2 * B * (in_dim * h1_dim + h1_dim * h2_dim + h2_dim),
        transcendentals=B,
        bytes_accessed=B * (in_dim * x.dtype.itemsize
                            + jnp.dtype(out_dtype).itemsize) + weight_bytes,
    )

    return pl.pallas_call(
        kernel,
        out_shape=jax.ShapeDtypeStruct((B, 1), out_dtype),
        grid=(n_tiles,),
        in_specs=[
            pl.BlockSpec((batch_tile, in_dim), lambda i: (i, 0)),   # streamed input
            rep(w1t), rep(b1r), rep(w2t), rep(b2r), rep(w3r), rep(b3r),
        ],
        out_specs=pl.BlockSpec((batch_tile, 1), lambda i: (i, 0)),
        compiler_params=pltpu.CompilerParams(
            dimension_semantics=("parallel",),       # megacore split on v7x
            vmem_limit_bytes=vmem_limit_bytes,       # sized for v7x's 64 MiB; raise on v5e/v6e
        ),
        cost_estimate=cost,
    )(x, w1t, b1r, w2t, b2r, w3r, b3r)


def init_params(key, input_dim=4, hidden_dim1=16, hidden_dim2=8):
    """U(-1/sqrt(fan_in), 1/sqrt(fan_in)) init, PyTorch nn.Linear convention."""
    def linear(k, fan_in, fan_out):
        kw, kb = jax.random.split(k)
        bound = 1.0 / (fan_in ** 0.5)
        w = jax.random.uniform(kw, (fan_out, fan_in), jnp.float32, -bound, bound)
        b = jax.random.uniform(kb, (fan_out,), jnp.float32, -bound, bound)
        return w, b

    k1, k2, k3 = jax.random.split(key, 3)
    w1, b1 = linear(k1, input_dim, hidden_dim1)
    w2, b2 = linear(k2, hidden_dim1, hidden_dim2)
    w3, b3 = linear(k3, hidden_dim2, 1)
    return (w1, b1, w2, b2, w3, b3)


def reference_forward(x, params):
    w1, b1, w2, b2, w3, b3 = params
    h = jnp.maximum(x @ w1.T + b1, 0.0)
    h = jnp.maximum(h @ w2.T + b2, 0.0)
    return jax.nn.sigmoid(h @ w3.T + b3)


if __name__ == "__main__":
    key = jax.random.PRNGKey(0)
    k_x, k_p = jax.random.split(key)

    input_dim, hidden_dim1, hidden_dim2 = 4, 16, 8
    params = init_params(k_p, input_dim, hidden_dim1, hidden_dim2)

    B = 4096                                   # small demo batch; still a 2-step grid
    x = jax.random.normal(k_x, (B, input_dim), jnp.float32)
    ref = reference_forward(x, params)

    # f32 streaming path (native (B, 4) layout, no transpose/pad in the wrapper).
    out = jax.block_until_ready(titanic_mlp_forward(x, params))
    assert out.shape == (B, 1)
    assert jnp.allclose(out, ref, atol=5e-3, rtol=1e-3)

    # Ragged batch: partial last grid block, masked inside the kernel (no jnp.pad).
    B2 = 1000
    out2 = jax.block_until_ready(titanic_mlp_forward(x[:B2], params))
    assert out2.shape == (B2, 1)
    assert jnp.allclose(out2, ref[:B2], atol=5e-3, rtol=1e-3)

    # bf16 streaming + bf16 output (halves read and write traffic; bf16 w1 feeds the
    # MXU directly, accumulation stays f32).  Input precision drop is a documented
    # numerical contract of this path.
    x_bf16 = x.astype(jnp.bfloat16)            # in a real pipeline the producer emits bf16
    out3 = jax.block_until_ready(
        titanic_mlp_forward(x_bf16, params, out_dtype=jnp.bfloat16))
    assert out3.shape == (B, 1) and out3.dtype == jnp.bfloat16
    assert jnp.allclose(out3.astype(jnp.float32), ref, atol=5e-2, rtol=5e-2)

    print("KERNEL_OK")
</pallas_src>

<mosaic_0001>
module attributes {stable_mosaic.version = 11 : i64} {
  func.func @kernel(%arg0: i32, %arg1: memref<2048x4xf32, #tpu.memory_space<vmem>>, %arg2: memref<4x16xf32, #tpu.memory_space<vmem>>, %arg3: memref<1x16xf32, #tpu.memory_space<vmem>>, %arg4: memref<16x8xf32, #tpu.memory_space<vmem>>, %arg5: memref<1x8xf32, #tpu.memory_space<vmem>>, %arg6: memref<1x8xf32, #tpu.memory_space<vmem>>, %arg7: memref<1x1xf32, #tpu.memory_space<vmem>>, %arg8: memref<2048x1xf32, #tpu.memory_space<vmem>>) attributes {dimension_semantics = [#tpu.dimension_semantics<parallel>], iteration_bounds = array<i64: 2>, scalar_prefetch = 0 : i64, scratch_operands = 0 : i64, tpu.core_type = #tpu.core_type<tc>, window_params = [{transform_indices = @transform_0, window_bounds = array<i64: 2048, 4>}, {pipeline_mode = #tpu.pipeline_mode<synchronous>, transform_indices = @transform_1, window_bounds = array<i64: 4, 16>}, {pipeline_mode = #tpu.pipeline_mode<synchronous>, transform_indices = @transform_2, window_bounds = array<i64: 1, 16>}, {pipeline_mode = #tpu.pipeline_mode<synchronous>, transform_indices = @transform_3, window_bounds = array<i64: 16, 8>}, {pipeline_mode = #tpu.pipeline_mode<synchronous>, transform_indices = @transform_4, window_bounds = array<i64: 1, 8>}, {pipeline_mode = #tpu.pipeline_mode<synchronous>, transform_indices = @transform_5, window_bounds = array<i64: 1, 8>}, {pipeline_mode = #tpu.pipeline_mode<synchronous>, transform_indices = @transform_6, window_bounds = array<i64: 1, 1>}, {transform_indices = @transform_7, window_bounds = array<i64: 2048, 1>}]} {
    %c0 = arith.constant 0 : index
    %c0_0 = arith.constant 0 : index
    %0 = vector.load %arg2[%c0, %c0_0] : memref<4x16xf32, #tpu.memory_space<vmem>>, vector<4x16xf32>
    %c0_1 = arith.constant 0 : index
    %c0_2 = arith.constant 0 : index
    %1 = vector.load %arg3[%c0_1, %c0_2] : memref<1x16xf32, #tpu.memory_space<vmem>>, vector<1x16xf32>
    %c0_3 = arith.constant 0 : index
    %c0_4 = arith.constant 0 : index
    %2 = vector.load %arg4[%c0_3, %c0_4] : memref<16x8xf32, #tpu.memory_space<vmem>>, vector<16x8xf32>
    %c0_5 = arith.constant 0 : index
    %c0_6 = arith.constant 0 : index
    %3 = vector.load %arg5[%c0_5, %c0_6] : memref<1x8xf32, #tpu.memory_space<vmem>>, vector<1x8xf32>
    %c0_7 = arith.constant 0 : index
    %c0_8 = arith.constant 0 : index
    %4 = vector.load %arg6[%c0_7, %c0_8] : memref<1x8xf32, #tpu.memory_space<vmem>>, vector<1x8xf32>
    %c0_9 = arith.constant 0 : index
    %c0_10 = arith.constant 0 : index
    %5 = vector.load %arg7[%c0_9, %c0_10] : memref<1x1xf32, #tpu.memory_space<vmem>>, vector<1x1xf32>
    %c0_11 = arith.constant 0 : index
    %c0_12 = arith.constant 0 : index
    %6 = vector.load %arg1[%c0_11, %c0_12] : memref<2048x4xf32, #tpu.memory_space<vmem>>, vector<2048x4xf32>
    %cst = arith.constant dense<0.000000e+00> : vector<2048x16xf32>
    %7 = tpu.matmul %6, %0, %cst {dimension_numbers = #tpu.dot_dimension_numbers<[1], [0], [0], [1], [0, 0, 1, 1], [], []>} : vector<2048x4xf32>, vector<4x16xf32>, vector<2048x16xf32> -> vector<2048x16xf32>
    %8 = vector.broadcast %1 : vector<1x16xf32> to vector<2048x16xf32>
    %9 = arith.addf %7, %8 : vector<2048x16xf32>
    %cst_13 = arith.constant 0.000000e+00 : f32
    %10 = vector.broadcast %cst_13 : f32 to vector<2048x16xf32>
    %11 = arith.maximumf %9, %10 : vector<2048x16xf32>
    %cst_14 = arith.constant dense<0.000000e+00> : vector<2048x8xf32>
    %12 = tpu.matmul %11, %2, %cst_14 {dimension_numbers = #tpu.dot_dimension_numbers<[1], [0], [0], [1], [0, 0, 1, 1], [], []>} : vector<2048x16xf32>, vector<16x8xf32>, vector<2048x8xf32> -> vector<2048x8xf32>
    %13 = vector.broadcast %3 : vector<1x8xf32> to vector<2048x8xf32>
    %14 = arith.addf %12, %13 : vector<2048x8xf32>
    %cst_15 = arith.constant 0.000000e+00 : f32
    %15 = vector.broadcast %cst_15 : f32 to vector<2048x8xf32>
    %16 = arith.maximumf %14, %15 : vector<2048x8xf32>
    %17 = vector.broadcast %4 : vector<1x8xf32> to vector<2048x8xf32>
    %18 = arith.mulf %16, %17 : vector<2048x8xf32>
    %cst_16 = arith.constant dense<0.000000e+00> : vector<2048xf32>
    %19 = vector.multi_reduction <add>, %18, %cst_16 [1] : vector<2048x8xf32> to vector<2048xf32>
    %20 = vector.shape_cast %19 : vector<2048xf32> to vector<2048x1xf32>
    %21 = vector.broadcast %5 : vector<1x1xf32> to vector<2048x1xf32>
    %22 = arith.addf %20, %21 : vector<2048x1xf32>
    %cst_17 = arith.constant 5.000000e-01 : f32
    %23 = vector.broadcast %cst_17 : f32 to vector<2048x1xf32>
    %24 = arith.mulf %23, %22 : vector<2048x1xf32>
    %25 = math.tanh %24 : vector<2048x1xf32>
    %cst_18 = arith.constant 5.000000e-01 : f32
    %26 = vector.broadcast %cst_18 : f32 to vector<2048x1xf32>
    %27 = arith.mulf %26, %25 : vector<2048x1xf32>
    %cst_19 = arith.constant 5.000000e-01 : f32
    %28 = vector.broadcast %cst_19 : f32 to vector<2048x1xf32>
    %29 = arith.addf %27, %28 : vector<2048x1xf32>
    %c0_20 = arith.constant 0 : index
    %c0_21 = arith.constant 0 : index
    %30 = vector.load %arg8[%c0_20, %c0_21] : memref<2048x1xf32, #tpu.memory_space<vmem>>, vector<2048x1xf32>
    tpu.vector_store %arg8[%c0_20, %c0_21], %29 {strides = array<i32>} : memref<2048x1xf32, #tpu.memory_space<vmem>>, vector<2048x1xf32>,
    return
  }
  func.func @transform_0(%arg0: i32) -> (i32, i32) {
    %c0_i32 = arith.constant 0 : i32
    %c0_i32_0 = arith.constant 0 : i32
    return %arg0, %c0_i32 : i32, i32
  }
  func.func @transform_1(%arg0: i32) -> (i32, i32) {
    %c0_i32 = arith.constant 0 : i32
    %c0_i32_0 = arith.constant 0 : i32
    %c0_i32_1 = arith.constant 0 : i32
    return %c0_i32, %c0_i32_0 : i32, i32
  }
  func.func @transform_2(%arg0: i32) -> (i32, i32) {
    %c0_i32 = arith.constant 0 : i32
    %c0_i32_0 = arith.constant 0 : i32
    %c0_i32_1 = arith.constant 0 : i32
    return %c0_i32, %c0_i32_0 : i32, i32
  }
  func.func @transform_3(%arg0: i32) -> (i32, i32) {
    %c0_i32 = arith.constant 0 : i32
    %c0_i32_0 = arith.constant 0 : i32
    %c0_i32_1 = arith.constant 0 : i32
    return %c0_i32, %c0_i32_0 : i32, i32
  }
  func.func @transform_4(%arg0: i32) -> (i32, i32) {
    %c0_i32 = arith.constant 0 : i32
    %c0_i32_0 = arith.constant 0 : i32
    %c0_i32_1 = arith.constant 0 : i32
    return %c0_i32, %c0_i32_0 : i32, i32
  }
  func.func @transform_5(%arg0: i32) -> (i32, i32) {
    %c0_i32 = arith.constant 0 : i32
    %c0_i32_0 = arith.constant 0 : i32
    %c0_i32_1 = arith.constant 0 : i32
    return %c0_i32, %c0_i32_0 : i32, i32
  }
  func.func @transform_6(%arg0: i32) -> (i32, i32) {
    %c0_i32 = arith.constant 0 : i32
    %c0_i32_0 = arith.constant 0 : i32
    %c0_i32_1 = arith.constant 0 : i32
    return %c0_i32, %c0_i32_0 : i32, i32
  }
  func.func @transform_7(%arg0: i32) -> (i32, i32) {
    %c0_i32 = arith.constant 0 : i32
    %c0_i32_0 = arith.constant 0 : i32
    return %arg0, %c0_i32 : i32, i32
  }
}

</mosaic_0001>

<bundles_post_ra>
// kernel: tpu_custom_call.1
= control target key start
LH: loop header
LB: loop body
LE: loop exit
PB: predicated region body
PF: predicated region fallthrough
CT: control target
= control target key end

     0   :  { %s10348_s26 = smov 0   ;;  %s14483_s0 = inlined_call_operand.vmem [shape: f32[4096,4], index: 0, kind: input, shape index: {}]   ;;  %s14484_s1 = inlined_call_operand.vmem [shape: f32[4,16], index: 1, kind: input, shape index: {}]   ;;  %s14485_s2 = inlined_call_operand.vmem [shape: f32[1,16], index: 2, kind: input, shape index: {}]   ;;  %s14486_s3 = inlined_call_operand.vmem [shape: f32[16,8], index: 3, kind: input, shape index: {}]   ;;  %s14487_s4 = inlined_call_operand.vmem [shape: f32[1,8], index: 4, kind: input, shape index: {}]   ;;  %s14488_s5 = inlined_call_operand.vmem [shape: f32[1,8], index: 5, kind: input, shape index: {}]   ;;  %s14489_s6 = inlined_call_operand.<no memory space> [shape: f32[1,1], index: 6, kind: input, shape index: {}]   ;;  %s14490_s7 = inlined_call_operand.vmem [shape: f32[4096,1], index: 7, kind: output, shape index: {}]  }
   0x1   :  { %v12_v0 = vstv %s14489_s6 }
   0x2   :  { %13 = vst [vmem:[#allocation2] sm:$0x1] %v12_v0 }
   0x3 LB: > { %s7933_s27 = sadd.s32 4294967295, %s10303_s26   ;;  %p7937_p0 = scmp.ge.s32.totalorder %s10303_s26, 1  ;;  %s10303_s26 = sphi %s10348_s26, %s19_s26  }
   0x4   : > { %p240_p1 = scmp.lt.s32.totalorder %s10303_s26, 3 }
   0x6   : > { %p241_p2 = pnand %p7937_p0, %p240_p1 }
   0x8   : > { %244 = sbr.rel (%p241_p2) target bundleno = 1213 (0x4bd), region = 48 }
   0xf   : > { %v284_v1 = vld [vmem:[%s14484_s1] sm:$0xf]  ;;  %vm1322_vm0 = vcmask 1043456   ;;  %s7938_s6 = sshll.u32 %s7933_s27, 8  ;;  %vm553_vm1 = vcmask 31744   ;;  %v287_v48 = vld [vmem:[%s14486_s3 + $0x8] sm:$0xff] }
  0x10   : > { %8976 = vmatprep.subr.msk.mxu0 %vm1322_vm0, %v284_v1  ;;  %p273_p3 = scmp.lt.s32.totalorder %s7938_s6, 511  ;;  %v286_v47 = vld [vmem:[%s14486_s3] sm:$0xff]  ;;  %vm2933_vm2 = vcmask 130048   ;;  %vm5565_vm3 = vcmask 64512   ;;  %vm7620_vm4 = vcmask 7168  }
  0x11   : > { %8977 = vmatpush3.msk.msra.mxu0 %vm1322_vm0, %v284_v1  ;;  %v9750_v50 = vpack.c.bf16 %v287_v48, %v286_v47  ;;  %v10591_v48 = vld [vmem:[%s14485_s2] ss:$0 sm:$0xff] }
  0x12   : > { %s14544_s6 = smov (!%p273_p3, %s7938_s6), 511 }
  0x13   : > { %s7939_s30 = sshll.u32 %s14544_s6, 3  ;;  %9751 = vmatprep.subr.bf16.mxu1 %v9750_v50 }
  0x14   : > { %s10367_s10 = scalar_lea.vmem %s14483_s0, %s7939_s30  ;;  %9753 = vmatpush3.bf16.msra.mxu1 %v9750_v50  ;;  %s11576_s12 = scalar_lea.vmem %s14490_s7, %s7939_s30 }
  0x15   : > { %v291_v2 = vld [vmem:[%s10367_s10] sm:$0xff]  ;;  %v292_v3 = vld [vmem:[%s10367_s10 + $0x8] sm:$0xff]  ;;  %v293_v4 = vld [vmem:[%s10367_s10 + $0x10] sm:$0xff] }
  0x16   : > { %8978 = vmatprep.mubr.msk.f32.mxu0 %vm553_vm1, %v291_v2  ;;  %v294_v5 = vld [vmem:[%s10367_s10 + $0x18] sm:$0xff]  ;;  %v295_v6 = vld [vmem:[%s10367_s10 + $0x20] sm:$0xff]  ;;  %v296_v7 = vld [vmem:[%s10367_s10 + $0x28] sm:$0xff] }
  0x17   : > { %8979 = vmatmul.mubr.msk.f32.vlgmr.msra.gmra.mrb[0].mxu0 %vm553_vm1, %v292_v3  ;;  %v297_v8 = vld [vmem:[%s10367_s10 + $0x30] sm:$0xff]  ;;  %v298_v9 = vld [vmem:[%s10367_s10 + $0x38] sm:$0xff]  ;;  %v299_v10 = vld [vmem:[%s10367_s10 + $0x40] sm:$0xff] }
  0x18   : > { %8981 = vmatprep.mubr.msk.f32.mxu0 %vm553_vm1, %v293_v4  ;;  %v300_v11 = vld [vmem:[%s10367_s10 + $0x48] sm:$0xff]  ;;  %v301_v12 = vld [vmem:[%s10367_s10 + $0x50] sm:$0xff]  ;;  %v302_v13 = vld [vmem:[%s10367_s10 + $0x58] sm:$0xff] }
  0x19   : > { %v303_v14 = vld [vmem:[%s10367_s10 + $0x60] sm:$0xff]  ;;  %v304_v15 = vld [vmem:[%s10367_s10 + $0x68] sm:$0xff]  ;;  %v305_v16 = vld [vmem:[%s10367_s10 + $0x70] sm:$0xff] }
  0x1a   : > { %v306_v17 = vld [vmem:[%s10367_s10 + $0x78] sm:$0xff]  ;;  %v307_v18 = vld [vmem:[%s10367_s10 + $0x80] sm:$0xff]  ;;  %v308_v19 = vld [vmem:[%s10367_s10 + $0x88] sm:$0xff] }
  0x1b   : > { %8982 = vmatmul.mubr.msk.f32.gmra.mrb[2].mxu0 %vm553_vm1, %v294_v5  ;;  %v309_v20 = vld [vmem:[%s10367_s10 + $0x90] sm:$0xff]  ;;  %v310_v21 = vld [vmem:[%s10367_s10 + $0x98] sm:$0xff]  ;;  %v311_v22 = vld [vmem:[%s10367_s10 + $0xa0] sm:$0xff] }
  0x1c   : > { %8984 = vmatprep.mubr.msk.f32.mxu0 %vm553_vm1, %v295_v6  ;;  %v312_v23 = vld [vmem:[%s10367_s10 + $0xa8] sm:$0xff]  ;;  %v313_v24 = vld [vmem:[%s10367_s10 + $0xb0] sm:$0xff]  ;;  %v314_v25 = vld [vmem:[%s10367_s10 + $0xb8] sm:$0xff] }
  0x1d   : > { %v315_v26 = vld [vmem:[%s10367_s10 + $0xc0] sm:$0xff]  ;;  %v316_v27 = vld [vmem:[%s10367_s10 + $0xc8] sm:$0xff]  ;;  %v317_v28 = vld [vmem:[%s10367_s10 + $0xd0] sm:$0xff] }
  0x1e   : > { %v318_v29 = vld [vmem:[%s10367_s10 + $0xd8] sm:$0xff]  ;;  %v319_v30 = vld [vmem:[%s10367_s10 + $0xe0] sm:$0xff]  ;;  %v320_v31 = vld [vmem:[%s10367_s10 + $0xe8] sm:$0xff] }
  0x1f   : > { %8985 = vmatmul.mubr.msk.f32.gmra.mrb[4].mxu0 %vm553_vm1, %v296_v7  ;;  %v321_v32 = vld [vmem:[%s10367_s10 + $0xf0] sm:$0xff]  ;;  %v322_v33 = vld [vmem:[%s10367_s10 + $0xf8] sm:$0xff]  ;;  %v323_v34 = vld [vmem:[%s10367_s10 + $0x100] sm:$0xff] }
  0x20   : > { %8987 = vmatprep.mubr.msk.f32.mxu0 %vm553_vm1, %v297_v8  ;;  %v324_v35 = vld [vmem:[%s10367_s10 + $0x108] sm:$0xff]  ;;  %v325_v36 = vld [vmem:[%s10367_s10 + $0x110] sm:$0xff]  ;;  %v326_v37 = vld [vmem:[%s10367_s10 + $0x118] sm:$0xff] }
  0x21   : > { %v327_v38 = vld [vmem:[%s10367_s10 + $0x120] sm:$0xff]  ;;  %v328_v39 = vld [vmem:[%s10367_s10 + $0x128] sm:$0xff]  ;;  %v329_v40 = vld [vmem:[%s10367_s10 + $0x130] sm:$0xff] }
  0x22   : > { %v330_v41 = vld [vmem:[%s10367_s10 + $0x138] sm:$0xff]  ;;  %v331_v42 = vld [vmem:[%s10367_s10 + $0x140] sm:$0xff]  ;;  %v332_v43 = vld [vmem:[%s10367_s10 + $0x148] sm:$0xff] }
  0x23   : > { %8988 = vmatmul.mubr.msk.f32.gmra.mrb[6].mxu0 %vm553_vm1, %v298_v9  ;;  %v333_v44 = vld [vmem:[%s10367_s10 + $0x150] sm:$0xff]  ;;  %v334_v45 = vld [vmem:[%s10367_s10 + $0x158] sm:$0xff]  ;;  %v335_v46 = vld [vmem:[%s10367_s10 + $0x160] sm:$0xff] }
  0x24   : > { %8990 = vmatprep.mubr.msk.f32.mxu0 %vm553_vm1, %v299_v10  ;;  %v336_v49 = vld [vmem:[%s10367_s10 + $0x168] sm:$0xff]  ;;  %v337_v51 = vld [vmem:[%s10367_s10 + $0x170] sm:$0xff]  ;;  %v338_v52 = vld [vmem:[%s10367_s10 + $0x178] sm:$0xff] }
  0x25   : > { %v339_v53 = vld [vmem:[%s10367_s10 + $0x180] sm:$0xff]  ;;  %v340_v54 = vld [vmem:[%s10367_s10 + $0x188] sm:$0xff]  ;;  %v341_v55 = vld [vmem:[%s10367_s10 + $0x190] sm:$0xff] }
  0x26   : > { %v342_v56 = vld [vmem:[%s10367_s10 + $0x198] sm:$0xff]  ;;  %v343_v57 = vld [vmem:[%s10367_s10 + $0x1a0] sm:$0xff]  ;;  %v344_v58 = vld [vmem:[%s10367_s10 + $0x1a8] sm:$0xff] }
  0x27   : > { %8991 = vmatmul.mubr.msk.f32.gmra.mrb[8].mxu0 %vm553_vm1, %v300_v11  ;;  %v345_v59 = vld [vmem:[%s10367_s10 + $0x1b0] sm:$0xff]  ;;  %v346_v60 = vld [vmem:[%s10367_s10 + $0x1b8] sm:$0xff]  ;;  %v347_v61 = vld [vmem:[%s10367_s10 + $0x1c0] sm:$0xff] }
  0x28   : > { %8993 = vmatprep.mubr.msk.f32.mxu0 %vm553_vm1, %v301_v12  ;;  %v348_v62 = vld [vmem:[%s10367_s10 + $0x1c8] sm:$0xff]  ;;  %v349_v63 = vld [vmem:[%s10367_s10 + $0x1d0] sm:$0xff]  ;;  %v350_v0 = vld [vmem:[%s10367_s10 + $0x1d8] sm:$0xff] }
  0x29   : > { %v351_v1 = vld [vmem:[%s10367_s10 + $0x1e0] sm:$0xff]  ;;  %v352_v2 = vld [vmem:[%s10367_s10 + $0x1e8] sm:$0xff]  ;;  %v353_v3 = vld [vmem:[%s10367_s10 + $0x1f0] sm:$0xff] }
  0x2a   : > { %v354_v4 = vld [vmem:[%s10367_s10 + $0x1f8] sm:$0xff]  ;;  %v355_v5 = vld [vmem:[%s10367_s10 + $0x200] sm:$0xff]  ;;  %v356_v6 = vld [vmem:[%s10367_s10 + $0x208] sm:$0xff] }
  0x2b   : > { %8994 = vmatmul.mubr.msk.f32.gmra.mrb[10].mxu0 %vm553_vm1, %v302_v13  ;;  %v357_v7 = vld [vmem:[%s10367_s10 + $0x210] sm:$0xff]  ;;  %v358_v8 = vld [vmem:[%s10367_s10 + $0x218] sm:$0xff]  ;;  %v359_v9 = vld [vmem:[%s10367_s10 + $0x220] sm:$0xff] }
  0x2c   : > { %8996 = vmatprep.mubr.msk.f32.mxu0 %vm553_vm1, %v303_v14  ;;  %v360_v10 = vld [vmem:[%s10367_s10 + $0x228] sm:$0xff]  ;;  %v361_v11 = vld [vmem:[%s10367_s10 + $0x230] sm:$0xff]  ;;  %v362_v12 = vld [vmem:[%s10367_s10 + $0x238] sm:$0xff] }
  0x2d   : > { %v363_v13 = vld [vmem:[%s10367_s10 + $0x240] sm:$0xff]  ;;  %v364_v14 = vld [vmem:[%s10367_s10 + $0x248] sm:$0xff]  ;;  %v397_v47 = vld [vmem:[%s10367_s10 + $0x350] sm:$0xff] }
  0x2e   : > { %v399_v50 = vld [vmem:[%s10367_s10 + $0x360] sm:$0xff] }
  0x2f   : > { %8997 = vmatmul.mubr.msk.f32.gmra.mrb[12].mxu0 %vm553_vm1, %v304_v15  ;;  %v365_v15 = vld [vmem:[%s10367_s10 + $0x250] sm:$0xff] }
  0x30   : > { %8999 = vmatprep.mubr.msk.f32.mxu0 %vm553_vm1, %v305_v16  ;;  %v366_v16 = vld [vmem:[%s10367_s10 + $0x258] sm:$0xff] }
  0x33   : > { %9000 = vmatmul.mubr.msk.f32.gmra.mrb[14].mxu0 %vm553_vm1, %v306_v17  ;;  %v367_v17 = vld [vmem:[%s10367_s10 + $0x260] sm:$0xff] }
  0x34   : > { %9002 = vmatprep.mubr.msk.f32.mxu0 %vm553_vm1, %v307_v18  ;;  %v368_v18 = vld [vmem:[%s10367_s10 + $0x268] sm:$0xff] }
  0x37   : > { %9003 = vmatmul.mubr.msk.f32.gmra.mrb[16].mxu0 %vm553_vm1, %v308_v19  ;;  %v369_v19 = vld [vmem:[%s10367_s10 + $0x270] sm:$0xff] }
  0x38   : > { %9005 = vmatprep.mubr.msk.f32.mxu0 %vm553_vm1, %v309_v20  ;;  %v370_v20 = vld [vmem:[%s10367_s10 + $0x278] sm:$0xff] }
  0x3b   : > { %9006 = vmatmul.mubr.msk.f32.gmra.mrb[18].mxu0 %vm553_vm1, %v310_v21  ;;  %v371_v21 = vld [vmem:[%s10367_s10 + $0x280] sm:$0xff] }
  0x3c   : > { %9008 = vmatprep.mubr.msk.f32.mxu0 %vm553_vm1, %v311_v22  ;;  %v372_v22 = vld [vmem:[%s10367_s10 + $0x288] sm:$0xff] }
  0x3f   : > { %9009 = vmatmul.mubr.msk.f32.gmra.mrb[20].mxu0 %vm553_vm1, %v312_v23  ;;  %v373_v23 = vld [vmem:[%s10367_s10 + $0x290] sm:$0xff] }
  0x40   : > { %9011 = vmatprep.mubr.msk.f32.mxu0 %vm553_vm1, %v313_v24  ;;  %v374_v24 = vld [vmem:[%s10367_s10 + $0x298] sm:$0xff] }
  0x43   : > { %9012 = vmatmul.mubr.msk.f32.gmra.mrb[22].mxu0 %vm553_vm1, %v314_v25  ;;  %v375_v25 = vld [vmem:[%s10367_s10 + $0x2a0] sm:$0xff] }
  0x44   : > { %9014 = vmatprep.mubr.msk.f32.mxu0 %vm553_vm1, %v315_v26  ;;  %v376_v26 = vld [vmem:[%s10367_s10 + $0x2a8] sm:$0xff] }
  0x47   : > { %9015 = vmatmul.mubr.msk.f32.gmra.mrb[24].mxu0 %vm553_vm1, %v316_v27  ;;  %v377_v27 = vld [vmem:[%s10367_s10 + $0x2b0] sm:$0xff] }
  0x48   : > { %9017 = vmatprep.mubr.msk.f32.mxu0 %vm553_vm1, %v317_v28  ;;  %v378_v28 = vld [vmem:[%s10367_s10 + $0x2b8] sm:$0xff] }
  0x4b   : > { %9018 = vmatmul.mubr.msk.f32.gmra.mrb[26].mxu0 %vm553_vm1, %v318_v29  ;;  %v379_v29 = vld [vmem:[%s10367_s10 + $0x2c0] sm:$0xff] }
  0x4c   : > { %9020 = vmatprep.mubr.msk.f32.mxu0 %vm553_vm1, %v319_v30  ;;  %v380_v30 = vld [vmem:[%s10367_s10 + $0x2c8] sm:$0xff] }
  0x4f   : > { %9021 = vmatmul.mubr.msk.f32.gmra.mrb[28].mxu0 %vm553_vm1, %v320_v31  ;;  %v381_v31 = vld [vmem:[%s10367_s10 + $0x2d0] sm:$0xff] }
  0x50   : > { %9023 = vmatprep.mubr.msk.f32.mxu0 %vm553_vm1, %v321_v32  ;;  %v382_v32 = vld [vmem:[%s10367_s10 + $0x2d8] sm:$0xff] }
  0x53   : > { %9024 = vmatmul.mubr.msk.f32.gmra.mrb[30].mxu0 %vm553_vm1, %v322_v33  ;;  %v383_v33 = vld [vmem:[%s10367_s10 + $0x2e0] sm:$0xff] }
  0x54   : > { %9026 = vmatprep.mubr.msk.f32.mxu0 %vm553_vm1, %v323_v34  ;;  %v384_v34 = vld [vmem:[%s10367_s10 + $0x2e8] sm:$0xff] }
  0x57   : > { %9027 = vmatmul.mubr.msk.f32.gmra.mrb[32].mxu0 %vm553_vm1, %v324_v35  ;;  %v385_v35 = vld [vmem:[%s10367_s10 + $0x2f0] sm:$0xff] }
  0x58   : > { %9029 = vmatprep.mubr.msk.f32.mxu0 %vm553_vm1, %v325_v36  ;;  %v386_v36 = vld [vmem:[%s10367_s10 + $0x2f8] sm:$0xff] }
  0x5b   : > { %9030 = vmatmul.mubr.msk.f32.gmra.mrb[34].mxu0 %vm553_vm1, %v326_v37  ;;  %v387_v37 = vld [vmem:[%s10367_s10 + $0x300] sm:$0xff] }
  0x5c   : > { %9032 = vmatprep.mubr.msk.f32.mxu0 %vm553_vm1, %v327_v38  ;;  %v388_v38 = vld [vmem:[%s10367_s10 + $0x308] sm:$0xff] }
  0x5f   : > { %9033 = vmatmul.mubr.msk.f32.gmra.mrb[36].mxu0 %vm553_vm1, %v328_v39  ;;  %v389_v39 = vld [vmem:[%s10367_s10 + $0x310] sm:$0xff] }
  0x60   : > { %9035 = vmatprep.mubr.msk.f32.mxu0 %vm553_vm1, %v329_v40  ;;  %v390_v40 = vld [vmem:[%s10367_s10 + $0x318] sm:$0xff] }
  0x63   : > { %9036 = vmatmul.mubr.msk.f32.gmra.mrb[38].mxu0 %vm553_vm1, %v330_v41  ;;  %v391_v41 = vld [vmem:[%s10367_s10 + $0x320] sm:$0xff] }
  0x64   : > { %9038 = vmatprep.mubr.msk.f32.mxu0 %vm553_vm1, %v331_v42  ;;  %v392_v42 = vld [vmem:[%s10367_s10 + $0x328] sm:$0xff] }
  0x67   : > { %9039 = vmatmul.mubr.msk.f32.gmra.mrb[40].mxu0 %vm553_vm1, %v332_v43  ;;  %v393_v43 = vld [vmem:[%s10367_s10 + $0x330] sm:$0xff] }
  0x68   : > { %9041 = vmatprep.mubr.msk.f32.mxu0 %vm553_vm1, %v333_v44  ;;  %v394_v44 = vld [vmem:[%s10367_s10 + $0x338] sm:$0xff] }
  0x6b   : > { %9042 = vmatmul.mubr.msk.f32.gmra.mrb[42].mxu0 %vm553_vm1, %v334_v45  ;;  %v395_v45 = vld [vmem:[%s10367_s10 + $0x340] sm:$0xff] }
  0x6c   : > { %9044 = vmatprep.mubr.msk.f32.mxu0 %vm553_vm1, %v335_v46  ;;  %v396_v46 = vld [vmem:[%s10367_s10 + $0x348] sm:$0xff] }
  0x6f   : > { %9045 = vmatmul.mubr.msk.f32.gmra.mrb[44].mxu0 %vm553_vm1, %v336_v49  ;;  %v398_v49 = vld [vmem:[%s10367_s10 + $0x358] sm:$0xff] }
  0x70   : > { %9047 = vmatprep.mubr.msk.f32.mxu0 %vm553_vm1, %v337_v51 }
  0x73   : > { %9048 = vmatmul.mubr.msk.f32.gmra.mrb[46].mxu0 %vm553_vm1, %v338_v52 }
  0x74   : > { %9050 = vmatprep.mubr.msk.f32.mxu0 %vm553_vm1, %v339_v53 }
  0x77   : > { %9051 = vmatmul.mubr.msk.f32.gmra.mrb[48].mxu0 %vm553_vm1, %v340_v54 }
  0x78   : > { %9053 = vmatprep.mubr.msk.f32.mxu0 %vm553_vm1, %v341_v55  ;;  %v400_v55 = vld [vmem:[%s10367_s10 + $0x368] sm:$0xff] }
  0x7b   : > { %9054 = vmatmul.mubr.msk.f32.gmra.mrb[50].mxu0 %vm553_vm1, %v342_v56  ;;  %v401_v56 = vld [vmem:[%s10367_s10 + $0x370] sm:$0xff] }
  0x7c   : > { %9056 = vmatprep.mubr.msk.f32.mxu0 %vm553_vm1, %v343_v57 }
  0x7f   : > { %9057 = vmatmul.mubr.msk.f32.gmra.mrb[52].mxu0 %vm553_vm1, %v344_v58 }
  0x80   : > { %9059 = vmatprep.mubr.msk.f32.mxu0 %vm553_vm1, %v345_v59 }
  0x83   : > { %9060 = vmatmul.mubr.msk.f32.gmra.mrb[54].mxu0 %vm553_vm1, %v346_v60 }
  0x84   : > { %9062 = vmatprep.mubr.msk.f32.mxu0 %vm553_vm1, %v347_v61 }
  0x87   : > { %9063 = vmatmul.mubr.msk.f32.gmra.mrb[56].mxu0 %vm553_vm1, %v348_v62 }
  0x88   : > { %9065 = vmatprep.mubr.msk.f32.mxu0 %vm553_vm1, %v349_v63  ;;  %v402_v63 = vld [vmem:[%s10367_s10 + $0x378] sm:$0xff] }
  0x8b   : > { %9066 = vmatmul.mubr.msk.f32.gmra.mrb[58].mxu0 %vm553_vm1, %v350_v0  ;;  %v403_v0 = vld [vmem:[%s10367_s10 + $0x380] sm:$0xff] }
  0x8c   : > { %9068 = vmatprep.mubr.msk.f32.mxu0 %vm553_vm1, %v351_v1 }
  0x8f   : > { %9069 = vmatmul.mubr.msk.f32.gmra.mrb[60].mxu0 %vm553_vm1, %v352_v2 }
  0x90   : > { %9071 = vmatprep.mubr.msk.f32.mxu0 %vm553_vm1, %v353_v3 }
  0x93   : > { %9072 = vmatmul.mubr.msk.f32.gmra.mrb[62].mxu0 %vm553_vm1, %v354_v4 }
  0x94   : > { %9074 = vmatprep.mubr.msk.f32.mxu0 %vm553_vm1, %v355_v5 }
  0x97   : > { %9075 = vmatmul.mubr.msk.f32.gmra.mrb[64].mxu0 %vm553_vm1, %v356_v6 }
  0x98   : > { %9077 = vmatprep.mubr.msk.f32.mxu0 %vm553_vm1, %v357_v7  ;;  %v404_v7 = vld [vmem:[%s10367_s10 + $0x388] sm:$0xff] }
  0x9b   : > { %9078 = vmatmul.mubr.msk.f32.gmra.mrb[66].mxu0 %vm553_vm1, %v358_v8 }
  0x9c   : > { %9080 = vmatprep.mubr.msk.f32.mxu0 %vm553_vm1, %v359_v9  ;;  %v405_v9 = vld [vmem:[%s10367_s10 + $0x390] sm:$0xff] }
  0x9f   : > { %9081 = vmatmul.mubr.msk.f32.gmra.mrb[68].mxu0 %vm553_vm1, %v360_v10 }
  0xa0   : > { %9083 = vmatprep.mubr.msk.f32.mxu0 %vm553_vm1, %v361_v11 }
  0xa3   : > { %9084 = vmatmul.mubr.msk.f32.gmra.mrb[70].mxu0 %vm553_vm1, %v362_v12 }
  0xa4   : > { %9086 = vmatprep.mubr.msk.f32.mxu0 %vm553_vm1, %v363_v13 }
  0xa7   : > { %9087 = vmatmul.mubr.msk.f32.gmra.mrb[72].mxu0 %vm553_vm1, %v364_v14 }
  0xa8   : > { %9089 = vmatprep.mubr.msk.f32.mxu0 %vm553_vm1, %v365_v15  ;;  %v406_v15 = vld [vmem:[%s10367_s10 + $0x398] sm:$0xff] }
  0xab   : > { %9090 = vmatmul.mubr.msk.f32.gmra.mrb[74].mxu0 %vm553_vm1, %v366_v16 }
  0xac   : > { %9092 = vmatprep.mubr.msk.f32.mxu0 %vm553_vm1, %v367_v17  ;;  %v407_v17 = vld [vmem:[%s10367_s10 + $0x3a0] sm:$0xff] }
  0xaf   : > { %9093 = vmatmul.mubr.msk.f32.gmra.mrb[76].mxu0 %vm553_vm1, %v368_v18 }
  0xb0   : > { %9095 = vmatprep.mubr.msk.f32.mxu0 %vm553_vm1, %v369_v19 }
  0xb3   : > { %9096 = vmatmul.mubr.msk.f32.gmra.mrb[78].mxu0 %vm553_vm1, %v370_v20 }
  0xb4   : > { %9098 = vmatprep.mubr.msk.f32.mxu0 %vm553_vm1, %v371_v21 }
  0xb7   : > { %9099 = vmatmul.mubr.msk.f32.gmra.mrb[80].mxu0 %vm553_vm1, %v372_v22 }
  0xb8   : > { %9101 = vmatprep.mubr.msk.f32.mxu0 %vm553_vm1, %v373_v23  ;;  %v408_v23 = vld [vmem:[%s10367_s10 + $0x3a8] sm:$0xff] }
  0xbb   : > { %9102 = vmatmul.mubr.msk.f32.gmra.mrb[82].mxu0 %vm553_vm1, %v374_v24 }
  0xbc   : > { %9104 = vmatprep.mubr.msk.f32.mxu0 %vm553_vm1, %v375_v25  ;;  %v409_v25 = vld [vmem:[%s10367_s10 + $0x3b0] sm:$0xff] }
  0xbf   : > { %9105 = vmatmul.mubr.msk.f32.gmra.mrb[84].mxu0 %vm553_vm1, %v376_v26 }
  0xc0   : > { %9107 = vmatprep.mubr.msk.f32.mxu0 %vm553_vm1, %v377_v27 }
  0xc3   : > { %9108 = vmatmul.mubr.msk.f32.gmra.mrb[86].mxu0 %vm553_vm1, %v378_v28 }
  0xc4   : > { %9110 = vmatprep.mubr.msk.f32.mxu0 %vm553_vm1, %v379_v29 }
  0xc7   : > { %9111 = vmatmul.mubr.msk.f32.gmra.mrb[88].mxu0 %vm553_vm1, %v380_v30 }
  0xc8   : > { %9113 = vmatprep.mubr.msk.f32.mxu0 %vm553_vm1, %v381_v31  ;;  %v410_v31 = vld [vmem:[%s10367_s10 + $0x3b8] sm:$0xff] }
  0xcb   : > { %9114 = vmatmul.mubr.msk.f32.gmra.mrb[90].mxu0 %vm553_vm1, %v382_v32 }
  0xcc   : > { %9116 = vmatprep.mubr.msk.f32.mxu0 %vm553_vm1, %v383_v33  ;;  %v411_v33 = vld [vmem:[%s10367_s10 + $0x3c0] sm:$0xff] }
  0xcf   : > { %9117 = vmatmul.mubr.msk.f32.gmra.mrb[92].mxu0 %vm553_vm1, %v384_v34 }
  0xd0   : > { %9119 = vmatprep.mubr.msk.f32.mxu0 %vm553_vm1, %v385_v35 }
  0xd3   : > { %9120 = vmatmul.mubr.msk.f32.gmra.mrb[94].mxu0 %vm553_vm1, %v386_v36 }
  0xd4   : > { %9122 = vmatprep.mubr.msk.f32.mxu0 %vm553_vm1, %v387_v37 }
  0xd7   : > { %9123 = vmatmul.mubr.msk.f32.gmra.mrb[96].mxu0 %vm553_vm1, %v388_v38 }
  0xd8   : > { %9125 = vmatprep.mubr.msk.f32.mxu0 %vm553_vm1, %v389_v39  ;;  %v412_v39 = vld [vmem:[%s10367_s10 + $0x3c8] sm:$0xff] }
  0xdb   : > { %9126 = vmatmul.mubr.msk.f32.gmra.mrb[98].mxu0 %vm553_vm1, %v390_v40 }
  0xdc   : > { %9128 = vmatprep.mubr.msk.f32.mxu0 %vm553_vm1, %v391_v41  ;;  %v413_v41 = vld [vmem:[%s10367_s10 + $0x3d0] sm:$0xff] }
  0xdf   : > { %9129 = vmatmul.mubr.msk.f32.gmra.mrb[100].mxu0 %vm553_vm1, %v392_v42 }
  0xe0   : > { %9131 = vmatprep.mubr.msk.f32.mxu0 %vm553_vm1, %v393_v43 }
  0xe3   : > { %9132 = vmatmul.mubr.msk.f32.gmra.mrb[102].mxu0 %vm553_vm1, %v394_v44 }
  0xe4   : > { %9134 = vmatprep.mubr.msk.f32.mxu0 %vm553_vm1, %v395_v45 }
  0xe7   : > { %9135 = vmatmul.mubr.msk.f32.gmra.mrb[104].mxu0 %vm553_vm1, %v396_v46 }
  0xe8   : > { %9137 = vmatprep.mubr.msk.f32.mxu0 %vm553_vm1, %v397_v47  ;;  %v414_v47 = vld [vmem:[%s10367_s10 + $0x3d8] sm:$0xff] }
  0xea   : > { %v8980_v51 = vpop.f32.mrb[0].mxu0 }
  0xeb   : > { %v1398_v52 = vadd.f32 %v8980_v51, %v10591_v48  ;;  %v1392_v53 = vpop.f32.mrb[1].mxu0  ;;  %9138 = vmatmul.mubr.msk.f32.gmra.mrb[106].mxu0 %vm553_vm1, %v398_v49 }
  0xec   : > { %v1393_v54 = vadd.f32 %v10591_v48, %v1392_v53  ;;  %9140 = vmatprep.mubr.msk.f32.mxu0 %vm553_vm1, %v399_v50  ;;  %v415_v50 = vld [vmem:[%s10367_s10 + $0x3e0] sm:$0xff] }
  0xed   : > { %v2672_v59 = vmax.f32 %v1398_v52, 0.0 }
  0xee   : > { %v2671_v57 = vmax.f32 %v1393_v54, 0.0  ;;  %v8983_v58 = vpop.f32.mrb[2].mxu0 }
  0xef   : > { %v1408_v60 = vadd.f32 %v8983_v58, %v10591_v48  ;;  %v1402_v61 = vpop.f32.mrb[3].mxu0  ;;  %9141 = vmatmul.mubr.msk.f32.gmra.mrb[108].mxu0 %vm553_vm1, %v400_v55  ;;  %v417_v58 = vld [vmem:[%s10367_s10 + $0x3f0] sm:$0xff] }
  0xf0   : > { %v1403_v62 = vadd.f32 %v10591_v48, %v1402_v61  ;;  %9366 = vmatprep.mubr.msk.f32.mxu1 %vm2933_vm2, %v2671_v57  ;;  %9143 = vmatprep.mubr.msk.f32.mxu0 %vm553_vm1, %v401_v56  ;;  %v416_v56 = vld [vmem:[%s10367_s10 + $0x3e8] sm:$0xff] }
  0xf1   : > { %9367 = vmatmul.mubr.msk.f32.vlgmr.msra.gmra.mrb[0].mxu1 %vm2933_vm2, %v2672_v59  ;;  %v2674_v3 = vmax.f32 %v1408_v60, 0.0 }
  0xf2   : > { %v2673_v1 = vmax.f32 %v1403_v62, 0.0  ;;  %v8986_v2 = vpop.f32.mrb[4].mxu0 }
  0xf3   : > { %v1418_v4 = vadd.f32 %v8986_v2, %v10591_v48  ;;  %v1412_v5 = vpop.f32.mrb[5].mxu0  ;;  %9144 = vmatmul.mubr.msk.f32.gmra.mrb[110].mxu0 %vm553_vm1, %v402_v63  ;;  %v419_v2 = vld [vmem:[%s10367_s10 + $0x400] sm:$0xff] }
  0xf4   : > { %v1413_v6 = vadd.f32 %v10591_v48, %v1412_v5  ;;  %9369 = vmatprep.mubr.msk.f32.mxu1 %vm2933_vm2, %v2673_v1  ;;  %9146 = vmatprep.mubr.msk.f32.mxu0 %vm553_vm1, %v403_v0  ;;  %v418_v0 = vld [vmem:[%s10367_s10 + $0x3f8] sm:$0xff] }
  0xf5   : > { %v2676_v8 = vmax.f32 %v1418_v4, 0.0  ;;  %9370 = vmatmul.mubr.msk.f32.gmra.mrb[2].mxu1 %vm2933_vm2, %v2674_v3 }
  0xf6   : > { %v2675_v10 = vmax.f32 %v1413_v6, 0.0  ;;  %v8989_v11 = vpop.f32.mrb[6].mxu0 }
  0xf7   : > { %v1428_v12 = vadd.f32 %v8989_v11, %v10591_v48  ;;  %v1422_v13 = vpop.f32.mrb[7].mxu0  ;;  %9147 = vmatmul.mubr.msk.f32.gmra.mrb[112].mxu0 %vm553_vm1, %v404_v7 }
  0xf8   : > { %v1423_v14 = vadd.f32 %v10591_v48, %v1422_v13  ;;  %9372 = vmatprep.mubr.msk.f32.mxu1 %vm2933_vm2, %v2675_v10  ;;  %9149 = vmatprep.mubr.msk.f32.mxu0 %vm553_vm1, %v405_v9  ;;  %v421_v10 = vld [vmem:[%s10367_s10 + $0x410] sm:$0xff] }
  0xf9   : > { %v2678_v16 = vmax.f32 %v1428_v12, 0.0  ;;  %9373 = vmatmul.mubr.msk.f32.gmra.mrb[4].mxu1 %vm2933_vm2, %v2676_v8  ;;  %v420_v8 = vld [vmem:[%s10367_s10 + $0x408] sm:$0xff] }
  0xfa   : > { %v2677_v18 = vmax.f32 %v1423_v14, 0.0  ;;  %v8992_v19 = vpop.f32.mrb[8].mxu0 }
  0xfb   : > { %v1438_v20 = vadd.f32 %v8992_v19, %v10591_v48  ;;  %v1432_v21 = vpop.f32.mrb[9].mxu0  ;;  %9150 = vmatmul.mubr.msk.f32.gmra.mrb[114].mxu0 %vm553_vm1, %v406_v15 }
  0xfc   : > { %v1433_v22 = vadd.f32 %v10591_v48, %v1432_v21  ;;  %9375 = vmatprep.mubr.msk.f32.mxu1 %vm2933_vm2, %v2677_v18  ;;  %9152 = vmatprep.mubr.msk.f32.mxu0 %vm553_vm1, %v407_v17  ;;  %v423_v18 = vld [vmem:[%s10367_s10 + $0x420] sm:$0xff] }
  0xfd   : > { %v2680_v24 = vmax.f32 %v1438_v20, 0.0  ;;  %9376 = vmatmul.mubr.msk.f32.gmra.mrb[6].mxu1 %vm2933_vm2, %v2678_v16  ;;  %v422_v16 = vld [vmem:[%s10367_s10 + $0x418] sm:$0xff] }
  0xfe   : > { %v2679_v26 = vmax.f32 %v1433_v22, 0.0  ;;  %v8995_v27 = vpop.f32.mrb[10].mxu0 }
  0xff   : > { %v1448_v28 = vadd.f32 %v8995_v27, %v10591_v48  ;;  %v1442_v29 = vpop.f32.mrb[11].mxu0  ;;  %9153 = vmatmul.mubr.msk.f32.gmra.mrb[116].mxu0 %vm553_vm1, %v408_v23 }
 0x100   : > { %v1443_v30 = vadd.f32 %v10591_v48, %v1442_v29  ;;  %9378 = vmatprep.mubr.msk.f32.mxu1 %vm2933_vm2, %v2679_v26  ;;  %9155 = vmatprep.mubr.msk.f32.mxu0 %vm553_vm1, %v409_v25  ;;  %v425_v26 = vld [vmem:[%s10367_s10 + $0x430] sm:$0xff] }
 0x101   : > { %v2682_v32 = vmax.f32 %v1448_v28, 0.0  ;;  %9379 = vmatmul.mubr.msk.f32.gmra.mrb[8].mxu1 %vm2933_vm2, %v2680_v24  ;;  %v424_v24 = vld [vmem:[%s10367_s10 + $0x428] sm:$0xff] }
 0x102   : > { %v2681_v34 = vmax.f32 %v1443_v30, 0.0  ;;  %v8998_v35 = vpop.f32.mrb[12].mxu0 }
 0x103   : > { %v1458_v36 = vadd.f32 %v8998_v35, %v10591_v48  ;;  %v1452_v37 = vpop.f32.mrb[13].mxu0  ;;  %9156 = vmatmul.mubr.msk.f32.gmra.mrb[118].mxu0 %vm553_vm1, %v410_v31 }
 0x104   : > { %v1453_v38 = vadd.f32 %v10591_v48, %v1452_v37  ;;  %9381 = vmatprep.mubr.msk.f32.mxu1 %vm2933_vm2, %v2681_v34  ;;  %9158 = vmatprep.mubr.msk.f32.mxu0 %vm553_vm1, %v411_v33  ;;  %v427_v34 = vld [vmem:[%s10367_s10 + $0x440] sm:$0xff] }
 0x105   : > { %v2684_v40 = vmax.f32 %v1458_v36, 0.0  ;;  %9382 = vmatmul.mubr.msk.f32.gmra.mrb[10].mxu1 %vm2933_vm2, %v2682_v32  ;;  %v426_v32 = vld [vmem:[%s10367_s10 + $0x438] sm:$0xff] }
 0x106   : > { %v2683_v42 = vmax.f32 %v1453_v38, 0.0  ;;  %v9001_v43 = vpop.f32.mrb[14].mxu0 }
 0x107   : > { %v1468_v44 = vadd.f32 %v9001_v43, %v10591_v48  ;;  %v1462_v45 = vpop.f32.mrb[15].mxu0  ;;  %9159 = vmatmul.mubr.msk.f32.gmra.mrb[120].mxu0 %vm553_vm1, %v412_v39 }
 0x108   : > { %v1463_v46 = vadd.f32 %v10591_v48, %v1462_v45  ;;  %9384 = vmatprep.mubr.msk.f32.mxu1 %vm2933_vm2, %v2683_v42  ;;  %9161 = vmatprep.mubr.msk.f32.mxu0 %vm553_vm1, %v413_v41  ;;  %v429_v42 = vld [vmem:[%s10367_s10 + $0x450] sm:$0xff] }
 0x109   : > { %v2686_v49 = vmax.f32 %v1468_v44, 0.0  ;;  %9385 = vmatmul.mubr.msk.f32.gmra.mrb[12].mxu1 %vm2933_vm2, %v2684_v40  ;;  %v428_v40 = vld [vmem:[%s10367_s10 + $0x448] sm:$0xff] }
 0x10a   : > { %v2685_v51 = vmax.f32 %v1463_v46, 0.0  ;;  %v9004_v52 = vpop.f32.mrb[16].mxu0 }
 0x10b   : > { %v1478_v53 = vadd.f32 %v9004_v52, %v10591_v48  ;;  %v1472_v54 = vpop.f32.mrb[17].mxu0  ;;  %9162 = vmatmul.mubr.msk.f32.gmra.mrb[122].mxu0 %vm553_vm1, %v414_v47 }
 0x10c   : > { %v1473_v55 = vadd.f32 %v10591_v48, %v1472_v54  ;;  %9387 = vmatprep.mubr.msk.f32.mxu1 %vm2933_vm2, %v2685_v51  ;;  %9164 = vmatprep.mubr.msk.f32.mxu0 %vm553_vm1, %v415_v50  ;;  %v431_v51 = vld [vmem:[%s10367_s10 + $0x460] sm:$0xff] }
 0x10d   : > { %v2688_v57 = vmax.f32 %v1478_v53, 0.0  ;;  %9388 = vmatmul.mubr.msk.f32.gmra.mrb[14].mxu1 %vm2933_vm2, %v2686_v49  ;;  %v430_v49 = vld [vmem:[%s10367_s10 + $0x458] sm:$0xff] }
 0x10e   : > { %v2687_v59 = vmax.f32 %v1473_v55, 0.0  ;;  %v9007_v60 = vpop.f32.mrb[18].mxu0 }
 0x10f   : > { %v1488_v61 = vadd.f32 %v9007_v60, %v10591_v48  ;;  %v1482_v62 = vpop.f32.mrb[19].mxu0  ;;  %9165 = vmatmul.mubr.msk.f32.gmra.mrb[124].mxu0 %vm553_vm1, %v416_v56 }
 0x110   : > { %v1483_v63 = vadd.f32 %v10591_v48, %v1482_v62  ;;  %9390 = vmatprep.mubr.msk.f32.mxu1 %vm2933_vm2, %v2687_v59  ;;  %9167 = vmatprep.mubr.msk.f32.mxu0 %vm553_vm1, %v417_v58  ;;  %v433_v59 = vld [vmem:[%s10367_s10 + $0x470] sm:$0xff] }
 0x111   : > { %v2690_v1 = vmax.f32 %v1488_v61, 0.0  ;;  %9391 = vmatmul.mubr.msk.f32.gmra.mrb[16].mxu1 %vm2933_vm2, %v2688_v57  ;;  %v432_v57 = vld [vmem:[%s10367_s10 + $0x468] sm:$0xff] }
 0x112   : > { %v2689_v3 = vmax.f32 %v1483_v63, 0.0  ;;  %v9010_v4 = vpop.f32.mrb[20].mxu0 }
 0x113   : > { %v1498_v5 = vadd.f32 %v9010_v4, %v10591_v48  ;;  %v1492_v6 = vpop.f32.mrb[21].mxu0  ;;  %9168 = vmatmul.mubr.msk.f32.gmra.mrb[126].mxu0 %vm553_vm1, %v418_v0 }
 0x114   : > { %v1493_v7 = vadd.f32 %v10591_v48, %v1492_v6  ;;  %9393 = vmatprep.mubr.msk.f32.mxu1 %vm2933_vm2, %v2689_v3  ;;  %9170 = vmatprep.mubr.msk.f32.mxu0 %vm553_vm1, %v419_v2  ;;  %v435_v3 = vld [vmem:[%s10367_s10 + $0x480] sm:$0xff] }
 0x115   : > { %v2692_v9 = vmax.f32 %v1498_v5, 0.0  ;;  %9394 = vmatmul.mubr.msk.f32.gmra.mrb[18].mxu1 %vm2933_vm2, %v2690_v1  ;;  %v434_v1 = vld [vmem:[%s10367_s10 + $0x478] sm:$0xff] }
 0x116   : > { %v2691_v11 = vmax.f32 %v1493_v7, 0.0  ;;  %v9013_v12 = vpop.f32.mrb[22].mxu0 }
 0x117   : > { %v1508_v13 = vadd.f32 %v9013_v12, %v10591_v48  ;;  %v1502_v14 = vpop.f32.mrb[23].mxu0  ;;  %9171 = vmatmul.mubr.msk.f32.gmra.mrb[128].mxu0 %vm553_vm1, %v420_v8 }
 0x118   : > { %v1503_v15 = vadd.f32 %v10591_v48, %v1502_v14  ;;  %9396 = vmatprep.mubr.msk.f32.mxu1 %vm2933_vm2, %v2691_v11  ;;  %9173 = vmatprep.mubr.msk.f32.mxu0 %vm553_vm1, %v421_v10  ;;  %v437_v11 = vld [vmem:[%s10367_s10 + $0x490] sm:$0xff] }
 0x119   : > { %v2694_v17 = vmax.f32 %v1508_v13, 0.0  ;;  %9397 = vmatmul.mubr.msk.f32.gmra.mrb[20].mxu1 %vm2933_vm2, %v2692_v9  ;;  %v436_v9 = vld [vmem:[%s10367_s10 + $0x488] sm:$0xff] }
 0x11a   : > { %v2693_v19 = vmax.f32 %v1503_v15, 0.0  ;;  %v9016_v20 = vpop.f32.mrb[24].mxu0 }
 0x11b   : > { %v1518_v21 = vadd.f32 %v9016_v20, %v10591_v48  ;;  %v1512_v22 = vpop.f32.mrb[25].mxu0  ;;  %9174 = vmatmul.mubr.msk.f32.gmra.mrb[130].mxu0 %vm553_vm1, %v422_v16 }
 0x11c   : > { %v1513_v23 = vadd.f32 %v10591_v48, %v1512_v22  ;;  %9399 = vmatprep.mubr.msk.f32.mxu1 %vm2933_vm2, %v2693_v19  ;;  %9176 = vmatprep.mubr.msk.f32.mxu0 %vm553_vm1, %v423_v18  ;;  %v439_v19 = vld [vmem:[%s10367_s10 + $0x4a0] sm:$0xff] }
 0x11d   : > { %v2696_v25 = vmax.f32 %v1518_v21, 0.0  ;;  %9400 = vmatmul.mubr.msk.f32.gmra.mrb[22].mxu1 %vm2933_vm2, %v2694_v17  ;;  %v438_v17 = vld [vmem:[%s10367_s10 + $0x498] sm:$0xff] }
 0x11e   : > { %v2695_v27 = vmax.f32 %v1513_v23, 0.0  ;;  %v9019_v28 = vpop.f32.mrb[26].mxu0 }
 0x11f   : > { %v1528_v29 = vadd.f32 %v9019_v28, %v10591_v48  ;;  %v1522_v30 = vpop.f32.mrb[27].mxu0  ;;  %9177 = vmatmul.mubr.msk.f32.gmra.mrb[132].mxu0 %vm553_vm1, %v424_v24 }
 0x120   : > { %v1523_v31 = vadd.f32 %v10591_v48, %v1522_v30  ;;  %9402 = vmatprep.mubr.msk.f32.mxu1 %vm2933_vm2, %v2695_v27  ;;  %9179 = vmatprep.mubr.msk.f32.mxu0 %vm553_vm1, %v425_v26  ;;  %v441_v27 = vld [vmem:[%s10367_s10 + $0x4b0] sm:$0xff] }
 0x121   : > { %v2698_v33 = vmax.f32 %v1528_v29, 0.0  ;;  %9403 = vmatmul.mubr.msk.f32.gmra.mrb[24].mxu1 %vm2933_vm2, %v2696_v25  ;;  %v440_v25 = vld [vmem:[%s10367_s10 + $0x4a8] sm:$0xff] }
 0x122   : > { %v2697_v35 = vmax.f32 %v1523_v31, 0.0  ;;  %v9022_v36 = vpop.f32.mrb[28].mxu0 }
 0x123   : > { %v1538_v37 = vadd.f32 %v9022_v36, %v10591_v48  ;;  %v1532_v38 = vpop.f32.mrb[29].mxu0  ;;  %9180 = vmatmul.mubr.msk.f32.gmra.mrb[134].mxu0 %vm553_vm1, %v426_v32 }
 0x124   : > { %v1533_v39 = vadd.f32 %v10591_v48, %v1532_v38  ;;  %9405 = vmatprep.mubr.msk.f32.mxu1 %vm2933_vm2, %v2697_v35  ;;  %9182 = vmatprep.mubr.msk.f32.mxu0 %vm553_vm1, %v427_v34  ;;  %v443_v35 = vld [vmem:[%s10367_s10 + $0x4c0] sm:$0xff] }
 0x125   : > { %v2700_v41 = vmax.f32 %v1538_v37, 0.0  ;;  %9406 = vmatmul.mubr.msk.f32.gmra.mrb[26].mxu1 %vm2933_vm2, %v2698_v33  ;;  %v442_v33 = vld [vmem:[%s10367_s10 + $0x4b8] sm:$0xff] }
 0x126   : > { %v2699_v43 = vmax.f32 %v1533_v39, 0.0  ;;  %v9025_v44 = vpop.f32.mrb[30].mxu0 }
 0x127   : > { %v1548_v45 = vadd.f32 %v9025_v44, %v10591_v48  ;;  %v1542_v46 = vpop.f32.mrb[31].mxu0  ;;  %9183 = vmatmul.mubr.msk.f32.gmra.mrb[136].mxu0 %vm553_vm1, %v428_v40 }
 0x128   : > { %v1543_v47 = vadd.f32 %v10591_v48, %v1542_v46  ;;  %9408 = vmatprep.mubr.msk.f32.mxu1 %vm2933_vm2, %v2699_v43  ;;  %9185 = vmatprep.mubr.msk.f32.mxu0 %vm553_vm1, %v429_v42  ;;  %v445_v43 = vld [vmem:[%s10367_s10 + $0x4d0] sm:$0xff] }
 0x129   : > { %v2702_v50 = vmax.f32 %v1548_v45, 0.0  ;;  %9409 = vmatmul.mubr.msk.f32.gmra.mrb[28].mxu1 %vm2933_vm2, %v2700_v41  ;;  %v444_v41 = vld [vmem:[%s10367_s10 + $0x4c8] sm:$0xff] }
 0x12a   : > { %v2701_v52 = vmax.f32 %v1543_v47, 0.0  ;;  %v9028_v53 = vpop.f32.mrb[32].mxu0 }
 0x12b   : > { %v1558_v54 = vadd.f32 %v9028_v53, %v10591_v48  ;;  %v1552_v55 = vpop.f32.mrb[33].mxu0  ;;  %9186 = vmatmul.mubr.msk.f32.gmra.mrb[138].mxu0 %vm553_vm1, %v430_v49 }
 0x12c   : > { %v1553_v56 = vadd.f32 %v10591_v48, %v1552_v55  ;;  %9411 = vmatprep.mubr.msk.f32.mxu1 %vm2933_vm2, %v2701_v52  ;;  %9188 = vmatprep.mubr.msk.f32.mxu0 %vm553_vm1, %v431_v51  ;;  %v447_v52 = vld [vmem:[%s10367_s10 + $0x4e0] sm:$0xff] }
 0x12d   : > { %v2704_v58 = vmax.f32 %v1558_v54, 0.0  ;;  %9412 = vmatmul.mubr.msk.f32.gmra.mrb[30].mxu1 %vm2933_vm2, %v2702_v50  ;;  %v446_v50 = vld [vmem:[%s10367_s10 + $0x4d8] sm:$0xff] }
 0x12e   : > { %v2703_v60 = vmax.f32 %v1553_v56, 0.0  ;;  %v9031_v61 = vpop.f32.mrb[34].mxu0 }
 0x12f   : > { %v1568_v62 = vadd.f32 %v9031_v61, %v10591_v48  ;;  %v1562_v63 = vpop.f32.mrb[35].mxu0  ;;  %9189 = vmatmul.mubr.msk.f32.gmra.mrb[140].mxu0 %vm553_vm1, %v432_v57 }
 0x130   : > { %v1563_v0 = vadd.f32 %v10591_v48, %v1562_v63  ;;  %9414 = vmatprep.mubr.msk.f32.mxu1 %vm2933_vm2, %v2703_v60  ;;  %9191 = vmatprep.mubr.msk.f32.mxu0 %vm553_vm1, %v433_v59  ;;  %v449_v60 = vld [vmem:[%s10367_s10 + $0x4f0] sm:$0xff] }
 0x131   : > { %v2706_v2 = vmax.f32 %v1568_v62, 0.0  ;;  %9415 = vmatmul.mubr.msk.f32.gmra.mrb[32].mxu1 %vm2933_vm2, %v2704_v58  ;;  %v448_v58 = vld [vmem:[%s10367_s10 + $0x4e8] sm:$0xff] }
 0x132   : > { %v2705_v4 = vmax.f32 %v1563_v0, 0.0  ;;  %v9034_v5 = vpop.f32.mrb[36].mxu0 }
 0x133   : > { %v1578_v6 = vadd.f32 %v9034_v5, %v10591_v48  ;;  %v1572_v7 = vpop.f32.mrb[37].mxu0  ;;  %9192 = vmatmul.mubr.msk.f32.gmra.mrb[142].mxu0 %vm553_vm1, %v434_v1 }
 0x134   : > { %v1573_v8 = vadd.f32 %v10591_v48, %v1572_v7  ;;  %9417 = vmatprep.mubr.msk.f32.mxu1 %vm2933_vm2, %v2705_v4  ;;  %9194 = vmatprep.mubr.msk.f32.mxu0 %vm553_vm1, %v435_v3  ;;  %v451_v4 = vld [vmem:[%s10367_s10 + $0x500] sm:$0xff] }
 0x135   : > { %v2708_v10 = vmax.f32 %v1578_v6, 0.0  ;;  %9418 = vmatmul.mubr.msk.f32.gmra.mrb[34].mxu1 %vm2933_vm2, %v2706_v2  ;;  %v450_v2 = vld [vmem:[%s10367_s10 + $0x4f8] sm:$0xff] }
 0x136   : > { %v2707_v12 = vmax.f32 %v1573_v8, 0.0  ;;  %v9037_v13 = vpop.f32.mrb[38].mxu0 }
 0x137   : > { %v1588_v14 = vadd.f32 %v9037_v13, %v10591_v48  ;;  %v1582_v15 = vpop.f32.mrb[39].mxu0  ;;  %9195 = vmatmul.mubr.msk.f32.gmra.mrb[144].mxu0 %vm553_vm1, %v436_v9 }
 0x138   : > { %v1583_v16 = vadd.f32 %v10591_v48, %v1582_v15  ;;  %9420 = vmatprep.mubr.msk.f32.mxu1 %vm2933_vm2, %v2707_v12  ;;  %9197 = vmatprep.mubr.msk.f32.mxu0 %vm553_vm1, %v437_v11  ;;  %v453_v12 = vld [vmem:[%s10367_s10 + $0x510] sm:$0xff] }
 0x139   : > { %v2710_v18 = vmax.f32 %v1588_v14, 0.0  ;;  %9421 = vmatmul.mubr.msk.f32.gmra.mrb[36].mxu1 %vm2933_vm2, %v2708_v10  ;;  %v452_v10 = vld [vmem:[%s10367_s10 + $0x508] sm:$0xff] }
 0x13a   : > { %v2709_v20 = vmax.f32 %v1583_v16, 0.0  ;;  %v9040_v21 = vpop.f32.mrb[40].mxu0 }
 0x13b   : > { %v1598_v22 = vadd.f32 %v9040_v21, %v10591_v48  ;;  %v1592_v23 = vpop.f32.mrb[41].mxu0  ;;  %9198 = vmatmul.mubr.msk.f32.gmra.mrb[146].mxu0 %vm553_vm1, %v438_v17 }
 0x13c   : > { %v1593_v24 = vadd.f32 %v10591_v48, %v1592_v23  ;;  %9423 = vmatprep.mubr.msk.f32.mxu1 %vm2933_vm2, %v2709_v20  ;;  %9200 = vmatprep.mubr.msk.f32.mxu0 %vm553_vm1, %v439_v19  ;;  %v455_v20 = vld [vmem:[%s10367_s10 + $0x520] sm:$0xff] }
 0x13d   : > { %v2712_v26 = vmax.f32 %v1598_v22, 0.0  ;;  %9424 = vmatmul.mubr.msk.f32.gmra.mrb[38].mxu1 %vm2933_vm2, %v2710_v18  ;;  %v454_v18 = vld [vmem:[%s10367_s10 + $0x518] sm:$0xff] }
 0x13e   : > { %v2711_v28 = vmax.f32 %v1593_v24, 0.0  ;;  %v9043_v29 = vpop.f32.mrb[42].mxu0 }
 0x13f   : > { %v1608_v30 = vadd.f32 %v9043_v29, %v10591_v48  ;;  %v1602_v31 = vpop.f32.mrb[43].mxu0  ;;  %9201 = vmatmul.mubr.msk.f32.gmra.mrb[148].mxu0 %vm553_vm1, %v440_v25 }
 0x140   : > { %v1603_v32 = vadd.f32 %v10591_v48, %v1602_v31  ;;  %9426 = vmatprep.mubr.msk.f32.mxu1 %vm2933_vm2, %v2711_v28  ;;  %9203 = vmatprep.mubr.msk.f32.mxu0 %vm553_vm1, %v441_v27  ;;  %v457_v28 = vld [vmem:[%s10367_s10 + $0x530] sm:$0xff] }
 0x141   : > { %v2714_v34 = vmax.f32 %v1608_v30, 0.0  ;;  %9427 = vmatmul.mubr.msk.f32.gmra.mrb[40].mxu1 %vm2933_vm2, %v2712_v26  ;;  %v456_v26 = vld [vmem:[%s10367_s10 + $0x528] sm:$0xff] }
 0x142   : > { %v2713_v36 = vmax.f32 %v1603_v32, 0.0  ;;  %v9046_v37 = vpop.f32.mrb[44].mxu0 }
 0x143   : > { %v1618_v38 = vadd.f32 %v9046_v37, %v10591_v48  ;;  %v1612_v39 = vpop.f32.mrb[45].mxu0  ;;  %9204 = vmatmul.mubr.msk.f32.gmra.mrb[150].mxu0 %vm553_vm1, %v442_v33 }
 0x144   : > { %v1613_v40 = vadd.f32 %v10591_v48, %v1612_v39  ;;  %9429 = vmatprep.mubr.msk.f32.mxu1 %vm2933_vm2, %v2713_v36  ;;  %9206 = vmatprep.mubr.msk.f32.mxu0 %vm553_vm1, %v443_v35  ;;  %v459_v36 = vld [vmem:[%s10367_s10 + $0x540] sm:$0xff] }
 0x145   : > { %v2716_v42 = vmax.f32 %v1618_v38, 0.0  ;;  %9430 = vmatmul.mubr.msk.f32.gmra.mrb[42].mxu1 %vm2933_vm2, %v2714_v34  ;;  %v458_v34 = vld [vmem:[%s10367_s10 + $0x538] sm:$0xff] }
 0x146   : > { %v2715_v44 = vmax.f32 %v1613_v40, 0.0  ;;  %v9049_v45 = vpop.f32.mrb[46].mxu0 }
 0x147   : > { %v1628_v46 = vadd.f32 %v9049_v45, %v10591_v48  ;;  %v1622_v47 = vpop.f32.mrb[47].mxu0  ;;  %9207 = vmatmul.mubr.msk.f32.gmra.mrb[152].mxu0 %vm553_vm1, %v444_v41 }
 0x148   : > { %v1623_v49 = vadd.f32 %v10591_v48, %v1622_v47  ;;  %9432 = vmatprep.mubr.msk.f32.mxu1 %vm2933_vm2, %v2715_v44  ;;  %9209 = vmatprep.mubr.msk.f32.mxu0 %vm553_vm1, %v445_v43  ;;  %v461_v44 = vld [vmem:[%s10367_s10 + $0x550] sm:$0xff] }
 0x149   : > { %v2718_v51 = vmax.f32 %v1628_v46, 0.0  ;;  %9433 = vmatmul.mubr.msk.f32.gmra.mrb[44].mxu1 %vm2933_vm2, %v2716_v42  ;;  %v460_v42 = vld [vmem:[%s10367_s10 + $0x548] sm:$0xff] }
 0x14a   : > { %v2717_v53 = vmax.f32 %v1623_v49, 0.0  ;;  %v9052_v54 = vpop.f32.mrb[48].mxu0 }
 0x14b   : > { %v1638_v55 = vadd.f32 %v9052_v54, %v10591_v48  ;;  %v1632_v56 = vpop.f32.mrb[49].mxu0  ;;  %9210 = vmatmul.mubr.msk.f32.gmra.mrb[154].mxu0 %vm553_vm1, %v446_v50 }
 0x14c   : > { %v1633_v57 = vadd.f32 %v10591_v48, %v1632_v56  ;;  %9435 = vmatprep.mubr.msk.f32.mxu1 %vm2933_vm2, %v2717_v53  ;;  %9212 = vmatprep.mubr.msk.f32.mxu0 %vm553_vm1, %v447_v52  ;;  %v463_v53 = vld [vmem:[%s10367_s10 + $0x560] sm:$0xff] }
 0x14d   : > { %v2720_v59 = vmax.f32 %v1638_v55, 0.0  ;;  %9436 = vmatmul.mubr.msk.f32.gmra.mrb[46].mxu1 %vm2933_vm2, %v2718_v51  ;;  %v462_v51 = vld [vmem:[%s10367_s10 + $0x558] sm:$0xff] }
 0x14e   : > { %v2719_v61 = vmax.f32 %v1633_v57, 0.0  ;;  %v9055_v62 = vpop.f32.mrb[50].mxu0 }
 0x14f   : > { %v1648_v63 = vadd.f32 %v9055_v62, %v10591_v48  ;;  %v1642_v0 = vpop.f32.mrb[51].mxu0  ;;  %9213 = vmatmul.mubr.msk.f32.gmra.mrb[156].mxu0 %vm553_vm1, %v448_v58 }
 0x150   : > { %v1643_v1 = vadd.f32 %v10591_v48, %v1642_v0  ;;  %9438 = vmatprep.mubr.msk.f32.mxu1 %vm2933_vm2, %v2719_v61  ;;  %9215 = vmatprep.mubr.msk.f32.mxu0 %vm553_vm1, %v449_v60  ;;  %v465_v61 = vld [vmem:[%s10367_s10 + $0x570] sm:$0xff] }
 0x151   : > { %v2722_v3 = vmax.f32 %v1648_v63, 0.0  ;;  %9439 = vmatmul.mubr.msk.f32.gmra.mrb[48].mxu1 %vm2933_vm2, %v2720_v59  ;;  %v464_v59 = vld [vmem:[%s10367_s10 + $0x568] sm:$0xff] }
 0x152   : > { %v2721_v5 = vmax.f32 %v1643_v1, 0.0  ;;  %v9058_v6 = vpop.f32.mrb[52].mxu0 }
 0x153   : > { %v1658_v7 = vadd.f32 %v9058_v6, %v10591_v48  ;;  %v1652_v8 = vpop.f32.mrb[53].mxu0  ;;  %9216 = vmatmul.mubr.msk.f32.gmra.mrb[158].mxu0 %vm553_vm1, %v450_v2 }
 0x154   : > { %v1653_v9 = vadd.f32 %v10591_v48, %v1652_v8  ;;  %9441 = vmatprep.mubr.msk.f32.mxu1 %vm2933_vm2, %v2721_v5  ;;  %9218 = vmatprep.mubr.msk.f32.mxu0 %vm553_vm1, %v451_v4  ;;  %v467_v5 = vld [vmem:[%s10367_s10 + $0x580] sm:$0xff] }
 0x155   : > { %v2724_v11 = vmax.f32 %v1658_v7, 0.0  ;;  %9442 = vmatmul.mubr.msk.f32.gmra.mrb[50].mxu1 %vm2933_vm2, %v2722_v3  ;;  %v466_v3 = vld [vmem:[%s10367_s10 + $0x578] sm:$0xff] }
 0x156   : > { %v2723_v13 = vmax.f32 %v1653_v9, 0.0  ;;  %v9061_v14 = vpop.f32.mrb[54].mxu0 }
 0x157   : > { %v1668_v15 = vadd.f32 %v9061_v14, %v10591_v48  ;;  %v1662_v16 = vpop.f32.mrb[55].mxu0  ;;  %9219 = vmatmul.mubr.msk.f32.gmra.mrb[160].mxu0 %vm553_vm1, %v452_v10 }
 0x158   : > { %v1663_v17 = vadd.f32 %v10591_v48, %v1662_v16  ;;  %9444 = vmatprep.mubr.msk.f32.mxu1 %vm2933_vm2, %v2723_v13  ;;  %9221 = vmatprep.mubr.msk.f32.mxu0 %vm553_vm1, %v453_v12  ;;  %v469_v13 = vld [vmem:[%s10367_s10 + $0x590] sm:$0xff] }
 0x159   : > { %v2726_v19 = vmax.f32 %v1668_v15, 0.0  ;;  %9445 = vmatmul.mubr.msk.f32.gmra.mrb[52].mxu1 %vm2933_vm2, %v2724_v11  ;;  %v468_v11 = vld [vmem:[%s10367_s10 + $0x588] sm:$0xff] }
 0x15a   : > { %v2725_v21 = vmax.f32 %v1663_v17, 0.0  ;;  %v9064_v22 = vpop.f32.mrb[56].mxu0 }
 0x15b   : > { %v1678_v23 = vadd.f32 %v9064_v22, %v10591_v48  ;;  %v1672_v24 = vpop.f32.mrb[57].mxu0  ;;  %9222 = vmatmul.mubr.msk.f32.gmra.mrb[162].mxu0 %vm553_vm1, %v454_v18 }
 0x15c   : > { %v1673_v25 = vadd.f32 %v10591_v48, %v1672_v24  ;;  %9447 = vmatprep.mubr.msk.f32.mxu1 %vm2933_vm2, %v2725_v21  ;;  %9224 = vmatprep.mubr.msk.f32.mxu0 %vm553_vm1, %v455_v20  ;;  %v471_v21 = vld [vmem:[%s10367_s10 + $0x5a0] sm:$0xff] }
 0x15d   : > { %v2728_v27 = vmax.f32 %v1678_v23, 0.0  ;;  %9448 = vmatmul.mubr.msk.f32.gmra.mrb[54].mxu1 %vm2933_vm2, %v2726_v19  ;;  %v470_v19 = vld [vmem:[%s10367_s10 + $0x598] sm:$0xff] }
 0x15e   : > { %v2727_v29 = vmax.f32 %v1673_v25, 0.0  ;;  %v9067_v30 = vpop.f32.mrb[58].mxu0 }
 0x15f   : > { %v1688_v31 = vadd.f32 %v9067_v30, %v10591_v48  ;;  %v1682_v32 = vpop.f32.mrb[59].mxu0  ;;  %9225 = vmatmul.mubr.msk.f32.gmra.mrb[164].mxu0 %vm553_vm1, %v456_v26 }
 0x160   : > { %v1683_v33 = vadd.f32 %v10591_v48, %v1682_v32  ;;  %9450 = vmatprep.mubr.msk.f32.mxu1 %vm2933_vm2, %v2727_v29  ;;  %9227 = vmatprep.mubr.msk.f32.mxu0 %vm553_vm1, %v457_v28  ;;  %v473_v29 = vld [vmem:[%s10367_s10 + $0x5b0] sm:$0xff] }
 0x161   : > { %v2730_v35 = vmax.f32 %v1688_v31, 0.0  ;;  %9451 = vmatmul.mubr.msk.f32.gmra.mrb[56].mxu1 %vm2933_vm2, %v2728_v27  ;;  %v472_v27 = vld [vmem:[%s10367_s10 + $0x5a8] sm:$0xff] }
 0x162   : > { %v2729_v37 = vmax.f32 %v1683_v33, 0.0  ;;  %v9070_v38 = vpop.f32.mrb[60].mxu0 }
 0x163   : > { %v1698_v39 = vadd.f32 %v9070_v38, %v10591_v48  ;;  %v1692_v40 = vpop.f32.mrb[61].mxu0  ;;  %9228 = vmatmul.mubr.msk.f32.gmra.mrb[166].mxu0 %vm553_vm1, %v458_v34 }
 0x164   : > { %v1693_v41 = vadd.f32 %v10591_v48, %v1692_v40  ;;  %9453 = vmatprep.mubr.msk.f32.mxu1 %vm2933_vm2, %v2729_v37  ;;  %9230 = vmatprep.mubr.msk.f32.mxu0 %vm553_vm1, %v459_v36  ;;  %v475_v37 = vld [vmem:[%s10367_s10 + $0x5c0] sm:$0xff] }
 0x165   : > { %v2732_v43 = vmax.f32 %v1698_v39, 0.0  ;;  %9454 = vmatmul.mubr.msk.f32.gmra.mrb[58].mxu1 %vm2933_vm2, %v2730_v35  ;;  %v474_v35 = vld [vmem:[%s10367_s10 + $0x5b8] sm:$0xff] }
 0x166   : > { %v2731_v45 = vmax.f32 %v1693_v41, 0.0  ;;  %v9073_v46 = vpop.f32.mrb[62].mxu0 }
 0x167   : > { %v1708_v47 = vadd.f32 %v9073_v46, %v10591_v48  ;;  %v1702_v49 = vpop.f32.mrb[63].mxu0  ;;  %9231 = vmatmul.mubr.msk.f32.gmra.mrb[168].mxu0 %vm553_vm1, %v460_v42 }
 0x168   : > { %v1703_v50 = vadd.f32 %v10591_v48, %v1702_v49  ;;  %9456 = vmatprep.mubr.msk.f32.mxu1 %vm2933_vm2, %v2731_v45  ;;  %9233 = vmatprep.mubr.msk.f32.mxu0 %vm553_vm1, %v461_v44  ;;  %v477_v45 = vld [vmem:[%s10367_s10 + $0x5d0] sm:$0xff] }
 0x169   : > { %v2734_v52 = vmax.f32 %v1708_v47, 0.0  ;;  %9457 = vmatmul.mubr.msk.f32.gmra.mrb[60].mxu1 %vm2933_vm2, %v2732_v43  ;;  %v476_v43 = vld [vmem:[%s10367_s10 + $0x5c8] sm:$0xff] }
 0x16a   : > { %v2733_v54 = vmax.f32 %v1703_v50, 0.0  ;;  %v9076_v55 = vpop.f32.mrb[64].mxu0 }
 0x16b   : > { %v1718_v56 = vadd.f32 %v9076_v55, %v10591_v48  ;;  %v1712_v57 = vpop.f32.mrb[65].mxu0  ;;  %9234 = vmatmul.mubr.msk.f32.gmra.mrb[170].mxu0 %vm553_vm1, %v462_v51 }
 0x16c   : > { %v1713_v58 = vadd.f32 %v10591_v48, %v1712_v57  ;;  %9459 = vmatprep.mubr.msk.f32.mxu1 %vm2933_vm2, %v2733_v54  ;;  %9236 = vmatprep.mubr.msk.f32.mxu0 %vm553_vm1, %v463_v53  ;;  %v479_v54 = vld [vmem:[%s10367_s10 + $0x5e0] sm:$0xff] }
 0x16d   : > { %v2736_v60 = vmax.f32 %v1718_v56, 0.0  ;;  %9460 = vmatmul.mubr.msk.f32.gmra.mrb[62].mxu1 %vm2933_vm2, %v2734_v52  ;;  %v478_v52 = vld [vmem:[%s10367_s10 + $0x5d8] sm:$0xff] }
 0x16e   : > { %v2735_v62 = vmax.f32 %v1713_v58, 0.0  ;;  %v9079_v63 = vpop.f32.mrb[66].mxu0 }
 0x16f   : > { %v1728_v0 = vadd.f32 %v9079_v63, %v10591_v48  ;;  %v1722_v1 = vpop.f32.mrb[67].mxu0  ;;  %9237 = vmatmul.mubr.msk.f32.gmra.mrb[172].mxu0 %vm553_vm1, %v464_v59 }
 0x170   : > { %v1723_v2 = vadd.f32 %v10591_v48, %v1722_v1  ;;  %9462 = vmatprep.mubr.msk.f32.mxu1 %vm2933_vm2, %v2735_v62  ;;  %9239 = vmatprep.mubr.msk.f32.mxu0 %vm553_vm1, %v465_v61  ;;  %v481_v62 = vld [vmem:[%s10367_s10 + $0x5f0] sm:$0xff] }
 0x171   : > { %v2738_v4 = vmax.f32 %v1728_v0, 0.0  ;;  %9463 = vmatmul.mubr.msk.f32.gmra.mrb[64].mxu1 %vm2933_vm2, %v2736_v60  ;;  %v480_v60 = vld [vmem:[%s10367_s10 + $0x5e8] sm:$0xff] }
 0x172   : > { %v2737_v6 = vmax.f32 %v1723_v2, 0.0  ;;  %v9082_v7 = vpop.f32.mrb[68].mxu0 }
 0x173   : > { %v1738_v8 = vadd.f32 %v9082_v7, %v10591_v48  ;;  %v1732_v9 = vpop.f32.mrb[69].mxu0  ;;  %9240 = vmatmul.mubr.msk.f32.gmra.mrb[174].mxu0 %vm553_vm1, %v466_v3 }
 0x174   : > { %v1733_v10 = vadd.f32 %v10591_v48, %v1732_v9  ;;  %9465 = vmatprep.mubr.msk.f32.mxu1 %vm2933_vm2, %v2737_v6  ;;  %9242 = vmatprep.mubr.msk.f32.mxu0 %vm553_vm1, %v467_v5  ;;  %v483_v6 = vld [vmem:[%s10367_s10 + $0x600] sm:$0xff] }
 0x175   : > { %v2740_v12 = vmax.f32 %v1738_v8, 0.0  ;;  %9466 = vmatmul.mubr.msk.f32.gmra.mrb[66].mxu1 %vm2933_vm2, %v2738_v4  ;;  %v482_v4 = vld [vmem:[%s10367_s10 + $0x5f8] sm:$0xff] }
 0x176   : > { %v2739_v14 = vmax.f32 %v1733_v10, 0.0  ;;  %v9085_v15 = vpop.f32.mrb[70].mxu0 }
 0x177   : > { %v1748_v16 = vadd.f32 %v9085_v15, %v10591_v48  ;;  %v1742_v17 = vpop.f32.mrb[71].mxu0  ;;  %9243 = vmatmul.mubr.msk.f32.gmra.mrb[176].mxu0 %vm553_vm1, %v468_v11 }
 0x178   : > { %v1743_v18 = vadd.f32 %v10591_v48, %v1742_v17  ;;  %9468 = vmatprep.mubr.msk.f32.mxu1 %vm2933_vm2, %v2739_v14  ;;  %9245 = vmatprep.mubr.msk.f32.mxu0 %vm553_vm1, %v469_v13  ;;  %v485_v14 = vld [vmem:[%s10367_s10 + $0x610] sm:$0xff]  ;;  %v10941_v17 = vld [vmem:[%s14485_s2] ss:$0 sm:$0xff] }
 0x179   : > { %v2742_v20 = vmax.f32 %v1748_v16, 0.0  ;;  %9469 = vmatmul.mubr.msk.f32.gmra.mrb[68].mxu1 %vm2933_vm2, %v2740_v12  ;;  %v484_v12 = vld [vmem:[%s10367_s10 + $0x608] sm:$0xff] }
 0x17a   : > { %v2741_v22 = vmax.f32 %v1743_v18, 0.0  ;;  %v9088_v23 = vpop.f32.mrb[72].mxu0 }
 0x17b   : > { %v1758_v24 = vadd.f32 %v9088_v23, %v10591_v48  ;;  %v1752_v25 = vpop.f32.mrb[73].mxu0  ;;  %9246 = vmatmul.mubr.msk.f32.gmra.mrb[178].mxu0 %vm553_vm1, %v470_v19 }
 0x17c   : > { %v1753_v26 = vadd.f32 %v10591_v48, %v1752_v25  ;;  %9471 = vmatprep.mubr.msk.f32.mxu1 %vm2933_vm2, %v2741_v22  ;;  %9248 = vmatprep.mubr.msk.f32.mxu0 %vm553_vm1, %v471_v21  ;;  %v487_v22 = vld [vmem:[%s10367_s10 + $0x620] sm:$0xff] }
 0x17d   : > { %v2744_v28 = vmax.f32 %v1758_v24, 0.0  ;;  %9472 = vmatmul.mubr.msk.f32.gmra.mrb[70].mxu1 %vm2933_vm2, %v2742_v20  ;;  %v486_v20 = vld [vmem:[%s10367_s10 + $0x618] sm:$0xff] }
 0x17e   : > { %v2743_v30 = vmax.f32 %v1753_v26, 0.0  ;;  %v9091_v31 = vpop.f32.mrb[74].mxu0 }
 0x17f   : > { %v1768_v32 = vadd.f32 %v9091_v31, %v10591_v48  ;;  %v1762_v33 = vpop.f32.mrb[75].mxu0  ;;  %9249 = vmatmul.mubr.msk.f32.gmra.mrb[180].mxu0 %vm553_vm1, %v472_v27 }
 0x180   : > { %v1763_v34 = vadd.f32 %v10591_v48, %v1762_v33  ;;  %9474 = vmatprep.mubr.msk.f32.mxu1 %vm2933_vm2, %v2743_v30  ;;  %9251 = vmatprep.mubr.msk.f32.mxu0 %vm553_vm1, %v473_v29  ;;  %v489_v30 = vld [vmem:[%s10367_s10 + $0x630] sm:$0xff] }
 0x181   : > { %v2746_v36 = vmax.f32 %v1768_v32, 0.0  ;;  %9475 = vmatmul.mubr.msk.f32.gmra.mrb[72].mxu1 %vm2933_vm2, %v2744_v28  ;;  %v488_v28 = vld [vmem:[%s10367_s10 + $0x628] sm:$0xff] }
 0x182   : > { %v2745_v38 = vmax.f32 %v1763_v34, 0.0  ;;  %v9094_v39 = vpop.f32.mrb[76].mxu0 }
 0x183   : > { %v1778_v40 = vadd.f32 %v9094_v39, %v10591_v48  ;;  %v1772_v41 = vpop.f32.mrb[77].mxu0  ;;  %9252 = vmatmul.mubr.msk.f32.gmra.mrb[182].mxu0 %vm553_vm1, %v474_v35 }
 0x184   : > { %v1773_v42 = vadd.f32 %v10591_v48, %v1772_v41  ;;  %9477 = vmatprep.mubr.msk.f32.mxu1 %vm2933_vm2, %v2745_v38  ;;  %9254 = vmatprep.mubr.msk.f32.mxu0 %vm553_vm1, %v475_v37  ;;  %v491_v38 = vld [vmem:[%s10367_s10 + $0x640] sm:$0xff] }
 0x185   : > { %v2748_v44 = vmax.f32 %v1778_v40, 0.0  ;;  %9478 = vmatmul.mubr.msk.f32.gmra.mrb[74].mxu1 %vm2933_vm2, %v2746_v36  ;;  %v490_v36 = vld [vmem:[%s10367_s10 + $0x638] sm:$0xff] }
 0x186   : > { %v2747_v46 = vmax.f32 %v1773_v42, 0.0  ;;  %v9097_v47 = vpop.f32.mrb[78].mxu0 }
 0x187   : > { %v1788_v49 = vadd.f32 %v9097_v47, %v10591_v48  ;;  %v1782_v50 = vpop.f32.mrb[79].mxu0  ;;  %9255 = vmatmul.mubr.msk.f32.gmra.mrb[184].mxu0 %vm553_vm1, %v476_v43 }
 0x188   : > { %v1783_v51 = vadd.f32 %v10591_v48, %v1782_v50  ;;  %9480 = vmatprep.mubr.msk.f32.mxu1 %vm2933_vm2, %v2747_v46  ;;  %9257 = vmatprep.mubr.msk.f32.mxu0 %vm553_vm1, %v477_v45  ;;  %v493_v46 = vld [vmem:[%s10367_s10 + $0x650] sm:$0xff] }
 0x189   : > { %v2750_v53 = vmax.f32 %v1788_v49, 0.0  ;;  %9481 = vmatmul.mubr.msk.f32.gmra.mrb[76].mxu1 %vm2933_vm2, %v2748_v44  ;;  %v492_v44 = vld [vmem:[%s10367_s10 + $0x648] sm:$0xff] }
 0x18a   : > { %v2749_v55 = vmax.f32 %v1783_v51, 0.0  ;;  %v9100_v56 = vpop.f32.mrb[80].mxu0 }
 0x18b   : > { %v1798_v57 = vadd.f32 %v9100_v56, %v10591_v48  ;;  %v1792_v58 = vpop.f32.mrb[81].mxu0  ;;  %9258 = vmatmul.mubr.msk.f32.gmra.mrb[186].mxu0 %vm553_vm1, %v478_v52 }
 0x18c   : > { %v1793_v59 = vadd.f32 %v10591_v48, %v1792_v58  ;;  %9483 = vmatprep.mubr.msk.f32.mxu1 %vm2933_vm2, %v2749_v55  ;;  %9260 = vmatprep.mubr.msk.f32.mxu0 %vm553_vm1, %v479_v54  ;;  %v495_v55 = vld [vmem:[%s10367_s10 + $0x660] sm:$0xff] }
 0x18d   : > { %v2752_v61 = vmax.f32 %v1798_v57, 0.0  ;;  %9484 = vmatmul.mubr.msk.f32.gmra.mrb[78].mxu1 %vm2933_vm2, %v2750_v53  ;;  %v494_v53 = vld [vmem:[%s10367_s10 + $0x658] sm:$0xff] }
 0x18e   : > { %v2751_v63 = vmax.f32 %v1793_v59, 0.0  ;;  %v9103_v0 = vpop.f32.mrb[82].mxu0 }
 0x18f   : > { %v1808_v1 = vadd.f32 %v9103_v0, %v10591_v48  ;;  %v1802_v2 = vpop.f32.mrb[83].mxu0  ;;  %9261 = vmatmul.mubr.msk.f32.gmra.mrb[188].mxu0 %vm553_vm1, %v480_v60 }
 0x190   : > { %v1803_v3 = vadd.f32 %v10591_v48, %v1802_v2  ;;  %9486 = vmatprep.mubr.msk.f32.mxu1 %vm2933_vm2, %v2751_v63  ;;  %9263 = vmatprep.mubr.msk.f32.mxu0 %vm553_vm1, %v481_v62  ;;  %v497_v63 = vld [vmem:[%s10367_s10 + $0x670] sm:$0xff] }
 0x191   : > { %v2754_v5 = vmax.f32 %v1808_v1, 0.0  ;;  %9487 = vmatmul.mubr.msk.f32.gmra.mrb[80].mxu1 %vm2933_vm2, %v2752_v61  ;;  %v496_v61 = vld [vmem:[%s10367_s10 + $0x668] sm:$0xff] }
 0x192   : > { %v2753_v7 = vmax.f32 %v1803_v3, 0.0  ;;  %v9106_v8 = vpop.f32.mrb[84].mxu0 }
 0x193   : > { %v1818_v9 = vadd.f32 %v9106_v8, %v10591_v48  ;;  %v1812_v10 = vpop.f32.mrb[85].mxu0  ;;  %9264 = vmatmul.mubr.msk.f32.gmra.mrb[190].mxu0 %vm553_vm1, %v482_v4 }
 0x194   : > { %v1813_v11 = vadd.f32 %v10591_v48, %v1812_v10  ;;  %9489 = vmatprep.mubr.msk.f32.mxu1 %vm2933_vm2, %v2753_v7  ;;  %9266 = vmatprep.mubr.msk.f32.mxu0 %vm553_vm1, %v483_v6  ;;  %v499_v7 = vld [vmem:[%s10367_s10 + $0x680] sm:$0xff] }
 0x195   : > { %v2756_v13 = vmax.f32 %v1818_v9, 0.0  ;;  %9490 = vmatmul.mubr.msk.f32.gmra.mrb[82].mxu1 %vm2933_vm2, %v2754_v5  ;;  %v498_v5 = vld [vmem:[%s10367_s10 + $0x678] sm:$0xff] }
 0x196   : > { %v2755_v15 = vmax.f32 %v1813_v11, 0.0  ;;  %v9109_v16 = vpop.f32.mrb[86].mxu0 }
 0x197   : > { %v1828_v48 = vadd.f32 %v10941_v17, %v9109_v16  ;;  %v1822_v18 = vpop.f32.mrb[87].mxu0  ;;  %9267 = vmatmul.mubr.msk.f32.gmra.mrb[192].mxu0 %vm553_vm1, %v484_v12 }
 0x198   : > { %v1823_v19 = vadd.f32 %v10941_v17, %v1822_v18  ;;  %9492 = vmatprep.mubr.msk.f32.mxu1 %vm2933_vm2, %v2755_v15  ;;  %9269 = vmatprep.mubr.msk.f32.mxu0 %vm553_vm1, %v485_v14  ;;  %v501_v15 = vld [vmem:[%s10367_s10 + $0x690] sm:$0xff] }
 0x199   : > { %v2758_v21 = vmax.f32 %v1828_v48, 0.0  ;;  %9493 = vmatmul.mubr.msk.f32.gmra.mrb[84].mxu1 %vm2933_vm2, %v2756_v13  ;;  %v500_v13 = vld [vmem:[%s10367_s10 + $0x688] sm:$0xff] }
 0x19a   : > { %v2757_v23 = vmax.f32 %v1823_v19, 0.0  ;;  %v9112_v24 = vpop.f32.mrb[88].mxu0 }
 0x19b   : > { %v1838_v25 = vadd.f32 %v10941_v17, %v9112_v24  ;;  %v1832_v26 = vpop.f32.mrb[89].mxu0  ;;  %9270 = vmatmul.mubr.msk.f32.gmra.mrb[194].mxu0 %vm553_vm1, %v486_v20 }
 0x19c   : > { %v1833_v27 = vadd.f32 %v10941_v17, %v1832_v26  ;;  %9495 = vmatprep.mubr.msk.f32.mxu1 %vm2933_vm2, %v2757_v23  ;;  %9272 = vmatprep.mubr.msk.f32.mxu0 %vm553_vm1, %v487_v22  ;;  %v503_v23 = vld [vmem:[%s10367_s10 + $0x6a0] sm:$0xff] }
 0x19d   : > { %v2760_v29 = vmax.f32 %v1838_v25, 0.0  ;;  %9496 = vmatmul.mubr.msk.f32.gmra.mrb[86].mxu1 %vm2933_vm2, %v2758_v21  ;;  %v502_v21 = vld [vmem:[%s10367_s10 + $0x698] sm:$0xff] }
 0x19e   : > { %v2759_v31 = vmax.f32 %v1833_v27, 0.0  ;;  %v9115_v32 = vpop.f32.mrb[90].mxu0 }
 0x19f   : > { %v1848_v33 = vadd.f32 %v10941_v17, %v9115_v32  ;;  %v1842_v34 = vpop.f32.mrb[91].mxu0  ;;  %9273 = vmatmul.mubr.msk.f32.gmra.mrb[196].mxu0 %vm553_vm1, %v488_v28 }
 0x1a0   : > { %v1843_v35 = vadd.f32 %v10941_v17, %v1842_v34  ;;  %9498 = vmatprep.mubr.msk.f32.mxu1 %vm2933_vm2, %v2759_v31  ;;  %9275 = vmatprep.mubr.msk.f32.mxu0 %vm553_vm1, %v489_v30  ;;  %v505_v31 = vld [vmem:[%s10367_s10 + $0x6b0] sm:$0xff] }
 0x1a1   : > { %v2762_v37 = vmax.f32 %v1848_v33, 0.0  ;;  %9499 = vmatmul.mubr.msk.f32.gmra.mrb[88].mxu1 %vm2933_vm2, %v2760_v29  ;;  %v504_v29 = vld [vmem:[%s10367_s10 + $0x6a8] sm:$0xff] }
 0x1a2   : > { %v2761_v39 = vmax.f32 %v1843_v35, 0.0  ;;  %v9118_v40 = vpop.f32.mrb[92].mxu0 }
 0x1a3   : > { %v1858_v41 = vadd.f32 %v10941_v17, %v9118_v40  ;;  %v1852_v42 = vpop.f32.mrb[93].mxu0  ;;  %9276 = vmatmul.mubr.msk.f32.gmra.mrb[198].mxu0 %vm553_vm1, %v490_v36 }
 0x1a4   : > { %v1853_v43 = vadd.f32 %v10941_v17, %v1852_v42  ;;  %9501 = vmatprep.mubr.msk.f32.mxu1 %vm2933_vm2, %v2761_v39  ;;  %9278 = vmatprep.mubr.msk.f32.mxu0 %vm553_vm1, %v491_v38  ;;  %v507_v39 = vld [vmem:[%s10367_s10 + $0x6c0] sm:$0xff] }
 0x1a5   : > { %v2764_v45 = vmax.f32 %v1858_v41, 0.0  ;;  %9502 = vmatmul.mubr.msk.f32.gmra.mrb[90].mxu1 %vm2933_vm2, %v2762_v37  ;;  %v506_v37 = vld [vmem:[%s10367_s10 + $0x6b8] sm:$0xff]  ;;  %v11034_v42 = vld [vmem:[%s14487_s4] ss:$0 sm:$0xff] }
 0x1a6   : > { %v2763_v47 = vmax.f32 %v1853_v43, 0.0  ;;  %v9121_v49 = vpop.f32.mrb[94].mxu0 }
 0x1a7   : > { %v1868_v50 = vadd.f32 %v10941_v17, %v9121_v49  ;;  %v1862_v51 = vpop.f32.mrb[95].mxu0  ;;  %9279 = vmatmul.mubr.msk.f32.gmra.mrb[200].mxu0 %vm553_vm1, %v492_v44 }
 0x1a8   : > { %v1863_v52 = vadd.f32 %v10941_v17, %v1862_v51  ;;  %9504 = vmatprep.mubr.msk.f32.mxu1 %vm2933_vm2, %v2763_v47  ;;  %9281 = vmatprep.mubr.msk.f32.mxu0 %vm553_vm1, %v493_v46  ;;  %v508_v47 = vld [vmem:[%s10367_s10 + $0x6c8] sm:$0xff] }
 0x1a9   : > { %v2766_v54 = vmax.f32 %v1868_v50, 0.0  ;;  %9505 = vmatmul.mubr.msk.f32.gmra.mrb[92].mxu1 %vm2933_vm2, %v2764_v45 }
 0x1aa   : > { %v2765_v56 = vmax.f32 %v1863_v52, 0.0  ;;  %v9124_v57 = vpop.f32.mrb[96].mxu0  ;;  %v509_v52 = vld [vmem:[%s10367_s10 + $0x6d0] sm:$0xff] }
 0x1ab   : > { %v1878_v58 = vadd.f32 %v10941_v17, %v9124_v57  ;;  %v1872_v59 = vpop.f32.mrb[97].mxu0  ;;  %9282 = vmatmul.mubr.msk.f32.gmra.mrb[202].mxu0 %vm553_vm1, %v494_v53 }
 0x1ac   : > { %v1873_v60 = vadd.f32 %v10941_v17, %v1872_v59  ;;  %9507 = vmatprep.mubr.msk.f32.mxu1 %vm2933_vm2, %v2765_v56  ;;  %9284 = vmatprep.mubr.msk.f32.mxu0 %vm553_vm1, %v495_v55  ;;  %v11049_v56 = vld [vmem:[%s14488_s5] ss:$0 sm:$0xff] }
 0x1ad   : > { %v2768_v62 = vmax.f32 %v1878_v58, 0.0  ;;  %9508 = vmatmul.mubr.msk.f32.gmra.mrb[94].mxu1 %vm2933_vm2, %v2766_v54 }
 0x1ae   : > { %v2767_v0 = vmax.f32 %v1873_v60, 0.0  ;;  %v9127_v1 = vpop.f32.mrb[98].mxu0 }
 0x1af   : > { %v1888_v2 = vadd.f32 %v10941_v17, %v9127_v1  ;;  %v1882_v3 = vpop.f32.mrb[99].mxu0  ;;  %9285 = vmatmul.mubr.msk.f32.gmra.mrb[204].mxu0 %vm553_vm1, %v496_v61 }
 0x1b0   : > { %v1883_v4 = vadd.f32 %v10941_v17, %v1882_v3  ;;  %9510 = vmatprep.mubr.msk.f32.mxu1 %vm2933_vm2, %v2767_v0  ;;  %9287 = vmatprep.mubr.msk.f32.mxu0 %vm553_vm1, %v497_v63  ;;  %v510_v63 = vld [vmem:[%s10367_s10 + $0x6d8] sm:$0xff] }
 0x1b1   : > { %v2770_v6 = vmax.f32 %v1888_v2, 0.0  ;;  %9511 = vmatmul.mubr.msk.f32.gmra.mrb[96].mxu1 %vm2933_vm2, %v2768_v62 }
 0x1b2   : > { %v2769_v8 = vmax.f32 %v1883_v4, 0.0  ;;  %v9130_v9 = vpop.f32.mrb[100].mxu0 }
 0x1b3   : > { %v1898_v10 = vadd.f32 %v10941_v17, %v9130_v9  ;;  %v1892_v11 = vpop.f32.mrb[101].mxu0  ;;  %9288 = vmatmul.mubr.msk.f32.gmra.mrb[206].mxu0 %vm553_vm1, %v498_v5 }
 0x1b4   : > { %v1893_v12 = vadd.f32 %v10941_v17, %v1892_v11  ;;  %9513 = vmatprep.mubr.msk.f32.mxu1 %vm2933_vm2, %v2769_v8  ;;  %9290 = vmatprep.mubr.msk.f32.mxu0 %vm553_vm1, %v499_v7  ;;  %v511_v7 = vld [vmem:[%s10367_s10 + $0x6e0] sm:$0xff] }
 0x1b5   : > { %v2772_v14 = vmax.f32 %v1898_v10, 0.0  ;;  %9514 = vmatmul.mubr.msk.f32.gmra.mrb[98].mxu1 %vm2933_vm2, %v2770_v6 }
 0x1b6   : > { %v2771_v16 = vmax.f32 %v1893_v12, 0.0  ;;  %v9133_v48 = vpop.f32.mrb[102].mxu0 }
 0x1b7   : > { %v1908_v18 = vadd.f32 %v10941_v17, %v9133_v48  ;;  %v1902_v19 = vpop.f32.mrb[103].mxu0  ;;  %9291 = vmatmul.mubr.msk.f32.gmra.mrb[208].mxu0 %vm553_vm1, %v500_v13 }
 0x1b8   : > { %v1903_v20 = vadd.f32 %v10941_v17, %v1902_v19  ;;  %9516 = vmatprep.mubr.msk.f32.mxu1 %vm2933_vm2, %v2771_v16  ;;  %9293 = vmatprep.mubr.msk.f32.mxu0 %vm553_vm1, %v501_v15  ;;  %v512_v15 = vld [vmem:[%s10367_s10 + $0x6e8] sm:$0xff] }
 0x1b9   : > { %v2774_v22 = vmax.f32 %v1908_v18, 0.0  ;;  %9517 = vmatmul.mubr.msk.f32.gmra.mrb[100].mxu1 %vm2933_vm2, %v2772_v14 }
 0x1ba   : > { %v2773_v24 = vmax.f32 %v1903_v20, 0.0  ;;  %v9136_v25 = vpop.f32.mrb[104].mxu0 }
 0x1bb   : > { %v1918_v26 = vadd.f32 %v10941_v17, %v9136_v25  ;;  %v1912_v27 = vpop.f32.mrb[105].mxu0  ;;  %9294 = vmatmul.mubr.msk.f32.gmra.mrb[210].mxu0 %vm553_vm1, %v502_v21 }
 0x1bc   : > { %v1913_v28 = vadd.f32 %v10941_v17, %v1912_v27  ;;  %9519 = vmatprep.mubr.msk.f32.mxu1 %vm2933_vm2, %v2773_v24  ;;  %9296 = vmatprep.mubr.msk.f32.mxu0 %vm553_vm1, %v503_v23 }
 0x1bd   : > { %v2776_v30 = vmax.f32 %v1918_v26, 0.0  ;;  %9520 = vmatmul.mubr.msk.f32.gmra.mrb[102].mxu1 %vm2933_vm2, %v2774_v22 }
 0x1be   : > { %v2775_v32 = vmax.f32 %v1913_v28, 0.0  ;;  %v9139_v33 = vpop.f32.mrb[106].mxu0  ;;  %v513_v28 = vld [vmem:[%s10367_s10 + $0x6f0] sm:$0xff] }
 0x1bf   : > { %v1928_v34 = vadd.f32 %v10941_v17, %v9139_v33  ;;  %v1922_v35 = vpop.f32.mrb[107].mxu0  ;;  %9297 = vmatmul.mubr.msk.f32.gmra.mrb[212].mxu0 %vm553_vm1, %v504_v29 }
 0x1c0   : > { %v1923_v36 = vadd.f32 %v10941_v17, %v1922_v35  ;;  %9522 = vmatprep.mubr.msk.f32.mxu1 %vm2933_vm2, %v2775_v32  ;;  %9299 = vmatprep.mubr.msk.f32.mxu0 %vm553_vm1, %v505_v31 }
 0x1c1   : > { %v2778_v38 = vmax.f32 %v1928_v34, 0.0  ;;  %9523 = vmatmul.mubr.msk.f32.gmra.mrb[104].mxu1 %vm2933_vm2, %v2776_v30  ;;  %v514_v34 = vld [vmem:[%s10367_s10 + $0x6f8] sm:$0xff] }
 0x1c2   : > { %v2777_v40 = vmax.f32 %v1923_v36, 0.0  ;;  %v9142_v41 = vpop.f32.mrb[108].mxu0 }
 0x1c3   : > { %v1938_v43 = vadd.f32 %v10941_v17, %v9142_v41  ;;  %v1932_v44 = vpop.f32.mrb[109].mxu0  ;;  %9300 = vmatmul.mubr.msk.f32.gmra.mrb[214].mxu0 %vm553_vm1, %v506_v37 }
 0x1c4   : > { %v1933_v45 = vadd.f32 %v10941_v17, %v1932_v44  ;;  %v9368_v46 = vpop.f32.mrb[0].mxu1  ;;  %9525 = vmatprep.mubr.msk.f32.mxu1 %vm2933_vm2, %v2777_v40  ;;  %9302 = vmatprep.mubr.msk.f32.mxu0 %vm553_vm1, %v507_v39 }
 0x1c5   : > { %v2780_v49 = vmax.f32 %v1938_v43, 0.0  ;;  %v3774_v50 = vadd.f32 %v9368_v46, %v11034_v42  ;;  %v3768_v51 = vpop.f32.mrb[1].mxu1  ;;  %9526 = vmatmul.mubr.msk.f32.gmra.mrb[106].mxu1 %vm2933_vm2, %v2778_v38 }
 0x1c6   : > { %v2779_v53 = vmax.f32 %v1933_v45, 0.0  ;;  %v3769_v54 = vadd.f32 %v11034_v42, %v3768_v51  ;;  %v9145_v55 = vpop.f32.mrb[110].mxu0 }
 0x1c7   : > { %v5048_v57 = vmax.f32 %v3774_v50, 0.0  ;;  %v1948_v58 = vadd.f32 %v10941_v17, %v9145_v55  ;;  %v1942_v59 = vpop.f32.mrb[111].mxu0  ;;  %9303 = vmatmul.mubr.msk.f32.gmra.mrb[216].mxu0 %vm553_vm1, %v508_v47  ;;  %v515_v47 = vld [vmem:[%s10367_s10 + $0x700] sm:$0xff] }
 0x1c8   : > { %v5047_v60 = vmax.f32 %v3769_v54, 0.0  ;;  %v1943_v61 = vadd.f32 %v10941_v17, %v1942_v59  ;;  %v9371_v62 = vpop.f32.mrb[2].mxu1  ;;  %9528 = vmatprep.mubr.msk.f32.mxu1 %vm2933_vm2, %v2779_v53  ;;  %9305 = vmatprep.mubr.msk.f32.mxu0 %vm553_vm1, %v509_v52  ;;  %v516_v54 = vld [vmem:[%s10367_s10 + $0x708] sm:$0xff] }
 0x1c9   : > { %v2782_v0 = vmax.f32 %v1948_v58, 0.0  ;;  %v3784_v1 = vadd.f32 %v9371_v62, %v11034_v42  ;;  %v3778_v2 = vpop.f32.mrb[3].mxu1  ;;  %9529 = vmatmul.mubr.msk.f32.gmra.mrb[108].mxu1 %vm2933_vm2, %v2780_v49  ;;  %v5310_v3 = vmul.f32 %v11049_v56, %v5048_v57 }
 0x1ca   : > { %v2781_v4 = vmax.f32 %v1943_v61, 0.0  ;;  %v3779_v5 = vadd.f32 %v11034_v42, %v3778_v2  ;;  %v9148_v6 = vpop.f32.mrb[112].mxu0  ;;  %v5309_v16 = vmul.f32 %v11049_v56, %v5047_v60 }
 0x1cb   : > { %v5050_v8 = vmax.f32 %v3784_v1, 0.0  ;;  %v1958_v9 = vadd.f32 %v10941_v17, %v9148_v6  ;;  %v1952_v10 = vpop.f32.mrb[113].mxu0  ;;  %9306 = vmatmul.mubr.msk.f32.gmra.mrb[218].mxu0 %vm553_vm1, %v510_v63  ;;  %v5569_v11 = vsel %vm5565_vm3, %v5310_v3, 0.0  ;;  %v517_v3 = vld [vmem:[%s10367_s10 + $0x710] sm:$0xff] }
 0x1cc   : > { %v5049_v12 = vmax.f32 %v3779_v5, 0.0  ;;  %v1953_v13 = vadd.f32 %v10941_v17, %v1952_v10  ;;  %9531 = vmatprep.mubr.msk.f32.mxu1 %vm2933_vm2, %v2781_v4  ;;  %5570 = vadd.xlane.f32.xlu0 %v5569_v11  ;;  %v9374_v14 = vpop.f32.mrb[4].mxu1  ;;  %v5566_v33 = vsel %vm5565_vm3, %v5309_v16, 0.0 }
 0x1cd   : > { %v2784_v48 = vmax.f32 %v1958_v9, 0.0  ;;  %v3794_v18 = vadd.f32 %v9374_v14, %v11034_v42  ;;  %v3788_v19 = vpop.f32.mrb[5].mxu1  ;;  %9532 = vmatmul.mubr.msk.f32.gmra.mrb[110].mxu1 %vm2933_vm2, %v2782_v0  ;;  %9308 = vmatprep.mubr.msk.f32.mxu0 %vm553_vm1, %v511_v7  ;;  %v5312_v20 = vmul.f32 %v11049_v56, %v5050_v8  ;;  %v518_v9 = vld [vmem:[%s10367_s10 + $0x718] sm:$0xff] }
 0x1ce   : > { %v2783_v21 = vmax.f32 %v1953_v13, 0.0  ;;  %v3789_v22 = vadd.f32 %v11034_v42, %v3788_v19  ;;  %v9151_v23 = vpop.f32.mrb[114].mxu0  ;;  %v5311_v29 = vmul.f32 %v11049_v56, %v5049_v12 }
 0x1cf   : > { %v5052_v24 = vmax.f32 %v3794_v18, 0.0  ;;  %v1968_v25 = vadd.f32 %v10941_v17, %v9151_v23  ;;  %v1962_v26 = vpop.f32.mrb[115].mxu0  ;;  %9309 = vmatmul.mubr.msk.f32.gmra.mrb[220].mxu0 %vm553_vm1, %v512_v15  ;;  %v5575_v27 = vsel %vm5565_vm3, %v5312_v20, 0.0 }
 0x1d0   : > { %v5051_v30 = vmax.f32 %v3789_v22, 0.0  ;;  %v1963_v31 = vadd.f32 %v10941_v17, %v1962_v26  ;;  %9534 = vmatprep.mubr.msk.f32.mxu1 %vm2933_vm2, %v2783_v21  ;;  %5576 = vadd.xlane.f32.xlu1 %v5575_v27  ;;  %v9377_v32 = vpop.f32.mrb[6].mxu1  ;;  %v5572_v46 = vsel %vm5565_vm3, %v5311_v29, 0.0  ;;  %v519_v21 = vld [vmem:[%s10367_s10 + $0x720] sm:$0xff]  ;;  %v520_v27 = vld [vmem:[%s10367_s10 + $0x728] sm:$0xff] }
 0x1d1   : > { %v2786_v35 = vmax.f32 %v1968_v25, 0.0  ;;  %v3804_v36 = vadd.f32 %v9377_v32, %v11034_v42  ;;  %5567 = vadd.xlane.f32.xlu0 %v5566_v33  ;;  %v3798_v37 = vpop.f32.mrb[7].mxu1  ;;  %9535 = vmatmul.mubr.msk.f32.gmra.mrb[112].mxu1 %vm2933_vm2, %v2784_v48  ;;  %v5314_v49 = vmul.f32 %v11049_v56, %v5052_v24 }
 0x1d2   : > { %v2785_v38 = vmax.f32 %v1963_v31, 0.0  ;;  %v3799_v39 = vadd.f32 %v11034_v42, %v3798_v37  ;;  %v9154_v40 = vpop.f32.mrb[116].mxu0  ;;  %9311 = vmatprep.mubr.msk.f32.mxu0 %vm553_vm1, %v513_v28  ;;  %v5313_v41 = vmul.f32 %v11049_v56, %v5051_v30 }
 0x1d3   : > { %v5054_v43 = vmax.f32 %v3804_v36, 0.0  ;;  %v1978_v44 = vadd.f32 %v10941_v17, %v9154_v40  ;;  %v1972_v45 = vpop.f32.mrb[117].mxu0  ;;  %9312 = vmatmul.mubr.msk.f32.gmra.mrb[222].mxu0 %vm553_vm1, %v514_v34  ;;  %v5581_v2 = vsel %vm5565_vm3, %v5314_v49, 0.0 }
 0x1d4   : > { %v5053_v50 = vmax.f32 %v3799_v39, 0.0  ;;  %v1973_v51 = vadd.f32 %v10941_v17, %v1972_v45  ;;  %v9380_v52 = vpop.f32.mrb[8].mxu1  ;;  %9537 = vmatprep.mubr.msk.f32.mxu1 %vm2933_vm2, %v2785_v38  ;;  %5573 = vadd.xlane.f32.xlu1 %v5572_v46  ;;  %v5578_v53 = vsel %vm5565_vm3, %v5313_v41, 0.0  ;;  %v521_v39 = vld [vmem:[%s10367_s10 + $0x730] sm:$0xff]  ;;  %v522_v46 = vld [vmem:[%s10367_s10 + $0x738] sm:$0xff] }
 0x1d5   : > { %v2788_v55 = vmax.f32 %v1978_v44, 0.0  ;;  %v3814_v57 = vadd.f32 %v9380_v52, %v11034_v42  ;;  %v3808_v58 = vpop.f32.mrb[9].mxu1  ;;  %9538 = vmatmul.mubr.msk.f32.gmra.mrb[114].mxu1 %vm2933_vm2, %v2786_v35  ;;  %5579 = vadd.xlane.f32.xlu0 %v5578_v53  ;;  %v5316_v4 = vmul.f32 %v11049_v56, %v5054_v43 }
 0x1d6   : > { %v2787_v59 = vmax.f32 %v1973_v51, 0.0  ;;  %v3809_v60 = vadd.f32 %v11034_v42, %v3808_v58  ;;  %v9157_v61 = vpop.f32.mrb[118].mxu0  ;;  %9314 = vmatprep.mubr.msk.f32.mxu0 %vm553_vm1, %v515_v47  ;;  %v5315_v62 = vmul.f32 %v11049_v56, %v5053_v50 }
 0x1d7   : > { %v5056_v63 = vmax.f32 %v3814_v57, 0.0  ;;  %v1988_v0 = vadd.f32 %v10941_v17, %v9157_v61  ;;  %v1982_v1 = vpop.f32.mrb[119].mxu0  ;;  %9315 = vmatmul.mubr.msk.f32.gmra.mrb[224].mxu0 %vm553_vm1, %v516_v54  ;;  %v5587_v20 = vsel %vm5565_vm3, %v5316_v4, 0.0 }
 0x1d8   : > { %v5055_v5 = vmax.f32 %v3809_v60, 0.0  ;;  %v1983_v6 = vadd.f32 %v10941_v17, %v1982_v1  ;;  %v9383_v7 = vpop.f32.mrb[10].mxu1  ;;  %9540 = vmatprep.mubr.msk.f32.mxu1 %vm2933_vm2, %v2787_v59  ;;  %5582 = vadd.xlane.f32.xlu1 %v5581_v2  ;;  %v5584_v8 = vsel %vm5565_vm3, %v5315_v62, 0.0  ;;  %v523_v60 = vld [vmem:[%s10367_s10 + $0x740] sm:$0xff]  ;;  %v524_v2 = vld [vmem:[%s10367_s10 + $0x748] sm:$0xff] }
 0x1d9   : > { %v2790_v10 = vmax.f32 %v1988_v0, 0.0  ;;  %v3824_v11 = vadd.f32 %v9383_v7, %v11034_v42  ;;  %v3818_v12 = vpop.f32.mrb[11].mxu1  ;;  %9541 = vmatmul.mubr.msk.f32.gmra.mrb[116].mxu1 %vm2933_vm2, %v2788_v55  ;;  %5585 = vadd.xlane.f32.xlu0 %v5584_v8  ;;  %v5318_v22 = vmul.f32 %v11049_v56, %v5056_v63 }
 0x1da   : > { %v2789_v13 = vmax.f32 %v1983_v6, 0.0  ;;  %v3819_v14 = vadd.f32 %v11034_v42, %v3818_v12  ;;  %v9160_v15 = vpop.f32.mrb[120].mxu0  ;;  %9317 = vmatprep.mubr.msk.f32.mxu0 %vm553_vm1, %v517_v3  ;;  %v5317_v16 = vmul.f32 %v11049_v56, %v5055_v5 }
 0x1db   : > { %v5058_v48 = vmax.f32 %v3824_v11, 0.0  ;;  %v1998_v18 = vadd.f32 %v10941_v17, %v9160_v15  ;;  %v1992_v19 = vpop.f32.mrb[121].mxu0  ;;  %9318 = vmatmul.mubr.msk.f32.gmra.mrb[226].mxu0 %vm553_vm1, %v518_v9  ;;  %v5593_v38 = vsel %vm5565_vm3, %v5318_v22, 0.0 }
 0x1dc   : > { %v5057_v23 = vmax.f32 %v3819_v14, 0.0  ;;  %v1993_v24 = vadd.f32 %v10941_v17, %v1992_v19  ;;  %v9386_v25 = vpop.f32.mrb[12].mxu1  ;;  %9543 = vmatprep.mubr.msk.f32.mxu1 %vm2933_vm2, %v2789_v13  ;;  %5588 = vadd.xlane.f32.xlu1 %v5587_v20  ;;  %v5590_v26 = vsel %vm5565_vm3, %v5317_v16, 0.0  ;;  %v525_v14 = vld [vmem:[%s10367_s10 + $0x750] sm:$0xff]  ;;  %v526_v20 = vld [vmem:[%s10367_s10 + $0x758] sm:$0xff] }
 0x1dd   : > { %v2792_v28 = vmax.f32 %v1998_v18, 0.0  ;;  %v3834_v29 = vadd.f32 %v9386_v25, %v11034_v42  ;;  %v3828_v30 = vpop.f32.mrb[13].mxu1  ;;  %9544 = vmatmul.mubr.msk.f32.gmra.mrb[118].mxu1 %vm2933_vm2, %v2790_v10  ;;  %5591 = vadd.xlane.f32.xlu0 %v5590_v26  ;;  %v5320_v40 = vmul.f32 %v11049_v56, %v5058_v48 }
 0x1de   : > { %v2791_v31 = vmax.f32 %v1993_v24, 0.0  ;;  %v3829_v32 = vadd.f32 %v11034_v42, %v3828_v30  ;;  %v9163_v33 = vpop.f32.mrb[122].mxu0  ;;  %9320 = vmatprep.mubr.msk.f32.mxu0 %vm553_vm1, %v519_v21  ;;  %v5319_v34 = vmul.f32 %v11049_v56, %v5057_v23 }
 0x1df   : > { %v5060_v35 = vmax.f32 %v3834_v29, 0.0  ;;  %v2008_v36 = vadd.f32 %v10941_v17, %v9163_v33  ;;  %v2002_v37 = vpop.f32.mrb[123].mxu0  ;;  %9321 = vmatmul.mubr.msk.f32.gmra.mrb[228].mxu0 %vm553_vm1, %v520_v27  ;;  %v5599_v59 = vsel %vm5565_vm3, %v5320_v40, 0.0 }
 0x1e0   : > { %v5059_v41 = vmax.f32 %v3829_v32, 0.0  ;;  %v2003_v43 = vadd.f32 %v10941_v17, %v2002_v37  ;;  %v9389_v44 = vpop.f32.mrb[14].mxu1  ;;  %9546 = vmatprep.mubr.msk.f32.mxu1 %vm2933_vm2, %v2791_v31  ;;  %5594 = vadd.xlane.f32.xlu1 %v5593_v38  ;;  %v5596_v45 = vsel %vm5565_vm3, %v5319_v34, 0.0  ;;  %v527_v32 = vld [vmem:[%s10367_s10 + $0x760] sm:$0xff]  ;;  %v528_v38 = vld [vmem:[%s10367_s10 + $0x768] sm:$0xff] }
 0x1e1   : > { %v2794_v47 = vmax.f32 %v2008_v36, 0.0  ;;  %v3844_v49 = vadd.f32 %v9389_v44, %v11034_v42  ;;  %v3838_v50 = vpop.f32.mrb[15].mxu1  ;;  %9547 = vmatmul.mubr.msk.f32.gmra.mrb[120].mxu1 %vm2933_vm2, %v2792_v28  ;;  %5597 = vadd.xlane.f32.xlu0 %v5596_v45  ;;  %v5322_v61 = vmul.f32 %v11049_v56, %v5060_v35 }
 0x1e2   : > { %v2793_v51 = vmax.f32 %v2003_v43, 0.0  ;;  %v3839_v52 = vadd.f32 %v11034_v42, %v3838_v50  ;;  %v9166_v53 = vpop.f32.mrb[124].mxu0  ;;  %9323 = vmatprep.mubr.msk.f32.mxu0 %vm553_vm1, %v521_v39  ;;  %v5321_v54 = vmul.f32 %v11049_v56, %v5059_v41 }
 0x1e3   : > { %v5062_v55 = vmax.f32 %v3844_v49, 0.0  ;;  %v2018_v57 = vadd.f32 %v10941_v17, %v9166_v53  ;;  %v2012_v58 = vpop.f32.mrb[125].mxu0  ;;  %9324 = vmatmul.mubr.msk.f32.gmra.mrb[230].mxu0 %vm553_vm1, %v522_v46  ;;  %v5605_v13 = vsel %vm5565_vm3, %v5322_v61, 0.0 }
 0x1e4   : > { %v5061_v62 = vmax.f32 %v3839_v52, 0.0  ;;  %v2013_v63 = vadd.f32 %v10941_v17, %v2012_v58  ;;  %v9392_v0 = vpop.f32.mrb[16].mxu1  ;;  %9549 = vmatprep.mubr.msk.f32.mxu1 %vm2933_vm2, %v2793_v51  ;;  %5600 = vadd.xlane.f32.xlu1 %v5599_v59  ;;  %v5602_v1 = vsel %vm5565_vm3, %v5321_v54, 0.0  ;;  %v529_v52 = vld [vmem:[%s10367_s10 + $0x770] sm:$0xff]  ;;  %v530_v59 = vld [vmem:[%s10367_s10 + $0x778] sm:$0xff] }
 0x1e5   : > { %v2796_v3 = vmax.f32 %v2018_v57, 0.0  ;;  %v3854_v4 = vadd.f32 %v9392_v0, %v11034_v42  ;;  %v3848_v5 = vpop.f32.mrb[17].mxu1  ;;  %9550 = vmatmul.mubr.msk.f32.gmra.mrb[122].mxu1 %vm2933_vm2, %v2794_v47  ;;  %5603 = vadd.xlane.f32.xlu0 %v5602_v1  ;;  %v5324_v15 = vmul.f32 %v11049_v56, %v5062_v55 }
 0x1e6   : > { %v2795_v6 = vmax.f32 %v2013_v63, 0.0  ;;  %v3849_v7 = vadd.f32 %v11034_v42, %v3848_v5  ;;  %v9169_v8 = vpop.f32.mrb[126].mxu0  ;;  %9326 = vmatprep.mubr.msk.f32.mxu0 %vm553_vm1, %v523_v60  ;;  %v5323_v9 = vmul.f32 %v11049_v56, %v5061_v62 }
 0x1e7   : > { %v5064_v10 = vmax.f32 %v3854_v4, 0.0  ;;  %v2028_v11 = vadd.f32 %v10941_v17, %v9169_v8  ;;  %v2022_v12 = vpop.f32.mrb[127].mxu0  ;;  %9327 = vmatmul.mubr.msk.f32.gmra.mrb[232].mxu0 %vm553_vm1, %v524_v2  ;;  %v5611_v31 = vsel %vm5565_vm3, %v5324_v15, 0.0 }
 0x1e8   : > { %v5063_v16 = vmax.f32 %v3849_v7, 0.0  ;;  %v2023_v48 = vadd.f32 %v10941_v17, %v2022_v12  ;;  %v9395_v18 = vpop.f32.mrb[18].mxu1  ;;  %9552 = vmatprep.mubr.msk.f32.mxu1 %vm2933_vm2, %v2795_v6  ;;  %5606 = vadd.xlane.f32.xlu1 %v5605_v13  ;;  %v5608_v19 = vsel %vm5565_vm3, %v5323_v9, 0.0  ;;  %v531_v7 = vld [vmem:[%s10367_s10 + $0x780] sm:$0xff]  ;;  %v532_v13 = vld [vmem:[%s10367_s10 + $0x788] sm:$0xff] }
 0x1e9   : > { %v2798_v21 = vmax.f32 %v2028_v11, 0.0  ;;  %v3864_v22 = vadd.f32 %v9395_v18, %v11034_v42  ;;  %v3858_v23 = vpop.f32.mrb[19].mxu1  ;;  %9553 = vmatmul.mubr.msk.f32.gmra.mrb[124].mxu1 %vm2933_vm2, %v2796_v3  ;;  %5609 = vadd.xlane.f32.xlu0 %v5608_v19  ;;  %v5326_v33 = vmul.f32 %v11049_v56, %v5064_v10 }
 0x1ea   : > { %v2797_v24 = vmax.f32 %v2023_v48, 0.0  ;;  %v3859_v25 = vadd.f32 %v11034_v42, %v3858_v23  ;;  %v9172_v26 = vpop.f32.mrb[128].mxu0  ;;  %9329 = vmatprep.mubr.msk.f32.mxu0 %vm553_vm1, %v525_v14  ;;  %v5325_v27 = vmul.f32 %v11049_v56, %v5063_v16 }
 0x1eb   : > { %v5066_v28 = vmax.f32 %v3864_v22, 0.0  ;;  %v2038_v29 = vadd.f32 %v10941_v17, %v9172_v26  ;;  %v2032_v30 = vpop.f32.mrb[129].mxu0  ;;  %9330 = vmatmul.mubr.msk.f32.gmra.mrb[234].mxu0 %vm553_vm1, %v526_v20  ;;  %v5617_v51 = vsel %vm5565_vm3, %v5326_v33, 0.0 }
 0x1ec   : > { %v5065_v34 = vmax.f32 %v3859_v25, 0.0  ;;  %v2033_v35 = vadd.f32 %v10941_v17, %v2032_v30  ;;  %v9398_v36 = vpop.f32.mrb[20].mxu1  ;;  %9555 = vmatprep.mubr.msk.f32.mxu1 %vm2933_vm2, %v2797_v24  ;;  %5612 = vadd.xlane.f32.xlu1 %v5611_v31  ;;  %v5614_v37 = vsel %vm5565_vm3, %v5325_v27, 0.0  ;;  %v533_v25 = vld [vmem:[%s10367_s10 + $0x790] sm:$0xff]  ;;  %v534_v31 = vld [vmem:[%s10367_s10 + $0x798] sm:$0xff] }
 0x1ed   : > { %v2800_v39 = vmax.f32 %v2038_v29, 0.0  ;;  %v3874_v40 = vadd.f32 %v9398_v36, %v11034_v42  ;;  %v3868_v41 = vpop.f32.mrb[21].mxu1  ;;  %9556 = vmatmul.mubr.msk.f32.gmra.mrb[126].mxu1 %vm2933_vm2, %v2798_v21  ;;  %5615 = vadd.xlane.f32.xlu0 %v5614_v37  ;;  %v5328_v53 = vmul.f32 %v11049_v56, %v5066_v28 }
 0x1ee   : > { %v2799_v43 = vmax.f32 %v2033_v35, 0.0  ;;  %v3869_v44 = vadd.f32 %v11034_v42, %v3868_v41  ;;  %v9175_v45 = vpop.f32.mrb[130].mxu0  ;;  %9332 = vmatprep.mubr.msk.f32.mxu0 %vm553_vm1, %v527_v32  ;;  %v5327_v46 = vmul.f32 %v11049_v56, %v5065_v34 }
 0x1ef   : > { %v5068_v47 = vmax.f32 %v3874_v40, 0.0  ;;  %v2048_v49 = vadd.f32 %v10941_v17, %v9175_v45  ;;  %v2042_v50 = vpop.f32.mrb[131].mxu0  ;;  %9333 = vmatmul.mubr.msk.f32.gmra.mrb[236].mxu0 %vm553_vm1, %v528_v38  ;;  %v5623_v6 = vsel %vm5565_vm3, %v5328_v53, 0.0 }
 0x1f0   : > { %v5067_v54 = vmax.f32 %v3869_v44, 0.0  ;;  %v2043_v55 = vadd.f32 %v10941_v17, %v2042_v50  ;;  %v9401_v57 = vpop.f32.mrb[22].mxu1  ;;  %9558 = vmatprep.mubr.msk.f32.mxu1 %vm2933_vm2, %v2799_v43  ;;  %5618 = vadd.xlane.f32.xlu1 %v5617_v51  ;;  %v5620_v58 = vsel %vm5565_vm3, %v5327_v46, 0.0  ;;  %v535_v44 = vld [vmem:[%s10367_s10 + $0x7a0] sm:$0xff]  ;;  %v536_v51 = vld [vmem:[%s10367_s10 + $0x7a8] sm:$0xff] }
 0x1f1   : > { %v2802_v60 = vmax.f32 %v2048_v49, 0.0  ;;  %v3884_v61 = vadd.f32 %v9401_v57, %v11034_v42  ;;  %v3878_v62 = vpop.f32.mrb[23].mxu1  ;;  %9559 = vmatmul.mubr.msk.f32.gmra.mrb[128].mxu1 %vm2933_vm2, %v2800_v39  ;;  %5621 = vadd.xlane.f32.xlu0 %v5620_v58  ;;  %v5330_v8 = vmul.f32 %v11049_v56, %v5068_v47 }
 0x1f2   : > { %v2801_v63 = vmax.f32 %v2043_v55, 0.0  ;;  %v3879_v0 = vadd.f32 %v11034_v42, %v3878_v62  ;;  %v9178_v1 = vpop.f32.mrb[132].mxu0  ;;  %9335 = vmatprep.mubr.msk.f32.mxu0 %vm553_vm1, %v529_v52  ;;  %v5329_v2 = vmul.f32 %v11049_v56, %v5067_v54 }
 0x1f3   : > { %v5070_v3 = vmax.f32 %v3884_v61, 0.0  ;;  %v2058_v4 = vadd.f32 %v10941_v17, %v9178_v1  ;;  %v2052_v5 = vpop.f32.mrb[133].mxu0  ;;  %9336 = vmatmul.mubr.msk.f32.gmra.mrb[238].mxu0 %vm553_vm1, %v530_v59  ;;  %v5629_v24 = vsel %vm5565_vm3, %v5330_v8, 0.0 }
 0x1f4   : > { %v5069_v9 = vmax.f32 %v3879_v0, 0.0  ;;  %v2053_v10 = vadd.f32 %v10941_v17, %v2052_v5  ;;  %v9404_v11 = vpop.f32.mrb[24].mxu1  ;;  %9561 = vmatprep.mubr.msk.f32.mxu1 %vm2933_vm2, %v2801_v63  ;;  %5624 = vadd.xlane.f32.xlu1 %v5623_v6  ;;  %v5626_v12 = vsel %vm5565_vm3, %v5329_v2, 0.0  ;;  %v537_v0 = vld [vmem:[%s10367_s10 + $0x7b0] sm:$0xff]  ;;  %v538_v6 = vld [vmem:[%s10367_s10 + $0x7b8] sm:$0xff] }
 0x1f5   : > { %v2804_v14 = vmax.f32 %v2058_v4, 0.0  ;;  %v3894_v15 = vadd.f32 %v9404_v11, %v11034_v42  ;;  %v3888_v16 = vpop.f32.mrb[25].mxu1  ;;  %9562 = vmatmul.mubr.msk.f32.gmra.mrb[130].mxu1 %vm2933_vm2, %v2802_v60  ;;  %5627 = vadd.xlane.f32.xlu0 %v5626_v12  ;;  %v5332_v26 = vmul.f32 %v11049_v56, %v5070_v3 }
 0x1f6   : > { %v2803_v48 = vmax.f32 %v2053_v10, 0.0  ;;  %v3889_v18 = vadd.f32 %v11034_v42, %v3888_v16  ;;  %v9181_v19 = vpop.f32.mrb[134].mxu0  ;;  %9338 = vmatprep.mubr.msk.f32.mxu0 %vm553_vm1, %v531_v7  ;;  %v5331_v20 = vmul.f32 %v11049_v56, %v5069_v9 }
 0x1f7   : > { %v5072_v21 = vmax.f32 %v3894_v15, 0.0  ;;  %v2068_v22 = vadd.f32 %v10941_v17, %v9181_v19  ;;  %v2062_v23 = vpop.f32.mrb[135].mxu0  ;;  %9339 = vmatmul.mubr.msk.f32.gmra.mrb[240].mxu0 %vm553_vm1, %v532_v13  ;;  %v5635_v43 = vsel %vm5565_vm3, %v5332_v26, 0.0 }
 0x1f8   : > { %v5071_v27 = vmax.f32 %v3889_v18, 0.0  ;;  %v2063_v28 = vadd.f32 %v10941_v17, %v2062_v23  ;;  %v9407_v29 = vpop.f32.mrb[26].mxu1  ;;  %9564 = vmatprep.mubr.msk.f32.mxu1 %vm2933_vm2, %v2803_v48  ;;  %5630 = vadd.xlane.f32.xlu1 %v5629_v24  ;;  %v5632_v30 = vsel %vm5565_vm3, %v5331_v20, 0.0  ;;  %v539_v18 = vld [vmem:[%s10367_s10 + $0x7c0] sm:$0xff]  ;;  %v540_v24 = vld [vmem:[%s10367_s10 + $0x7c8] sm:$0xff] }
 0x1f9   : > { %v2806_v32 = vmax.f32 %v2068_v22, 0.0  ;;  %v3904_v33 = vadd.f32 %v9407_v29, %v11034_v42  ;;  %v3898_v34 = vpop.f32.mrb[27].mxu1  ;;  %9565 = vmatmul.mubr.msk.f32.gmra.mrb[132].mxu1 %vm2933_vm2, %v2804_v14  ;;  %5633 = vadd.xlane.f32.xlu0 %v5632_v30  ;;  %v5334_v45 = vmul.f32 %v11049_v56, %v5072_v21 }
 0x1fa   : > { %v2805_v35 = vmax.f32 %v2063_v28, 0.0  ;;  %v3899_v36 = vadd.f32 %v11034_v42, %v3898_v34  ;;  %v9184_v37 = vpop.f32.mrb[136].mxu0  ;;  %9341 = vmatprep.mubr.msk.f32.mxu0 %vm553_vm1, %v533_v25  ;;  %v5333_v38 = vmul.f32 %v11049_v56, %v5071_v27 }
 0x1fb   : > { %v5074_v39 = vmax.f32 %v3904_v33, 0.0  ;;  %v2078_v40 = vadd.f32 %v10941_v17, %v9184_v37  ;;  %v2072_v41 = vpop.f32.mrb[137].mxu0  ;;  %9342 = vmatmul.mubr.msk.f32.gmra.mrb[242].mxu0 %vm553_vm1, %v534_v31  ;;  %v5641_v63 = vsel %vm5565_vm3, %v5334_v45, 0.0 }
 0x1fc   : > { %v5073_v46 = vmax.f32 %v3899_v36, 0.0  ;;  %v2073_v47 = vadd.f32 %v10941_v17, %v2072_v41  ;;  %v9410_v49 = vpop.f32.mrb[28].mxu1  ;;  %9567 = vmatprep.mubr.msk.f32.mxu1 %vm2933_vm2, %v2805_v35  ;;  %5636 = vadd.xlane.f32.xlu1 %v5635_v43  ;;  %v5638_v50 = vsel %vm5565_vm3, %v5333_v38, 0.0  ;;  %v541_v36 = vld [vmem:[%s10367_s10 + $0x7d0] sm:$0xff]  ;;  %v542_v43 = vld [vmem:[%s10367_s10 + $0x7d8] sm:$0xff] }
 0x1fd   : > { %v2808_v52 = vmax.f32 %v2078_v40, 0.0  ;;  %v3914_v53 = vadd.f32 %v9410_v49, %v11034_v42  ;;  %v3908_v54 = vpop.f32.mrb[29].mxu1  ;;  %9568 = vmatmul.mubr.msk.f32.gmra.mrb[134].mxu1 %vm2933_vm2, %v2806_v32  ;;  %5639 = vadd.xlane.f32.xlu0 %v5638_v50  ;;  %v5336_v1 = vmul.f32 %v11049_v56, %v5074_v39  ;;  %v11273_v32 = vld [vmem:[%s14485_s2] ss:$0 sm:$0xff] }
 0x1fe   : > { %v2807_v55 = vmax.f32 %v2073_v47, 0.0  ;;  %v3909_v57 = vadd.f32 %v11034_v42, %v3908_v54  ;;  %v9187_v58 = vpop.f32.mrb[138].mxu0  ;;  %9344 = vmatprep.mubr.msk.f32.mxu0 %vm553_vm1, %v535_v44  ;;  %v5335_v59 = vmul.f32 %v11049_v56, %v5073_v46 }
 0x1ff   : > { %v5076_v60 = vmax.f32 %v3914_v53, 0.0  ;;  %v2088_v61 = vadd.f32 %v10941_v17, %v9187_v58  ;;  %v2082_v62 = vpop.f32.mrb[139].mxu0  ;;  %9345 = vmatmul.mubr.msk.f32.gmra.mrb[244].mxu0 %vm553_vm1, %v536_v51  ;;  %v5647_v48 = vsel %vm5565_vm3, %v5336_v1, 0.0 }
 0x200   : > { %v5075_v2 = vmax.f32 %v3909_v57, 0.0  ;;  %v2083_v3 = vadd.f32 %v10941_v17, %v2082_v62  ;;  %v9413_v4 = vpop.f32.mrb[30].mxu1  ;;  %9570 = vmatprep.mubr.msk.f32.mxu1 %vm2933_vm2, %v2807_v55  ;;  %5642 = vadd.xlane.f32.xlu1 %v5641_v63  ;;  %v5644_v5 = vsel %vm5565_vm3, %v5335_v59, 0.0  ;;  %v543_v57 = vld [vmem:[%s10367_s10 + $0x7e0] sm:$0xff]  ;;  %v544_v63 = vld [vmem:[%s10367_s10 + $0x7e8] sm:$0xff] }
 0x201   : > { %v2810_v7 = vmax.f32 %v2088_v61, 0.0  ;;  %v3924_v8 = vadd.f32 %v9413_v4, %v11034_v42  ;;  %v3918_v9 = vpop.f32.mrb[31].mxu1  ;;  %9571 = vmatmul.mubr.msk.f32.gmra.mrb[136].mxu1 %vm2933_vm2, %v2808_v52  ;;  %5645 = vadd.xlane.f32.xlu0 %v5644_v5  ;;  %v5338_v19 = vmul.f32 %v11049_v56, %v5076_v60 }
 0x202   : > { %v2809_v10 = vmax.f32 %v2083_v3, 0.0  ;;  %v3919_v11 = vadd.f32 %v11034_v42, %v3918_v9  ;;  %v9190_v12 = vpop.f32.mrb[140].mxu0  ;;  %9347 = vmatprep.mubr.msk.f32.mxu0 %vm553_vm1, %v537_v0  ;;  %v5337_v13 = vmul.f32 %v11049_v56, %v5075_v2 }
 0x203   : > { %v5078_v14 = vmax.f32 %v3924_v8, 0.0  ;;  %v2098_v15 = vadd.f32 %v10941_v17, %v9190_v12  ;;  %v2092_v16 = vpop.f32.mrb[141].mxu0  ;;  %9348 = vmatmul.mubr.msk.f32.gmra.mrb[246].mxu0 %vm553_vm1, %v538_v6  ;;  %v5653_v35 = vsel %vm5565_vm3, %v5338_v19, 0.0 }
 0x204   : > { %v5077_v20 = vmax.f32 %v3919_v11, 0.0  ;;  %v2093_v21 = vadd.f32 %v10941_v17, %v2092_v16  ;;  %v9416_v22 = vpop.f32.mrb[32].mxu1  ;;  %9573 = vmatprep.mubr.msk.f32.mxu1 %vm2933_vm2, %v2809_v10  ;;  %5648 = vadd.xlane.f32.xlu1 %v5647_v48  ;;  %v5650_v23 = vsel %vm5565_vm3, %v5337_v13, 0.0  ;;  %v545_v11 = vld [vmem:[%s10367_s10 + $0x7f0] sm:$0xff]  ;;  %v546_v48 = vld [vmem:[%s10367_s10 + $0x7f8] sm:$0xff] }
 0x205   : > { %v2812_v25 = vmax.f32 %v2098_v15, 0.0  ;;  %v3934_v26 = vadd.f32 %v9416_v22, %v11034_v42  ;;  %v3928_v27 = vpop.f32.mrb[33].mxu1  ;;  %9574 = vmatmul.mubr.msk.f32.gmra.mrb[138].mxu1 %vm2933_vm2, %v2810_v7  ;;  %5651 = vadd.xlane.f32.xlu0 %v5650_v23  ;;  %v5340_v37 = vmul.f32 %v11049_v56, %v5078_v14 }
 0x206   : > { %v2811_v28 = vmax.f32 %v2093_v21, 0.0  ;;  %v3929_v29 = vadd.f32 %v11034_v42, %v3928_v27  ;;  %v9193_v30 = vpop.f32.mrb[142].mxu0  ;;  %9350 = vmatprep.mubr.msk.f32.mxu0 %vm553_vm1, %v539_v18  ;;  %v5339_v17 = vmul.f32 %v11049_v56, %v5077_v20 }
 0x207   : > { %v5080_v31 = vmax.f32 %v3934_v26, 0.0  ;;  %v2108_v33 = vadd.f32 %v11273_v32, %v9193_v30  ;;  %v2102_v34 = vpop.f32.mrb[143].mxu0  ;;  %9351 = vmatmul.mubr.msk.f32.gmra.mrb[248].mxu0 %vm553_vm1, %v540_v24  ;;  %v5659_v55 = vsel %vm5565_vm3, %v5340_v37, 0.0 }
 0x208   : > { %v5079_v38 = vmax.f32 %v3929_v29, 0.0  ;;  %v2103_v39 = vadd.f32 %v11273_v32, %v2102_v34  ;;  %v9419_v40 = vpop.f32.mrb[34].mxu1  ;;  %9576 = vmatprep.mubr.msk.f32.mxu1 %vm2933_vm2, %v2811_v28  ;;  %5654 = vadd.xlane.f32.xlu1 %v5653_v35  ;;  %v5656_v41 = vsel %vm5565_vm3, %v5339_v17, 0.0 }
 0x209   : > { %v2814_v44 = vmax.f32 %v2108_v33, 0.0  ;;  %v3944_v45 = vadd.f32 %v9419_v40, %v11034_v42  ;;  %v3938_v46 = vpop.f32.mrb[35].mxu1  ;;  %9577 = vmatmul.mubr.msk.f32.gmra.mrb[140].mxu1 %vm2933_vm2, %v2812_v25  ;;  %5657 = vadd.xlane.f32.xlu0 %v5656_v41  ;;  %v5342_v58 = vmul.f32 %v11049_v56, %v5080_v31 }
 0x20a   : > { %v2813_v47 = vmax.f32 %v2103_v39, 0.0  ;;  %v3939_v49 = vadd.f32 %v11034_v42, %v3938_v46  ;;  %v9196_v50 = vpop.f32.mrb[144].mxu0  ;;  %9353 = vmatprep.mubr.msk.f32.mxu0 %vm553_vm1, %v541_v36  ;;  %v5341_v51 = vmul.f32 %v11049_v56, %v5079_v38 }
 0x20b   : > { %v5082_v52 = vmax.f32 %v3944_v45, 0.0  ;;  %v2118_v53 = vadd.f32 %v11273_v32, %v9196_v50  ;;  %v2112_v54 = vpop.f32.mrb[145].mxu0  ;;  %9354 = vmatmul.mubr.msk.f32.gmra.mrb[250].mxu0 %vm553_vm1, %v542_v43  ;;  %v5665_v10 = vsel %vm5565_vm3, %v5342_v58, 0.0 }
 0x20c   : > { %v5081_v59 = vmax.f32 %v3939_v49, 0.0  ;;  %v2113_v60 = vadd.f32 %v11273_v32, %v2112_v54  ;;  %v9422_v61 = vpop.f32.mrb[36].mxu1  ;;  %9579 = vmatprep.mubr.msk.f32.mxu1 %vm2933_vm2, %v2813_v47  ;;  %5660 = vadd.xlane.f32.xlu1 %v5659_v55  ;;  %v5662_v62 = vsel %vm5565_vm3, %v5341_v51, 0.0 }
 0x20d   : > { %v2816_v0 = vmax.f32 %v2118_v53, 0.0  ;;  %v3954_v1 = vadd.f32 %v9422_v61, %v11034_v42  ;;  %v3948_v2 = vpop.f32.mrb[37].mxu1  ;;  %9580 = vmatmul.mubr.msk.f32.gmra.mrb[142].mxu1 %vm2933_vm2, %v2814_v44  ;;  %5663 = vadd.xlane.f32.xlu0 %v5662_v62  ;;  %v5344_v12 = vmul.f32 %v11049_v56, %v5082_v52 }
 0x20e   : > { %v2815_v3 = vmax.f32 %v2113_v60, 0.0  ;;  %v3949_v4 = vadd.f32 %v11034_v42, %v3948_v2  ;;  %v9199_v5 = vpop.f32.mrb[146].mxu0  ;;  %9356 = vmatprep.mubr.msk.f32.mxu0 %vm553_vm1, %v543_v57  ;;  %v5343_v6 = vmul.f32 %v11049_v56, %v5081_v59 }
 0x20f   : > { %v5084_v7 = vmax.f32 %v3954_v1, 0.0  ;;  %v2128_v8 = vadd.f32 %v11273_v32, %v9199_v5  ;;  %v2122_v9 = vpop.f32.mrb[147].mxu0  ;;  %9357 = vmatmul.mubr.msk.f32.gmra.mrb[252].mxu0 %vm553_vm1, %v544_v63  ;;  %v5671_v28 = vsel %vm5565_vm3, %v5344_v12, 0.0  ;;  %v11347_v5 = vld [vmem:[%s14487_s4] ss:$0 sm:$0xff] }
 0x210   : > { %v5083_v13 = vmax.f32 %v3949_v4, 0.0  ;;  %v2123_v14 = vadd.f32 %v11273_v32, %v2122_v9  ;;  %v9425_v15 = vpop.f32.mrb[38].mxu1  ;;  %9582 = vmatprep.mubr.msk.f32.mxu1 %vm2933_vm2, %v2815_v3  ;;  %5666 = vadd.xlane.f32.xlu1 %v5665_v10  ;;  %v5668_v16 = vsel %vm5565_vm3, %v5343_v6, 0.0 }
 0x211   : > { %v2818_v18 = vmax.f32 %v2128_v8, 0.0  ;;  %v3964_v19 = vadd.f32 %v9425_v15, %v11034_v42  ;;  %v3958_v20 = vpop.f32.mrb[39].mxu1  ;;  %9583 = vmatmul.mubr.msk.f32.gmra.mrb[144].mxu1 %vm2933_vm2, %v2816_v0  ;;  %5669 = vadd.xlane.f32.xlu0 %v5668_v16  ;;  %v5346_v29 = vmul.f32 %v11049_v56, %v5084_v7  ;;  %v11358_v16 = vld [vmem:[%s14488_s5] ss:$0 sm:$0xff] }
 0x212   : > { %v2817_v21 = vmax.f32 %v2123_v14, 0.0  ;;  %v3959_v22 = vadd.f32 %v11034_v42, %v3958_v20  ;;  %v9202_v23 = vpop.f32.mrb[148].mxu0  ;;  %9359 = vmatprep.mubr.msk.f32.mxu0 %vm553_vm1, %v545_v11  ;;  %v5345_v24 = vmul.f32 %v11049_v56, %v5083_v13 }
 0x213   : > { %v5086_v25 = vmax.f32 %v3964_v19, 0.0  ;;  %v2138_v26 = vadd.f32 %v11273_v32, %v9202_v23  ;;  %v2132_v27 = vpop.f32.mrb[149].mxu0  ;;  %9360 = vmatmul.mubr.msk.f32.gmra.mrb[254].mxu0 %vm553_vm1, %v546_v48  ;;  %v5677_v45 = vsel %vm5565_vm3, %v5346_v29, 0.0 }
 0x214   : > { %v5085_v30 = vmax.f32 %v3959_v22, 0.0  ;;  %v2133_v17 = vadd.f32 %v11273_v32, %v2132_v27  ;;  %v9428_v31 = vpop.f32.mrb[40].mxu1  ;;  %9585 = vmatprep.mubr.msk.f32.mxu1 %vm2933_vm2, %v2817_v21  ;;  %5672 = vadd.xlane.f32.xlu1 %v5671_v28  ;;  %v5674_v33 = vsel %vm5565_vm3, %v5345_v24, 0.0 }
 0x215   : > { %v2820_v34 = vmax.f32 %v2138_v26, 0.0  ;;  %v3974_v35 = vadd.f32 %v9428_v31, %v11034_v42  ;;  %v3968_v36 = vpop.f32.mrb[41].mxu1  ;;  %9586 = vmatmul.mubr.msk.f32.gmra.mrb[146].mxu1 %vm2933_vm2, %v2818_v18  ;;  %5675 = vadd.xlane.f32.xlu0 %v5674_v33  ;;  %v5348_v46 = vmul.f32 %v11049_v56, %v5086_v25 }
 0x216   : > { %v2819_v37 = vmax.f32 %v2133_v17, 0.0  ;;  %v3969_v38 = vadd.f32 %v11034_v42, %v3968_v36  ;;  %v9205_v39 = vpop.f32.mrb[150].mxu0  ;;  %v5347_v40 = vmul.f32 %v11049_v56, %v5085_v30 }
 0x217   : > { %v5088_v41 = vmax.f32 %v3974_v35, 0.0  ;;  %v2148_v43 = vadd.f32 %v11273_v32, %v9205_v39  ;;  %v2142_v44 = vpop.f32.mrb[151].mxu0  ;;  %v5683_v63 = vsel %vm5565_vm3, %v5348_v46, 0.0 }
 0x218   : > { %v5087_v47 = vmax.f32 %v3969_v38, 0.0  ;;  %v2143_v49 = vadd.f32 %v11273_v32, %v2142_v44  ;;  %v9431_v50 = vpop.f32.mrb[42].mxu1  ;;  %9588 = vmatprep.mubr.msk.f32.mxu1 %vm2933_vm2, %v2819_v37  ;;  %5678 = vadd.xlane.f32.xlu1 %v5677_v45  ;;  %v5680_v51 = vsel %vm5565_vm3, %v5347_v40, 0.0 }
 0x219   : > { %v2822_v52 = vmax.f32 %v2148_v43, 0.0  ;;  %v3984_v53 = vadd.f32 %v9431_v50, %v11034_v42  ;;  %v3978_v54 = vpop.f32.mrb[43].mxu1  ;;  %9589 = vmatmul.mubr.msk.f32.gmra.mrb[148].mxu1 %vm2933_vm2, %v2820_v34  ;;  %5681 = vadd.xlane.f32.xlu0 %v5680_v51  ;;  %v5350_v0 = vmul.f32 %v11049_v56, %v5088_v41 }
 0x21a   : > { %v2821_v55 = vmax.f32 %v2143_v49, 0.0  ;;  %v3979_v57 = vadd.f32 %v11034_v42, %v3978_v54  ;;  %v9208_v58 = vpop.f32.mrb[152].mxu0  ;;  %v5349_v59 = vmul.f32 %v11049_v56, %v5087_v47 }
 0x21b   : > { %v5090_v60 = vmax.f32 %v3984_v53, 0.0  ;;  %v2158_v61 = vadd.f32 %v11273_v32, %v9208_v58  ;;  %v2152_v62 = vpop.f32.mrb[153].mxu0  ;;  %v5689_v15 = vsel %vm5565_vm3, %v5350_v0, 0.0 }
 0x21c   : > { %v5089_v1 = vmax.f32 %v3979_v57, 0.0  ;;  %v2153_v2 = vadd.f32 %v11273_v32, %v2152_v62  ;;  %v9434_v3 = vpop.f32.mrb[44].mxu1  ;;  %9591 = vmatprep.mubr.msk.f32.mxu1 %vm2933_vm2, %v2821_v55  ;;  %5684 = vadd.xlane.f32.xlu1 %v5683_v63  ;;  %v5686_v42 = vsel %vm5565_vm3, %v5349_v59, 0.0 }
 0x21d   : > { %v2824_v4 = vmax.f32 %v2158_v61, 0.0  ;;  %v3994_v6 = vadd.f32 %v11347_v5, %v9434_v3  ;;  %v3988_v7 = vpop.f32.mrb[45].mxu1  ;;  %9592 = vmatmul.mubr.msk.f32.gmra.mrb[150].mxu1 %vm2933_vm2, %v2822_v52  ;;  %5687 = vadd.xlane.f32.xlu0 %v5686_v42  ;;  %v5352_v48 = vmul.f32 %v11358_v16, %v5090_v60 }
 0x21e   : > { %v2823_v8 = vmax.f32 %v2153_v2, 0.0  ;;  %v3989_v9 = vadd.f32 %v11347_v5, %v3988_v7  ;;  %v9211_v10 = vpop.f32.mrb[154].mxu0  ;;  %v5351_v11 = vmul.f32 %v11049_v56, %v5089_v1 }
 0x21f   : > { %v5092_v12 = vmax.f32 %v3994_v6, 0.0  ;;  %v2168_v13 = vadd.f32 %v11273_v32, %v9211_v10  ;;  %v2162_v14 = vpop.f32.mrb[155].mxu0  ;;  %v5695_v17 = vsel %vm5565_vm3, %v5352_v48, 0.0 }
 0x220   : > { %v5091_v18 = vmax.f32 %v3989_v9, 0.0  ;;  %v2163_v19 = vadd.f32 %v11273_v32, %v2162_v14  ;;  %v9437_v20 = vpop.f32.mrb[46].mxu1  ;;  %9594 = vmatprep.mubr.msk.f32.mxu1 %vm2933_vm2, %v2823_v8  ;;  %5690 = vadd.xlane.f32.xlu1 %v5689_v15  ;;  %v5692_v56 = vsel %vm5565_vm3, %v5351_v11, 0.0 }
 0x221   : > { %v2826_v21 = vmax.f32 %v2168_v13, 0.0  ;;  %v4004_v22 = vadd.f32 %v11347_v5, %v9437_v20  ;;  %v3998_v23 = vpop.f32.mrb[47].mxu1  ;;  %9595 = vmatmul.mubr.msk.f32.gmra.mrb[152].mxu1 %vm2933_vm2, %v2824_v4  ;;  %5693 = vadd.xlane.f32.xlu0 %v5692_v56  ;;  %v5354_v31 = vmul.f32 %v11358_v16, %v5092_v12 }
 0x222   : > { %v2825_v24 = vmax.f32 %v2163_v19, 0.0  ;;  %v3999_v25 = vadd.f32 %v11347_v5, %v3998_v23  ;;  %v9214_v26 = vpop.f32.mrb[156].mxu0  ;;  %v5353_v27 = vmul.f32 %v11358_v16, %v5091_v18 }
 0x223   : > { %v5094_v28 = vmax.f32 %v4004_v22, 0.0  ;;  %v2178_v29 = vadd.f32 %v11273_v32, %v9214_v26  ;;  %v2172_v30 = vpop.f32.mrb[157].mxu0  ;;  %v5701_v49 = vsel %vm5565_vm3, %v5354_v31, 0.0 }
 0x224   : > { %v5093_v33 = vmax.f32 %v3999_v25, 0.0  ;;  %v2173_v34 = vadd.f32 %v11273_v32, %v2172_v30  ;;  %v9440_v35 = vpop.f32.mrb[48].mxu1  ;;  %9597 = vmatprep.mubr.msk.f32.mxu1 %vm2933_vm2, %v2825_v24  ;;  %5696 = vadd.xlane.f32.xlu1 %v5695_v17  ;;  %v5698_v36 = vsel %vm5565_vm3, %v5353_v27, 0.0 }
 0x225   : > { %v2828_v37 = vmax.f32 %v2178_v29, 0.0  ;;  %v4014_v38 = vadd.f32 %v11347_v5, %v9440_v35  ;;  %v4008_v39 = vpop.f32.mrb[49].mxu1  ;;  %9598 = vmatmul.mubr.msk.f32.gmra.mrb[154].mxu1 %vm2933_vm2, %v2826_v21  ;;  %5699 = vadd.xlane.f32.xlu0 %v5698_v36  ;;  %v5356_v50 = vmul.f32 %v11358_v16, %v5094_v28 }
 0x226   : > { %v2827_v40 = vmax.f32 %v2173_v34, 0.0  ;;  %v4009_v41 = vadd.f32 %v11347_v5, %v4008_v39  ;;  %v9217_v43 = vpop.f32.mrb[158].mxu0  ;;  %v5355_v44 = vmul.f32 %v11358_v16, %v5093_v33 }
 0x227   : > { %v5096_v45 = vmax.f32 %v4014_v38, 0.0  ;;  %v2188_v46 = vadd.f32 %v11273_v32, %v9217_v43  ;;  %v2182_v47 = vpop.f32.mrb[159].mxu0  ;;  %v5707_v2 = vsel %vm5565_vm3, %v5356_v50, 0.0 }
 0x228   : > { %v5095_v51 = vmax.f32 %v4009_v41, 0.0  ;;  %v2183_v52 = vadd.f32 %v11273_v32, %v2182_v47  ;;  %v9443_v53 = vpop.f32.mrb[50].mxu1  ;;  %9600 = vmatprep.mubr.msk.f32.mxu1 %vm2933_vm2, %v2827_v40  ;;  %5702 = vadd.xlane.f32.xlu1 %v5701_v49  ;;  %v5704_v54 = vsel %vm5565_vm3, %v5355_v44, 0.0 }
 0x229   : > { %v2830_v55 = vmax.f32 %v2188_v46, 0.0  ;;  %v4024_v57 = vadd.f32 %v11347_v5, %v9443_v53  ;;  %v4018_v58 = vpop.f32.mrb[51].mxu1  ;;  %9601 = vmatmul.mubr.msk.f32.gmra.mrb[156].mxu1 %vm2933_vm2, %v2828_v37  ;;  %5705 = vadd.xlane.f32.xlu0 %v5704_v54  ;;  %v5358_v3 = vmul.f32 %v11358_v16, %v5096_v45 }
 0x22a   : > { %v2829_v59 = vmax.f32 %v2183_v52, 0.0  ;;  %v4019_v60 = vadd.f32 %v11347_v5, %v4018_v58  ;;  %v9220_v61 = vpop.f32.mrb[160].mxu0  ;;  %v5357_v62 = vmul.f32 %v11358_v16, %v5095_v51 }
 0x22b   : > { %v5098_v63 = vmax.f32 %v4024_v57, 0.0  ;;  %v2198_v0 = vadd.f32 %v11273_v32, %v9220_v61  ;;  %v2192_v1 = vpop.f32.mrb[161].mxu0  ;;  %v5713_v19 = vsel %vm5565_vm3, %v5358_v3, 0.0 }
 0x22c   : > { %v5097_v42 = vmax.f32 %v4019_v60, 0.0  ;;  %v2193_v4 = vadd.f32 %v11273_v32, %v2192_v1  ;;  %v9446_v6 = vpop.f32.mrb[52].mxu1  ;;  %9603 = vmatprep.mubr.msk.f32.mxu1 %vm2933_vm2, %v2829_v59  ;;  %5708 = vadd.xlane.f32.xlu1 %v5707_v2  ;;  %v5710_v7 = vsel %vm5565_vm3, %v5357_v62, 0.0 }
 0x22d   : > { %v2832_v8 = vmax.f32 %v2198_v0, 0.0  ;;  %v4034_v9 = vadd.f32 %v11347_v5, %v9446_v6  ;;  %v4028_v10 = vpop.f32.mrb[53].mxu1  ;;  %9604 = vmatmul.mubr.msk.f32.gmra.mrb[158].mxu1 %vm2933_vm2, %v2830_v55  ;;  %5711 = vadd.xlane.f32.xlu0 %v5710_v7  ;;  %v5360_v20 = vmul.f32 %v11358_v16, %v5098_v63 }
 0x22e   : > { %v2831_v11 = vmax.f32 %v2193_v4, 0.0  ;;  %v4029_v12 = vadd.f32 %v11347_v5, %v4028_v10  ;;  %v9223_v13 = vpop.f32.mrb[162].mxu0  ;;  %v5359_v14 = vmul.f32 %v11358_v16, %v5097_v42 }
 0x22f   : > { %v5100_v15 = vmax.f32 %v4034_v9, 0.0  ;;  %v2208_v48 = vadd.f32 %v11273_v32, %v9223_v13  ;;  %v2202_v18 = vpop.f32.mrb[163].mxu0  ;;  %v5719_v34 = vsel %vm5565_vm3, %v5360_v20, 0.0 }
 0x230   : > { %v5099_v56 = vmax.f32 %v4029_v12, 0.0  ;;  %v2203_v21 = vadd.f32 %v11273_v32, %v2202_v18  ;;  %v9449_v22 = vpop.f32.mrb[54].mxu1  ;;  %9606 = vmatprep.mubr.msk.f32.mxu1 %vm2933_vm2, %v2831_v11  ;;  %5714 = vadd.xlane.f32.xlu1 %v5713_v19  ;;  %v5716_v23 = vsel %vm5565_vm3, %v5359_v14, 0.0 }
 0x231   : > { %v2834_v24 = vmax.f32 %v2208_v48, 0.0  ;;  %v4044_v25 = vadd.f32 %v11347_v5, %v9449_v22  ;;  %v4038_v26 = vpop.f32.mrb[55].mxu1  ;;  %9607 = vmatmul.mubr.msk.f32.gmra.mrb[160].mxu1 %vm2933_vm2, %v2832_v8  ;;  %5717 = vadd.xlane.f32.xlu0 %v5716_v23  ;;  %v5362_v35 = vmul.f32 %v11358_v16, %v5100_v15 }
 0x232   : > { %v2833_v27 = vmax.f32 %v2203_v21, 0.0  ;;  %v4039_v28 = vadd.f32 %v11347_v5, %v4038_v26  ;;  %v9226_v29 = vpop.f32.mrb[164].mxu0  ;;  %v5361_v30 = vmul.f32 %v11358_v16, %v5099_v56 }
 0x233   : > { %v5102_v17 = vmax.f32 %v4044_v25, 0.0  ;;  %v2218_v31 = vadd.f32 %v11273_v32, %v9226_v29  ;;  %v2212_v33 = vpop.f32.mrb[165].mxu0  ;;  %v5725_v52 = vsel %vm5565_vm3, %v5362_v35, 0.0 }
 0x234   : > { %v5101_v36 = vmax.f32 %v4039_v28, 0.0  ;;  %v2213_v37 = vadd.f32 %v11273_v32, %v2212_v33  ;;  %v9452_v38 = vpop.f32.mrb[56].mxu1  ;;  %9609 = vmatprep.mubr.msk.f32.mxu1 %vm2933_vm2, %v2833_v27  ;;  %5720 = vadd.xlane.f32.xlu1 %v5719_v34  ;;  %v5722_v39 = vsel %vm5565_vm3, %v5361_v30, 0.0 }
 0x235   : > { %v2836_v40 = vmax.f32 %v2218_v31, 0.0  ;;  %v4054_v41 = vadd.f32 %v11347_v5, %v9452_v38  ;;  %v4048_v43 = vpop.f32.mrb[57].mxu1  ;;  %9610 = vmatmul.mubr.msk.f32.gmra.mrb[162].mxu1 %vm2933_vm2, %v2834_v24  ;;  %5723 = vadd.xlane.f32.xlu0 %v5722_v39  ;;  %v5364_v53 = vmul.f32 %v11358_v16, %v5102_v17 }
 0x236   : > { %v2835_v44 = vmax.f32 %v2213_v37, 0.0  ;;  %v4049_v45 = vadd.f32 %v11347_v5, %v4048_v43  ;;  %v9229_v46 = vpop.f32.mrb[166].mxu0  ;;  %v5363_v47 = vmul.f32 %v11358_v16, %v5101_v36 }
 0x237   : > { %v5104_v49 = vmax.f32 %v4054_v41, 0.0  ;;  %v2228_v50 = vadd.f32 %v11273_v32, %v9229_v46  ;;  %v2222_v51 = vpop.f32.mrb[167].mxu0  ;;  %v5731_v4 = vsel %vm5565_vm3, %v5364_v53, 0.0 }
 0x238   : > { %v5103_v54 = vmax.f32 %v4049_v45, 0.0  ;;  %v2223_v55 = vadd.f32 %v11273_v32, %v2222_v51  ;;  %v9455_v57 = vpop.f32.mrb[58].mxu1  ;;  %9612 = vmatprep.mubr.msk.f32.mxu1 %vm2933_vm2, %v2835_v44  ;;  %5726 = vadd.xlane.f32.xlu1 %v5725_v52  ;;  %v5728_v58 = vsel %vm5565_vm3, %v5363_v47, 0.0 }
 0x239   : > { %v2838_v59 = vmax.f32 %v2228_v50, 0.0  ;;  %v4064_v60 = vadd.f32 %v11347_v5, %v9455_v57  ;;  %v4058_v61 = vpop.f32.mrb[59].mxu1  ;;  %9613 = vmatmul.mubr.msk.f32.gmra.mrb[164].mxu1 %vm2933_vm2, %v2836_v40  ;;  %5729 = vadd.xlane.f32.xlu0 %v5728_v58  ;;  %v5366_v6 = vmul.f32 %v11358_v16, %v5104_v49 }
 0x23a   : > { %v2837_v62 = vmax.f32 %v2223_v55, 0.0  ;;  %v4059_v63 = vadd.f32 %v11347_v5, %v4058_v61  ;;  %v9232_v0 = vpop.f32.mrb[168].mxu0  ;;  %v5365_v1 = vmul.f32 %v11358_v16, %v5103_v54 }
 0x23b   : > { %v5106_v2 = vmax.f32 %v4064_v60, 0.0  ;;  %v2238_v3 = vadd.f32 %v11273_v32, %v9232_v0  ;;  %v2232_v42 = vpop.f32.mrb[169].mxu0  ;;  %v5737_v21 = vsel %vm5565_vm3, %v5366_v6, 0.0 }
 0x23c   : > { %v5105_v7 = vmax.f32 %v4059_v63, 0.0  ;;  %v2233_v8 = vadd.f32 %v11273_v32, %v2232_v42  ;;  %v9458_v9 = vpop.f32.mrb[60].mxu1  ;;  %9615 = vmatprep.mubr.msk.f32.mxu1 %vm2933_vm2, %v2837_v62  ;;  %5732 = vadd.xlane.f32.xlu1 %v5731_v4  ;;  %v5734_v10 = vsel %vm5565_vm3, %v5365_v1, 0.0 }
 0x23d   : > { %v2840_v11 = vmax.f32 %v2238_v3, 0.0  ;;  %v4074_v12 = vadd.f32 %v11347_v5, %v9458_v9  ;;  %v4068_v13 = vpop.f32.mrb[61].mxu1  ;;  %9616 = vmatmul.mubr.msk.f32.gmra.mrb[166].mxu1 %vm2933_vm2, %v2838_v59  ;;  %5735 = vadd.xlane.f32.xlu0 %v5734_v10  ;;  %v5368_v22 = vmul.f32 %v11358_v16, %v5106_v2 }
 0x23e   : > { %v2839_v14 = vmax.f32 %v2233_v8, 0.0  ;;  %v4069_v15 = vadd.f32 %v11347_v5, %v4068_v13  ;;  %v9235_v48 = vpop.f32.mrb[170].mxu0  ;;  %v5367_v18 = vmul.f32 %v11358_v16, %v5105_v7 }
 0x23f   : > { %v5108_v19 = vmax.f32 %v4074_v12, 0.0  ;;  %v2248_v20 = vadd.f32 %v11273_v32, %v9235_v48  ;;  %v2242_v56 = vpop.f32.mrb[171].mxu0  ;;  %v5743_v37 = vsel %vm5565_vm3, %v5368_v22, 0.0 }
 0x240   : > { %v5107_v23 = vmax.f32 %v4069_v15, 0.0  ;;  %v2243_v24 = vadd.f32 %v11273_v32, %v2242_v56  ;;  %v9461_v25 = vpop.f32.mrb[62].mxu1  ;;  %9618 = vmatprep.mubr.msk.f32.mxu1 %vm2933_vm2, %v2839_v14  ;;  %5738 = vadd.xlane.f32.xlu1 %v5737_v21  ;;  %v5740_v26 = vsel %vm5565_vm3, %v5367_v18, 0.0 }
 0x241   : > { %v2842_v27 = vmax.f32 %v2248_v20, 0.0  ;;  %v4084_v28 = vadd.f32 %v11347_v5, %v9461_v25  ;;  %v4078_v29 = vpop.f32.mrb[63].mxu1  ;;  %9619 = vmatmul.mubr.msk.f32.gmra.mrb[168].mxu1 %vm2933_vm2, %v2840_v11  ;;  %5741 = vadd.xlane.f32.xlu0 %v5740_v26  ;;  %v5370_v38 = vmul.f32 %v11358_v16, %v5108_v19 }
 0x242   : > { %v2841_v30 = vmax.f32 %v2243_v24, 0.0  ;;  %v4079_v17 = vadd.f32 %v11347_v5, %v4078_v29  ;;  %v9238_v31 = vpop.f32.mrb[172].mxu0  ;;  %v5369_v33 = vmul.f32 %v11358_v16, %v5107_v23 }
 0x243   : > { %v5110_v34 = vmax.f32 %v4084_v28, 0.0  ;;  %v2258_v35 = vadd.f32 %v11273_v32, %v9238_v31  ;;  %v2252_v36 = vpop.f32.mrb[173].mxu0  ;;  %v5749_v55 = vsel %vm5565_vm3, %v5370_v38, 0.0 }
 0x244   : > { %v5109_v39 = vmax.f32 %v4079_v17, 0.0  ;;  %v2253_v40 = vadd.f32 %v11273_v32, %v2252_v36  ;;  %v9464_v41 = vpop.f32.mrb[64].mxu1  ;;  %9621 = vmatprep.mubr.msk.f32.mxu1 %vm2933_vm2, %v2841_v30  ;;  %5744 = vadd.xlane.f32.xlu1 %v5743_v37  ;;  %v5746_v43 = vsel %vm5565_vm3, %v5369_v33, 0.0 }
 0x245   : > { %v2844_v44 = vmax.f32 %v2258_v35, 0.0  ;;  %v4094_v45 = vadd.f32 %v11347_v5, %v9464_v41  ;;  %v4088_v46 = vpop.f32.mrb[65].mxu1  ;;  %9622 = vmatmul.mubr.msk.f32.gmra.mrb[170].mxu1 %vm2933_vm2, %v2842_v27  ;;  %5747 = vadd.xlane.f32.xlu0 %v5746_v43  ;;  %v5372_v57 = vmul.f32 %v11358_v16, %v5110_v34 }
 0x246   : > { %v2843_v47 = vmax.f32 %v2253_v40, 0.0  ;;  %v4089_v49 = vadd.f32 %v11347_v5, %v4088_v46  ;;  %v9241_v50 = vpop.f32.mrb[174].mxu0  ;;  %v5371_v51 = vmul.f32 %v11358_v16, %v5109_v39 }
 0x247   : > { %v5112_v52 = vmax.f32 %v4094_v45, 0.0  ;;  %v2268_v53 = vadd.f32 %v11273_v32, %v9241_v50  ;;  %v2262_v54 = vpop.f32.mrb[175].mxu0  ;;  %v5755_v8 = vsel %vm5565_vm3, %v5372_v57, 0.0 }
 0x248   : > { %v5111_v58 = vmax.f32 %v4089_v49, 0.0  ;;  %v2263_v59 = vadd.f32 %v11273_v32, %v2262_v54  ;;  %v9467_v60 = vpop.f32.mrb[66].mxu1  ;;  %9624 = vmatprep.mubr.msk.f32.mxu1 %vm2933_vm2, %v2843_v47  ;;  %5750 = vadd.xlane.f32.xlu1 %v5749_v55  ;;  %v5752_v61 = vsel %vm5565_vm3, %v5371_v51, 0.0 }
 0x249   : > { %v2846_v62 = vmax.f32 %v2268_v53, 0.0  ;;  %v4104_v63 = vadd.f32 %v11347_v5, %v9467_v60  ;;  %v4098_v0 = vpop.f32.mrb[67].mxu1  ;;  %9625 = vmatmul.mubr.msk.f32.gmra.mrb[172].mxu1 %vm2933_vm2, %v2844_v44  ;;  %5753 = vadd.xlane.f32.xlu0 %v5752_v61  ;;  %v5374_v9 = vmul.f32 %v11358_v16, %v5112_v52  ;;  %v11500_v60 = vld [vmem:[#allocation2] ss:$0 sm:$0xff] }
 0x24a   : > { %v2845_v1 = vmax.f32 %v2263_v59, 0.0  ;;  %v4099_v2 = vadd.f32 %v11347_v5, %v4098_v0  ;;  %v9244_v3 = vpop.f32.mrb[176].mxu0  ;;  %v5373_v42 = vmul.f32 %v11358_v16, %v5111_v58 }
 0x24b   : > { %v5114_v4 = vmax.f32 %v4104_v63, 0.0  ;;  %v2278_v6 = vadd.f32 %v11273_v32, %v9244_v3  ;;  %v2272_v7 = vpop.f32.mrb[177].mxu0  ;;  %v5761_v24 = vsel %vm5565_vm3, %v5374_v9, 0.0 }
 0x24c   : > { %v5113_v10 = vmax.f32 %v4099_v2, 0.0  ;;  %v2273_v11 = vadd.f32 %v11273_v32, %v2272_v7  ;;  %v9470_v12 = vpop.f32.mrb[68].mxu1  ;;  %9627 = vmatprep.mubr.msk.f32.mxu1 %vm2933_vm2, %v2845_v1  ;;  %5756 = vadd.xlane.f32.xlu1 %v5755_v8  ;;  %v5758_v13 = vsel %vm5565_vm3, %v5373_v42, 0.0 }
 0x24d   : > { %v2848_v14 = vmax.f32 %v2278_v6, 0.0  ;;  %v4114_v15 = vadd.f32 %v11347_v5, %v9470_v12  ;;  %v4108_v48 = vpop.f32.mrb[69].mxu1  ;;  %9628 = vmatmul.mubr.msk.f32.gmra.mrb[174].mxu1 %vm2933_vm2, %v2846_v62  ;;  %5759 = vadd.xlane.f32.xlu0 %v5758_v13  ;;  %v5376_v25 = vmul.f32 %v11358_v16, %v5114_v4 }
 0x24e   : > { %v2847_v18 = vmax.f32 %v2273_v11, 0.0  ;;  %v4109_v19 = vadd.f32 %v11347_v5, %v4108_v48  ;;  %v9247_v20 = vpop.f32.mrb[178].mxu0  ;;  %v5375_v56 = vmul.f32 %v11358_v16, %v5113_v10 }
 0x24f   : > { %v5116_v21 = vmax.f32 %v4114_v15, 0.0  ;;  %v2288_v22 = vadd.f32 %v11273_v32, %v9247_v20  ;;  %v2282_v23 = vpop.f32.mrb[179].mxu0  ;;  %v5767_v40 = vsel %vm5565_vm3, %v5376_v25, 0.0 }
 0x250   : > { %v5115_v26 = vmax.f32 %v4109_v19, 0.0  ;;  %v2283_v27 = vadd.f32 %v11273_v32, %v2282_v23  ;;  %v9473_v28 = vpop.f32.mrb[70].mxu1  ;;  %9630 = vmatprep.mubr.msk.f32.mxu1 %vm2933_vm2, %v2847_v18  ;;  %5762 = vadd.xlane.f32.xlu1 %v5761_v24  ;;  %v5764_v29 = vsel %vm5565_vm3, %v5375_v56, 0.0 }
 0x251   : > { %v2850_v30 = vmax.f32 %v2288_v22, 0.0  ;;  %v4124_v17 = vadd.f32 %v11347_v5, %v9473_v28  ;;  %v4118_v31 = vpop.f32.mrb[71].mxu1  ;;  %9631 = vmatmul.mubr.msk.f32.gmra.mrb[176].mxu1 %vm2933_vm2, %v2848_v14  ;;  %5765 = vadd.xlane.f32.xlu0 %v5764_v29  ;;  %v5378_v41 = vmul.f32 %v11358_v16, %v5116_v21 }
 0x252   : > { %v2849_v33 = vmax.f32 %v2283_v27, 0.0  ;;  %v4119_v34 = vadd.f32 %v11347_v5, %v4118_v31  ;;  %v9250_v35 = vpop.f32.mrb[180].mxu0  ;;  %v5377_v36 = vmul.f32 %v11358_v16, %v5115_v26 }
 0x253   : > { %v5118_v37 = vmax.f32 %v4124_v17, 0.0  ;;  %v2298_v38 = vadd.f32 %v11273_v32, %v9250_v35  ;;  %v2292_v39 = vpop.f32.mrb[181].mxu0  ;;  %v5773_v59 = vsel %vm5565_vm3, %v5378_v41, 0.0 }
 0x254   : > { %v5117_v43 = vmax.f32 %v4119_v34, 0.0  ;;  %v2293_v44 = vadd.f32 %v11273_v32, %v2292_v39  ;;  %v9476_v45 = vpop.f32.mrb[72].mxu1  ;;  %9633 = vmatprep.mubr.msk.f32.mxu1 %vm2933_vm2, %v2849_v33  ;;  %5768 = vadd.xlane.f32.xlu1 %v5767_v40  ;;  %v5770_v46 = vsel %vm5565_vm3, %v5377_v36, 0.0 }
 0x255   : > { %v2852_v47 = vmax.f32 %v2298_v38, 0.0  ;;  %v4134_v49 = vadd.f32 %v11347_v5, %v9476_v45  ;;  %v4128_v50 = vpop.f32.mrb[73].mxu1  ;;  %9634 = vmatmul.mubr.msk.f32.gmra.mrb[178].mxu1 %vm2933_vm2, %v2850_v30  ;;  %5771 = vadd.xlane.f32.xlu0 %v5770_v46  ;;  %v5380_v61 = vmul.f32 %v11358_v16, %v5118_v37 }
 0x256   : > { %v2851_v51 = vmax.f32 %v2293_v44, 0.0  ;;  %v4129_v52 = vadd.f32 %v11347_v5, %v4128_v50  ;;  %v9253_v53 = vpop.f32.mrb[182].mxu0  ;;  %v5379_v54 = vmul.f32 %v11358_v16, %v5117_v43 }
 0x257   : > { %v5120_v55 = vmax.f32 %v4134_v49, 0.0  ;;  %v2308_v57 = vadd.f32 %v11273_v32, %v9253_v53  ;;  %v2302_v58 = vpop.f32.mrb[183].mxu0  ;;  %v5779_v15 = vsel %vm5565_vm3, %v5380_v61, 0.0 }
 0x258   : > { %v5119_v62 = vmax.f32 %v4129_v52, 0.0  ;;  %v2303_v63 = vadd.f32 %v11273_v32, %v2302_v58  ;;  %v9479_v0 = vpop.f32.mrb[74].mxu1  ;;  %9636 = vmatprep.mubr.msk.f32.mxu1 %vm2933_vm2, %v2851_v51  ;;  %5774 = vadd.xlane.f32.xlu1 %v5773_v59  ;;  %v5776_v1 = vsel %vm5565_vm3, %v5379_v54, 0.0 }
 0x259   : > { %v2854_v2 = vmax.f32 %v2308_v57, 0.0  ;;  %v4144_v3 = vadd.f32 %v11347_v5, %v9479_v0  ;;  %9637 = vmatmul.mubr.msk.f32.gmra.mrb[180].mxu1 %vm2933_vm2, %v2852_v47  ;;  %v5571_v42 = vpop.xlane.xlu0 %5570  ;;  %v4138_v4 = vpop.f32.mrb[75].mxu1  ;;  %5777 = vadd.xlane.f32.xlu0 %v5776_v1  ;;  %v5382_v6 = vmul.f32 %v11358_v16, %v5120_v55 }
 0x25a   : > { %v2853_v7 = vmax.f32 %v2303_v63, 0.0  ;;  %v6341_v8 = vadd.f32 %v11500_v60, %v5571_v42  ;;  %v4139_v9 = vadd.f32 %v11347_v5, %v4138_v4  ;;  %v9256_v10 = vpop.f32.mrb[184].mxu0  ;;  %v5381_v11 = vmul.f32 %v11358_v16, %v5119_v62 }
 0x25b   : > { %v5122_v12 = vmax.f32 %v4144_v3, 0.0  ;;  %v2318_v13 = vadd.f32 %v11273_v32, %v9256_v10  ;;  %v2312_v14 = vpop.f32.mrb[185].mxu0  ;;  %v5785_v25 = vsel %vm5565_vm3, %v5382_v6, 0.0 }
 0x25c   : > { %v6597_v48 = vmul.f32 0.5, %v6341_v8  ;;  %v5121_v18 = vmax.f32 %v4139_v9, 0.0  ;;  %v2313_v19 = vadd.f32 %v11273_v32, %v2312_v14  ;;  %v9482_v20 = vpop.f32.mrb[76].mxu1  ;;  %9639 = vmatprep.mubr.msk.f32.mxu1 %vm2933_vm2, %v2853_v7  ;;  %5780 = vadd.xlane.f32.xlu1 %v5779_v15  ;;  %v5782_v56 = vsel %vm5565_vm3, %v5381_v11, 0.0  ;;  %v11559_v14 = vld [vmem:[%s14485_s2] ss:$0 sm:$0xff] }
 0x25d   : > { %v2856_v21 = vmax.f32 %v2318_v13, 0.0  ;;  %v4154_v22 = vadd.f32 %v11347_v5, %v9482_v20  ;;  %9640 = vmatmul.mubr.msk.f32.gmra.mrb[182].mxu1 %vm2933_vm2, %v2854_v2  ;;  %v5577_v23 = vpop.xlane.xlu1 %5576  ;;  %v4148_v24 = vpop.f32.mrb[77].mxu1  ;;  %5783 = vadd.xlane.f32.xlu0 %v5782_v56  ;;  %v5384_v26 = vmul.f32 %v11358_v16, %v5122_v12 }
 0x25e   : > { %9762 = vtanh.f32 %v6597_v48  ;;  %v2855_v27 = vmax.f32 %v2313_v19, 0.0  ;;  %v6343_v28 = vadd.f32 %v11500_v60, %v5577_v23  ;;  %v4149_v29 = vadd.f32 %v11347_v5, %v4148_v24  ;;  %v5568_v30 = vpop.xlane.xlu0 %5567  ;;  %v9259_v17 = vpop.f32.mrb[186].mxu0 }
 0x25f   : > { %v5124_v31 = vmax.f32 %v4154_v22, 0.0  ;;  %v6340_v33 = vadd.f32 %v11500_v60, %v5568_v30  ;;  %v2328_v34 = vadd.f32 %v11273_v32, %v9259_v17  ;;  %v2322_v35 = vpop.f32.mrb[187].mxu0  ;;  %v5383_v36 = vmul.f32 %v11358_v16, %v5121_v18 }
 0x260   : > { %v6599_v37 = vmul.f32 0.5, %v6343_v28  ;;  %v5123_v38 = vmax.f32 %v4149_v29, 0.0  ;;  %v2323_v39 = vadd.f32 %v11273_v32, %v2322_v35  ;;  %v9485_v40 = vpop.f32.mrb[78].mxu1  ;;  %9642 = vmatprep.mubr.msk.f32.mxu1 %vm2933_vm2, %v2855_v27  ;;  %5786 = vadd.xlane.f32.xlu1 %v5785_v25  ;;  %v5791_v41 = vsel %vm5565_vm3, %v5384_v26, 0.0 }
 0x261   : > { %v6596_v43 = vmul.f32 0.5, %v6340_v33  ;;  %v2858_v44 = vmax.f32 %v2328_v34, 0.0  ;;  %v11530_v45 = vadd.f32 %v11347_v5, %v9485_v40  ;;  %v4158_v46 = vpop.f32.mrb[79].mxu1  ;;  %9643 = vmatmul.mubr.msk.f32.gmra.mrb[184].mxu1 %vm2933_vm2, %v2856_v21  ;;  %v5574_v47 = vpop.xlane.xlu1 %5573  ;;  %v5788_v49 = vsel %vm5565_vm3, %v5383_v36, 0.0 }
 0x262   : > { %9764 = vtanh.f32 %v6599_v37  ;;  %v2857_v50 = vmax.f32 %v2323_v39, 0.0  ;;  %v11535_v51 = vadd.f32 %v11347_v5, %v4158_v46  ;;  %v6342_v52 = vadd.f32 %v11500_v60, %v5574_v47  ;;  %5789 = vadd.xlane.f32.xlu0 %v5788_v49  ;;  %v9262_v53 = vpop.f32.mrb[188].mxu0  ;;  %v5580_v54 = vpop.xlane.xlu0 %5579 }
 0x263   : > { %9766 = vtanh.f32 %v6596_v43  ;;  %v5126_v55 = vmax.f32 %v11530_v45, 0.0  ;;  %v2338_v57 = vadd.f32 %v11273_v32, %v9262_v53  ;;  %v6344_v58 = vadd.f32 %v11500_v60, %v5580_v54  ;;  %v2332_v59 = vpop.f32.mrb[189].mxu0 }
 0x264   : > { %v5125_v61 = vmax.f32 %v11535_v51, 0.0  ;;  %v6598_v62 = vmul.f32 0.5, %v6342_v52  ;;  %v2333_v63 = vadd.f32 %v11273_v32, %v2332_v59  ;;  %v9488_v0 = vpop.f32.mrb[80].mxu1  ;;  %9645 = vmatprep.mubr.msk.f32.mxu1 %vm2933_vm2, %v2857_v50  ;;  %5792 = vadd.xlane.f32.xlu1 %v5791_v41  ;;  %v5385_v1 = vmul.f32 %v11358_v16, %v5123_v38 }
 0x265   : > { %v2860_v2 = vmax.f32 %v2338_v57, 0.0  ;;  %v6600_v3 = vmul.f32 0.5, %v6344_v58  ;;  %v11546_v42 = vadd.f32 %v11347_v5, %v9488_v0  ;;  %v4168_v4 = vpop.f32.mrb[81].mxu1  ;;  %9646 = vmatmul.mubr.msk.f32.gmra.mrb[186].mxu1 %vm2933_vm2, %v2858_v44  ;;  %v5583_v6 = vpop.xlane.xlu1 %5582  ;;  %v5386_v7 = vmul.f32 %v11358_v16, %v5124_v31 }
 0x266   : > { %9768 = vtanh.f32 %v6598_v62  ;;  %v2859_v8 = vmax.f32 %v2333_v63, 0.0  ;;  %v11551_v32 = vadd.f32 %v11347_v5, %v4168_v4  ;;  %v6345_v9 = vadd.f32 %v11500_v60, %v5583_v6  ;;  %v9265_v10 = vpop.f32.mrb[190].mxu0  ;;  %v5586_v11 = vpop.xlane.xlu0 %5585 }
 0x267   : > { %9770 = vtanh.f32 %v6600_v3  ;;  %v5128_v12 = vmax.f32 %v11546_v42, 0.0  ;;  %v5794_v13 = vsel %vm5565_vm3, %v5385_v1, 0.0  ;;  %v2348_v15 = vadd.f32 %v11559_v14, %v9265_v10  ;;  %v2342_v48 = vpop.f32.mrb[191].mxu0 }
 0x268   : > { %v9763_v18 = vpop.eup %9762  ;;  %v5127_v19 = vmax.f32 %v11551_v32, 0.0  ;;  %v6601_v20 = vmul.f32 0.5, %v6345_v9  ;;  %5795 = vadd.xlane.f32.xlu0 %v5794_v13  ;;  %v6346_v56 = vadd.f32 %v11500_v60, %v5586_v11  ;;  %v2343_v21 = vadd.f32 %v11559_v14, %v2342_v48  ;;  %v9491_v22 = vpop.f32.mrb[82].mxu1  ;;  %9648 = vmatprep.mubr.msk.f32.mxu1 %vm2933_vm2, %v2859_v8 }
 0x269   : > { %v7109_v23 = vmul.f32 0.5, %v9763_v18  ;;  %v2862_v24 = vmax.f32 %v2348_v15, 0.0  ;;  %v11567_v25 = vadd.f32 %v11347_v5, %v9491_v22  ;;  %v5797_v26 = vsel %vm5565_vm3, %v5386_v7, 0.0  ;;  %v4178_v27 = vpop.f32.mrb[83].mxu1  ;;  %9649 = vmatmul.mubr.msk.f32.gmra.mrb[188].mxu1 %vm2933_vm2, %v2860_v2  ;;  %v5589_v28 = vpop.xlane.xlu1 %5588 }
 0x26a   : > { %9772 = vtanh.f32 %v6601_v20  ;;  %v6602_v29 = vmul.f32 0.5, %v6346_v56  ;;  %v2861_v30 = vmax.f32 %v2343_v21, 0.0  ;;  %5798 = vadd.xlane.f32.xlu1 %v5797_v26  ;;  %v11579_v17 = vadd.f32 %v11347_v5, %v4178_v27  ;;  %v9268_v31 = vpop.f32.mrb[192].mxu0  ;;  %v5592_v33 = vpop.xlane.xlu0 %5591 }
 0x26b   : > { %v7365_v34 = vadd.f32 0.5, %v7109_v23  ;;  %v5130_v35 = vmax.f32 %v11567_v25, 0.0  ;;  %v6347_v36 = vadd.f32 %v11500_v60, %v5589_v28  ;;  %v5387_v37 = vmul.f32 %v11358_v16, %v5125_v61  ;;  %v2352_v38 = vpop.f32.mrb[193].mxu0 }
 0x26c   : > { %v9765_v39 = vpop.eup %9764  ;;  %9774 = vtanh.f32 %v6602_v29  ;;  %v5129_v40 = vmax.f32 %v11579_v17, 0.0  ;;  %v2358_v41 = vadd.f32 %v11559_v14, %v9268_v31  ;;  %v6348_v43 = vadd.f32 %v11500_v60, %v5592_v33  ;;  %v9494_v44 = vpop.f32.mrb[84].mxu1  ;;  %9651 = vmatprep.mubr.msk.f32.mxu1 %vm2933_vm2, %v2861_v30 }
 0x26d   : > { %v9767_v46 = vpop.eup %9766  ;;  %7622 = vst.msk [vmem:[%s11576_s12 + $0x8] sm:$0xff] %vm7620_vm4, %v7365_v34  ;;  %v7111_v47 = vmul.f32 0.5, %v9765_v39  ;;  %v6603_v49 = vmul.f32 0.5, %v6347_v36  ;;  %v5800_v50 = vsel %vm5565_vm3, %v5387_v37, 0.0  ;;  %v2353_v51 = vadd.f32 %v11559_v14, %v2352_v38  ;;  %v4188_v52 = vpop.f32.mrb[85].mxu1  ;;  %9652 = vmatmul.mubr.msk.f32.gmra.mrb[190].mxu1 %vm2933_vm2, %v2862_v24 }
 0x26e   : > { %v5595_v53 = vpop.xlane.xlu1 %5594  ;;  %v7108_v54 = vmul.f32 0.5, %v9767_v46  ;;  %5801 = vadd.xlane.f32.xlu0 %v5800_v50  ;;  %v2864_v57 = vmax.f32 %v2358_v41, 0.0  ;;  %v6604_v58 = vmul.f32 0.5, %v6348_v43  ;;  %v11594_v59 = vadd.f32 %v11347_v5, %v9494_v44  ;;  %v9271_v61 = vpop.f32.mrb[194].mxu0 }
 0x26f   : > { %v5598_v62 = vpop.xlane.xlu0 %5597  ;;  %v7367_v63 = vadd.f32 0.5, %v7111_v47  ;;  %9776 = vtanh.f32 %v6603_v49  ;;  %v2863_v0 = vmax.f32 %v2353_v51, 0.0  ;;  %v5388_v1 = vmul.f32 %v11358_v16, %v5126_v55  ;;  %v2362_v2 = vpop.f32.mrb[195].mxu0 }
 0x270   : > { %v9769_v3 = vpop.eup %9768  ;;  %v7364_v4 = vadd.f32 0.5, %v7108_v54  ;;  %9778 = vtanh.f32 %v6604_v58  ;;  %v5132_v6 = vmax.f32 %v11594_v59, 0.0  ;;  %v11601_v7 = vadd.f32 %v11347_v5, %v4188_v52  ;;  %v9497_v8 = vpop.f32.mrb[86].mxu1 }
 0x271   : > { %v9771_v9 = vpop.eup %9770  ;;  %7624 = vst.msk [vmem:[%s11576_s12 + $0x18] sm:$0xff] %vm7620_vm4, %v7367_v63  ;;  %v7110_v10 = vmul.f32 0.5, %v9769_v3  ;;  %v5803_v11 = vsel %vm5565_vm3, %v5388_v1, 0.0  ;;  %v6349_v45 = vadd.f32 %v11500_v60, %v5595_v53  ;;  %v5389_v55 = vmul.f32 %v11358_v16, %v5127_v19  ;;  %9654 = vmatprep.mubr.msk.f32.mxu1 %vm2933_vm2, %v2863_v0  ;;  %v4198_v13 = vpop.f32.mrb[87].mxu1 }
 0x272   : > { %v5601_v15 = vpop.xlane.xlu1 %5600  ;;  %7621 = vst.msk [vmem:[%s11576_s12] sm:$0xff] %vm7620_vm4, %v7364_v4  ;;  %v7112_v48 = vmul.f32 0.5, %v9771_v9  ;;  %5804 = vadd.xlane.f32.xlu1 %v5803_v11  ;;  %v5131_v18 = vmax.f32 %v11601_v7, 0.0  ;;  %v2368_v20 = vadd.f32 %v11559_v14, %v9271_v61  ;;  %v6350_v56 = vadd.f32 %v11500_v60, %v5598_v62  ;;  %9655 = vmatmul.mubr.msk.f32.gmra.mrb[192].mxu1 %vm2933_vm2, %v2864_v57  ;;  %v9274_v32 = vpop.f32.mrb[196].mxu0  ;;  %v11650_v62 = vld [vmem:[%s14487_s4] ss:$0 sm:$0xff] }
 0x273   : > { %v5604_v21 = vpop.xlane.xlu0 %5603  ;;  %v7366_v19 = vadd.f32 0.5, %v7110_v10  ;;  %v6605_v22 = vmul.f32 0.5, %v6349_v45  ;;  %v5806_v23 = vsel %vm5565_vm3, %v5389_v55, 0.0  ;;  %v2363_v24 = vadd.f32 %v11559_v14, %v2362_v2  ;;  %v2372_v26 = vpop.f32.mrb[197].mxu0 }
 0x274   : > { %v9773_v27 = vpop.eup %9772  ;;  %v7368_v28 = vadd.f32 0.5, %v7112_v48  ;;  %5807 = vadd.xlane.f32.xlu0 %v5806_v23  ;;  %v2866_v29 = vmax.f32 %v2368_v20, 0.0  ;;  %v6606_v30 = vmul.f32 0.5, %v6350_v56  ;;  %v11620_v31 = vadd.f32 %v11347_v5, %v9497_v8  ;;  %v9500_v33 = vpop.f32.mrb[88].mxu1 }
 0x275   : > { %7623 = vst.msk [vmem:[%s11576_s12 + $0x10] sm:$0xff] %vm7620_vm4, %v7366_v19  ;;  %v7113_v34 = vmul.f32 0.5, %v9773_v27  ;;  %9780 = vtanh.f32 %v6605_v22  ;;  %v2865_v36 = vmax.f32 %v2363_v24, 0.0  ;;  %v5390_v37 = vmul.f32 %v11358_v16, %v5128_v12  ;;  %v4208_v38 = vpop.f32.mrb[89].mxu1 }
 0x276   : > { %v5607_v39 = vpop.xlane.xlu1 %5606  ;;  %v9775_v41 = vpop.eup %9774  ;;  %7625 = vst.msk [vmem:[%s11576_s12 + $0x20] sm:$0xff] %vm7620_vm4, %v7368_v28  ;;  %9782 = vtanh.f32 %v6606_v30  ;;  %v5134_v43 = vmax.f32 %v11620_v31, 0.0  ;;  %v11631_v44 = vadd.f32 %v11347_v5, %v4198_v13  ;;  %v6351_v46 = vadd.f32 %v11500_v60, %v5601_v15  ;;  %v11661_v13 = vld [vmem:[%s14488_s5] ss:$0 sm:$0xff] }
 0x277   : > { %v9277_v47 = vpop.f32.mrb[198].mxu0  ;;  %v5610_v49 = vpop.xlane.xlu0 %5609  ;;  %v7369_v50 = vadd.f32 0.5, %v7113_v34  ;;  %v7114_v42 = vmul.f32 0.5, %v9775_v41  ;;  %v5809_v12 = vsel %vm5565_vm3, %v5390_v37, 0.0  ;;  %v5391_v51 = vmul.f32 %v11358_v16, %v5129_v40  ;;  %9657 = vmatprep.mubr.msk.f32.mxu1 %vm2933_vm2, %v2865_v36 }
 0x278   : > { %v2382_v52 = vpop.f32.mrb[199].mxu0  ;;  %5810 = vadd.xlane.f32.xlu1 %v5809_v12  ;;  %v5133_v5 = vmax.f32 %v11631_v44, 0.0  ;;  %v6607_v53 = vmul.f32 0.5, %v6351_v46  ;;  %v2378_v54 = vadd.f32 %v11559_v14, %v9274_v32  ;;  %v6352_v57 = vadd.f32 %v11500_v60, %v5604_v21  ;;  %9658 = vmatmul.mubr.msk.f32.gmra.mrb[194].mxu1 %vm2933_vm2, %v2866_v29  ;;  %v9503_v58 = vpop.f32.mrb[90].mxu1 }
 0x279   : > { %v9777_v61 = vpop.eup %9776  ;;  %7626 = vst.msk [vmem:[%s11576_s12 + $0x28] sm:$0xff] %vm7620_vm4, %v7369_v50  ;;  %v7370_v17 = vadd.f32 0.5, %v7114_v42  ;;  %v5812_v16 = vsel %vm5565_vm3, %v5391_v51, 0.0  ;;  %v2373_v40 = vadd.f32 %v11559_v14, %v2372_v26  ;;  %v11653_v63 = vadd.f32 %v11650_v62, %v9500_v33  ;;  %v4218_v0 = vpop.f32.mrb[91].mxu1 }
 0x27a   : > { %v5613_v1 = vpop.xlane.xlu1 %5612  ;;  %v9779_v2 = vpop.eup %9778  ;;  %v7115_v3 = vmul.f32 0.5, %v9777_v61  ;;  %9784 = vtanh.f32 %v6607_v53  ;;  %5813 = vadd.xlane.f32.xlu0 %v5812_v16  ;;  %v2868_v4 = vmax.f32 %v2378_v54, 0.0  ;;  %v6608_v8 = vmul.f32 0.5, %v6352_v57 }
 0x27b   : > { %v9280_v9 = vpop.f32.mrb[200].mxu0  ;;  %v5616_v10 = vpop.xlane.xlu0 %5615  ;;  %7627 = vst.msk [vmem:[%s11576_s12 + $0x30] sm:$0xff] %vm7620_vm4, %v7370_v17  ;;  %v7116_v11 = vmul.f32 0.5, %v9779_v2  ;;  %v2867_v45 = vmax.f32 %v2373_v40, 0.0  ;;  %v5136_v55 = vmax.f32 %v11653_v63, 0.0  ;;  %v5392_v15 = vmul.f32 %v11661_v13, %v5130_v35 }
 0x27c   : > { %v2392_v48 = vpop.f32.mrb[201].mxu0  ;;  %v7371_v20 = vadd.f32 0.5, %v7115_v3  ;;  %9786 = vtanh.f32 %v6608_v8  ;;  %v11667_v56 = vadd.f32 %v11650_v62, %v4208_v38  ;;  %v6353_v32 = vadd.f32 %v11500_v60, %v5607_v39  ;;  %v9506_v21 = vpop.f32.mrb[92].mxu1 }
 0x27d   : > { %v7372_v19 = vadd.f32 0.5, %v7116_v11  ;;  %v5815_v22 = vsel %vm5565_vm3, %v5392_v15, 0.0  ;;  %v5393_v23 = vmul.f32 %v11661_v13, %v5131_v18  ;;  %v2388_v25 = vadd.f32 %v11559_v14, %v9277_v47  ;;  %9660 = vmatprep.mubr.msk.f32.mxu1 %vm2933_vm2, %v2867_v45  ;;  %v11676_v35 = vpop.f32.mrb[93].mxu1 }
 0x27e   : > { %v11678_v24 = vpop.xlane.xlu1 %5618  ;;  %7628 = vst.msk [vmem:[%s11576_s12 + $0x38] sm:$0xff] %vm7620_vm4, %v7371_v20  ;;  %5816 = vadd.xlane.f32.xlu1 %v5815_v22  ;;  %v5135_v26 = vmax.f32 %v11667_v56, 0.0  ;;  %v6609_v27 = vmul.f32 0.5, %v6353_v32  ;;  %v6354_v28 = vadd.f32 %v11500_v60, %v5610_v49  ;;  %v2383_v7 = vadd.f32 %v11559_v14, %v2382_v52  ;;  %9661 = vmatmul.mubr.msk.f32.gmra.mrb[196].mxu1 %vm2933_vm2, %v2868_v4  ;;  %v11686_v18 = vpop.f32.mrb[202].mxu0 }
 0x27f   : > { %v11688_v29 = vpop.xlane.xlu0 %5621  ;;  %v9781_v30 = vpop.eup %9780  ;;  %7629 = vst.msk [vmem:[%s11576_s12 + $0x40] sm:$0xff] %vm7620_vm4, %v7372_v19  ;;  %v5818_v33 = vsel %vm5565_vm3, %v5393_v23, 0.0  ;;  %v2870_v34 = vmax.f32 %v2388_v25, 0.0  ;;  %v11694_v36 = vadd.f32 %v11650_v62, %v9503_v58  ;;  %v5394_v37 = vmul.f32 %v11661_v13, %v5132_v6 }
 0x280   : > { %v11699_v38 = vpop.f32.mrb[203].mxu0  ;;  %v9783_v39 = vpop.eup %9782  ;;  %v7117_v41 = vmul.f32 0.5, %v9781_v30  ;;  %9788 = vtanh.f32 %v6609_v27  ;;  %5819 = vadd.xlane.f32.xlu0 %v5818_v33  ;;  %v6610_v46 = vmul.f32 0.5, %v6354_v28  ;;  %v2869_v47 = vmax.f32 %v2383_v7, 0.0 }
 0x281   : > { %v9509_v49 = vpop.f32.mrb[94].mxu1  ;;  %v7118_v50 = vmul.f32 0.5, %v9783_v39  ;;  %v5138_v42 = vmax.f32 %v11694_v36, 0.0  ;;  %v5821_v12 = vsel %vm5565_vm3, %v5394_v37, 0.0  ;;  %v11704_v51 = vadd.f32 %v11650_v62, %v4218_v0 }
 0x282   : > { %v11706_v59 = vpop.f32.mrb[95].mxu1  ;;  %v11708_v6 = vpop.xlane.xlu1 %5624  ;;  %v7373_v52 = vadd.f32 0.5, %v7117_v41  ;;  %9790 = vtanh.f32 %v6610_v46  ;;  %5822 = vadd.xlane.f32.xlu1 %v5821_v12  ;;  %v6355_v53 = vadd.f32 %v11500_v60, %v5613_v1  ;;  %v5395_v54 = vmul.f32 %v11661_v13, %v5133_v5  ;;  %9663 = vmatprep.mubr.msk.f32.mxu1 %vm2933_vm2, %v2869_v47 }
 0x283   : > { %v11715_v57 = vpop.f32.mrb[204].mxu0  ;;  %v11717_v58 = vpop.xlane.xlu0 %5627  ;;  %v7374_v61 = vadd.f32 0.5, %v7118_v50  ;;  %v5137_v17 = vmax.f32 %v11704_v51, 0.0  ;;  %v2398_v16 = vadd.f32 %v11559_v14, %v9280_v9  ;;  %v6356_v40 = vadd.f32 %v11500_v60, %v5616_v10  ;;  %9664 = vmatmul.mubr.msk.f32.gmra.mrb[198].mxu1 %vm2933_vm2, %v2870_v34 }
 0x284   : > { %v11723_v0 = vpop.f32.mrb[205].mxu0  ;;  %v9785_v44 = vpop.eup %9784  ;;  %7630 = vst.msk [vmem:[%s11576_s12 + $0x48] sm:$0xff] %vm7620_vm4, %v7373_v52  ;;  %v6611_v5 = vmul.f32 0.5, %v6355_v53  ;;  %v5824_v1 = vsel %vm5565_vm3, %v5395_v54, 0.0  ;;  %v2393_v2 = vadd.f32 %v11559_v14, %v2392_v48  ;;  %v11730_v3 = vadd.f32 %v11650_v62, %v9506_v21 }
 0x285   : > { %v11732_v4 = vpop.f32.mrb[96].mxu1  ;;  %7631 = vst.msk [vmem:[%s11576_s12 + $0x50] sm:$0xff] %vm7620_vm4, %v7374_v61  ;;  %v7119_v8 = vmul.f32 0.5, %v9785_v44  ;;  %5825 = vadd.xlane.f32.xlu0 %v5824_v1  ;;  %v2872_v9 = vmax.f32 %v2398_v16, 0.0  ;;  %v6612_v10 = vmul.f32 0.5, %v6356_v40  ;;  %v5396_v11 = vmul.f32 %v11661_v13, %v5134_v43 }
 0x286   : > { %v11739_v45 = vpop.f32.mrb[97].mxu1  ;;  %v11741_v15 = vpop.xlane.xlu1 %5630  ;;  %9792 = vtanh.f32 %v6611_v5  ;;  %v2871_v20 = vmax.f32 %v2393_v2, 0.0  ;;  %v5140_v32 = vmax.f32 %v11730_v3, 0.0  ;;  %v11746_v21 = vadd.f32 %v11650_v62, %v11676_v35 }
 0x287   : > { %v9787_v48 = vpop.eup %9786  ;;  %v11748_v19 = vpop.f32.mrb[206].mxu0  ;;  %v7375_v31 = vadd.f32 0.5, %v7119_v8  ;;  %9794 = vtanh.f32 %v6612_v10  ;;  %v5827_v23 = vsel %vm5565_vm3, %v5396_v11, 0.0  ;;  %v6357_v28 = vadd.f32 %v11500_v60, %v11678_v24 }
 0x288   : > { %v11750_v22 = vpop.xlane.xlu0 %5633  ;;  %v7120_v43 = vmul.f32 0.5, %v9787_v48  ;;  %v11753_v25 = vpop.f32.mrb[207].mxu0  ;;  %5828 = vadd.xlane.f32.xlu1 %v5827_v23  ;;  %v5139_v27 = vmax.f32 %v11746_v21, 0.0  ;;  %v5397_v35 = vmul.f32 %v11661_v13, %v5135_v26  ;;  %v2408_v7 = vadd.f32 %v11559_v14, %v11686_v18  ;;  %9666 = vmatprep.mubr.msk.f32.mxu1 %vm2933_vm2, %v2871_v20 }
 0x289   : > { %v11764_v30 = vpop.f32.mrb[98].mxu1  ;;  %7632 = vst.msk [vmem:[%s11576_s12 + $0x58] sm:$0xff] %vm7620_vm4, %v7375_v31  ;;  %v6358_v34 = vadd.f32 %v11500_v60, %v11688_v29  ;;  %v2403_v24 = vadd.f32 %v11559_v14, %v11699_v38  ;;  %v11773_v56 = vadd.f32 %v11650_v62, %v9509_v49  ;;  %9667 = vmatmul.mubr.msk.f32.gmra.mrb[200].mxu1 %vm2933_vm2, %v2872_v9  ;;  %v6613_v39 = vmul.f32 0.5, %v6357_v28 }
 0x28a   : > { %v7376_v33 = vadd.f32 0.5, %v7120_v43  ;;  %v11776_v26 = vpop.f32.mrb[99].mxu1  ;;  %v11778_v18 = vpop.xlane.xlu1 %5636  ;;  %v5830_v41 = vsel %vm5565_vm3, %v5397_v35, 0.0  ;;  %v2874_v46 = vmax.f32 %v2408_v7, 0.0  ;;  %v5398_v29 = vmul.f32 %v11661_v13, %v5136_v55 }
 0x28b   : > { %v9789_v37 = vpop.eup %9788  ;;  %v11784_v47 = vpop.f32.mrb[208].mxu0  ;;  %5831 = vadd.xlane.f32.xlu0 %v5830_v41  ;;  %v6614_v50 = vmul.f32 0.5, %v6358_v34  ;;  %v2873_v12 = vmax.f32 %v2403_v24, 0.0  ;;  %v5142_v52 = vmax.f32 %v11773_v56, 0.0  ;;  %9796 = vtanh.f32 %v6613_v39 }
 0x28c   : > { %v11786_v38 = vpop.xlane.xlu0 %5639  ;;  %7633 = vst.msk [vmem:[%s11576_s12 + $0x60] sm:$0xff] %vm7620_vm4, %v7376_v33  ;;  %v7121_v49 = vmul.f32 0.5, %v9789_v37  ;;  %v11791_v53 = vpop.f32.mrb[209].mxu0  ;;  %v5833_v63 = vsel %vm5565_vm3, %v5398_v29, 0.0  ;;  %v11796_v55 = vadd.f32 %v11650_v62, %v11706_v59  ;;  %v6359_v61 = vadd.f32 %v11500_v60, %v11708_v6 }
 0x28d   : > { %v9791_v54 = vpop.eup %9790  ;;  %v11800_v16 = vpop.f32.mrb[100].mxu1  ;;  %9798 = vtanh.f32 %v6614_v50  ;;  %5834 = vadd.xlane.f32.xlu1 %v5833_v63  ;;  %v5399_v5 = vmul.f32 %v11661_v13, %v5137_v17  ;;  %9669 = vmatprep.mubr.msk.f32.mxu1 %vm2933_vm2, %v2873_v12  ;;  %v2418_v8 = vadd.f32 %v11559_v14, %v11715_v57  ;;  %v6360_v9 = vadd.f32 %v11500_v60, %v11717_v58 }
 0x28e   : > { %v7377_v40 = vadd.f32 0.5, %v7121_v49  ;;  %v7122_v44 = vmul.f32 0.5, %v9791_v54  ;;  %v11806_v1 = vpop.f32.mrb[101].mxu1  ;;  %v11808_v59 = vpop.xlane.xlu1 %5642  ;;  %v5141_v2 = vmax.f32 %v11796_v55, 0.0  ;;  %v6615_v6 = vmul.f32 0.5, %v6359_v61  ;;  %9670 = vmatmul.mubr.msk.f32.gmra.mrb[202].mxu1 %vm2933_vm2, %v2874_v46 }
 0x28f   : > { %v11816_v51 = vpop.f32.mrb[210].mxu0  ;;  %v5836_v11 = vsel %vm5565_vm3, %v5399_v5, 0.0  ;;  %v2413_v48 = vadd.f32 %v11559_v14, %v11723_v0  ;;  %v11827_v57 = vadd.f32 %v11650_v62, %v11732_v4  ;;  %v2876_v31 = vmax.f32 %v2418_v8, 0.0 }
 0x290   : > { %v11818_v17 = vpop.xlane.xlu0 %5645  ;;  %7634 = vst.msk [vmem:[%s11576_s12 + $0x68] sm:$0xff] %vm7620_vm4, %v7377_v40  ;;  %v7378_v10 = vadd.f32 0.5, %v7122_v44  ;;  %v11829_v58 = vpop.f32.mrb[211].mxu0  ;;  %9800 = vtanh.f32 %v6615_v6  ;;  %5837 = vadd.xlane.f32.xlu0 %v5836_v11  ;;  %v6616_v43 = vmul.f32 0.5, %v6360_v9  ;;  %v5400_v23 = vmul.f32 %v11661_v13, %v5138_v42 }
 0x291   : > { %v9793_v20 = vpop.eup %9792  ;;  %v11834_v28 = vpop.f32.mrb[102].mxu1  ;;  %v2875_v7 = vmax.f32 %v2413_v48, 0.0  ;;  %v5144_v4 = vmax.f32 %v11827_v57, 0.0  ;;  %v11841_v33 = vadd.f32 %v11650_v62, %v11739_v45  ;;  %v6361_v37 = vadd.f32 %v11500_v60, %v11741_v15 }
 0x292   : > { %v9795_v35 = vpop.eup %9794  ;;  %7635 = vst.msk [vmem:[%s11576_s12 + $0x70] sm:$0xff] %vm7620_vm4, %v7378_v10  ;;  %v7123_v0 = vmul.f32 0.5, %v9793_v20  ;;  %v11843_v34 = vpop.f32.mrb[103].mxu1  ;;  %9802 = vtanh.f32 %v6616_v43  ;;  %v5839_v42 = vsel %vm5565_vm3, %v5400_v23, 0.0  ;;  %v5401_v29 = vmul.f32 %v11661_v13, %v5139_v27 }
 0x293   : > { %v11845_v24 = vpop.xlane.xlu1 %5648  ;;  %v7124_v36 = vmul.f32 0.5, %v9795_v35  ;;  %v11850_v39 = vpop.f32.mrb[212].mxu0  ;;  %5840 = vadd.xlane.f32.xlu1 %v5839_v42  ;;  %v5143_v45 = vmax.f32 %v11841_v33, 0.0  ;;  %v2428_v49 = vadd.f32 %v11559_v14, %v11748_v19  ;;  %9672 = vmatprep.mubr.msk.f32.mxu1 %vm2933_vm2, %v2875_v7  ;;  %v6617_v12 = vmul.f32 0.5, %v6361_v37 }
 0x294   : > { %v11852_v41 = vpop.xlane.xlu0 %5651  ;;  %v7379_v46 = vadd.f32 0.5, %v7123_v0  ;;  %v11861_v15 = vpop.f32.mrb[213].mxu0  ;;  %v6362_v54 = vadd.f32 %v11500_v60, %v11750_v22  ;;  %v2423_v63 = vadd.f32 %v11559_v14, %v11753_v25  ;;  %9673 = vmatmul.mubr.msk.f32.gmra.mrb[204].mxu1 %vm2933_vm2, %v2876_v31  ;;  %v5842_v19 = vsel %vm5565_vm3, %v5401_v29, 0.0 }
 0x295   : > { %v7380_v50 = vadd.f32 0.5, %v7124_v36  ;;  %v11868_v21 = vpop.f32.mrb[104].mxu1  ;;  %v2878_v27 = vmax.f32 %v2428_v49, 0.0  ;;  %v4264_v61 = vadd.f32 %v11650_v62, %v11764_v30  ;;  %v5402_v40 = vmul.f32 %v11661_v13, %v5140_v32  ;;  %v9797_v25 = vpop.eup %9796  ;;  %5843 = vadd.xlane.f32.xlu0 %v5842_v19 }
 0x296   : > { %7636 = vst.msk [vmem:[%s11576_s12 + $0x78] sm:$0xff] %vm7620_vm4, %v7379_v46  ;;  %v11878_v22 = vpop.f32.mrb[105].mxu1  ;;  %9804 = vtanh.f32 %v6617_v12  ;;  %v6618_v5 = vmul.f32 0.5, %v6362_v54  ;;  %v2877_v6 = vmax.f32 %v2423_v63, 0.0  ;;  %v4259_v8 = vadd.f32 %v11650_v62, %v11776_v26  ;;  %v11886_v9 = vpop.f32.mrb[214].mxu0 }
 0x297   : > { %v11880_v44 = vpop.xlane.xlu1 %5654  ;;  %7637 = vst.msk [vmem:[%s11576_s12 + $0x80] sm:$0xff] %vm7620_vm4, %v7380_v50  ;;  %v9799_v3 = vpop.eup %9798  ;;  %v7125_v32 = vmul.f32 0.5, %v9797_v25  ;;  %v5146_v10 = vmax.f32 %v4264_v61, 0.0  ;;  %v5845_v11 = vsel %vm5565_vm3, %v5402_v40, 0.0  ;;  %v6363_v48 = vadd.f32 %v11500_v60, %v11778_v18 }
 0x298   : > { %v11888_v30 = vpop.xlane.xlu0 %5657  ;;  %v11893_v20 = vpop.f32.mrb[215].mxu0  ;;  %v7126_v31 = vmul.f32 0.5, %v9799_v3  ;;  %9806 = vtanh.f32 %v6618_v5  ;;  %5846 = vadd.xlane.f32.xlu1 %v5845_v11  ;;  %v5145_v43 = vmax.f32 %v4259_v8, 0.0  ;;  %v5403_v26 = vmul.f32 %v11661_v13, %v5141_v2  ;;  %9675 = vmatprep.mubr.msk.f32.mxu1 %vm2933_vm2, %v2877_v6 }
 0x299   : > { %v11899_v23 = vpop.f32.mrb[106].mxu1  ;;  %v7381_v35 = vadd.f32 0.5, %v7125_v32  ;;  %v11902_v0 = vmul.f32 %v11661_v13, %v5146_v10  ;;  %v6619_v18 = vmul.f32 0.5, %v6363_v48  ;;  %v2438_v7 = vadd.f32 %v11559_v14, %v11784_v47  ;;  %9676 = vmatmul.mubr.msk.f32.gmra.mrb[206].mxu1 %vm2933_vm2, %v2878_v27 }
 0x29a   : > { %v11907_v36 = vpop.f32.mrb[107].mxu1  ;;  %v9801_v2 = vpop.eup %9800  ;;  %v7382_v42 = vadd.f32 0.5, %v7126_v31  ;;  %v11912_v37 = vmul.f32 %v11661_v13, %v5145_v43  ;;  %v5848_v46 = vsel %vm5565_vm3, %v5403_v26, 0.0  ;;  %v6364_v29 = vadd.f32 %v11500_v60, %v11786_v38 }
 0x29b   : > { %v11909_v55 = vpop.xlane.xlu1 %5660  ;;  %v11917_v49 = vpop.f32.mrb[216].mxu0  ;;  %7638 = vst.msk [vmem:[%s11576_s12 + $0x88] sm:$0xff] %vm7620_vm4, %v7381_v35  ;;  %v7127_v50 = vmul.f32 0.5, %v9801_v2  ;;  %9808 = vtanh.f32 %v6619_v18  ;;  %5849 = vadd.xlane.f32.xlu0 %v5848_v46  ;;  %v2880_v12 = vmax.f32 %v2438_v7, 0.0  ;;  %v2433_v54 = vadd.f32 %v11559_v14, %v11791_v53 }
 0x29c   : > { %v11919_v47 = vpop.xlane.xlu0 %5663  ;;  %v11925_v63 = vpop.f32.mrb[217].mxu0  ;;  %7639 = vst.msk [vmem:[%s11576_s12 + $0x90] sm:$0xff] %vm7620_vm4, %v7382_v42  ;;  %v6620_v27 = vmul.f32 0.5, %v6364_v29  ;;  %v4274_v38 = vadd.f32 %v11650_v62, %v11800_v16  ;;  %v5404_v61 = vmul.f32 %v11661_v13, %v5142_v52  ;;  %v4269_v40 = vadd.f32 %v11650_v62, %v11806_v1 }
 0x29d   : > { %v9803_v19 = vpop.eup %9802  ;;  %v11936_v25 = vpop.f32.mrb[108].mxu1  ;;  %v7383_v53 = vadd.f32 0.5, %v7127_v50  ;;  %v2879_v6 = vmax.f32 %v2433_v54, 0.0  ;;  %v6365_v8 = vadd.f32 %v11500_v60, %v11808_v59  ;;  %v5405_v59 = vmul.f32 %v11661_v13, %v5143_v45 }
 0x29e   : > { %v7128_v5 = vmul.f32 0.5, %v9803_v19  ;;  %v11940_v3 = vpop.f32.mrb[109].mxu1  ;;  %9810 = vtanh.f32 %v6620_v27  ;;  %v5148_v56 = vmax.f32 %v4274_v38, 0.0  ;;  %v5851_v16 = vsel %vm5565_vm3, %v5404_v61, 0.0  ;;  %v11945_v10 = vpop.f32.mrb[218].mxu0 }
 0x29f   : > { %v11942_v32 = vpop.xlane.xlu1 %5666  ;;  %v5147_v52 = vmax.f32 %v4269_v40, 0.0  ;;  %7640 = vst.msk [vmem:[%s11576_s12 + $0x98] sm:$0xff] %vm7620_vm4, %v7383_v53  ;;  %5852 = vadd.xlane.f32.xlu1 %v5851_v16  ;;  %v6621_v48 = vmul.f32 0.5, %v6365_v8  ;;  %v2448_v31 = vadd.f32 %v11559_v14, %v11816_v51  ;;  %9678 = vmatprep.mubr.msk.f32.mxu1 %vm2933_vm2, %v2879_v6  ;;  %v11957_v43 = vpop.f32.mrb[219].mxu0  ;;  %v6366_v7 = vadd.f32 %v11500_v60, %v11818_v17  ;;  %v11990_v40 = vld [vmem:[#allocation2] ss:$0 sm:$0xff] }
 0x2a0   : > { %v11947_v1 = vpop.xlane.xlu0 %5669  ;;  %v7384_v11 = vadd.f32 0.5, %v7128_v5  ;;  %v9805_v26 = vpop.eup %9804  ;;  %v11960_v35 = vmul.f32 %v11661_v13, %v5148_v56  ;;  %v2443_v33 = vadd.f32 %v11559_v14, %v11829_v58  ;;  %9679 = vmatmul.mubr.msk.f32.gmra.mrb[208].mxu1 %vm2933_vm2, %v2880_v12  ;;  %v5854_v2 = vsel %vm5565_vm3, %v5405_v59, 0.0 }
 0x2a1   : > { %v11963_v18 = vmul.f32 %v11661_v13, %v5147_v52  ;;  %v11970_v51 = vpop.f32.mrb[110].mxu1  ;;  %v7129_v45 = vmul.f32 0.5, %v9805_v26  ;;  %9812 = vtanh.f32 %v6621_v48  ;;  %v2882_v42 = vmax.f32 %v2448_v31, 0.0  ;;  %5855 = vadd.xlane.f32.xlu0 %v5854_v2 }
 0x2a2   : > { %7641 = vst.msk [vmem:[%s11576_s12 + $0xa0] sm:$0xff] %vm7620_vm4, %v7384_v11  ;;  %v11975_v46 = vpop.f32.mrb[111].mxu1  ;;  %v9807_v50 = vpop.eup %9806  ;;  %v6622_v60 = vmul.f32 0.5, %v6366_v7  ;;  %v2881_v17 = vmax.f32 %v2443_v33, 0.0  ;;  %v4284_v58 = vadd.f32 %v11650_v62, %v11834_v28  ;;  %v5406_v12 = vmul.f32 %v11661_v13, %v5144_v4 }
 0x2a3   : > { %v11977_v29 = vpop.xlane.xlu1 %5672  ;;  %v11984_v54 = vpop.f32.mrb[220].mxu0  ;;  %v7385_v27 = vadd.f32 0.5, %v7129_v45  ;;  %v7130_v38 = vmul.f32 0.5, %v9807_v50  ;;  %v4279_v61 = vadd.f32 %v11650_v62, %v11843_v34  ;;  %v6367_v53 = vadd.f32 %v11990_v40, %v11845_v24 }
 0x2a4   : > { %v11986_v19 = vpop.xlane.xlu0 %5675  ;;  %v11994_v28 = vpop.f32.mrb[221].mxu0  ;;  %9814 = vtanh.f32 %v6622_v60  ;;  %v5150_v57 = vmax.f32 %v4284_v58, 0.0  ;;  %v5857_v4 = vsel %vm5565_vm3, %v5406_v12, 0.0  ;;  %v5860_v5 = vsel %vm5565_vm3, %v11912_v37, 0.0  ;;  %9681 = vmatprep.mubr.msk.f32.mxu1 %vm2933_vm2, %v2881_v17 }
 0x2a5   : > { %v12000_v6 = vpop.f32.mrb[112].mxu1  ;;  %v9809_v8 = vpop.eup %9808  ;;  %7642 = vst.msk [vmem:[%s11576_s12 + $0xa8] sm:$0xff] %vm7620_vm4, %v7385_v27  ;;  %v7386_v34 = vadd.f32 0.5, %v7130_v38  ;;  %5858 = vadd.xlane.f32.xlu1 %v5857_v4  ;;  %v5149_v24 = vmax.f32 %v4279_v61, 0.0  ;;  %v6623_v56 = vmul.f32 0.5, %v6367_v53  ;;  %v2458_v16 = vadd.f32 %v11559_v14, %v11850_v39  ;;  %9682 = vmatmul.mubr.msk.f32.gmra.mrb[210].mxu1 %vm2933_vm2, %v2882_v42 }
 0x2a6   : > { %v12007_v52 = vpop.f32.mrb[113].mxu1  ;;  %v7131_v11 = vmul.f32 0.5, %v9809_v8  ;;  %v12012_v48 = vmul.f32 %v11661_v13, %v5150_v57  ;;  %5861 = vadd.xlane.f32.xlu0 %v5860_v5  ;;  %v6368_v59 = vadd.f32 %v11990_v40, %v11852_v41  ;;  %v2453_v31 = vadd.f32 %v11559_v14, %v11861_v15  ;;  %v12018_v26 = vpop.f32.mrb[222].mxu0 }
 0x2a7   : > { %v12009_v37 = vpop.xlane.xlu1 %5678  ;;  %7643 = vst.msk [vmem:[%s11576_s12 + $0xb0] sm:$0xff] %vm7620_vm4, %v7386_v34  ;;  %v5411_v7 = vmul.f32 %v11661_v13, %v5149_v24  ;;  %9816 = vtanh.f32 %v6623_v56  ;;  %v2884_v33 = vmax.f32 %v2458_v16, 0.0  ;;  %v4294_v45 = vadd.f32 %v11650_v62, %v11868_v21  ;;  %v12027_v2 = vpop.f32.mrb[223].mxu0 }
 0x2a8   : > { %v12020_v39 = vpop.xlane.xlu0 %5681  ;;  %v9811_v41 = vpop.eup %9810  ;;  %v7387_v42 = vadd.f32 0.5, %v7131_v11  ;;  %v6624_v50 = vmul.f32 0.5, %v6368_v59  ;;  %v2883_v15 = vmax.f32 %v2453_v31, 0.0  ;;  %v5863_v60 = vsel %vm5565_vm3, %v11902_v0, 0.0 }
 0x2a9   : > { %v12031_v17 = vpop.f32.mrb[114].mxu1  ;;  %v7132_v58 = vmul.f32 0.5, %v9811_v41  ;;  %v5152_v12 = vmax.f32 %v4294_v45, 0.0  ;;  %5864 = vadd.xlane.f32.xlu1 %v5863_v60  ;;  %v4289_v27 = vadd.f32 %v11650_v62, %v11878_v22  ;;  %v6369_v21 = vadd.f32 %v11990_v40, %v11880_v44 }
 0x2aa   : > { %v12037_v38 = vpop.f32.mrb[115].mxu1  ;;  %7644 = vst.msk [vmem:[%s11576_s12 + $0xb8] sm:$0xff] %vm7620_vm4, %v7387_v42  ;;  %9818 = vtanh.f32 %v6624_v50  ;;  %v5866_v0 = vsel %vm5565_vm3, %v11963_v18, 0.0  ;;  %v2468_v53 = vadd.f32 %v11559_v14, %v11886_v9  ;;  %v6370_v57 = vadd.f32 %v11990_v40, %v11888_v30  ;;  %9684 = vmatprep.mubr.msk.f32.mxu1 %vm2933_vm2, %v2883_v15  ;;  %v12050_v22 = vpop.f32.mrb[224].mxu0 }
 0x2ab   : > { %v12039_v61 = vpop.xlane.xlu1 %5684  ;;  %v9813_v4 = vpop.eup %9812  ;;  %v7388_v5 = vadd.f32 0.5, %v7132_v58  ;;  %v12055_v8 = vmul.f32 %v11661_v13, %v5152_v12  ;;  %v5151_v34 = vmax.f32 %v4289_v27, 0.0  ;;  %v6625_v18 = vmul.f32 0.5, %v6369_v21  ;;  %5867 = vadd.xlane.f32.xlu0 %v5866_v0  ;;  %9685 = vmatmul.mubr.msk.f32.gmra.mrb[212].mxu1 %vm2933_vm2, %v2884_v33 }
 0x2ac   : > { %v12052_v44 = vpop.xlane.xlu0 %5687  ;;  %v12058_v9 = vpop.f32.mrb[225].mxu0  ;;  %v7133_v30 = vmul.f32 0.5, %v9813_v4  ;;  %v2886_v24 = vmax.f32 %v2468_v53, 0.0  ;;  %v6626_v56 = vmul.f32 0.5, %v6370_v57  ;;  %v2463_v16 = vadd.f32 %v11559_v14, %v11893_v20 }
 0x2ad   : > { %v12062_v11 = vpop.f32.mrb[116].mxu1  ;;  %7645 = vst.msk [vmem:[%s11576_s12 + $0xc0] sm:$0xff] %vm7620_vm4, %v7388_v5  ;;  %v5413_v59 = vmul.f32 %v11661_v13, %v5151_v34  ;;  %9820 = vtanh.f32 %v6625_v18  ;;  %v4304_v31 = vadd.f32 %v11650_v62, %v11899_v23  ;;  %v5869_v33 = vsel %vm5565_vm3, %v11960_v35, 0.0 }
 0x2ae   : > { %v12071_v45 = vpop.f32.mrb[117].mxu1  ;;  %v9815_v42 = vpop.eup %9814  ;;  %v7389_v20 = vadd.f32 0.5, %v7133_v30  ;;  %9822 = vtanh.f32 %v6626_v56  ;;  %v2885_v50 = vmax.f32 %v2463_v16, 0.0  ;;  %5870 = vadd.xlane.f32.xlu1 %v5869_v33  ;;  %v4299_v15 = vadd.f32 %v11650_v62, %v11907_v36 }
 0x2af   : > { %v12073_v41 = vpop.xlane.xlu1 %5690  ;;  %v12077_v60 = vpop.f32.mrb[226].mxu0  ;;  %v7134_v23 = vmul.f32 0.5, %v9815_v42  ;;  %v5154_v12 = vmax.f32 %v4304_v31, 0.0  ;;  %v6371_v35 = vadd.f32 %v11990_v40, %v11909_v55  ;;  %v5872_v27 = vsel %vm5565_vm3, %v5411_v7, 0.0 }
 0x2b0   : > { %v12079_v58 = vpop.xlane.xlu0 %5693  ;;  %v12084_v21 = vpop.f32.mrb[227].mxu0  ;;  %7646 = vst.msk [vmem:[%s11576_s12 + $0xc8] sm:$0xff] %vm7620_vm4, %v7389_v20  ;;  %v5153_v0 = vmax.f32 %v4299_v15, 0.0  ;;  %5873 = vadd.xlane.f32.xlu0 %v5872_v27  ;;  %v2478_v36 = vadd.f32 %v11559_v14, %v11917_v49  ;;  %v6372_v53 = vadd.f32 %v11990_v40, %v11919_v47  ;;  %v2473_v57 = vadd.f32 %v11559_v14, %v11925_v63 }
 0x2b1   : > { %9687 = vmatprep.mubr.msk.f32.mxu1 %vm2933_vm2, %v2885_v50  ;;  %v12095_v55 = vpop.f32.mrb[118].mxu1  ;;  %v9817_v7 = vpop.eup %9816  ;;  %v7390_v4 = vadd.f32 0.5, %v7134_v23  ;;  %v12098_v5 = vmul.f32 %v11661_v13, %v5154_v12  ;;  %v6627_v34 = vmul.f32 0.5, %v6371_v35  ;;  %v4314_v49 = vadd.f32 %v11650_v62, %v11936_v25 }
 0x2b2   : > { %9688 = vmatmul.mubr.msk.f32.gmra.mrb[214].mxu1 %vm2933_vm2, %v2886_v24  ;;  %v12103_v47 = vpop.f32.mrb[119].mxu1  ;;  %v7135_v14 = vmul.f32 0.5, %v9817_v7  ;;  %v5415_v63 = vmul.f32 %v11661_v13, %v5153_v0  ;;  %v2888_v30 = vmax.f32 %v2478_v36, 0.0  ;;  %v6628_v56 = vmul.f32 0.5, %v6372_v53  ;;  %v12108_v16 = vpop.f32.mrb[228].mxu0 }
 0x2b3   : > { %v12105_v18 = vpop.xlane.xlu1 %5696  ;;  %7647 = vst.msk [vmem:[%s11576_s12 + $0xd0] sm:$0xff] %vm7620_vm4, %v7390_v4  ;;  %9824 = vtanh.f32 %v6627_v34  ;;  %v2887_v33 = vmax.f32 %v2473_v57, 0.0  ;;  %v5156_v25 = vmax.f32 %v4314_v49, 0.0  ;;  %v5875_v24 = vsel %vm5565_vm3, %v12012_v48, 0.0  ;;  %v12116_v42 = vpop.f32.mrb[229].mxu0 }
 0x2b4   : > { %v12110_v31 = vpop.xlane.xlu0 %5699  ;;  %v9819_v20 = vpop.eup %9818  ;;  %v7391_v50 = vadd.f32 0.5, %v7135_v14  ;;  %9826 = vtanh.f32 %v6628_v56  ;;  %5876 = vadd.xlane.f32.xlu1 %v5875_v24  ;;  %v4309_v15 = vadd.f32 %v11650_v62, %v11940_v3  ;;  %v6373_v23 = vadd.f32 %v11990_v40, %v11942_v32  ;;  %v12131_v0 = vld [vmem:[%s14485_s2] ss:$0 sm:$0xff] }
 0x2b5   : > { %v12122_v12 = vpop.f32.mrb[120].mxu1  ;;  %v7136_v35 = vmul.f32 0.5, %v9819_v20  ;;  %v12125_v27 = vmul.f32 %v11661_v13, %v5156_v25  ;;  %v5878_v48 = vsel %vm5565_vm3, %v5413_v59, 0.0  ;;  %v2488_v36 = vadd.f32 %v12131_v0, %v11945_v10  ;;  %9690 = vmatprep.mubr.msk.f32.mxu1 %vm2933_vm2, %v2887_v33 }
 0x2b6   : > { %v12136_v3 = vpop.f32.mrb[121].mxu1  ;;  %7648 = vst.msk [vmem:[%s11576_s12 + $0xd8] sm:$0xff] %vm7620_vm4, %v7391_v50  ;;  %v5155_v53 = vmax.f32 %v4309_v15, 0.0  ;;  %v6629_v57 = vmul.f32 0.5, %v6373_v23  ;;  %5879 = vadd.xlane.f32.xlu0 %v5878_v48  ;;  %v6374_v59 = vadd.f32 %v11990_v40, %v11947_v1  ;;  %v2483_v7 = vadd.f32 %v12131_v0, %v11957_v43  ;;  %9691 = vmatmul.mubr.msk.f32.gmra.mrb[216].mxu1 %vm2933_vm2, %v2888_v30  ;;  %v12147_v10 = vpop.f32.mrb[230].mxu0 }
 0x2b7   : > { %v12138_v32 = vpop.xlane.xlu1 %5702  ;;  %v9821_v34 = vpop.eup %9820  ;;  %v7392_v49 = vadd.f32 0.5, %v7136_v35  ;;  %v2890_v14 = vmax.f32 %v2488_v36, 0.0  ;;  %v4324_v56 = vadd.f32 %v11650_v62, %v11970_v51  ;;  %v5881_v33 = vsel %vm5565_vm3, %v12055_v8, 0.0 }
 0x2b8   : > { %v12149_v4 = vpop.xlane.xlu0 %5705  ;;  %v12155_v1 = vpop.f32.mrb[231].mxu0  ;;  %v7137_v43 = vmul.f32 0.5, %v9821_v34  ;;  %v5417_v30 = vmul.f32 %v11661_v13, %v5155_v53  ;;  %9828 = vtanh.f32 %v6629_v57  ;;  %v6630_v24 = vmul.f32 0.5, %v6374_v59  ;;  %5882 = vadd.xlane.f32.xlu1 %v5881_v33 }
 0x2b9   : > { %v9823_v25 = vpop.eup %9822  ;;  %v12158_v20 = vpop.f32.mrb[122].mxu1  ;;  %7649 = vst.msk [vmem:[%s11576_s12 + $0xe0] sm:$0xff] %vm7620_vm4, %v7392_v49  ;;  %v2889_v15 = vmax.f32 %v2483_v7, 0.0  ;;  %v5158_v23 = vmax.f32 %v4324_v56, 0.0  ;;  %v4319_v51 = vadd.f32 %v11650_v62, %v11975_v46  ;;  %v6375_v36 = vadd.f32 %v11990_v40, %v11977_v29 }
 0x2ba   : > { %v7138_v50 = vmul.f32 0.5, %v9823_v25  ;;  %v12164_v8 = vpop.f32.mrb[123].mxu1  ;;  %v7393_v48 = vadd.f32 0.5, %v7137_v43  ;;  %9830 = vtanh.f32 %v6630_v24  ;;  %v5884_v53 = vsel %vm5565_vm3, %v5415_v63, 0.0  ;;  %v12171_v57 = vpop.f32.mrb[232].mxu0 }
 0x2bb   : > { %v12166_v35 = vpop.xlane.xlu1 %5708  ;;  %v12176_v46 = vmul.f32 %v11661_v13, %v5158_v23  ;;  %v5157_v34 = vmax.f32 %v4319_v51, 0.0  ;;  %5885 = vadd.xlane.f32.xlu0 %v5884_v53  ;;  %v2498_v49 = vadd.f32 %v12131_v0, %v11984_v54  ;;  %9693 = vmatprep.mubr.msk.f32.mxu1 %vm2933_vm2, %v2889_v15  ;;  %v12181_v56 = vpop.f32.mrb[233].mxu0  ;;  %v6631_v29 = vmul.f32 0.5, %v6375_v36 }
 0x2bc   : > { %v12173_v59 = vpop.xlane.xlu0 %5711  ;;  %v7394_v7 = vadd.f32 0.5, %v7138_v50  ;;  %7650 = vst.msk [vmem:[%s11576_s12 + $0xe8] sm:$0xff] %vm7620_vm4, %v7393_v48  ;;  %v6376_v63 = vadd.f32 %v11990_v40, %v11986_v19  ;;  %v2493_v33 = vadd.f32 %v12131_v0, %v11994_v28  ;;  %v4334_v25 = vadd.f32 %v11650_v62, %v12000_v6  ;;  %9694 = vmatmul.mubr.msk.f32.gmra.mrb[218].mxu1 %vm2933_vm2, %v2890_v14  ;;  %v12192_v43 = vpop.f32.mrb[124].mxu1 }
 0x2bd   : > { %v9825_v54 = vpop.eup %9824  ;;  %v5419_v24 = vmul.f32 %v11661_v13, %v5157_v34  ;;  %v2892_v50 = vmax.f32 %v2498_v49, 0.0  ;;  %v5887_v15 = vsel %vm5565_vm3, %v12098_v5, 0.0  ;;  %v4329_v19 = vadd.f32 %v11650_v62, %v12007_v52  ;;  %v12201_v28 = vpop.f32.mrb[125].mxu1 }
 0x2be   : > { %7651 = vst.msk [vmem:[%s11576_s12 + $0xf0] sm:$0xff] %vm7620_vm4, %v7394_v7  ;;  %v9827_v6 = vpop.eup %9826  ;;  %v7139_v14 = vmul.f32 0.5, %v9825_v54  ;;  %9832 = vtanh.f32 %v6631_v29  ;;  %v6632_v51 = vmul.f32 0.5, %v6376_v63  ;;  %v2891_v48 = vmax.f32 %v2493_v33, 0.0  ;;  %5888 = vadd.xlane.f32.xlu1 %v5887_v15  ;;  %v12205_v36 = vpop.f32.mrb[234].mxu0 }
 0x2bf   : > { %v12203_v23 = vpop.xlane.xlu1 %5714  ;;  %v7140_v7 = vmul.f32 0.5, %v9827_v6  ;;  %v5160_v34 = vmax.f32 %v4334_v25, 0.0  ;;  %v5159_v5 = vmax.f32 %v4329_v19, 0.0  ;;  %v6377_v52 = vadd.f32 %v11990_v40, %v12009_v37  ;;  %v12211_v49 = vpop.f32.mrb[235].mxu0 }
 0x2c0   : > { %14491 = vst [vmem:[#allocation3_spill] sm:$0xff] %v12203_v23  ;;  %v12207_v53 = vpop.xlane.xlu0 %5717  ;;  %v7395_v23 = vadd.f32 0.5, %v7139_v14  ;;  %9834 = vtanh.f32 %v6632_v51  ;;  %v5890_v29 = vsel %vm5565_vm3, %v5417_v30, 0.0  ;;  %v2508_v63 = vadd.f32 %v12131_v0, %v12018_v26  ;;  %9696 = vmatprep.mubr.msk.f32.mxu1 %vm2933_vm2, %v2891_v48  ;;  %v12217_v33 = vpop.f32.mrb[126].mxu1 }
 0x2c1   : > { %v7396_v54 = vadd.f32 0.5, %v7140_v7  ;;  %v12220_v25 = vmul.f32 %v11661_v13, %v5160_v34  ;;  %v12223_v37 = vmul.f32 %v11661_v13, %v5159_v5  ;;  %v6633_v15 = vmul.f32 0.5, %v6377_v52  ;;  %5891 = vadd.xlane.f32.xlu0 %v5890_v29  ;;  %9697 = vmatmul.mubr.msk.f32.gmra.mrb[220].mxu1 %vm2933_vm2, %v2892_v50  ;;  %v12226_v30 = vpop.f32.mrb[127].mxu1 }
 0x2c2   : > { %v9829_v26 = vpop.eup %9828  ;;  %7652 = vst.msk [vmem:[%s11576_s12 + $0xf8] sm:$0xff] %vm7620_vm4, %v7395_v23  ;;  %v2894_v6 = vmax.f32 %v2508_v63, 0.0  ;;  %v6378_v14 = vadd.f32 %v11990_v40, %v12020_v39  ;;  %v2503_v51 = vadd.f32 %v12131_v0, %v12027_v2  ;;  %v4344_v13 = vadd.f32 %v11650_v62, %v12031_v17  ;;  %v12238_v48 = vpop.f32.mrb[236].mxu0  ;;  %v12249_v39 = vld [vmem:[%s14487_s4] ss:$0 sm:$0xff] }
 0x2c3   : > { %v12228_v19 = vpop.xlane.xlu1 %5720  ;;  %7653 = vst.msk [vmem:[%s11576_s12 + $0x100] sm:$0xff] %vm7620_vm4, %v7396_v54  ;;  %v7141_v7 = vmul.f32 0.5, %v9829_v26  ;;  %9836 = vtanh.f32 %v6633_v15  ;;  %v5893_v23 = vsel %vm5565_vm3, %v12125_v27, 0.0  ;;  %v4339_v2 = vadd.f32 %v12249_v39, %v12037_v38  ;;  %v12253_v62 = vpop.f32.mrb[237].mxu0 }
 0x2c4   : > { %v12240_v50 = vpop.xlane.xlu0 %5723  ;;  %v9831_v17 = vpop.eup %9830  ;;  %v6634_v34 = vmul.f32 0.5, %v6378_v14  ;;  %v2893_v5 = vmax.f32 %v2503_v51, 0.0  ;;  %v5162_v52 = vmax.f32 %v4344_v13, 0.0  ;;  %5894 = vadd.xlane.f32.xlu1 %v5893_v23  ;;  %v6379_v29 = vadd.f32 %v11990_v40, %v12039_v61  ;;  %v12267_v14 = vld [vmem:[%s14488_s5] ss:$0 sm:$0xff] }
 0x2c5   : > { %14492 = vst [vmem:[#allocation4_spill] sm:$0xff] %v12240_v50  ;;  %v12257_v63 = vpop.f32.mrb[128].mxu1  ;;  %v7397_v27 = vadd.f32 0.5, %v7141_v7  ;;  %v7142_v54 = vmul.f32 0.5, %v9831_v17  ;;  %v5161_v15 = vmax.f32 %v4339_v2, 0.0  ;;  %v5896_v26 = vsel %vm5565_vm3, %v5419_v24, 0.0 }
 0x2c6   : > { %v12260_v50 = vpop.f32.mrb[129].mxu1  ;;  %9838 = vtanh.f32 %v6634_v34  ;;  %v12270_v61 = vmul.f32 %v12267_v14, %v5162_v52  ;;  %v6635_v51 = vmul.f32 0.5, %v6379_v29  ;;  %5897 = vadd.xlane.f32.xlu0 %v5896_v26  ;;  %v2518_v13 = vadd.f32 %v12131_v0, %v12050_v22  ;;  %9699 = vmatprep.mubr.msk.f32.mxu1 %vm2933_vm2, %v2893_v5  ;;  %v12275_v24 = vpop.f32.mrb[238].mxu0 }
 0x2c7   : > { %v12262_v38 = vpop.xlane.xlu1 %5726  ;;  %7654 = vst.msk [vmem:[%s11576_s12 + $0x108] sm:$0xff] %vm7620_vm4, %v7397_v27  ;;  %v7398_v23 = vadd.f32 0.5, %v7142_v54  ;;  %v12282_v2 = vmul.f32 %v12267_v14, %v5161_v15  ;;  %v6380_v17 = vadd.f32 %v11990_v40, %v12052_v44  ;;  %v2513_v34 = vadd.f32 %v12131_v0, %v12058_v9  ;;  %9700 = vmatmul.mubr.msk.f32.gmra.mrb[222].mxu1 %vm2933_vm2, %v2894_v6  ;;  %v12289_v22 = vpop.f32.mrb[239].mxu0 }
 0x2c8   : > { %v12277_v7 = vpop.xlane.xlu0 %5729  ;;  %v9833_v5 = vpop.eup %9832  ;;  %9840 = vtanh.f32 %v6635_v51  ;;  %v2896_v52 = vmax.f32 %v2518_v13, 0.0  ;;  %v4354_v29 = vadd.f32 %v12249_v39, %v12062_v11  ;;  %v5899_v27 = vsel %vm5565_vm3, %v12176_v46, 0.0 }
 0x2c9   : > { %v12295_v54 = vpop.f32.mrb[130].mxu1  ;;  %7655 = vst.msk [vmem:[%s11576_s12 + $0x110] sm:$0xff] %vm7620_vm4, %v7398_v23  ;;  %v7143_v44 = vmul.f32 0.5, %v9833_v5  ;;  %v6636_v15 = vmul.f32 0.5, %v6380_v17  ;;  %v2895_v9 = vmax.f32 %v2513_v34, 0.0  ;;  %5900 = vadd.xlane.f32.xlu1 %v5899_v27  ;;  %v4349_v6 = vadd.f32 %v12249_v39, %v12071_v45 }
 0x2ca   : > { %14493 = vst [vmem:[#allocation5_spill] sm:$0xff] %v12295_v54  ;;  %v12301_v26 = vpop.f32.mrb[131].mxu1  ;;  %v9835_v13 = vpop.eup %9834  ;;  %v5164_v11 = vmax.f32 %v4354_v29, 0.0  ;;  %v6381_v46 = vadd.f32 %v11990_v40, %v12073_v41  ;;  %v5902_v54 = vsel %vm5565_vm3, %v12223_v37, 0.0  ;;  %v2528_v23 = vadd.f32 %v12131_v0, %v12077_v60 }
 0x2cb   : > { %v12303_v51 = vpop.xlane.xlu1 %5732  ;;  %v12311_v17 = vpop.f32.mrb[240].mxu0  ;;  %v7399_v45 = vadd.f32 0.5, %v7143_v44  ;;  %v7144_v5 = vmul.f32 0.5, %v9835_v13  ;;  %9842 = vtanh.f32 %v6636_v15  ;;  %v5163_v27 = vmax.f32 %v4349_v6, 0.0  ;;  %5903 = vadd.xlane.f32.xlu0 %v5902_v54  ;;  %9702 = vmatprep.mubr.msk.f32.mxu1 %vm2933_vm2, %v2895_v9 }
 0x2cc   : > { %14494 = vst [vmem:[#allocation6_spill] sm:$0xff] %v12303_v51  ;;  %v12313_v34 = vpop.xlane.xlu0 %5735  ;;  %v12316_v29 = vpop.f32.mrb[241].mxu0  ;;  %v12319_v41 = vmul.f32 %v12267_v14, %v5164_v11  ;;  %v6637_v37 = vmul.f32 0.5, %v6381_v46  ;;  %v2898_v51 = vmax.f32 %v2528_v23, 0.0  ;;  %v6382_v60 = vadd.f32 %v11990_v40, %v12079_v58  ;;  %9703 = vmatmul.mubr.msk.f32.gmra.mrb[224].mxu1 %vm2933_vm2, %v2896_v52 }
 0x2cd   : > { %v12324_v44 = vpop.f32.mrb[132].mxu1  ;;  %v9837_v15 = vpop.eup %9836  ;;  %7656 = vst.msk [vmem:[%s11576_s12 + $0x118] sm:$0xff] %vm7620_vm4, %v7399_v45  ;;  %v7400_v54 = vadd.f32 0.5, %v7144_v5  ;;  %v5425_v9 = vmul.f32 %v12267_v14, %v5163_v27  ;;  %v2523_v6 = vadd.f32 %v12131_v0, %v12084_v21  ;;  %v4364_v13 = vadd.f32 %v12249_v39, %v12095_v55 }
 0x2ce   : > { %v12333_v11 = vpop.f32.mrb[133].mxu1  ;;  %v7145_v52 = vmul.f32 0.5, %v9837_v15  ;;  %9844 = vtanh.f32 %v6637_v37  ;;  %v6638_v46 = vmul.f32 0.5, %v6382_v60  ;;  %v5905_v23 = vsel %vm5565_vm3, %v12220_v25, 0.0  ;;  %v12339_v45 = vpop.f32.mrb[242].mxu0 }
 0x2cf   : > { %v12335_v58 = vpop.xlane.xlu1 %5738  ;;  %7657 = vst.msk [vmem:[%s11576_s12 + $0x120] sm:$0xff] %vm7620_vm4, %v7400_v54  ;;  %v2897_v21 = vmax.f32 %v2523_v6, 0.0  ;;  %v5166_v27 = vmax.f32 %v4364_v13, 0.0  ;;  %5906 = vadd.xlane.f32.xlu1 %v5905_v23  ;;  %v4359_v55 = vadd.f32 %v12249_v39, %v12103_v47  ;;  %v6383_v15 = vadd.f32 %v11990_v40, %v12105_v18  ;;  %v12349_v37 = vpop.f32.mrb[243].mxu0 }
 0x2d0   : > { %v12341_v5 = vpop.xlane.xlu0 %5741  ;;  %14496 = vst [vmem:[#allocation8_spill] sm:$0xff] %v12349_v37  ;;  %v9839_v60 = vpop.eup %9838  ;;  %v7401_v25 = vadd.f32 0.5, %v7145_v52  ;;  %9846 = vtanh.f32 %v6638_v46  ;;  %v2538_v54 = vadd.f32 %v12131_v0, %v12108_v16  ;;  %v6384_v16 = vadd.f32 %v11990_v40, %v12110_v31 }
 0x2d1   : > { %14495 = vst [vmem:[#allocation7_spill] sm:$0xff] %v12341_v5  ;;  %v5908_v5 = vsel %vm5565_vm3, %v12282_v2, 0.0  ;;  %v12355_v6 = vpop.f32.mrb[134].mxu1  ;;  %v7146_v13 = vmul.f32 0.5, %v9839_v60  ;;  %v12358_v47 = vmul.f32 %v12267_v14, %v5166_v27  ;;  %v5165_v23 = vmax.f32 %v4359_v55, 0.0  ;;  %9705 = vmatprep.mubr.msk.f32.mxu1 %vm2933_vm2, %v2897_v21 }
 0x2d2   : > { %v6639_v18 = vmul.f32 0.5, %v6383_v15  ;;  %5909 = vadd.xlane.f32.xlu0 %v5908_v5  ;;  %v12361_v37 = vpop.f32.mrb[135].mxu1  ;;  %v9841_v46 = vpop.eup %9840  ;;  %7658 = vst.msk [vmem:[%s11576_s12 + $0x128] sm:$0xff] %vm7620_vm4, %v7401_v25  ;;  %v2900_v2 = vmax.f32 %v2538_v54, 0.0  ;;  %v2533_v27 = vadd.f32 %v12131_v0, %v12116_v42  ;;  %v4374_v5 = vadd.f32 %v12249_v39, %v12122_v12  ;;  %9706 = vmatmul.mubr.msk.f32.gmra.mrb[226].mxu1 %vm2933_vm2, %v2898_v51 }
 0x2d3   : > { %14497 = vst [vmem:[#allocation9_spill] sm:$0xff] %v12361_v37  ;;  %v12363_v52 = vpop.xlane.xlu1 %5744  ;;  %v12374_v21 = vpop.f32.mrb[244].mxu0  ;;  %v7402_v15 = vadd.f32 0.5, %v7146_v13  ;;  %v7147_v60 = vmul.f32 0.5, %v9841_v46  ;;  %v5427_v25 = vmul.f32 %v12267_v14, %v5165_v23  ;;  %v6640_v31 = vmul.f32 0.5, %v6384_v16 }
 0x2d4   : > { %14498 = vst [vmem:[#allocation10_spill] sm:$0xff] %v12363_v52  ;;  %v12376_v55 = vpop.xlane.xlu0 %5747  ;;  %9848 = vtanh.f32 %v6639_v18  ;;  %v12379_v54 = vpop.f32.mrb[245].mxu0  ;;  %v2899_v52 = vmax.f32 %v2533_v27, 0.0  ;;  %v5168_v42 = vmax.f32 %v4374_v5, 0.0  ;;  %v5911_v37 = vsel %vm5565_vm3, %v12270_v61, 0.0 }
 0x2d5   : > { %14499 = vst [vmem:[#allocation11_spill] sm:$0xff] %v12376_v55  ;;  %v12383_v12 = vpop.f32.mrb[136].mxu1  ;;  %v9843_v51 = vpop.eup %9842  ;;  %7659 = vst.msk [vmem:[%s11576_s12 + $0x130] sm:$0xff] %vm7620_vm4, %v7402_v15  ;;  %v7403_v55 = vadd.f32 0.5, %v7147_v60  ;;  %5912 = vadd.xlane.f32.xlu1 %v5911_v37  ;;  %v4369_v13 = vadd.f32 %v12249_v39, %v12136_v3  ;;  %v6385_v23 = vadd.f32 %v11990_v40, %v12138_v32  ;;  %v5914_v18 = vsel %vm5565_vm3, %v5425_v9, 0.0 }
 0x2d6   : > { %v12392_v46 = vpop.f32.mrb[137].mxu1  ;;  %v7148_v61 = vmul.f32 0.5, %v9843_v51  ;;  %9850 = vtanh.f32 %v6640_v31  ;;  %v12397_v27 = vmul.f32 %v12267_v14, %v5168_v42  ;;  %5915 = vadd.xlane.f32.xlu0 %v5914_v18  ;;  %v2548_v37 = vadd.f32 %v12131_v0, %v12147_v10  ;;  %9708 = vmatprep.mubr.msk.f32.mxu1 %vm2933_vm2, %v2899_v52  ;;  %v12402_v3 = vpop.f32.mrb[246].mxu0 }
 0x2d7   : > { %v12394_v16 = vpop.xlane.xlu1 %5750  ;;  %7660 = vst.msk [vmem:[%s11576_s12 + $0x138] sm:$0xff] %vm7620_vm4, %v7403_v55  ;;  %v5167_v9 = vmax.f32 %v4369_v13, 0.0  ;;  %v6641_v5 = vmul.f32 0.5, %v6385_v23  ;;  %v6386_v15 = vadd.f32 %v11990_v40, %v12149_v4  ;;  %v2543_v60 = vadd.f32 %v12131_v0, %v12155_v1  ;;  %9709 = vmatmul.mubr.msk.f32.gmra.mrb[228].mxu1 %vm2933_vm2, %v2900_v2  ;;  %v12413_v10 = vpop.f32.mrb[247].mxu0 }
 0x2d8   : > { %v12404_v32 = vpop.xlane.xlu0 %5753  ;;  %v9845_v52 = vpop.eup %9844  ;;  %v7404_v31 = vadd.f32 0.5, %v7148_v61  ;;  %v2902_v42 = vmax.f32 %v2548_v37, 0.0  ;;  %v4384_v51 = vadd.f32 %v12249_v39, %v12158_v20  ;;  %v5917_v55 = vsel %vm5565_vm3, %v12319_v41, 0.0 }
 0x2d9   : > { %v12419_v13 = vpop.f32.mrb[138].mxu1  ;;  %v7149_v4 = vmul.f32 0.5, %v9845_v52  ;;  %v5429_v23 = vmul.f32 %v12267_v14, %v5167_v9  ;;  %9852 = vtanh.f32 %v6641_v5  ;;  %v6642_v1 = vmul.f32 0.5, %v6386_v15  ;;  %5918 = vadd.xlane.f32.xlu1 %v5917_v55 }
 0x2da   : > { %v12422_v2 = vpop.f32.mrb[139].mxu1  ;;  %v9847_v61 = vpop.eup %9846  ;;  %7661 = vst.msk [vmem:[%s11576_s12 + $0x140] sm:$0xff] %vm7620_vm4, %v7404_v31  ;;  %v2901_v37 = vmax.f32 %v2543_v60, 0.0  ;;  %v5170_v20 = vmax.f32 %v4384_v51, 0.0  ;;  %v4379_v41 = vadd.f32 %v12249_v39, %v12164_v8  ;;  %v6387_v52 = vadd.f32 %v11990_v40, %v12166_v35 }
 0x2db   : > { %14500 = vst [vmem:[#allocation12_spill] sm:$0xff] %v12422_v2  ;;  %v12424_v18 = vpop.xlane.xlu1 %5756  ;;  %v12432_v9 = vpop.f32.mrb[248].mxu0  ;;  %v7405_v15 = vadd.f32 0.5, %v7149_v4  ;;  %v7150_v55 = vmul.f32 0.5, %v9847_v61  ;;  %9854 = vtanh.f32 %v6642_v1  ;;  %v2558_v35 = vadd.f32 %v12131_v0, %v12171_v57 }
 0x2dc   : > { %14501 = vst [vmem:[#allocation13_spill] sm:$0xff] %v12424_v18  ;;  %v12434_v5 = vpop.xlane.xlu0 %5759  ;;  %v5920_v18 = vsel %vm5565_vm3, %v5427_v25, 0.0  ;;  %v12437_v2 = vpop.f32.mrb[249].mxu0  ;;  %v12440_v60 = vmul.f32 %v12267_v14, %v5170_v20  ;;  %v5169_v31 = vmax.f32 %v4379_v41, 0.0  ;;  %v6643_v8 = vmul.f32 0.5, %v6387_v52  ;;  %9711 = vmatprep.mubr.msk.f32.mxu1 %vm2933_vm2, %v2901_v37 }
 0x2dd   : > { %5921 = vadd.xlane.f32.xlu0 %v5920_v18  ;;  %v12445_v51 = vpop.f32.mrb[140].mxu1  ;;  %7662 = vst.msk [vmem:[%s11576_s12 + $0x148] sm:$0xff] %vm7620_vm4, %v7405_v15  ;;  %v7406_v25 = vadd.f32 0.5, %v7150_v55  ;;  %v6388_v1 = vadd.f32 %v11990_v40, %v12173_v59  ;;  %v2553_v61 = vadd.f32 %v12131_v0, %v12181_v56  ;;  %v4394_v18 = vadd.f32 %v12249_v39, %v12192_v43 }
 0x2de   : > { %v9849_v4 = vpop.eup %9848  ;;  %9712 = vmatmul.mubr.msk.f32.gmra.mrb[230].mxu1 %vm2933_vm2, %v2902_v42  ;;  %v12456_v57 = vpop.f32.mrb[141].mxu1  ;;  %v5431_v41 = vmul.f32 %v12267_v14, %v5169_v31  ;;  %9856 = vtanh.f32 %v6643_v8  ;;  %v2904_v52 = vmax.f32 %v2558_v35, 0.0  ;;  %v5923_v42 = vsel %vm5565_vm3, %v12358_v47, 0.0  ;;  %v14504_v8 = vld [vmem:[#allocation3_spill] sm:$0xff] }
 0x2df   : > { %14502 = vst [vmem:[#allocation14_spill] sm:$0xff] %v12456_v57  ;;  %v12458_v37 = vpop.xlane.xlu1 %5762  ;;  %v7151_v20 = vmul.f32 0.5, %v9849_v4  ;;  %v12461_v15 = vpop.f32.mrb[250].mxu0  ;;  %7663 = vst.msk [vmem:[%s11576_s12 + $0x150] sm:$0xff] %vm7620_vm4, %v7406_v25  ;;  %v6644_v56 = vmul.f32 0.5, %v6388_v1  ;;  %v2903_v55 = vmax.f32 %v2553_v61, 0.0  ;;  %5924 = vadd.xlane.f32.xlu1 %v5923_v42  ;;  %v4389_v31 = vadd.f32 %v12249_v39, %v12201_v28 }
 0x2e0   : > { %14503 = vst [vmem:[#allocation15_spill] sm:$0xff] %v12458_v37  ;;  %v12463_v59 = vpop.xlane.xlu0 %5765  ;;  %v5172_v43 = vmax.f32 %v4394_v18, 0.0  ;;  %v12469_v57 = vpop.f32.mrb[251].mxu0  ;;  %v6389_v35 = vadd.f32 %v11990_v40, %v14504_v8  ;;  %v5926_v25 = vsel %vm5565_vm3, %v5429_v23, 0.0  ;;  %v2568_v18 = vadd.f32 %v12131_v0, %v12205_v36 }
 0x2e1   : > { %v9851_v4 = vpop.eup %9850  ;;  %v7407_v37 = vadd.f32 0.5, %v7151_v20  ;;  %v12476_v1 = vpop.f32.mrb[142].mxu1  ;;  %9858 = vtanh.f32 %v6644_v56  ;;  %5927 = vadd.xlane.f32.xlu0 %v5926_v25  ;;  %9714 = vmatprep.mubr.msk.f32.mxu1 %vm2933_vm2, %v2903_v55  ;;  %v5171_v23 = vmax.f32 %v4389_v31, 0.0  ;;  %v6390_v56 = vadd.f32 %v11990_v40, %v12207_v53 }
 0x2e2   : > { %v7152_v61 = vmul.f32 0.5, %v9851_v4  ;;  %v12479_v47 = vmul.f32 %v12267_v14, %v5172_v43  ;;  %v12484_v20 = vpop.f32.mrb[143].mxu1  ;;  %v6645_v42 = vmul.f32 0.5, %v6389_v35  ;;  %v2563_v43 = vadd.f32 %v12131_v0, %v12211_v49  ;;  %9715 = vmatmul.mubr.msk.f32.gmra.mrb[232].mxu1 %vm2933_vm2, %v2904_v52  ;;  %v12495_v36 = vpop.f32.mrb[252].mxu0 }
 0x2e3   : > { %v12486_v28 = vpop.xlane.xlu1 %5768  ;;  %7664 = vst.msk [vmem:[%s11576_s12 + $0x158] sm:$0xff] %vm7620_vm4, %v7407_v37  ;;  %14505 = vst [vmem:[#allocation3_spill] sm:$0xff] %v12495_v36  ;;  %v9853_v4 = vpop.eup %9852  ;;  %v2906_v25 = vmax.f32 %v2568_v18, 0.0  ;;  %v4404_v37 = vadd.f32 %v12249_v39, %v12217_v33  ;;  %v5929_v31 = vsel %vm5565_vm3, %v12397_v27, 0.0  ;;  %v5433_v49 = vmul.f32 %v12267_v14, %v5171_v23 }
 0x2e4   : > { %v12497_v55 = vpop.xlane.xlu0 %5771  ;;  %v7408_v8 = vadd.f32 0.5, %v7152_v61  ;;  %v12503_v53 = vpop.f32.mrb[253].mxu0  ;;  %v7153_v35 = vmul.f32 0.5, %v9853_v4  ;;  %9860 = vtanh.f32 %v6645_v42  ;;  %v6646_v52 = vmul.f32 0.5, %v6390_v56  ;;  %5930 = vadd.xlane.f32.xlu1 %v5929_v31 }
 0x2e5   : > { %14506 = vst [vmem:[#allocation16_spill] sm:$0xff] %v12497_v55  ;;  %14507 = vst [vmem:[#allocation17_spill] sm:$0xff] %v12503_v53  ;;  %v12506_v36 = vpop.f32.mrb[144].mxu1  ;;  %v9855_v55 = vpop.eup %9854  ;;  %v2905_v61 = vmax.f32 %v2563_v43, 0.0  ;;  %v5174_v18 = vmax.f32 %v4404_v37, 0.0  ;;  %v4399_v33 = vadd.f32 %v12249_v39, %v12226_v30  ;;  %v6391_v27 = vadd.f32 %v11990_v40, %v12228_v19 }
 0x2e6   : > { %7665 = vst.msk [vmem:[%s11576_s12 + $0x160] sm:$0xff] %vm7620_vm4, %v7408_v8  ;;  %v12514_v53 = vpop.f32.mrb[145].mxu1  ;;  %v7409_v42 = vadd.f32 0.5, %v7153_v35  ;;  %v7154_v56 = vmul.f32 0.5, %v9855_v55  ;;  %9862 = vtanh.f32 %v6646_v52  ;;  %v5932_v4 = vsel %vm5565_vm3, %v5431_v41, 0.0  ;;  %v12519_v31 = vpop.f32.mrb[254].mxu0 }
 0x2e7   : > { %v12516_v23 = vpop.xlane.xlu1 %5774  ;;  %v12524_v8 = vmul.f32 %v12267_v14, %v5174_v18  ;;  %v5173_v30 = vmax.f32 %v4399_v33, 0.0  ;;  %v6647_v37 = vmul.f32 0.5, %v6391_v27  ;;  %5933 = vadd.xlane.f32.xlu0 %v5932_v4  ;;  %v2578_v19 = vadd.f32 %v12131_v0, %v12238_v48  ;;  %9717 = vmatprep.mubr.msk.f32.mxu1 %vm2933_vm2, %v2905_v61  ;;  %v12529_v55 = vpop.f32.mrb[255].mxu0  ;;  %v14510_v52 = vld [vmem:[#allocation4_spill] sm:$0xff] }
 0x2e8   : > { %v12521_v43 = vpop.xlane.xlu0 %5777  ;;  %14509 = vst [vmem:[#allocation19_spill] sm:$0xff] %v12529_v55  ;;  %v9857_v35 = vpop.eup %9856  ;;  %7666 = vst.msk [vmem:[%s11576_s12 + $0x168] sm:$0xff] %vm7620_vm4, %v7409_v42  ;;  %v7410_v41 = vadd.f32 0.5, %v7154_v56  ;;  %v2573_v18 = vadd.f32 %v12131_v0, %v12253_v62  ;;  %v4414_v33 = vadd.f32 %v12249_v39, %v12257_v63  ;;  %9718 = vmatmul.mubr.msk.f32.gmra.mrb[234].mxu1 %vm2933_vm2, %v2906_v25  ;;  %v5935_v63 = vsel %vm5565_vm3, %v12440_v60, 0.0 }
 0x2e9   : > { %14508 = vst [vmem:[#allocation18_spill] sm:$0xff] %v12521_v43  ;;  %v6392_v43 = vadd.f32 %v11990_v40, %v14510_v52  ;;  %v12540_v48 = vpop.f32.mrb[146].mxu1  ;;  %v7155_v61 = vmul.f32 0.5, %v9857_v35  ;;  %v5435_v27 = vmul.f32 %v12267_v14, %v5173_v30  ;;  %9864 = vtanh.f32 %v6647_v37  ;;  %5936 = vadd.xlane.f32.xlu1 %v5935_v63  ;;  %v14512_v63 = vld [vmem:[#allocation5_spill] sm:$0xff] }
 0x2ea   : > { %14511 = vst [vmem:[#allocation4_spill] sm:$0xff] %v12540_v48  ;;  %v2908_v4 = vmax.f32 %v2578_v19, 0.0  ;;  %v12543_v42 = vpop.f32.mrb[147].mxu1  ;;  %7667 = vst.msk [vmem:[%s11576_s12 + $0x170] sm:$0xff] %vm7620_vm4, %v7410_v41  ;;  %v2907_v62 = vmax.f32 %v2573_v18, 0.0  ;;  %v5176_v55 = vmax.f32 %v4414_v33, 0.0  ;;  %v4409_v30 = vadd.f32 %v12249_v39, %v12260_v50 }
 0x2eb   : > { %v12545_v56 = vpop.xlane.xlu1 %5780  ;;  %v6648_v52 = vmul.f32 0.5, %v6392_v43  ;;  %v9859_v35 = vpop.eup %9858  ;;  %v7411_v48 = vadd.f32 0.5, %v7155_v61  ;;  %v6393_v37 = vadd.f32 %v11990_v40, %v12262_v38  ;;  %v5938_v19 = vsel %vm5565_vm3, %v5433_v49, 0.0 }
 0x2ec   : > { %v12551_v25 = vpop.xlane.xlu0 %5783  ;;  %v7156_v43 = vmul.f32 0.5, %v9859_v35  ;;  %v12559_v41 = vmul.f32 %v12267_v14, %v5176_v55  ;;  %5939 = vadd.xlane.f32.xlu0 %v5938_v19  ;;  %v2588_v60 = vadd.f32 %v12131_v0, %v12275_v24  ;;  %9720 = vmatprep.mubr.msk.f32.mxu1 %vm2933_vm2, %v2907_v62  ;;  %v12564_v18 = vpop.f32.mrb[148].mxu1  ;;  %v5175_v50 = vmax.f32 %v4409_v30, 0.0 }
 0x2ed   : > { %9866 = vtanh.f32 %v6648_v52  ;;  %7668 = vst.msk [vmem:[%s11576_s12 + $0x178] sm:$0xff] %vm7620_vm4, %v7411_v48  ;;  %v6649_v33 = vmul.f32 0.5, %v6393_v37  ;;  %v6394_v38 = vadd.f32 %v11990_v40, %v12277_v7  ;;  %v2583_v49 = vadd.f32 %v12131_v0, %v12289_v22  ;;  %9721 = vmatmul.mubr.msk.f32.gmra.mrb[236].mxu1 %vm2933_vm2, %v2908_v4  ;;  %v12573_v55 = vpop.f32.mrb[149].mxu1 }
 0x2ee   : > { %v9861_v61 = vpop.eup %9860  ;;  %v7412_v52 = vadd.f32 0.5, %v7156_v43  ;;  %v2910_v62 = vmax.f32 %v2588_v60, 0.0  ;;  %v4424_v48 = vadd.f32 %v12249_v39, %v14512_v63  ;;  %v5941_v35 = vsel %vm5565_vm3, %v12479_v47, 0.0  ;;  %v12588_v60 = vld [vmem:[#allocation2] ss:$0 sm:$0xff] }
 0x2ef   : > { %v12575_v24 = vpop.xlane.xlu1 %5786  ;;  %v7157_v40 = vmul.f32 0.5, %v9861_v61  ;;  %v5437_v7 = vmul.f32 %v12267_v14, %v5175_v50  ;;  %9868 = vtanh.f32 %v6649_v33  ;;  %v6650_v22 = vmul.f32 0.5, %v6394_v38  ;;  %5942 = vadd.xlane.f32.xlu1 %v5941_v35  ;;  %v14513_v47 = vld [vmem:[#allocation6_spill] sm:$0xff] }
 0x2f0   : > { %v12582_v4 = vpop.xlane.xlu0 %5789  ;;  %v9863_v30 = vpop.eup %9862  ;;  %7669 = vst.msk [vmem:[%s11576_s12 + $0x180] sm:$0xff] %vm7620_vm4, %v7412_v52  ;;  %v2909_v37 = vmax.f32 %v2583_v49, 0.0  ;;  %v5178_v19 = vmax.f32 %v4424_v48, 0.0  ;;  %v4419_v43 = vadd.f32 %v12249_v39, %v12301_v26  ;;  %v6395_v61 = vadd.f32 %v12588_v60, %v14513_v47 }
 0x2f1   : > { %v12592_v50 = vpop.f32.mrb[150].mxu1  ;;  %v7413_v33 = vadd.f32 0.5, %v7157_v40  ;;  %v7158_v38 = vmul.f32 0.5, %v9863_v30  ;;  %9870 = vtanh.f32 %v6650_v22  ;;  %v5944_v63 = vsel %vm5565_vm3, %v5435_v27, 0.0 }
 0x2f2   : > { %v12595_v35 = vpop.f32.mrb[151].mxu1  ;;  %v12598_v49 = vmul.f32 %v12267_v14, %v5178_v19  ;;  %v5177_v52 = vmax.f32 %v4419_v43, 0.0  ;;  %v6651_v26 = vmul.f32 0.5, %v6395_v61  ;;  %5945 = vadd.xlane.f32.xlu0 %v5944_v63  ;;  %v2598_v48 = vadd.f32 %v12131_v0, %v12311_v17  ;;  %9723 = vmatprep.mubr.msk.f32.mxu1 %vm2933_vm2, %v2909_v37 }
 0x2f3   : > { %v9865_v47 = vpop.eup %9864  ;;  %7670 = vst.msk [vmem:[%s11576_s12 + $0x188] sm:$0xff] %vm7620_vm4, %v7413_v33  ;;  %v7414_v40 = vadd.f32 0.5, %v7158_v38  ;;  %v6396_v27 = vadd.f32 %v12588_v60, %v12313_v34  ;;  %v2593_v22 = vadd.f32 %v12131_v0, %v12316_v29  ;;  %v4434_v30 = vadd.f32 %v12249_v39, %v12324_v44  ;;  %9724 = vmatmul.mubr.msk.f32.gmra.mrb[238].mxu1 %vm2933_vm2, %v2910_v62  ;;  %v12612_v19 = vpop.xlane.xlu1 %5792 }
 0x2f4   : > { %v7159_v17 = vmul.f32 0.5, %v9865_v47  ;;  %v5439_v37 = vmul.f32 %v12267_v14, %v5177_v52  ;;  %9872 = vtanh.f32 %v6651_v26  ;;  %v2912_v43 = vmax.f32 %v2598_v48, 0.0  ;;  %v12615_v61 = vpop.f32.mrb[152].mxu1 }
 0x2f5   : > { %7671 = vst.msk [vmem:[%s11576_s12 + $0x190] sm:$0xff] %vm7620_vm4, %v7414_v40  ;;  %v6652_v34 = vmul.f32 0.5, %v6396_v27  ;;  %v2911_v33 = vmax.f32 %v2593_v22, 0.0  ;;  %v5180_v38 = vmax.f32 %v4434_v30, 0.0  ;;  %v5947_v29 = vsel %vm5565_vm3, %v12524_v8, 0.0  ;;  %v12621_v44 = vpop.xlane.xlu0 %5795  ;;  %v12623_v62 = vpop.f32.mrb[153].mxu1 }
 0x2f6   : > { %v7415_v47 = vadd.f32 0.5, %v7159_v17  ;;  %5948 = vadd.xlane.f32.xlu1 %v5947_v29  ;;  %v4429_v52 = vadd.f32 %v12249_v39, %v12333_v11  ;;  %v6397_v26 = vadd.f32 %v12588_v60, %v12335_v58  ;;  %v5950_v48 = vsel %vm5565_vm3, %v5437_v7, 0.0  ;;  %v14514_v30 = vld [vmem:[#allocation7_spill] sm:$0xff]  ;;  %v14515_v17 = vld [vmem:[#allocation8_spill] sm:$0xff] }
 0x2f7   : > { %v9867_v63 = vpop.eup %9866  ;;  %9874 = vtanh.f32 %v6652_v34  ;;  %v12631_v27 = vmul.f32 %v12267_v14, %v5180_v38  ;;  %5951 = vadd.xlane.f32.xlu0 %v5950_v48  ;;  %v2608_v8 = vadd.f32 %v12131_v0, %v12339_v45  ;;  %9726 = vmatprep.mubr.msk.f32.mxu1 %vm2933_vm2, %v2911_v33  ;;  %v6398_v58 = vadd.f32 %v12588_v60, %v14514_v30 }
 0x2f8   : > { %v7160_v40 = vmul.f32 0.5, %v9867_v63  ;;  %7672 = vst.msk [vmem:[%s11576_s12 + $0x198] sm:$0xff] %vm7620_vm4, %v7415_v47  ;;  %v5179_v22 = vmax.f32 %v4429_v52, 0.0  ;;  %v6653_v11 = vmul.f32 0.5, %v6397_v26  ;;  %v2603_v7 = vadd.f32 %v12131_v0, %v14515_v17  ;;  %9727 = vmatmul.mubr.msk.f32.gmra.mrb[240].mxu1 %vm2933_vm2, %v2912_v43  ;;  %v12643_v34 = vpop.f32.mrb[154].mxu1  ;;  %v12649_v47 = vpop.xlane.xlu1 %5798  ;;  %v14519_v17 = vld [vmem:[#allocation9_spill] sm:$0xff] }
 0x2f9   : > { %14516 = vst [vmem:[#allocation5_spill] sm:$0xff] %v12643_v34  ;;  %v9869_v38 = vpop.eup %9868  ;;  %v2914_v45 = vmax.f32 %v2608_v8, 0.0  ;;  %v4444_v33 = vadd.f32 %v12249_v39, %v12355_v6  ;;  %v5953_v63 = vsel %vm5565_vm3, %v12559_v41, 0.0  ;;  %14517 = vst [vmem:[#allocation6_spill] sm:$0xff] %v12649_v47  ;;  %v12651_v52 = vpop.f32.mrb[155].mxu1  ;;  %v6654_v43 = vmul.f32 0.5, %v6398_v58 }
 0x2fa   : > { %v7416_v29 = vadd.f32 0.5, %v7160_v40  ;;  %14518 = vst [vmem:[#allocation7_spill] sm:$0xff] %v12651_v52  ;;  %v7161_v26 = vmul.f32 0.5, %v9869_v38  ;;  %v5441_v48 = vmul.f32 %v12267_v14, %v5179_v22  ;;  %9876 = vtanh.f32 %v6653_v11  ;;  %5954 = vadd.xlane.f32.xlu1 %v5953_v63  ;;  %v14520_v34 = vld [vmem:[#allocation10_spill] sm:$0xff] }
 0x2fb   : > { %v9871_v30 = vpop.eup %9870  ;;  %v2913_v40 = vmax.f32 %v2603_v7, 0.0  ;;  %v5182_v8 = vmax.f32 %v4444_v33, 0.0  ;;  %v4439_v6 = vadd.f32 %v12249_v39, %v14519_v17  ;;  %v6399_v41 = vadd.f32 %v12588_v60, %v14520_v34  ;;  %v12660_v47 = vpop.xlane.xlu0 %5801 }
 0x2fc   : > { %7673 = vst.msk [vmem:[%s11576_s12 + $0x1a0] sm:$0xff] %vm7620_vm4, %v7416_v29  ;;  %v7417_v38 = vadd.f32 0.5, %v7161_v26  ;;  %v7162_v52 = vmul.f32 0.5, %v9871_v30  ;;  %9878 = vtanh.f32 %v6654_v43  ;;  %v5956_v22 = vsel %vm5565_vm3, %v5439_v37, 0.0  ;;  %v12663_v11 = vpop.f32.mrb[156].mxu1  ;;  %v14521_v26 = vld [vmem:[#allocation11_spill] sm:$0xff] }
 0x2fd   : > { %v12666_v58 = vmul.f32 %v12267_v14, %v5182_v8  ;;  %v5181_v7 = vmax.f32 %v4439_v6, 0.0  ;;  %v6655_v29 = vmul.f32 0.5, %v6399_v41  ;;  %5957 = vadd.xlane.f32.xlu0 %v5956_v22  ;;  %v2618_v33 = vadd.f32 %v12131_v0, %v12374_v21  ;;  %9729 = vmatprep.mubr.msk.f32.mxu1 %vm2933_vm2, %v2913_v40  ;;  %v12671_v34 = vpop.f32.mrb[157].mxu1 }
 0x2fe   : > { %v9873_v63 = vpop.eup %9872  ;;  %7674 = vst.msk [vmem:[%s11576_s12 + $0x1a8] sm:$0xff] %vm7620_vm4, %v7417_v38  ;;  %v7418_v37 = vadd.f32 0.5, %v7162_v52  ;;  %v6400_v43 = vadd.f32 %v12588_v60, %v14521_v26  ;;  %v2613_v30 = vadd.f32 %v12131_v0, %v12379_v54  ;;  %v4454_v8 = vadd.f32 %v12249_v39, %v12383_v12  ;;  %9730 = vmatmul.mubr.msk.f32.gmra.mrb[242].mxu1 %vm2933_vm2, %v2914_v45  ;;  %v12706_v26 = vld [vmem:[%s14485_s2] ss:$0 sm:$0xff] }
 0x2ff   : > { %v7163_v21 = vmul.f32 0.5, %v9873_v63  ;;  %v5443_v40 = vmul.f32 %v12267_v14, %v5181_v7  ;;  %9880 = vtanh.f32 %v6655_v29  ;;  %v2916_v17 = vmax.f32 %v2618_v33, 0.0  ;;  %v12683_v6 = vpop.xlane.xlu1 %5804 }
 0x300   : > { %7675 = vst.msk [vmem:[%s11576_s12 + $0x1b0] sm:$0xff] %vm7620_vm4, %v7418_v37  ;;  %v6656_v52 = vmul.f32 0.5, %v6400_v43  ;;  %v2915_v41 = vmax.f32 %v2613_v30, 0.0  ;;  %v5184_v38 = vmax.f32 %v4454_v8, 0.0  ;;  %v5959_v0 = vsel %vm5565_vm3, %v12598_v49, 0.0  ;;  %v12689_v54 = vpop.f32.mrb[158].mxu1 }
 0x301   : > { %v9875_v12 = vpop.eup %9874  ;;  %v7419_v45 = vadd.f32 0.5, %v7163_v21  ;;  %5960 = vadd.xlane.f32.xlu1 %v5959_v0  ;;  %v4449_v22 = vadd.f32 %v12249_v39, %v12392_v46  ;;  %v6401_v7 = vadd.f32 %v12588_v60, %v12394_v16  ;;  %v5962_v29 = vsel %vm5565_vm3, %v5441_v48, 0.0  ;;  %v12696_v33 = vpop.xlane.xlu0 %5807 }
 0x302   : > { %v12698_v63 = vpop.f32.mrb[159].mxu1  ;;  %v7164_v37 = vmul.f32 0.5, %v9875_v12  ;;  %9882 = vtanh.f32 %v6656_v52  ;;  %v12701_v49 = vmul.f32 %v12267_v14, %v5184_v38  ;;  %5963 = vadd.xlane.f32.xlu0 %v5962_v29  ;;  %v2628_v46 = vadd.f32 %v12706_v26, %v12402_v3  ;;  %9732 = vmatprep.mubr.msk.f32.mxu1 %vm2933_vm2, %v2915_v41  ;;  %v14523_v29 = vld [vmem:[#allocation13_spill] sm:$0xff] }
 0x303   : > { %7676 = vst.msk [vmem:[%s11576_s12 + $0x1b8] sm:$0xff] %vm7620_vm4, %v7419_v45  ;;  %v5183_v16 = vmax.f32 %v4449_v22, 0.0  ;;  %v6657_v48 = vmul.f32 0.5, %v6401_v7  ;;  %v6402_v43 = vadd.f32 %v12588_v60, %v12404_v32  ;;  %v2623_v30 = vadd.f32 %v12706_v26, %v12413_v10  ;;  %9733 = vmatmul.mubr.msk.f32.gmra.mrb[244].mxu1 %vm2933_vm2, %v2916_v17  ;;  %v14522_v7 = vld [vmem:[#allocation12_spill] sm:$0xff] }
 0x304   : > { %v9877_v8 = vpop.eup %9876  ;;  %v7420_v21 = vadd.f32 0.5, %v7164_v37  ;;  %v2918_v52 = vmax.f32 %v2628_v46, 0.0  ;;  %v4464_v3 = vadd.f32 %v12249_v39, %v12419_v13  ;;  %v5965_v41 = vsel %vm5565_vm3, %v12631_v27, 0.0  ;;  %v12722_v38 = vpop.f32.mrb[160].mxu1 }
 0x305   : > { %v7165_v0 = vmul.f32 0.5, %v9877_v8  ;;  %v5445_v32 = vmul.f32 %v12267_v14, %v5183_v16  ;;  %9884 = vtanh.f32 %v6657_v48  ;;  %v6658_v12 = vmul.f32 0.5, %v6402_v43  ;;  %5966 = vadd.xlane.f32.xlu1 %v5965_v41  ;;  %v12725_v10 = vpop.xlane.xlu1 %5810  ;;  %v12727_v17 = vpop.f32.mrb[161].mxu1 }
 0x306   : > { %v9879_v45 = vpop.eup %9878  ;;  %7677 = vst.msk [vmem:[%s11576_s12 + $0x1c0] sm:$0xff] %vm7620_vm4, %v7420_v21  ;;  %v2917_v22 = vmax.f32 %v2623_v30, 0.0  ;;  %v5186_v13 = vmax.f32 %v4464_v3, 0.0  ;;  %v4459_v27 = vadd.f32 %v12249_v39, %v14522_v7  ;;  %v6403_v37 = vadd.f32 %v12588_v60, %v14523_v29 }
 0x307   : > { %v7421_v46 = vadd.f32 0.5, %v7165_v0  ;;  %v7166_v16 = vmul.f32 0.5, %v9879_v45  ;;  %9886 = vtanh.f32 %v6658_v12  ;;  %v5968_v48 = vsel %vm5565_vm3, %v5443_v40, 0.0  ;;  %v12736_v43 = vpop.xlane.xlu0 %5813 }
 0x308   : > { %v12739_v8 = vmul.f32 %v12267_v14, %v5186_v13  ;;  %v5185_v21 = vmax.f32 %v4459_v27, 0.0  ;;  %v6659_v30 = vmul.f32 0.5, %v6403_v37  ;;  %5969 = vadd.xlane.f32.xlu0 %v5968_v48  ;;  %v2638_v3 = vadd.f32 %v12706_v26, %v12432_v9  ;;  %9735 = vmatprep.mubr.msk.f32.mxu1 %vm2933_vm2, %v2917_v22  ;;  %v12744_v41 = vpop.f32.mrb[162].mxu1 }
 0x309   : > { %v9881_v0 = vpop.eup %9880  ;;  %7678 = vst.msk [vmem:[%s11576_s12 + $0x1c8] sm:$0xff] %vm7620_vm4, %v7421_v46  ;;  %v7422_v40 = vadd.f32 0.5, %v7166_v16  ;;  %v6404_v12 = vadd.f32 %v12588_v60, %v12434_v5  ;;  %v2633_v45 = vadd.f32 %v12706_v26, %v12437_v2  ;;  %v4474_v13 = vadd.f32 %v12249_v39, %v12445_v51  ;;  %9736 = vmatmul.mubr.msk.f32.gmra.mrb[246].mxu1 %vm2933_vm2, %v2918_v52  ;;  %v12755_v9 = vpop.f32.mrb[163].mxu1  ;;  %v14524_v16 = vld [vmem:[#allocation14_spill] sm:$0xff] }
 0x30a   : > { %v7167_v22 = vmul.f32 0.5, %v9881_v0  ;;  %v5447_v7 = vmul.f32 %v12267_v14, %v5185_v21  ;;  %9888 = vtanh.f32 %v6659_v30  ;;  %v2920_v27 = vmax.f32 %v2638_v3, 0.0  ;;  %v14525_v21 = vld [vmem:[#allocation15_spill] sm:$0xff] }
 0x30b   : > { %7679 = vst.msk [vmem:[%s11576_s12 + $0x1d0] sm:$0xff] %vm7620_vm4, %v7422_v40  ;;  %v6660_v29 = vmul.f32 0.5, %v6404_v12  ;;  %v2919_v37 = vmax.f32 %v2633_v45, 0.0  ;;  %v5188_v5 = vmax.f32 %v4474_v13, 0.0  ;;  %v5971_v2 = vsel %vm5565_vm3, %v12666_v58, 0.0  ;;  %v12762_v46 = vpop.xlane.xlu1 %5816 }
 0x30c   : > { %v9883_v51 = vpop.eup %9882  ;;  %v7423_v52 = vadd.f32 0.5, %v7167_v22  ;;  %5972 = vadd.xlane.f32.xlu1 %v5971_v2  ;;  %v4469_v48 = vadd.f32 %v12249_v39, %v14524_v16  ;;  %v6405_v30 = vadd.f32 %v12588_v60, %v14525_v21  ;;  %v5974_v3 = vsel %vm5565_vm3, %v5445_v32, 0.0  ;;  %v12769_v0 = vpop.f32.mrb[164].mxu1 }
 0x30d   : > { %v7168_v40 = vmul.f32 0.5, %v9883_v51  ;;  %9890 = vtanh.f32 %v6660_v29  ;;  %v12772_v58 = vmul.f32 %v12267_v14, %v5188_v5  ;;  %5975 = vadd.xlane.f32.xlu0 %v5974_v3  ;;  %v2648_v12 = vadd.f32 %v12706_v26, %v12461_v15  ;;  %9738 = vmatprep.mubr.msk.f32.mxu1 %vm2933_vm2, %v2919_v37  ;;  %v12777_v45 = vpop.xlane.xlu0 %5819  ;;  %v12779_v13 = vpop.f32.mrb[165].mxu1 }
 0x30e   : > { %7680 = vst.msk [vmem:[%s11576_s12 + $0x1d8] sm:$0xff] %vm7620_vm4, %v7423_v52  ;;  %v5187_v32 = vmax.f32 %v4469_v48, 0.0  ;;  %v6661_v22 = vmul.f32 0.5, %v6405_v30  ;;  %v6406_v29 = vadd.f32 %v12588_v60, %v12463_v59  ;;  %v2643_v5 = vadd.f32 %v12706_v26, %v12469_v57  ;;  %9739 = vmatmul.mubr.msk.f32.gmra.mrb[248].mxu1 %vm2933_vm2, %v2920_v27 }
 0x30f   : > { %v9885_v15 = vpop.eup %9884  ;;  %v7424_v2 = vadd.f32 0.5, %v7168_v40  ;;  %v2922_v37 = vmax.f32 %v2648_v12, 0.0  ;;  %v4484_v51 = vadd.f32 %v12249_v39, %v12476_v1  ;;  %v5977_v52 = vsel %vm5565_vm3, %v12701_v49, 0.0  ;;  %v12792_v16 = vpop.xlane.xlu1 %5822  ;;  %v12802_v39 = vld [vmem:[%s14487_s4] ss:$0 sm:$0xff] }
 0x310   : > { %v7169_v48 = vmul.f32 0.5, %v9885_v15  ;;  %v5449_v59 = vmul.f32 %v12267_v14, %v5187_v32  ;;  %9892 = vtanh.f32 %v6661_v22  ;;  %v6662_v21 = vmul.f32 0.5, %v6406_v29  ;;  %5978 = vadd.xlane.f32.xlu1 %v5977_v52  ;;  %v12795_v57 = vpop.f32.mrb[166].mxu1 }
 0x311   : > { %v9887_v27 = vpop.eup %9886  ;;  %7681 = vst.msk [vmem:[%s11576_s12 + $0x1e0] sm:$0xff] %vm7620_vm4, %v7424_v2  ;;  %v2921_v30 = vmax.f32 %v2643_v5, 0.0  ;;  %v5190_v3 = vmax.f32 %v4484_v51, 0.0  ;;  %v4479_v1 = vadd.f32 %v12802_v39, %v12484_v20  ;;  %v6407_v49 = vadd.f32 %v12588_v60, %v12486_v28  ;;  %v12808_v40 = vpop.f32.mrb[167].mxu1  ;;  %v14526_v51 = vld [vmem:[#allocation3_spill] sm:$0xff] }
 0x312   : > { %v7425_v12 = vadd.f32 0.5, %v7169_v48  ;;  %v7170_v32 = vmul.f32 0.5, %v9887_v27  ;;  %9894 = vtanh.f32 %v6662_v21  ;;  %v5980_v22 = vsel %vm5565_vm3, %v5447_v7, 0.0  ;;  %v12811_v29 = vpop.xlane.xlu0 %5825  ;;  %v14527_v48 = vld [vmem:[#allocation16_spill] sm:$0xff]  ;;  %v14528_v21 = vld [vmem:[#allocation17_spill] sm:$0xff] }
 0x313   : > { %v12814_v5 = vmul.f32 %v12267_v14, %v5190_v3  ;;  %v5189_v15 = vmax.f32 %v4479_v1, 0.0  ;;  %v6663_v2 = vmul.f32 0.5, %v6407_v49  ;;  %5981 = vadd.xlane.f32.xlu0 %v5980_v22  ;;  %v2658_v20 = vadd.f32 %v12706_v26, %v14526_v51  ;;  %9741 = vmatprep.mubr.msk.f32.mxu1 %vm2933_vm2, %v2921_v30  ;;  %v12833_v30 = vld [vmem:[%s14488_s5] ss:$0 sm:$0xff] }
 0x314   : > { %v9889_v28 = vpop.eup %9888  ;;  %7682 = vst.msk [vmem:[%s11576_s12 + $0x1e8] sm:$0xff] %vm7620_vm4, %v7425_v12  ;;  %v7426_v52 = vadd.f32 0.5, %v7170_v32  ;;  %v6408_v7 = vadd.f32 %v12588_v60, %v14527_v48  ;;  %v2653_v14 = vadd.f32 %v12706_v26, %v14528_v21  ;;  %v4494_v27 = vadd.f32 %v12802_v39, %v12506_v36  ;;  %9742 = vmatmul.mubr.msk.f32.gmra.mrb[250].mxu1 %vm2933_vm2, %v2922_v37  ;;  %v12828_v3 = vpop.f32.mrb[168].mxu1 }
 0x315   : > { %v7171_v1 = vmul.f32 0.5, %v9889_v28  ;;  %v5451_v49 = vmul.f32 %v12833_v30, %v5189_v15  ;;  %9896 = vtanh.f32 %v6663_v2  ;;  %v2924_v12 = vmax.f32 %v2658_v20, 0.0  ;;  %v12836_v32 = vpop.xlane.xlu1 %5828  ;;  %v12838_v22 = vpop.f32.mrb[169].mxu1 }
 0x316   : > { %14529 = vst [vmem:[#allocation8_spill] sm:$0xff] %v12838_v22  ;;  %7683 = vst.msk [vmem:[%s11576_s12 + $0x1f0] sm:$0xff] %vm7620_vm4, %v7426_v52  ;;  %v6664_v36 = vmul.f32 0.5, %v6408_v7  ;;  %v2923_v37 = vmax.f32 %v2653_v14, 0.0  ;;  %v5192_v51 = vmax.f32 %v4494_v27, 0.0  ;;  %v5983_v28 = vsel %vm5565_vm3, %v12739_v8, 0.0 }
 0x317   : > { %v9891_v48 = vpop.eup %9890  ;;  %v7427_v21 = vadd.f32 0.5, %v7171_v1  ;;  %5984 = vadd.xlane.f32.xlu1 %v5983_v28  ;;  %v4489_v15 = vadd.f32 %v12802_v39, %v12514_v53  ;;  %v6409_v2 = vadd.f32 %v12588_v60, %v12516_v23  ;;  %v5986_v20 = vsel %vm5565_vm3, %v5449_v59, 0.0  ;;  %v14530_v59 = vld [vmem:[#allocation18_spill] sm:$0xff]  ;;  %v14531_v1 = vld [vmem:[#allocation19_spill] sm:$0xff] }
 0x318   : > { %v7172_v22 = vmul.f32 0.5, %v9891_v48  ;;  %9898 = vtanh.f32 %v6664_v36  ;;  %v12850_v52 = vmul.f32 %v12833_v30, %v5192_v51  ;;  %5987 = vadd.xlane.f32.xlu0 %v5986_v20  ;;  %v2668_v8 = vadd.f32 %v12706_v26, %v12519_v31  ;;  %9744 = vmatprep.mubr.msk.f32.mxu1 %vm2933_vm2, %v2923_v37  ;;  %v12855_v7 = vpop.xlane.xlu0 %5831  ;;  %v12857_v14 = vpop.f32.mrb[170].mxu1  ;;  %v14533_v48 = vld [vmem:[#allocation4_spill] sm:$0xff] }
 0x319   : > { %7684 = vst.msk [vmem:[%s11576_s12 + $0x1f8] sm:$0xff] %vm7620_vm4, %v7427_v21  ;;  %v5191_v53 = vmax.f32 %v4489_v15, 0.0  ;;  %v6665_v23 = vmul.f32 0.5, %v6409_v2  ;;  %v6410_v27 = vadd.f32 %v12588_v60, %v14530_v59  ;;  %v2663_v36 = vadd.f32 %v12706_v26, %v14531_v1  ;;  %9745 = vmatmul.mubr.msk.f32.gmra.mrb[252].mxu1 %vm2933_vm2, %v2924_v12  ;;  %v12866_v31 = vpop.f32.mrb[171].mxu1 }
 0x31a   : > { %14532 = vst [vmem:[#allocation9_spill] sm:$0xff] %v12866_v31  ;;  %v9893_v37 = vpop.eup %9892  ;;  %v7428_v51 = vadd.f32 0.5, %v7172_v22  ;;  %v2926_v28 = vmax.f32 %v2668_v8, 0.0  ;;  %v4504_v20 = vadd.f32 %v12802_v39, %v14533_v48  ;;  %v5989_v21 = vsel %vm5565_vm3, %v12772_v58, 0.0  ;;  %v12872_v15 = vpop.xlane.xlu1 %5834 }
 0x31b   : > { %v7173_v2 = vmul.f32 0.5, %v9893_v37  ;;  %v5453_v59 = vmul.f32 %v12833_v30, %v5191_v53  ;;  %9900 = vtanh.f32 %v6665_v23  ;;  %v6666_v26 = vmul.f32 0.5, %v6410_v27  ;;  %5990 = vadd.xlane.f32.xlu1 %v5989_v21 }
 0x31c   : > { %v9895_v12 = vpop.eup %9894  ;;  %7685 = vst.msk [vmem:[%s11576_s12 + $0x200] sm:$0xff] %vm7620_vm4, %v7428_v51  ;;  %v2925_v1 = vmax.f32 %v2663_v36, 0.0  ;;  %v5194_v22 = vmax.f32 %v4504_v20, 0.0  ;;  %v4499_v8 = vadd.f32 %v12802_v39, %v12543_v42  ;;  %v6411_v58 = vadd.f32 %v12588_v60, %v12545_v56  ;;  %v12881_v48 = vpop.f32.mrb[172].mxu1 }
 0x31d   : > { %v7429_v37 = vadd.f32 0.5, %v7173_v2  ;;  %v7174_v31 = vmul.f32 0.5, %v9895_v12  ;;  %9902 = vtanh.f32 %v6666_v26  ;;  %v5992_v53 = vsel %vm5565_vm3, %v5451_v49, 0.0  ;;  %v12884_v23 = vpop.xlane.xlu0 %5837  ;;  %v12886_v27 = vpop.f32.mrb[173].mxu1 }
 0x31e   : > { %v5456_v36 = vmul.f32 %v12833_v30, %v5194_v22  ;;  %v5193_v51 = vmax.f32 %v4499_v8, 0.0  ;;  %v6667_v20 = vmul.f32 0.5, %v6411_v58  ;;  %5993 = vadd.xlane.f32.xlu0 %v5992_v53  ;;  %v6412_v42 = vadd.f32 %v12588_v60, %v12551_v25  ;;  %9747 = vmatprep.mubr.msk.f32.mxu1 %vm2933_vm2, %v2925_v1 }
 0x31f   : > { %v9897_v56 = vpop.eup %9896  ;;  %7686 = vst.msk [vmem:[%s11576_s12 + $0x208] sm:$0xff] %vm7620_vm4, %v7429_v37  ;;  %v7430_v21 = vadd.f32 0.5, %v7174_v31  ;;  %v4514_v49 = vadd.f32 %v12802_v39, %v12564_v18  ;;  %v5995_v2 = vsel %vm5565_vm3, %v12814_v5, 0.0  ;;  %v4509_v26 = vadd.f32 %v12802_v39, %v12573_v55  ;;  %9748 = vmatmul.mubr.msk.f32.gmra.mrb[254].mxu1 %vm2933_vm2, %v2926_v28 }
 0x320   : > { %v7175_v12 = vmul.f32 0.5, %v9897_v56  ;;  %v5455_v25 = vmul.f32 %v12833_v30, %v5193_v51  ;;  %9904 = vtanh.f32 %v6667_v20  ;;  %v6668_v1 = vmul.f32 0.5, %v6412_v42  ;;  %5996 = vadd.xlane.f32.xlu1 %v5995_v2  ;;  %v12902_v22 = vpop.xlane.xlu1 %5840  ;;  %v12904_v31 = vpop.f32.mrb[174].mxu1 }
 0x321   : > { %7687 = vst.msk [vmem:[%s11576_s12 + $0x210] sm:$0xff] %vm7620_vm4, %v7430_v21  ;;  %v5196_v18 = vmax.f32 %v4514_v49, 0.0  ;;  %v5195_v5 = vmax.f32 %v4509_v26, 0.0  ;;  %v6413_v55 = vadd.f32 %v12588_v60, %v12575_v24  ;;  %v5998_v28 = vsel %vm5565_vm3, %v5453_v59, 0.0  ;;  %v12911_v8 = vpop.f32.mrb[175].mxu1 }
 0x322   : > { %v9899_v58 = vpop.eup %9898  ;;  %v7431_v37 = vadd.f32 0.5, %v7175_v12  ;;  %9906 = vtanh.f32 %v6668_v1  ;;  %5999 = vadd.xlane.f32.xlu0 %v5998_v28  ;;  %v6414_v53 = vadd.f32 %v12588_v60, %v12582_v4  ;;  %v4524_v51 = vadd.f32 %v12802_v39, %v12592_v50  ;;  %v12919_v21 = vpop.xlane.xlu0 %5843 }
 0x323   : > { %v7176_v20 = vmul.f32 0.5, %v9899_v58  ;;  %v5458_v42 = vmul.f32 %v12833_v30, %v5196_v18  ;;  %v5457_v56 = vmul.f32 %v12833_v30, %v5195_v5  ;;  %v6669_v24 = vmul.f32 0.5, %v6413_v55 }
 0x324   : > { %7688 = vst.msk [vmem:[%s11576_s12 + $0x218] sm:$0xff] %vm7620_vm4, %v7431_v37  ;;  %v6670_v59 = vmul.f32 0.5, %v6414_v53  ;;  %v5198_v49 = vmax.f32 %v4524_v51, 0.0  ;;  %v6001_v2 = vsel %vm5565_vm3, %v12850_v52, 0.0  ;;  %v4519_v4 = vadd.f32 %v12802_v39, %v12595_v35  ;;  %v12927_v50 = vpop.f32.mrb[176].mxu1 }
 0x325   : > { %v9901_v26 = vpop.eup %9900  ;;  %v7432_v12 = vadd.f32 0.5, %v7176_v20  ;;  %9908 = vtanh.f32 %v6669_v24  ;;  %6002 = vadd.xlane.f32.xlu1 %v6001_v2  ;;  %v6415_v1 = vadd.f32 %v12588_v60, %v12612_v19  ;;  %v6004_v18 = vsel %vm5565_vm3, %v5455_v25, 0.0  ;;  %v12932_v5 = vpop.f32.mrb[177].mxu1 }
 0x326   : > { %v7177_v55 = vmul.f32 0.5, %v9901_v26  ;;  %9910 = vtanh.f32 %v6670_v59  ;;  %v12935_v52 = vmul.f32 %v12833_v30, %v5198_v49  ;;  %v5197_v35 = vmax.f32 %v4519_v4, 0.0  ;;  %6005 = vadd.xlane.f32.xlu0 %v6004_v18  ;;  %v12937_v28 = vpop.xlane.xlu1 %5846 }
 0x327   : > { %v9903_v58 = vpop.eup %9902  ;;  %7689 = vst.msk [vmem:[%s11576_s12 + $0x220] sm:$0xff] %vm7620_vm4, %v7432_v12  ;;  %v6671_v37 = vmul.f32 0.5, %v6415_v1  ;;  %v6416_v19 = vadd.f32 %v12588_v60, %v12621_v44  ;;  %v4534_v25 = vadd.f32 %v12802_v39, %v12615_v61  ;;  %v6007_v53 = vsel %vm5565_vm3, %v5456_v36, 0.0  ;;  %v14534_v44 = vld [vmem:[#allocation6_spill] sm:$0xff] }
 0x328   : > { %v7433_v51 = vadd.f32 0.5, %v7177_v55  ;;  %v7178_v20 = vmul.f32 0.5, %v9903_v58  ;;  %v5459_v24 = vmul.f32 %v12833_v30, %v5197_v35  ;;  %v4529_v59 = vadd.f32 %v12802_v39, %v12623_v62  ;;  %v12949_v49 = vpop.f32.mrb[178].mxu1  ;;  %v12953_v61 = vpop.xlane.xlu0 %5849 }
 0x329   : > { %9912 = vtanh.f32 %v6671_v37  ;;  %v6672_v2 = vmul.f32 0.5, %v6416_v19  ;;  %v5200_v4 = vmax.f32 %v4534_v25, 0.0  ;;  %6008 = vadd.xlane.f32.xlu1 %v6007_v53  ;;  %v6417_v26 = vadd.f32 %v12588_v60, %v14534_v44  ;;  %v12955_v36 = vpop.f32.mrb[179].mxu1  ;;  %v14536_v44 = vld [vmem:[#allocation7_spill] sm:$0xff] }
 0x32a   : > { %v9905_v12 = vpop.eup %9904  ;;  %7690 = vst.msk [vmem:[%s11576_s12 + $0x228] sm:$0xff] %vm7620_vm4, %v7433_v51  ;;  %v7434_v1 = vadd.f32 0.5, %v7178_v20  ;;  %v5199_v18 = vmax.f32 %v4529_v59, 0.0  ;;  %v6010_v62 = vsel %vm5565_vm3, %v5457_v56, 0.0  ;;  %v6418_v55 = vadd.f32 %v12588_v60, %v12660_v47  ;;  %v14535_v51 = vld [vmem:[#allocation5_spill] sm:$0xff] }
 0x32b   : > { %v7179_v35 = vmul.f32 0.5, %v9905_v12  ;;  %9914 = vtanh.f32 %v6672_v2  ;;  %v12963_v58 = vmul.f32 %v12833_v30, %v5200_v4  ;;  %v6673_v37 = vmul.f32 0.5, %v6417_v26  ;;  %6011 = vadd.xlane.f32.xlu0 %v6010_v62 }
 0x32c   : > { %v9907_v19 = vpop.eup %9906  ;;  %7691 = vst.msk [vmem:[%s11576_s12 + $0x230] sm:$0xff] %vm7620_vm4, %v7434_v1  ;;  %v5461_v25 = vmul.f32 %v12833_v30, %v5199_v18  ;;  %v6674_v53 = vmul.f32 0.5, %v6418_v55  ;;  %v4544_v56 = vadd.f32 %v12802_v39, %v14535_v51  ;;  %v6013_v20 = vsel %vm5565_vm3, %v5458_v42, 0.0  ;;  %v12971_v47 = vpop.xlane.xlu1 %5852 }
 0x32d   : > { %v12973_v59 = vpop.f32.mrb[180].mxu1  ;;  %v7435_v2 = vadd.f32 0.5, %v7179_v35  ;;  %v7180_v4 = vmul.f32 0.5, %v9907_v19  ;;  %9916 = vtanh.f32 %v6673_v37  ;;  %6014 = vadd.xlane.f32.xlu1 %v6013_v20  ;;  %v4539_v26 = vadd.f32 %v12802_v39, %v14536_v44 }
 0x32e   : > { %v12977_v12 = vpop.f32.mrb[181].mxu1  ;;  %9918 = vtanh.f32 %v6674_v53  ;;  %v5202_v1 = vmax.f32 %v4544_v56, 0.0  ;;  %v6419_v18 = vadd.f32 %v12588_v60, %v12683_v6  ;;  %v6016_v42 = vsel %vm5565_vm3, %v5459_v24, 0.0  ;;  %v12988_v53 = vpop.xlane.xlu0 %5855 }
 0x32f   : > { %v9909_v62 = vpop.eup %9908  ;;  %7692 = vst.msk [vmem:[%s11576_s12 + $0x238] sm:$0xff] %vm7620_vm4, %v7435_v2  ;;  %v7436_v55 = vadd.f32 0.5, %v7180_v4  ;;  %v5201_v35 = vmax.f32 %v4539_v26, 0.0  ;;  %6017 = vadd.xlane.f32.xlu0 %v6016_v42  ;;  %v6420_v37 = vadd.f32 %v12588_v60, %v12696_v33  ;;  %v4554_v19 = vadd.f32 %v12802_v39, %v12663_v11 }
 0x330   : > { %v9911_v51 = vpop.eup %9910  ;;  %v7181_v56 = vmul.f32 0.5, %v9909_v62  ;;  %v12991_v6 = vmul.f32 %v12833_v30, %v5202_v1  ;;  %v6675_v24 = vmul.f32 0.5, %v6419_v18  ;;  %v6019_v20 = vsel %vm5565_vm3, %v12935_v52, 0.0  ;;  %v12995_v2 = vpop.f32.mrb[182].mxu1 }
 0x331   : > { %7693 = vst.msk [vmem:[%s11576_s12 + $0x240] sm:$0xff] %vm7620_vm4, %v7436_v55  ;;  %v7182_v4 = vmul.f32 0.5, %v9911_v51  ;;  %v5463_v33 = vmul.f32 %v12833_v30, %v5201_v35  ;;  %v6676_v11 = vmul.f32 0.5, %v6420_v37  ;;  %v5204_v44 = vmax.f32 %v4554_v19, 0.0  ;;  %6020 = vadd.xlane.f32.xlu1 %v6019_v20  ;;  %v13000_v26 = vpop.f32.mrb[183].mxu1 }
 0x332   : > { %14537 = vst [vmem:[#allocation10_spill] sm:$0xff] %v13000_v26  ;;  %v7437_v42 = vadd.f32 0.5, %v7181_v56  ;;  %9920 = vtanh.f32 %v6675_v24  ;;  %v4549_v1 = vadd.f32 %v12802_v39, %v12671_v34  ;;  %v6421_v52 = vadd.f32 %v12588_v60, %v12725_v10  ;;  %v13006_v18 = vpop.xlane.xlu1 %5858 }
 0x333   : > { %v9913_v62 = vpop.eup %9912  ;;  %v7438_v55 = vadd.f32 0.5, %v7182_v4  ;;  %9922 = vtanh.f32 %v6676_v11  ;;  %v13009_v35 = vmul.f32 %v12833_v30, %v5204_v44  ;;  %v6022_v37 = vsel %vm5565_vm3, %v5461_v25, 0.0  ;;  %v13012_v19 = vpop.xlane.xlu0 %5861 }
 0x334   : > { %7694 = vst.msk [vmem:[%s11576_s12 + $0x248] sm:$0xff] %vm7620_vm4, %v7437_v42  ;;  %v7183_v51 = vmul.f32 0.5, %v9913_v62  ;;  %v5203_v34 = vmax.f32 %v4549_v1, 0.0  ;;  %v6677_v56 = vmul.f32 0.5, %v6421_v52  ;;  %6023 = vadd.xlane.f32.xlu0 %v6022_v37  ;;  %v6422_v10 = vadd.f32 %v12588_v60, %v12736_v43  ;;  %v13018_v24 = vpop.f32.mrb[184].mxu1 }
 0x335   : > { %14538 = vst [vmem:[#allocation11_spill] sm:$0xff] %v13018_v24  ;;  %v9915_v20 = vpop.eup %9914  ;;  %7695 = vst.msk [vmem:[%s11576_s12 + $0x250] sm:$0xff] %vm7620_vm4, %v7438_v55  ;;  %v4564_v4 = vadd.f32 %v12802_v39, %v12689_v54  ;;  %v6025_v25 = vsel %vm5565_vm3, %v12963_v58, 0.0  ;;  %v4559_v11 = vadd.f32 %v12802_v39, %v12698_v63  ;;  %v6423_v44 = vadd.f32 %v12588_v60, %v12762_v46  ;;  %v13030_v42 = vpop.f32.mrb[185].mxu1 }
 0x336   : > { %v7439_v43 = vadd.f32 0.5, %v7183_v51  ;;  %v7184_v1 = vmul.f32 0.5, %v9915_v20  ;;  %v5465_v52 = vmul.f32 %v12833_v30, %v5203_v34  ;;  %9924 = vtanh.f32 %v6677_v56  ;;  %6026 = vadd.xlane.f32.xlu1 %v6025_v25  ;;  %v13033_v62 = vpop.xlane.xlu1 %5864 }
 0x337   : > { %v9917_v54 = vpop.eup %9916  ;;  %v6678_v55 = vmul.f32 0.5, %v6422_v10  ;;  %v5206_v58 = vmax.f32 %v4564_v4, 0.0  ;;  %v5205_v37 = vmax.f32 %v4559_v11, 0.0  ;;  %v6679_v24 = vmul.f32 0.5, %v6423_v44 }
 0x338   : > { %v9919_v63 = vpop.eup %9918  ;;  %7696 = vst.msk [vmem:[%s11576_s12 + $0x258] sm:$0xff] %vm7620_vm4, %v7439_v43  ;;  %v7440_v46 = vadd.f32 0.5, %v7184_v1  ;;  %v7185_v26 = vmul.f32 0.5, %v9917_v54  ;;  %v6028_v51 = vsel %vm5565_vm3, %v5463_v33, 0.0  ;;  %v6424_v34 = vadd.f32 %v12588_v60, %v12777_v45  ;;  %v13040_v56 = vpop.xlane.xlu0 %5867 }
 0x339   : > { %v13042_v20 = vpop.f32.mrb[186].mxu1  ;;  %v7186_v25 = vmul.f32 0.5, %v9919_v63  ;;  %9926 = vtanh.f32 %v6678_v55  ;;  %v5468_v10 = vmul.f32 %v12833_v30, %v5206_v58  ;;  %v5467_v4 = vmul.f32 %v12833_v30, %v5205_v37  ;;  %6029 = vadd.xlane.f32.xlu0 %v6028_v51 }
 0x33a   : > { %v13046_v11 = vpop.f32.mrb[187].mxu1  ;;  %7697 = vst.msk [vmem:[%s11576_s12 + $0x260] sm:$0xff] %vm7620_vm4, %v7440_v46  ;;  %v7441_v33 = vadd.f32 0.5, %v7185_v26  ;;  %9928 = vtanh.f32 %v6679_v24  ;;  %v6680_v44 = vmul.f32 0.5, %v6424_v34  ;;  %v4574_v45 = vadd.f32 %v12802_v39, %v12722_v38 }
 0x33b   : > { %v7442_v43 = vadd.f32 0.5, %v7186_v25  ;;  %v6031_v1 = vsel %vm5565_vm3, %v12991_v6, 0.0  ;;  %v4569_v54 = vadd.f32 %v12802_v39, %v12727_v17  ;;  %v6425_v55 = vadd.f32 %v12588_v60, %v12792_v16  ;;  %v13058_v58 = vpop.xlane.xlu1 %5870 }
 0x33c   : > { %v9921_v37 = vpop.eup %9920  ;;  %7698 = vst.msk [vmem:[%s11576_s12 + $0x268] sm:$0xff] %vm7620_vm4, %v7441_v33  ;;  %9930 = vtanh.f32 %v6680_v44  ;;  %v5208_v26 = vmax.f32 %v4574_v45, 0.0  ;;  %6032 = vadd.xlane.f32.xlu1 %v6031_v1  ;;  %v6034_v38 = vsel %vm5565_vm3, %v5465_v52, 0.0  ;;  %v6426_v24 = vadd.f32 %v12588_v60, %v12811_v29  ;;  %v13065_v6 = vpop.f32.mrb[188].mxu1 }
 0x33d   : > { %v9923_v63 = vpop.eup %9922  ;;  %7699 = vst.msk [vmem:[%s11576_s12 + $0x270] sm:$0xff] %vm7620_vm4, %v7442_v43  ;;  %v7187_v17 = vmul.f32 0.5, %v9921_v37  ;;  %v5207_v16 = vmax.f32 %v4569_v54, 0.0  ;;  %v6681_v46 = vmul.f32 0.5, %v6425_v55  ;;  %6035 = vadd.xlane.f32.xlu0 %v6034_v38  ;;  %v4584_v51 = vadd.f32 %v12802_v39, %v12744_v41  ;;  %v13071_v34 = vpop.xlane.xlu0 %5873 }
 0x33e   : > { %v13073_v25 = vpop.f32.mrb[189].mxu1  ;;  %v7188_v52 = vmul.f32 0.5, %v9923_v63  ;;  %v5470_v29 = vmul.f32 %v12833_v30, %v5208_v26  ;;  %v6682_v33 = vmul.f32 0.5, %v6426_v24  ;;  %v6037_v44 = vsel %vm5565_vm3, %v13009_v35, 0.0 }
 0x33f   : > { %v7443_v45 = vadd.f32 0.5, %v7187_v17  ;;  %v5469_v43 = vmul.f32 %v12833_v30, %v5207_v16  ;;  %9932 = vtanh.f32 %v6681_v46  ;;  %v5210_v1 = vmax.f32 %v4584_v51, 0.0 }
 0x340   : > { %v9925_v54 = vpop.eup %9924  ;;  %v7444_v41 = vadd.f32 0.5, %v7188_v52  ;;  %9934 = vtanh.f32 %v6682_v33  ;;  %6038 = vadd.xlane.f32.xlu1 %v6037_v44  ;;  %v4579_v55 = vadd.f32 %v12802_v39, %v12755_v9  ;;  %v6427_v37 = vadd.f32 %v12588_v60, %v12836_v32  ;;  %v13083_v26 = vpop.f32.mrb[190].mxu1 }
 0x341   : > { %7700 = vst.msk [vmem:[%s11576_s12 + $0x278] sm:$0xff] %vm7620_vm4, %v7443_v45  ;;  %v7189_v35 = vmul.f32 0.5, %v9925_v54  ;;  %v13088_v38 = vmul.f32 %v12833_v30, %v5210_v1  ;;  %v6040_v24 = vsel %vm5565_vm3, %v5467_v4, 0.0  ;;  %v6428_v63 = vadd.f32 %v12588_v60, %v12855_v7  ;;  %v13093_v17 = vpop.xlane.xlu1 %5876  ;;  %v13095_v16 = vpop.f32.mrb[191].mxu1  ;;  %v13104_v7 = vld [vmem:[#allocation2] ss:$0 sm:$0xff] }
 0x342   : > { %7701 = vst.msk [vmem:[%s11576_s12 + $0x280] sm:$0xff] %vm7620_vm4, %v7444_v41  ;;  %v5209_v9 = vmax.f32 %v4579_v55, 0.0  ;;  %v6683_v32 = vmul.f32 0.5, %v6427_v37  ;;  %6041 = vadd.xlane.f32.xlu0 %v6040_v24  ;;  %v4594_v46 = vadd.f32 %v12802_v39, %v12769_v0  ;;  %v6043_v51 = vsel %vm5565_vm3, %v5468_v10, 0.0 }
 0x343   : > { %v9927_v52 = vpop.eup %9926  ;;  %v7445_v4 = vadd.f32 0.5, %v7189_v35  ;;  %v6684_v33 = vmul.f32 0.5, %v6428_v63  ;;  %v4589_v60 = vadd.f32 %v12802_v39, %v12779_v13  ;;  %v6429_v44 = vadd.f32 %v13104_v7, %v12872_v15  ;;  %v13108_v45 = vpop.xlane.xlu0 %5879 }
 0x344   : > { %v9929_v1 = vpop.eup %9928  ;;  %v7190_v54 = vmul.f32 0.5, %v9927_v52  ;;  %v5471_v41 = vmul.f32 %v12833_v30, %v5209_v9  ;;  %9936 = vtanh.f32 %v6683_v32  ;;  %v5212_v0 = vmax.f32 %v4594_v46, 0.0  ;;  %6044 = vadd.xlane.f32.xlu1 %v6043_v51 }
 0x345   : > { %7702 = vst.msk [vmem:[%s11576_s12 + $0x288] sm:$0xff] %vm7620_vm4, %v7445_v4  ;;  %v7191_v10 = vmul.f32 0.5, %v9929_v1  ;;  %9938 = vtanh.f32 %v6684_v33  ;;  %v5211_v13 = vmax.f32 %v4589_v60, 0.0  ;;  %v6685_v55 = vmul.f32 0.5, %v6429_v44  ;;  %v13113_v37 = vpop.xlane.xlu1 %5882  ;;  %v13115_v35 = vpop.f32.mrb[192].mxu1 }
 0x346   : > { %v9931_v15 = vpop.eup %9930  ;;  %v7446_v24 = vadd.f32 0.5, %v7190_v54  ;;  %v5474_v63 = vmul.f32 %v12833_v30, %v5212_v0  ;;  %v6046_v9 = vsel %vm5565_vm3, %v5469_v43, 0.0  ;;  %v6430_v32 = vadd.f32 %v13104_v7, %v12884_v23  ;;  %v13121_v46 = vpop.f32.mrb[193].mxu1 }
 0x347   : > { %v7447_v51 = vadd.f32 0.5, %v7191_v10  ;;  %v7192_v52 = vmul.f32 0.5, %v9931_v15  ;;  %v5473_v4 = vmul.f32 %v12833_v30, %v5211_v13  ;;  %9940 = vtanh.f32 %v6685_v55  ;;  %6047 = vadd.xlane.f32.xlu0 %v6046_v9 }
 0x348   : > { %7703 = vst.msk [vmem:[%s11576_s12 + $0x290] sm:$0xff] %vm7620_vm4, %v7446_v24  ;;  %v6686_v33 = vmul.f32 0.5, %v6430_v32  ;;  %v4604_v60 = vadd.f32 %v12802_v39, %v12795_v57  ;;  %v6049_v43 = vsel %vm5565_vm3, %v5470_v29, 0.0  ;;  %v4599_v23 = vadd.f32 %v12802_v39, %v12808_v40  ;;  %v13131_v44 = vpop.xlane.xlu0 %5885 }
 0x349   : > { %v9933_v1 = vpop.eup %9932  ;;  %7704 = vst.msk [vmem:[%s11576_s12 + $0x298] sm:$0xff] %vm7620_vm4, %v7447_v51  ;;  %v7448_v54 = vadd.f32 0.5, %v7192_v52  ;;  %6050 = vadd.xlane.f32.xlu1 %v6049_v43  ;;  %v6431_v0 = vadd.f32 %v13104_v7, %v12902_v22  ;;  %v6052_v10 = vsel %vm5565_vm3, %v5471_v41, 0.0  ;;  %v6432_v57 = vadd.f32 %v13104_v7, %v12919_v21 }
 0x34a   : > { %v9935_v13 = vpop.eup %9934  ;;  %v7193_v29 = vmul.f32 0.5, %v9933_v1  ;;  %9942 = vtanh.f32 %v6686_v33  ;;  %v5214_v55 = vmax.f32 %v4604_v60, 0.0  ;;  %v5213_v40 = vmax.f32 %v4599_v23, 0.0 }
 0x34b   : > { %7705 = vst.msk [vmem:[%s11576_s12 + $0x2a0] sm:$0xff] %vm7620_vm4, %v7448_v54  ;;  %v7194_v15 = vmul.f32 0.5, %v9935_v13  ;;  %v6687_v24 = vmul.f32 0.5, %v6431_v0  ;;  %6053 = vadd.xlane.f32.xlu0 %v6052_v10  ;;  %v6688_v9 = vmul.f32 0.5, %v6432_v57  ;;  %v4614_v22 = vadd.f32 %v12802_v39, %v12828_v3  ;;  %v13144_v32 = vpop.xlane.xlu1 %5888  ;;  %v13146_v41 = vpop.f32.mrb[194].mxu1  ;;  %v14539_v3 = vld [vmem:[#allocation8_spill] sm:$0xff] }
 0x34c   : > { %v7449_v21 = vadd.f32 0.5, %v7193_v29  ;;  %v5476_v51 = vmul.f32 %v12833_v30, %v5214_v55  ;;  %v5475_v52 = vmul.f32 %v12833_v30, %v5213_v40  ;;  %v6055_v33 = vsel %vm5565_vm3, %v13088_v38, 0.0  ;;  %v13152_v60 = vpop.f32.mrb[195].mxu1 }
 0x34d   : > { %v7450_v43 = vadd.f32 0.5, %v7194_v15  ;;  %9944 = vtanh.f32 %v6687_v24  ;;  %v5216_v23 = vmax.f32 %v4614_v22, 0.0  ;;  %6056 = vadd.xlane.f32.xlu1 %v6055_v33  ;;  %v4609_v1 = vadd.f32 %v12802_v39, %v14539_v3 }
 0x34e   : > { %v9937_v54 = vpop.eup %9936  ;;  %7706 = vst.msk [vmem:[%s11576_s12 + $0x2a8] sm:$0xff] %vm7620_vm4, %v7449_v21  ;;  %9946 = vtanh.f32 %v6688_v9  ;;  %v6433_v0 = vadd.f32 %v13104_v7, %v12937_v28  ;;  %v6058_v10 = vsel %vm5565_vm3, %v5473_v4, 0.0  ;;  %v6434_v38 = vadd.f32 %v13104_v7, %v12953_v61  ;;  %v13163_v57 = vpop.xlane.xlu0 %5891 }
 0x34f   : > { %v9939_v13 = vpop.eup %9938  ;;  %7707 = vst.msk [vmem:[%s11576_s12 + $0x2b0] sm:$0xff] %vm7620_vm4, %v7450_v43  ;;  %v7195_v29 = vmul.f32 0.5, %v9937_v54  ;;  %v13168_v55 = vmul.f32 %v12833_v30, %v5216_v23  ;;  %v5215_v40 = vmax.f32 %v4609_v1, 0.0  ;;  %6059 = vadd.xlane.f32.xlu0 %v6058_v10  ;;  %v4624_v15 = vadd.f32 %v12802_v39, %v12857_v14  ;;  %v14540_v43 = vld [vmem:[#allocation9_spill] sm:$0xff] }
 0x350   : > { %v7196_v28 = vmul.f32 0.5, %v9939_v13  ;;  %v6689_v24 = vmul.f32 0.5, %v6433_v0  ;;  %v6690_v4 = vmul.f32 0.5, %v6434_v38  ;;  %v6061_v61 = vsel %vm5565_vm3, %v5474_v63, 0.0 }
 0x351   : > { %v9941_v9 = vpop.eup %9940  ;;  %v7451_v22 = vadd.f32 0.5, %v7195_v29  ;;  %v5477_v21 = vmul.f32 %v12833_v30, %v5215_v40  ;;  %v5218_v33 = vmax.f32 %v4624_v15, 0.0  ;;  %6062 = vadd.xlane.f32.xlu1 %v6061_v61  ;;  %v4619_v23 = vadd.f32 %v12802_v39, %v14540_v43  ;;  %v13176_v3 = vpop.xlane.xlu1 %5894 }
 0x352   : > { %v13178_v1 = vpop.f32.mrb[196].mxu1  ;;  %v7452_v14 = vadd.f32 0.5, %v7196_v28  ;;  %v7197_v54 = vmul.f32 0.5, %v9941_v9  ;;  %9948 = vtanh.f32 %v6689_v24  ;;  %v6435_v63 = vadd.f32 %v13104_v7, %v12971_v47 }
 0x353   : > { %v13182_v0 = vpop.f32.mrb[197].mxu1  ;;  %7708 = vst.msk [vmem:[%s11576_s12 + $0x2b8] sm:$0xff] %vm7620_vm4, %v7451_v22  ;;  %9950 = vtanh.f32 %v6690_v4  ;;  %v13187_v10 = vmul.f32 %v12833_v30, %v5218_v33  ;;  %v5217_v38 = vmax.f32 %v4619_v23, 0.0  ;;  %v6064_v13 = vsel %vm5565_vm3, %v5475_v52, 0.0  ;;  %v13190_v29 = vpop.xlane.xlu0 %5897 }
 0x354   : > { %v9943_v40 = vpop.eup %9942  ;;  %7709 = vst.msk [vmem:[%s11576_s12 + $0x2c0] sm:$0xff] %vm7620_vm4, %v7452_v14  ;;  %v7453_v15 = vadd.f32 0.5, %v7197_v54  ;;  %v6691_v28 = vmul.f32 0.5, %v6435_v63  ;;  %6065 = vadd.xlane.f32.xlu0 %v6064_v13  ;;  %v6436_v47 = vadd.f32 %v13104_v7, %v12988_v53  ;;  %v4634_v24 = vadd.f32 %v12802_v39, %v12881_v48 }
 0x355   : > { %v7198_v4 = vmul.f32 0.5, %v9943_v40  ;;  %v5479_v61 = vmul.f32 %v12833_v30, %v5217_v38  ;;  %v6067_v9 = vsel %vm5565_vm3, %v5476_v51, 0.0  ;;  %v4629_v52 = vadd.f32 %v12802_v39, %v12886_v27 }
 0x356   : > { %7710 = vst.msk [vmem:[%s11576_s12 + $0x2c8] sm:$0xff] %vm7620_vm4, %v7453_v15  ;;  %9952 = vtanh.f32 %v6691_v28  ;;  %v6692_v22 = vmul.f32 0.5, %v6436_v47  ;;  %v5220_v33 = vmax.f32 %v4634_v24, 0.0  ;;  %6068 = vadd.xlane.f32.xlu1 %v6067_v9  ;;  %v6437_v53 = vadd.f32 %v13104_v7, %v13006_v18  ;;  %v13206_v43 = vpop.xlane.xlu1 %5900  ;;  %v13208_v48 = vpop.f32.mrb[198].mxu1 }
 0x357   : > { %v9945_v23 = vpop.eup %9944  ;;  %v7454_v14 = vadd.f32 0.5, %v7198_v4  ;;  %v5219_v51 = vmax.f32 %v4629_v52, 0.0  ;;  %v6070_v54 = vsel %vm5565_vm3, %v5477_v21, 0.0  ;;  %v6438_v27 = vadd.f32 %v13104_v7, %v13012_v19  ;;  %v13213_v63 = vpop.f32.mrb[199].mxu1 }
 0x358   : > { %v9947_v38 = vpop.eup %9946  ;;  %v7199_v13 = vmul.f32 0.5, %v9945_v23  ;;  %9954 = vtanh.f32 %v6692_v22  ;;  %v5482_v18 = vmul.f32 %v12833_v30, %v5220_v33  ;;  %v6693_v40 = vmul.f32 0.5, %v6437_v53  ;;  %6071 = vadd.xlane.f32.xlu0 %v6070_v54  ;;  %v13216_v15 = vpop.xlane.xlu0 %5903 }
 0x359   : > { %7711 = vst.msk [vmem:[%s11576_s12 + $0x2d0] sm:$0xff] %vm7620_vm4, %v7454_v14  ;;  %v7200_v28 = vmul.f32 0.5, %v9947_v38  ;;  %v5481_v21 = vmul.f32 %v12833_v30, %v5219_v51  ;;  %v6694_v47 = vmul.f32 0.5, %v6438_v27  ;;  %v4644_v19 = vadd.f32 %v12802_v39, %v12904_v31 }
 0x35a   : > { %v7455_v24 = vadd.f32 0.5, %v7199_v13  ;;  %9956 = vtanh.f32 %v6693_v40  ;;  %v6073_v4 = vsel %vm5565_vm3, %v13168_v55, 0.0  ;;  %v4639_v9 = vadd.f32 %v12802_v39, %v12911_v8 }
 0x35b   : > { %v7456_v52 = vadd.f32 0.5, %v7200_v28  ;;  %9958 = vtanh.f32 %v6694_v47  ;;  %v5222_v22 = vmax.f32 %v4644_v19, 0.0  ;;  %6074 = vadd.xlane.f32.xlu1 %v6073_v4  ;;  %v6439_v33 = vadd.f32 %v13104_v7, %v13033_v62 }
 0x35c   : > { %v9949_v53 = vpop.eup %9948  ;;  %7712 = vst.msk [vmem:[%s11576_s12 + $0x2d8] sm:$0xff] %vm7620_vm4, %v7455_v24  ;;  %v5221_v31 = vmax.f32 %v4639_v9, 0.0  ;;  %v6076_v23 = vsel %vm5565_vm3, %v5479_v61, 0.0  ;;  %v6440_v55 = vadd.f32 %v13104_v7, %v13040_v56  ;;  %v4654_v14 = vadd.f32 %v12802_v39, %v12927_v50  ;;  %v13236_v8 = vpop.xlane.xlu1 %5906 }
 0x35d   : > { %v13238_v51 = vpop.f32.mrb[200].mxu1  ;;  %v9951_v54 = vpop.eup %9950  ;;  %7713 = vst.msk [vmem:[%s11576_s12 + $0x2e0] sm:$0xff] %vm7620_vm4, %v7456_v52  ;;  %v7201_v62 = vmul.f32 0.5, %v9949_v53  ;;  %v13243_v27 = vmul.f32 %v12833_v30, %v5222_v22  ;;  %v6695_v38 = vmul.f32 0.5, %v6439_v33  ;;  %6077 = vadd.xlane.f32.xlu0 %v6076_v23  ;;  %v6079_v61 = vsel %vm5565_vm3, %v13187_v10, 0.0 }
 0x35e   : > { %v13247_v56 = vpop.f32.mrb[201].mxu1  ;;  %v7202_v50 = vmul.f32 0.5, %v9951_v54  ;;  %v5483_v13 = vmul.f32 %v12833_v30, %v5221_v31  ;;  %v6696_v40 = vmul.f32 0.5, %v6440_v55  ;;  %v5224_v28 = vmax.f32 %v4654_v14, 0.0 }
 0x35f   : > { %v13250_v47 = vpop.xlane.xlu0 %5909  ;;  %v7457_v19 = vadd.f32 0.5, %v7201_v62  ;;  %9960 = vtanh.f32 %v6695_v38  ;;  %6080 = vadd.xlane.f32.xlu1 %v6079_v61  ;;  %v4649_v24 = vadd.f32 %v12802_v39, %v12932_v5  ;;  %v6441_v10 = vadd.f32 %v13104_v7, %v13058_v58 }
 0x360   : > { %v9953_v4 = vpop.eup %9952  ;;  %v7458_v9 = vadd.f32 0.5, %v7202_v50  ;;  %9962 = vtanh.f32 %v6696_v40  ;;  %v13257_v52 = vmul.f32 %v12833_v30, %v5224_v28  ;;  %v6082_v22 = vsel %vm5565_vm3, %v5481_v21, 0.0 }
 0x361   : > { %7714 = vst.msk [vmem:[%s11576_s12 + $0x2e8] sm:$0xff] %vm7620_vm4, %v7457_v19  ;;  %v7203_v33 = vmul.f32 0.5, %v9953_v4  ;;  %v5223_v53 = vmax.f32 %v4649_v24, 0.0  ;;  %v6697_v31 = vmul.f32 0.5, %v6441_v10  ;;  %6083 = vadd.xlane.f32.xlu0 %v6082_v22  ;;  %v6442_v5 = vadd.f32 %v13104_v7, %v13071_v34  ;;  %v13264_v23 = vpop.f32.mrb[202].mxu1 }
 0x362   : > { %v9955_v58 = vpop.eup %9954  ;;  %7715 = vst.msk [vmem:[%s11576_s12 + $0x2f0] sm:$0xff] %vm7620_vm4, %v7458_v9  ;;  %v4664_v55 = vadd.f32 %v12802_v39, %v12949_v49  ;;  %v6085_v14 = vsel %vm5565_vm3, %v5482_v18, 0.0  ;;  %v4659_v21 = vadd.f32 %v12802_v39, %v12955_v36  ;;  %v6443_v54 = vadd.f32 %v13104_v7, %v13093_v17  ;;  %v13275_v62 = vpop.xlane.xlu1 %5912 }
 0x363   : > { %v13277_v34 = vpop.f32.mrb[203].mxu1  ;;  %v7459_v38 = vadd.f32 0.5, %v7203_v33  ;;  %v7204_v61 = vmul.f32 0.5, %v9955_v58  ;;  %v5485_v50 = vmul.f32 %v12833_v30, %v5223_v53  ;;  %9964 = vtanh.f32 %v6697_v31  ;;  %6086 = vadd.xlane.f32.xlu1 %v6085_v14  ;;  %v13280_v49 = vpop.xlane.xlu0 %5915 }
 0x364   : > { %v9957_v18 = vpop.eup %9956  ;;  %v6698_v40 = vmul.f32 0.5, %v6442_v5  ;;  %v5226_v39 = vmax.f32 %v4664_v55, 0.0  ;;  %v5225_v36 = vmax.f32 %v4659_v21, 0.0  ;;  %v6699_v28 = vmul.f32 0.5, %v6443_v54 }
 0x365   : > { %v9959_v19 = vpop.eup %9958  ;;  %7716 = vst.msk [vmem:[%s11576_s12 + $0x2f8] sm:$0xff] %vm7620_vm4, %v7459_v38  ;;  %v7460_v17 = vadd.f32 0.5, %v7204_v61  ;;  %v7205_v24 = vmul.f32 0.5, %v9957_v18  ;;  %v6088_v10 = vsel %vm5565_vm3, %v5483_v13, 0.0  ;;  %v6444_v4 = vadd.f32 %v13104_v7, %v13108_v45  ;;  %v13294_v13 = vld [vmem:[%s14487_s4] ss:$0 sm:$0xff] }
 0x366   : > { %v7206_v9 = vmul.f32 0.5, %v9959_v19  ;;  %9966 = vtanh.f32 %v6698_v40  ;;  %v5488_v22 = vmul.f32 %v12833_v30, %v5226_v39  ;;  %v5487_v33 = vmul.f32 %v12833_v30, %v5225_v36  ;;  %6089 = vadd.xlane.f32.xlu0 %v6088_v10  ;;  %v13298_v5 = vpop.xlane.xlu1 %5918 }
 0x367   : > { %7717 = vst.msk [vmem:[%s11576_s12 + $0x300] sm:$0xff] %vm7620_vm4, %v7460_v17  ;;  %v7461_v53 = vadd.f32 0.5, %v7205_v24  ;;  %9968 = vtanh.f32 %v6699_v28  ;;  %v6700_v31 = vmul.f32 0.5, %v6444_v4  ;;  %v4674_v45 = vadd.f32 %v13294_v13, %v12973_v59  ;;  %v13300_v58 = vpop.f32.mrb[204].mxu1 }
 0x368   : > { %v7462_v30 = vadd.f32 0.5, %v7206_v9  ;;  %v6091_v55 = vsel %vm5565_vm3, %v13243_v27, 0.0  ;;  %v4669_v14 = vadd.f32 %v13294_v13, %v12977_v12  ;;  %v6445_v21 = vadd.f32 %v13104_v7, %v13113_v37  ;;  %v13308_v54 = vpop.f32.mrb[205].mxu1 }
 0x369   : > { %v9961_v38 = vpop.eup %9960  ;;  %7718 = vst.msk [vmem:[%s11576_s12 + $0x308] sm:$0xff] %vm7620_vm4, %v7461_v53  ;;  %9970 = vtanh.f32 %v6700_v31  ;;  %v5228_v59 = vmax.f32 %v4674_v45, 0.0  ;;  %6092 = vadd.xlane.f32.xlu1 %v6091_v55  ;;  %v6094_v61 = vsel %vm5565_vm3, %v5485_v50, 0.0  ;;  %v6446_v18 = vadd.f32 %v13104_v7, %v13131_v44  ;;  %v13324_v50 = vld [vmem:[%s14488_s5] ss:$0 sm:$0xff] }
 0x36a   : > { %v13315_v27 = vpop.xlane.xlu0 %5921  ;;  %v9963_v40 = vpop.eup %9962  ;;  %7719 = vst.msk [vmem:[%s11576_s12 + $0x310] sm:$0xff] %vm7620_vm4, %v7462_v30  ;;  %v7207_v12 = vmul.f32 0.5, %v9961_v38  ;;  %v5227_v37 = vmax.f32 %v4669_v14, 0.0  ;;  %v6701_v39 = vmul.f32 0.5, %v6445_v21  ;;  %6095 = vadd.xlane.f32.xlu0 %v6094_v61  ;;  %v4684_v36 = vadd.f32 %v13294_v13, %v12995_v2  ;;  %v14541_v31 = vld [vmem:[#allocation10_spill] sm:$0xff] }
 0x36b   : > { %v7208_v28 = vmul.f32 0.5, %v9963_v40  ;;  %v5490_v44 = vmul.f32 %v13324_v50, %v5228_v59  ;;  %v6702_v19 = vmul.f32 0.5, %v6446_v18  ;;  %v6097_v17 = vsel %vm5565_vm3, %v13257_v52, 0.0  ;;  %v14542_v40 = vld [vmem:[#allocation11_spill] sm:$0xff] }
 0x36c   : > { %v7463_v24 = vadd.f32 0.5, %v7207_v12  ;;  %v5489_v10 = vmul.f32 %v13324_v50, %v5227_v37  ;;  %9972 = vtanh.f32 %v6701_v39  ;;  %v5230_v4 = vmax.f32 %v4684_v36, 0.0  ;;  %v13330_v2 = vpop.f32.mrb[206].mxu1  ;;  %v13336_v55 = vpop.xlane.xlu1 %5924 }
 0x36d   : > { %v9965_v9 = vpop.eup %9964  ;;  %v7464_v53 = vadd.f32 0.5, %v7208_v28  ;;  %9974 = vtanh.f32 %v6702_v19  ;;  %6098 = vadd.xlane.f32.xlu1 %v6097_v17  ;;  %v4679_v45 = vadd.f32 %v13294_v13, %v14541_v31  ;;  %v6447_v30 = vadd.f32 %v13104_v7, %v13144_v32  ;;  %v13338_v52 = vpop.f32.mrb[207].mxu1 }
 0x36e   : > { %7720 = vst.msk [vmem:[%s11576_s12 + $0x318] sm:$0xff] %vm7620_vm4, %v7463_v24  ;;  %v7209_v14 = vmul.f32 0.5, %v9965_v9  ;;  %v13343_v21 = vmul.f32 %v13324_v50, %v5230_v4  ;;  %v6100_v38 = vsel %vm5565_vm3, %v5487_v33, 0.0  ;;  %v6448_v59 = vadd.f32 %v13104_v7, %v13163_v57  ;;  %v13348_v61 = vpop.xlane.xlu0 %5927 }
 0x36f   : > { %7721 = vst.msk [vmem:[%s11576_s12 + $0x320] sm:$0xff] %vm7620_vm4, %v7464_v53  ;;  %v5229_v32 = vmax.f32 %v4679_v45, 0.0  ;;  %v6703_v18 = vmul.f32 0.5, %v6447_v30  ;;  %6101 = vadd.xlane.f32.xlu0 %v6100_v38  ;;  %v4694_v12 = vadd.f32 %v13294_v13, %v14542_v40  ;;  %v6103_v37 = vsel %vm5565_vm3, %v5488_v22, 0.0 }
 0x370   : > { %v9967_v39 = vpop.eup %9966  ;;  %v7465_v36 = vadd.f32 0.5, %v7209_v14  ;;  %v6704_v28 = vmul.f32 0.5, %v6448_v59  ;;  %v4689_v33 = vadd.f32 %v13294_v13, %v13030_v42  ;;  %v6449_v57 = vadd.f32 %v13104_v7, %v13176_v3 }
 0x371   : > { %v9969_v19 = vpop.eup %9968  ;;  %v7210_v17 = vmul.f32 0.5, %v9967_v39  ;;  %v5491_v24 = vmul.f32 %v13324_v50, %v5229_v32  ;;  %9976 = vtanh.f32 %v6703_v18  ;;  %v5232_v4 = vmax.f32 %v4694_v12, 0.0  ;;  %6104 = vadd.xlane.f32.xlu1 %v6103_v37  ;;  %v13362_v31 = vpop.xlane.xlu1 %5930 }
 0x372   : > { %7722 = vst.msk [vmem:[%s11576_s12 + $0x328] sm:$0xff] %vm7620_vm4, %v7465_v36  ;;  %v7211_v9 = vmul.f32 0.5, %v9969_v19  ;;  %9978 = vtanh.f32 %v6704_v28  ;;  %v5231_v22 = vmax.f32 %v4689_v33, 0.0  ;;  %v6705_v53 = vmul.f32 0.5, %v6449_v57 }
 0x373   : > { %v9971_v42 = vpop.eup %9970  ;;  %v7466_v45 = vadd.f32 0.5, %v7210_v17  ;;  %v13365_v3 = vmul.f32 %v13324_v50, %v5232_v4  ;;  %v6106_v30 = vsel %vm5565_vm3, %v5489_v10, 0.0  ;;  %v6450_v14 = vadd.f32 %v13104_v7, %v13190_v29  ;;  %v13370_v38 = vpop.f32.mrb[208].mxu1 }
 0x374   : > { %v7467_v59 = vadd.f32 0.5, %v7211_v9  ;;  %v7212_v32 = vmul.f32 0.5, %v9971_v42  ;;  %v5493_v18 = vmul.f32 %v13324_v50, %v5231_v22  ;;  %9980 = vtanh.f32 %v6705_v53  ;;  %6107 = vadd.xlane.f32.xlu0 %v6106_v30  ;;  %v13373_v40 = vpop.xlane.xlu0 %5933  ;;  %v13375_v12 = vpop.f32.mrb[209].mxu1 }
 0x375   : > { %7723 = vst.msk [vmem:[%s11576_s12 + $0x330] sm:$0xff] %vm7620_vm4, %v7466_v45  ;;  %v6706_v37 = vmul.f32 0.5, %v6450_v14  ;;  %v4704_v10 = vadd.f32 %v13294_v13, %v13042_v20  ;;  %v6109_v29 = vsel %vm5565_vm3, %v5490_v44, 0.0  ;;  %v4699_v39 = vadd.f32 %v13294_v13, %v13046_v11 }
 0x376   : > { %v9973_v36 = vpop.eup %9972  ;;  %7724 = vst.msk [vmem:[%s11576_s12 + $0x338] sm:$0xff] %vm7620_vm4, %v7467_v59  ;;  %v7468_v28 = vadd.f32 0.5, %v7212_v32  ;;  %6110 = vadd.xlane.f32.xlu1 %v6109_v29  ;;  %v6451_v33 = vadd.f32 %v13104_v7, %v13206_v43  ;;  %v6112_v57 = vsel %vm5565_vm3, %v5491_v24, 0.0  ;;  %v6452_v19 = vadd.f32 %v13104_v7, %v13216_v15  ;;  %v13395_v53 = vpop.xlane.xlu1 %5936 }
 0x377   : > { %v9975_v17 = vpop.eup %9974  ;;  %v7213_v20 = vmul.f32 0.5, %v9973_v36  ;;  %9982 = vtanh.f32 %v6706_v37  ;;  %v5234_v44 = vmax.f32 %v4704_v10, 0.0  ;;  %v5233_v4 = vmax.f32 %v4699_v39, 0.0 }
 0x378   : > { %7725 = vst.msk [vmem:[%s11576_s12 + $0x340] sm:$0xff] %vm7620_vm4, %v7468_v28  ;;  %v7214_v11 = vmul.f32 0.5, %v9975_v17  ;;  %v6707_v9 = vmul.f32 0.5, %v6451_v33  ;;  %6113 = vadd.xlane.f32.xlu0 %v6112_v57  ;;  %v6708_v22 = vmul.f32 0.5, %v6452_v19  ;;  %v4714_v43 = vadd.f32 %v13294_v13, %v13065_v6  ;;  %v13397_v24 = vpop.f32.mrb[210].mxu1 }
 0x379   : > { %v7469_v15 = vadd.f32 0.5, %v7213_v20  ;;  %v5496_v42 = vmul.f32 %v13324_v50, %v5234_v44  ;;  %v5495_v45 = vmul.f32 %v13324_v50, %v5233_v4  ;;  %v6115_v30 = vsel %vm5565_vm3, %v13343_v21, 0.0  ;;  %v13403_v14 = vpop.xlane.xlu0 %5939  ;;  %v13405_v59 = vpop.f32.mrb[211].mxu1 }
 0x37a   : > { %v7470_v32 = vadd.f32 0.5, %v7214_v11  ;;  %9984 = vtanh.f32 %v6707_v9  ;;  %v5236_v6 = vmax.f32 %v4714_v43, 0.0  ;;  %6116 = vadd.xlane.f32.xlu1 %v6115_v30  ;;  %v4709_v37 = vadd.f32 %v13294_v13, %v13073_v25 }
 0x37b   : > { %v9977_v10 = vpop.eup %9976  ;;  %7726 = vst.msk [vmem:[%s11576_s12 + $0x348] sm:$0xff] %vm7620_vm4, %v7469_v15  ;;  %9986 = vtanh.f32 %v6708_v22  ;;  %v6453_v29 = vadd.f32 %v13104_v7, %v13236_v8  ;;  %v6118_v21 = vsel %vm5565_vm3, %v5493_v18, 0.0  ;;  %v6454_v39 = vadd.f32 %v13104_v7, %v13250_v47 }
 0x37c   : > { %v9979_v36 = vpop.eup %9978  ;;  %7727 = vst.msk [vmem:[%s11576_s12 + $0x350] sm:$0xff] %vm7620_vm4, %v7470_v32  ;;  %v7215_v28 = vmul.f32 0.5, %v9977_v10  ;;  %v13419_v33 = vmul.f32 %v13324_v50, %v5236_v6  ;;  %v5235_v25 = vmax.f32 %v4709_v37, 0.0  ;;  %6119 = vadd.xlane.f32.xlu0 %v6118_v21  ;;  %v4724_v57 = vadd.f32 %v13294_v13, %v13083_v26  ;;  %v13425_v47 = vpop.xlane.xlu1 %5942 }
 0x37d   : > { %v7216_v19 = vmul.f32 0.5, %v9979_v36  ;;  %v6709_v17 = vmul.f32 0.5, %v6453_v29  ;;  %v6710_v8 = vmul.f32 0.5, %v6454_v39  ;;  %v6121_v18 = vsel %vm5565_vm3, %v13365_v3, 0.0 }
 0x37e   : > { %v9981_v20 = vpop.eup %9980  ;;  %v7471_v44 = vadd.f32 0.5, %v7215_v28  ;;  %v5497_v4 = vmul.f32 %v13324_v50, %v5235_v25  ;;  %v5238_v11 = vmax.f32 %v4724_v57, 0.0  ;;  %6122 = vadd.xlane.f32.xlu1 %v6121_v18  ;;  %v4719_v9 = vadd.f32 %v13294_v13, %v13095_v16  ;;  %v13430_v26 = vpop.f32.mrb[212].mxu1 }
 0x37f   : > { %v7472_v22 = vadd.f32 0.5, %v7216_v19  ;;  %v7217_v43 = vmul.f32 0.5, %v9981_v20  ;;  %9988 = vtanh.f32 %v6709_v17  ;;  %v6455_v3 = vadd.f32 %v13104_v7, %v13275_v62  ;;  %v13434_v15 = vpop.xlane.xlu0 %5945  ;;  %v13436_v30 = vpop.f32.mrb[213].mxu1 }
 0x380   : > { %7728 = vst.msk [vmem:[%s11576_s12 + $0x358] sm:$0xff] %vm7620_vm4, %v7471_v44  ;;  %9990 = vtanh.f32 %v6710_v8  ;;  %v13441_v32 = vmul.f32 %v13324_v50, %v5238_v11  ;;  %v5237_v16 = vmax.f32 %v4719_v9, 0.0  ;;  %v6124_v6 = vsel %vm5565_vm3, %v5495_v45, 0.0 }
 0x381   : > { %v9983_v37 = vpop.eup %9982  ;;  %7729 = vst.msk [vmem:[%s11576_s12 + $0x360] sm:$0xff] %vm7620_vm4, %v7472_v22  ;;  %v7473_v10 = vadd.f32 0.5, %v7217_v43  ;;  %v6711_v29 = vmul.f32 0.5, %v6455_v3  ;;  %6125 = vadd.xlane.f32.xlu0 %v6124_v6  ;;  %v6456_v62 = vadd.f32 %v13104_v7, %v13280_v49  ;;  %v4734_v21 = vadd.f32 %v13294_v13, %v13115_v35 }
 0x382   : > { %v7218_v39 = vmul.f32 0.5, %v9983_v37  ;;  %v5499_v36 = vmul.f32 %v13324_v50, %v5237_v16  ;;  %v6127_v28 = vsel %vm5565_vm3, %v5496_v42, 0.0  ;;  %v4729_v45 = vadd.f32 %v13294_v13, %v13121_v46 }
 0x383   : > { %7730 = vst.msk [vmem:[%s11576_s12 + $0x368] sm:$0xff] %vm7620_vm4, %v7473_v10  ;;  %9992 = vtanh.f32 %v6711_v29  ;;  %v6712_v25 = vmul.f32 0.5, %v6456_v62  ;;  %v5240_v57 = vmax.f32 %v4734_v21, 0.0  ;;  %6128 = vadd.xlane.f32.xlu1 %v6127_v28  ;;  %v6457_v49 = vadd.f32 %v13104_v7, %v13298_v5  ;;  %v13458_v19 = vpop.xlane.xlu1 %5948 }
 0x384   : > { %v9985_v35 = vpop.eup %9984  ;;  %v7474_v17 = vadd.f32 0.5, %v7218_v39  ;;  %v5239_v8 = vmax.f32 %v4729_v45, 0.0  ;;  %v6130_v42 = vsel %vm5565_vm3, %v5497_v4, 0.0  ;;  %v6458_v46 = vadd.f32 %v13104_v7, %v13315_v27  ;;  %v13463_v18 = vpop.xlane.xlu0 %5951 }
 0x385   : > { %v13465_v20 = vpop.f32.mrb[214].mxu1  ;;  %v9987_v44 = vpop.eup %9986  ;;  %v7219_v11 = vmul.f32 0.5, %v9985_v35  ;;  %9994 = vtanh.f32 %v6712_v25  ;;  %v5502_v5 = vmul.f32 %v13324_v50, %v5240_v57  ;;  %v6713_v9 = vmul.f32 0.5, %v6457_v49  ;;  %6131 = vadd.xlane.f32.xlu0 %v6130_v42 }
 0x386   : > { %v13468_v22 = vpop.f32.mrb[215].mxu1  ;;  %7731 = vst.msk [vmem:[%s11576_s12 + $0x370] sm:$0xff] %vm7620_vm4, %v7474_v17  ;;  %v7220_v4 = vmul.f32 0.5, %v9987_v44  ;;  %v5501_v43 = vmul.f32 %v13324_v50, %v5239_v8  ;;  %v6714_v27 = vmul.f32 0.5, %v6458_v46  ;;  %v4744_v3 = vadd.f32 %v13294_v13, %v13146_v41 }
 0x387   : > { %v7475_v16 = vadd.f32 0.5, %v7219_v11  ;;  %9996 = vtanh.f32 %v6713_v9  ;;  %v6133_v6 = vsel %vm5565_vm3, %v13419_v33, 0.0  ;;  %v4739_v37 = vadd.f32 %v13294_v13, %v13152_v60  ;;  %v13481_v21 = vpop.xlane.xlu1 %5954 }
 0x388   : > { %v7476_v10 = vadd.f32 0.5, %v7220_v4  ;;  %9998 = vtanh.f32 %v6714_v27  ;;  %v5242_v29 = vmax.f32 %v4744_v3, 0.0  ;;  %6134 = vadd.xlane.f32.xlu1 %v6133_v6  ;;  %v6459_v62 = vadd.f32 %v13104_v7, %v13336_v55 }
 0x389   : > { %v9989_v39 = vpop.eup %9988  ;;  %7732 = vst.msk [vmem:[%s11576_s12 + $0x378] sm:$0xff] %vm7620_vm4, %v7475_v16  ;;  %v5241_v41 = vmax.f32 %v4739_v37, 0.0  ;;  %v6136_v28 = vsel %vm5565_vm3, %v5499_v36, 0.0  ;;  %v6460_v33 = vadd.f32 %v13104_v7, %v13348_v61  ;;  %v4754_v60 = vadd.f32 %v13294_v13, %v13178_v1  ;;  %v13490_v45 = vpop.f32.mrb[216].mxu1 }
 0x38a   : > { %v9991_v25 = vpop.eup %9990  ;;  %7733 = vst.msk [vmem:[%s11576_s12 + $0x380] sm:$0xff] %vm7620_vm4, %v7476_v10  ;;  %v7221_v55 = vmul.f32 0.5, %v9989_v39  ;;  %v13495_v57 = vmul.f32 %v13324_v50, %v5242_v29  ;;  %v6715_v49 = vmul.f32 0.5, %v6459_v62  ;;  %6137 = vadd.xlane.f32.xlu0 %v6136_v28  ;;  %v6139_v36 = vsel %vm5565_vm3, %v13441_v32, 0.0  ;;  %v13499_v35 = vpop.xlane.xlu0 %5957 }
 0x38b   : > { %v13501_v61 = vpop.f32.mrb[217].mxu1  ;;  %v7222_v1 = vmul.f32 0.5, %v9991_v25  ;;  %v5503_v17 = vmul.f32 %v13324_v50, %v5241_v41  ;;  %v6716_v8 = vmul.f32 0.5, %v6460_v33  ;;  %v5244_v42 = vmax.f32 %v4754_v60, 0.0 }
 0x38c   : > { %v7477_v46 = vadd.f32 0.5, %v7221_v55  ;;  %10000 = vtanh.f32 %v6715_v49  ;;  %6140 = vadd.xlane.f32.xlu1 %v6139_v36  ;;  %v4749_v44 = vadd.f32 %v13294_v13, %v13182_v0  ;;  %v6461_v32 = vadd.f32 %v13104_v7, %v13362_v31 }
 0x38d   : > { %v9993_v11 = vpop.eup %9992  ;;  %v7478_v9 = vadd.f32 0.5, %v7222_v1  ;;  %10002 = vtanh.f32 %v6716_v8  ;;  %v13509_v4 = vmul.f32 %v13324_v50, %v5244_v42  ;;  %v6142_v27 = vsel %vm5565_vm3, %v5501_v43, 0.0 }
 0x38e   : > { %7734 = vst.msk [vmem:[%s11576_s12 + $0x388] sm:$0xff] %vm7620_vm4, %v7477_v46  ;;  %v7223_v3 = vmul.f32 0.5, %v9993_v11  ;;  %v5243_v16 = vmax.f32 %v4749_v44, 0.0  ;;  %v6717_v6 = vmul.f32 0.5, %v6461_v32  ;;  %6143 = vadd.xlane.f32.xlu0 %v6142_v27  ;;  %v6462_v0 = vadd.f32 %v13104_v7, %v13373_v40  ;;  %v13516_v37 = vpop.xlane.xlu1 %5960 }
 0x38f   : > { %v9995_v31 = vpop.eup %9994  ;;  %7735 = vst.msk [vmem:[%s11576_s12 + $0x390] sm:$0xff] %vm7620_vm4, %v7478_v9  ;;  %v4764_v10 = vadd.f32 %v13294_v13, %v13208_v48  ;;  %v6145_v29 = vsel %vm5565_vm3, %v5502_v5, 0.0  ;;  %v4759_v43 = vadd.f32 %v13294_v13, %v13213_v63  ;;  %v6463_v62 = vadd.f32 %v13104_v7, %v13395_v53  ;;  %v13527_v39 = vpop.xlane.xlu0 %5963 }
 0x390   : > { %v13529_v40 = vpop.f32.mrb[218].mxu1  ;;  %v7479_v41 = vadd.f32 0.5, %v7223_v3  ;;  %v7224_v28 = vmul.f32 0.5, %v9995_v31  ;;  %v5505_v33 = vmul.f32 %v13324_v50, %v5243_v16  ;;  %10004 = vtanh.f32 %v6717_v6  ;;  %6146 = vadd.xlane.f32.xlu1 %v6145_v29 }
 0x391   : > { %v13532_v48 = vpop.f32.mrb[219].mxu1  ;;  %v9997_v5 = vpop.eup %9996  ;;  %v6718_v60 = vmul.f32 0.5, %v6462_v0  ;;  %v5246_v63 = vmax.f32 %v4764_v10, 0.0  ;;  %v5245_v25 = vmax.f32 %v4759_v43, 0.0  ;;  %v6719_v55 = vmul.f32 0.5, %v6463_v62 }
 0x392   : > { %v9999_v49 = vpop.eup %9998  ;;  %7736 = vst.msk [vmem:[%s11576_s12 + $0x398] sm:$0xff] %vm7620_vm4, %v7479_v41  ;;  %v7480_v53 = vadd.f32 0.5, %v7224_v28  ;;  %v7225_v36 = vmul.f32 0.5, %v9997_v5  ;;  %v6148_v1 = vsel %vm5565_vm3, %v5503_v17, 0.0  ;;  %v6464_v8 = vadd.f32 %v13104_v7, %v13403_v14  ;;  %v13541_v32 = vpop.xlane.xlu1 %5966 }
 0x393   : > { %v7226_v42 = vmul.f32 0.5, %v9999_v49  ;;  %10006 = vtanh.f32 %v6718_v60  ;;  %v5508_v46 = vmul.f32 %v13324_v50, %v5246_v63  ;;  %v5507_v44 = vmul.f32 %v13324_v50, %v5245_v25  ;;  %6149 = vadd.xlane.f32.xlu0 %v6148_v1 }
 0x394   : > { %7737 = vst.msk [vmem:[%s11576_s12 + $0x3a0] sm:$0xff] %vm7620_vm4, %v7480_v53  ;;  %v7481_v11 = vadd.f32 0.5, %v7225_v36  ;;  %10008 = vtanh.f32 %v6719_v55  ;;  %v6720_v9 = vmul.f32 0.5, %v6464_v8  ;;  %v4774_v17 = vadd.f32 %v13294_v13, %v13238_v51  ;;  %v13547_v14 = vpop.f32.mrb[220].mxu1  ;;  %v13576_v53 = vld [vmem:[#allocation2] ss:$0 sm:$0xff] }
 0x395   : > { %v7482_v27 = vadd.f32 0.5, %v7226_v42  ;;  %v6151_v3 = vsel %vm5565_vm3, %v13495_v57, 0.0  ;;  %v4769_v16 = vadd.f32 %v13294_v13, %v13247_v56  ;;  %v6465_v6 = vadd.f32 %v13104_v7, %v13425_v47  ;;  %v13555_v0 = vpop.xlane.xlu0 %5969  ;;  %v13557_v31 = vpop.f32.mrb[221].mxu1 }
 0x396   : > { %v10001_v10 = vpop.eup %10000  ;;  %7738 = vst.msk [vmem:[%s11576_s12 + $0x3a8] sm:$0xff] %vm7620_vm4, %v7481_v11  ;;  %10010 = vtanh.f32 %v6720_v9  ;;  %v5248_v51 = vmax.f32 %v4774_v17, 0.0  ;;  %6152 = vadd.xlane.f32.xlu1 %v6151_v3  ;;  %v6154_v29 = vsel %vm5565_vm3, %v5505_v33, 0.0  ;;  %v6466_v57 = vadd.f32 %v13104_v7, %v13434_v15 }
 0x397   : > { %v10003_v43 = vpop.eup %10002  ;;  %7739 = vst.msk [vmem:[%s11576_s12 + $0x3b0] sm:$0xff] %vm7620_vm4, %v7482_v27  ;;  %v7227_v56 = vmul.f32 0.5, %v10001_v10  ;;  %v5247_v47 = vmax.f32 %v4769_v16, 0.0  ;;  %v6721_v62 = vmul.f32 0.5, %v6465_v6  ;;  %6155 = vadd.xlane.f32.xlu0 %v6154_v29  ;;  %v4784_v41 = vadd.f32 %v13294_v13, %v13264_v23 }
 0x398   : > { %v7228_v28 = vmul.f32 0.5, %v10003_v43  ;;  %v5510_v5 = vmul.f32 %v13324_v50, %v5248_v51  ;;  %v6722_v60 = vmul.f32 0.5, %v6466_v57  ;;  %v6157_v33 = vsel %vm5565_vm3, %v13509_v4, 0.0 }
 0x399   : > { %v7483_v63 = vadd.f32 0.5, %v7227_v56  ;;  %v5509_v7 = vmul.f32 %v13324_v50, %v5247_v47  ;;  %10012 = vtanh.f32 %v6721_v62  ;;  %v5250_v15 = vmax.f32 %v4784_v41, 0.0  ;;  %v13572_v25 = vpop.xlane.xlu1 %5972 }
 0x39a   : > { %v10005_v55 = vpop.eup %10004  ;;  %v7484_v49 = vadd.f32 0.5, %v7228_v28  ;;  %10014 = vtanh.f32 %v6722_v60  ;;  %6158 = vadd.xlane.f32.xlu1 %v6157_v33  ;;  %v4779_v23 = vadd.f32 %v13294_v13, %v13277_v34  ;;  %v6467_v4 = vadd.f32 %v13576_v53, %v13458_v19  ;;  %v13580_v36 = vpop.xlane.xlu0 %5975 }
 0x39b   : > { %v13582_v1 = vpop.f32.mrb[222].mxu1  ;;  %7740 = vst.msk [vmem:[%s11576_s12 + $0x3b8] sm:$0xff] %vm7620_vm4, %v7483_v63  ;;  %v7229_v8 = vmul.f32 0.5, %v10005_v55  ;;  %v13587_v42 = vmul.f32 %v13324_v50, %v5250_v15  ;;  %v6160_v11 = vsel %vm5565_vm3, %v5507_v44, 0.0  ;;  %v6468_v34 = vadd.f32 %v13576_v53, %v13463_v18 }
 0x39c   : > { %v13592_v9 = vpop.f32.mrb[223].mxu1  ;;  %7741 = vst.msk [vmem:[%s11576_s12 + $0x3c0] sm:$0xff] %vm7620_vm4, %v7484_v49  ;;  %v5249_v19 = vmax.f32 %v4779_v23, 0.0  ;;  %v6723_v17 = vmul.f32 0.5, %v6467_v4  ;;  %6161 = vadd.xlane.f32.xlu0 %v6160_v11  ;;  %v4794_v27 = vadd.f32 %v13294_v13, %v13300_v58  ;;  %v6163_v3 = vsel %vm5565_vm3, %v5508_v46, 0.0 }
 0x39d   : > { %v10007_v16 = vpop.eup %10006  ;;  %v7485_v6 = vadd.f32 0.5, %v7229_v8  ;;  %v6724_v10 = vmul.f32 0.5, %v6468_v34  ;;  %v4789_v44 = vadd.f32 %v13294_v13, %v13308_v54  ;;  %v6469_v18 = vadd.f32 %v13576_v53, %v13481_v21  ;;  %v13604_v56 = vpop.xlane.xlu1 %5978 }
 0x39e   : > { %v10009_v51 = vpop.eup %10008  ;;  %v7230_v29 = vmul.f32 0.5, %v10007_v16  ;;  %v5511_v57 = vmul.f32 %v13324_v50, %v5249_v19  ;;  %10016 = vtanh.f32 %v6723_v17  ;;  %v5252_v43 = vmax.f32 %v4794_v27, 0.0  ;;  %6164 = vadd.xlane.f32.xlu1 %v6163_v3 }
 0x39f   : > { %7742 = vst.msk [vmem:[%s11576_s12 + $0x3c8] sm:$0xff] %vm7620_vm4, %v7485_v6  ;;  %v7231_v58 = vmul.f32 0.5, %v10009_v51  ;;  %10018 = vtanh.f32 %v6724_v10  ;;  %v5251_v46 = vmax.f32 %v4789_v44, 0.0  ;;  %v6725_v47 = vmul.f32 0.5, %v6469_v18  ;;  %v13608_v54 = vpop.f32.mrb[224].mxu1 }
 0x3a0   : > { %v10011_v62 = vpop.eup %10010  ;;  %v7486_v21 = vadd.f32 0.5, %v7230_v29  ;;  %v13611_v41 = vmul.f32 %v13324_v50, %v5252_v43  ;;  %v6166_v28 = vsel %vm5565_vm3, %v5509_v7, 0.0  ;;  %v6470_v60 = vadd.f32 %v13576_v53, %v13499_v35  ;;  %v13616_v33 = vpop.xlane.xlu0 %5981 }
 0x3a1   : > { %v13618_v63 = vpop.f32.mrb[225].mxu1  ;;  %v7487_v15 = vadd.f32 0.5, %v7231_v58  ;;  %v7232_v55 = vmul.f32 0.5, %v10011_v62  ;;  %v5513_v49 = vmul.f32 %v13324_v50, %v5251_v46  ;;  %10020 = vtanh.f32 %v6725_v47  ;;  %6167 = vadd.xlane.f32.xlu0 %v6166_v28 }
 0x3a2   : > { %7743 = vst.msk [vmem:[%s11576_s12 + $0x3d0] sm:$0xff] %vm7620_vm4, %v7486_v21  ;;  %v6726_v23 = vmul.f32 0.5, %v6470_v60  ;;  %v4804_v4 = vadd.f32 %v13294_v13, %v13330_v2  ;;  %v6169_v7 = vsel %vm5565_vm3, %v5510_v5, 0.0  ;;  %v4799_v35 = vadd.f32 %v13294_v13, %v13338_v52 }
 0x3a3   : > { %v10013_v8 = vpop.eup %10012  ;;  %7744 = vst.msk [vmem:[%s11576_s12 + $0x3d8] sm:$0xff] %vm7620_vm4, %v7487_v15  ;;  %v7488_v11 = vadd.f32 0.5, %v7232_v55  ;;  %6170 = vadd.xlane.f32.xlu1 %v6169_v7  ;;  %v6471_v34 = vadd.f32 %v13576_v53, %v13516_v37  ;;  %v6172_v19 = vsel %vm5565_vm3, %v5511_v57, 0.0  ;;  %v6472_v17 = vadd.f32 %v13576_v53, %v13527_v39 }
 0x3a4   : > { %v10015_v2 = vpop.eup %10014  ;;  %v7233_v27 = vmul.f32 0.5, %v10013_v8  ;;  %10022 = vtanh.f32 %v6726_v23  ;;  %v5254_v5 = vmax.f32 %v4804_v4, 0.0  ;;  %v5253_v3 = vmax.f32 %v4799_v35, 0.0  ;;  %v13635_v16 = vpop.xlane.xlu1 %5984 }
 0x3a5   : > { %7745 = vst.msk [vmem:[%s11576_s12 + $0x3e0] sm:$0xff] %vm7620_vm4, %v7488_v11  ;;  %v7234_v52 = vmul.f32 0.5, %v10015_v2  ;;  %v6727_v6 = vmul.f32 0.5, %v6471_v34  ;;  %6173 = vadd.xlane.f32.xlu0 %v6172_v19  ;;  %v6728_v10 = vmul.f32 0.5, %v6472_v17  ;;  %v4814_v37 = vadd.f32 %v13294_v13, %v13370_v38  ;;  %v13641_v44 = vpop.xlane.xlu0 %5987  ;;  %v13643_v39 = vpop.f32.mrb[226].mxu1 }
 0x3a6   : > { %v7489_v18 = vadd.f32 0.5, %v7233_v27  ;;  %v5516_v51 = vmul.f32 %v13324_v50, %v5254_v5  ;;  %v5515_v29 = vmul.f32 %v13324_v50, %v5253_v3  ;;  %v6175_v57 = vsel %vm5565_vm3, %v13587_v42, 0.0  ;;  %v13649_v43 = vpop.f32.mrb[227].mxu1 }
 0x3a7   : > { %v7490_v58 = vadd.f32 0.5, %v7234_v52  ;;  %10024 = vtanh.f32 %v6727_v6  ;;  %v5256_v46 = vmax.f32 %v4814_v37, 0.0  ;;  %6176 = vadd.xlane.f32.xlu1 %v6175_v57  ;;  %v4809_v38 = vadd.f32 %v13294_v13, %v13375_v12 }
 0x3a8   : > { %v10017_v47 = vpop.eup %10016  ;;  %7746 = vst.msk [vmem:[%s11576_s12 + $0x3e8] sm:$0xff] %vm7620_vm4, %v7489_v18  ;;  %10026 = vtanh.f32 %v6728_v10  ;;  %v6473_v62 = vadd.f32 %v13576_v53, %v13541_v32  ;;  %v6178_v21 = vsel %vm5565_vm3, %v5513_v49, 0.0  ;;  %v6474_v42 = vadd.f32 %v13576_v53, %v13555_v0  ;;  %v13660_v28 = vpop.xlane.xlu1 %5990 }
 0x3a9   : > { %v10019_v60 = vpop.eup %10018  ;;  %7747 = vst.msk [vmem:[%s11576_s12 + $0x3f0] sm:$0xff] %vm7620_vm4, %v7490_v58  ;;  %v7235_v15 = vmul.f32 0.5, %v10017_v47  ;;  %v13665_v12 = vmul.f32 %v13324_v50, %v5256_v46  ;;  %v5255_v55 = vmax.f32 %v4809_v38, 0.0  ;;  %6179 = vadd.xlane.f32.xlu0 %v6178_v21  ;;  %v4824_v23 = vadd.f32 %v13294_v13, %v13397_v24 }
 0x3aa   : > { %v7236_v32 = vmul.f32 0.5, %v10019_v60  ;;  %v6729_v4 = vmul.f32 0.5, %v6473_v62  ;;  %v6730_v49 = vmul.f32 0.5, %v6474_v42  ;;  %v6181_v0 = vsel %vm5565_vm3, %v13611_v41, 0.0  ;;  %v13671_v7 = vpop.f32.mrb[228].mxu1 }
 0x3ab   : > { %v10021_v35 = vpop.eup %10020  ;;  %v7491_v8 = vadd.f32 0.5, %v7235_v15  ;;  %v5517_v11 = vmul.f32 %v13324_v50, %v5255_v55  ;;  %v5258_v34 = vmax.f32 %v4824_v23, 0.0  ;;  %6182 = vadd.xlane.f32.xlu1 %v6181_v0  ;;  %v4819_v19 = vadd.f32 %v13294_v13, %v13405_v59  ;;  %v13676_v24 = vpop.xlane.xlu0 %5993 }
 0x3ac   : > { %v13678_v17 = vpop.f32.mrb[229].mxu1  ;;  %v7492_v2 = vadd.f32 0.5, %v7236_v32  ;;  %v7237_v27 = vmul.f32 0.5, %v10021_v35  ;;  %10028 = vtanh.f32 %v6729_v4  ;;  %v6475_v41 = vadd.f32 %v13576_v53, %v13572_v25 }
 0x3ad   : > { %7748 = vst.msk [vmem:[%s11576_s12 + $0x3f8] sm:$0xff] %vm7620_vm4, %v7491_v8  ;;  %10030 = vtanh.f32 %v6730_v49  ;;  %v13685_v5 = vmul.f32 %v13324_v50, %v5258_v34  ;;  %v5257_v3 = vmax.f32 %v4819_v19, 0.0  ;;  %v6184_v59 = vsel %vm5565_vm3, %v5515_v29, 0.0  ;;  %v13688_v52 = vpop.xlane.xlu1 %5996 }
 0x3ae   : > { %v10023_v6 = vpop.eup %10022  ;;  %7749 = vst.msk [vmem:[%s11576_s12 + $0x400] sm:$0xff] %vm7620_vm4, %v7492_v2  ;;  %v7493_v10 = vadd.f32 0.5, %v7237_v27  ;;  %v6731_v37 = vmul.f32 0.5, %v6475_v41  ;;  %6185 = vadd.xlane.f32.xlu0 %v6184_v59  ;;  %v6476_v25 = vadd.f32 %v13576_v53, %v13580_v36  ;;  %v4834_v18 = vadd.f32 %v13294_v13, %v13430_v26 }
 0x3af   : > { %v7238_v57 = vmul.f32 0.5, %v10023_v6  ;;  %v5519_v58 = vmul.f32 %v13324_v50, %v5257_v3  ;;  %v6187_v46 = vsel %vm5565_vm3, %v5516_v51, 0.0  ;;  %v4829_v29 = vadd.f32 %v13294_v13, %v13436_v30  ;;  %v13700_v38 = vpop.xlane.xlu0 %5999 }
 0x3b0   : > { %7750 = vst.msk [vmem:[%s11576_s12 + $0x408] sm:$0xff] %vm7620_vm4, %v7493_v10  ;;  %10032 = vtanh.f32 %v6731_v37  ;;  %v6732_v47 = vmul.f32 0.5, %v6476_v25  ;;  %v5260_v62 = vmax.f32 %v4834_v18, 0.0  ;;  %6188 = vadd.xlane.f32.xlu1 %v6187_v46  ;;  %v6477_v26 = vadd.f32 %v13576_v53, %v13604_v56 }
 0x3b1   : > { %v13706_v36 = vpop.f32.mrb[230].mxu1  ;;  %v10025_v21 = vpop.eup %10024  ;;  %v7494_v42 = vadd.f32 0.5, %v7238_v57  ;;  %v5259_v51 = vmax.f32 %v4829_v29, 0.0  ;;  %v6190_v60 = vsel %vm5565_vm3, %v5517_v11, 0.0  ;;  %v6478_v30 = vadd.f32 %v13576_v53, %v13616_v33 }
 0x3b2   : > { %v13711_v15 = vpop.f32.mrb[231].mxu1  ;;  %v10027_v55 = vpop.eup %10026  ;;  %v7239_v23 = vmul.f32 0.5, %v10025_v21  ;;  %10034 = vtanh.f32 %v6732_v47  ;;  %v5522_v32 = vmul.f32 %v13324_v50, %v5260_v62  ;;  %v6733_v4 = vmul.f32 0.5, %v6477_v26  ;;  %6191 = vadd.xlane.f32.xlu0 %v6190_v60 }
 0x3b3   : > { %v13714_v56 = vpop.xlane.xlu1 %6002  ;;  %7751 = vst.msk [vmem:[%s11576_s12 + $0x410] sm:$0xff] %vm7620_vm4, %v7494_v42  ;;  %v7240_v49 = vmul.f32 0.5, %v10027_v55  ;;  %v5521_v0 = vmul.f32 %v13324_v50, %v5259_v51  ;;  %v6734_v35 = vmul.f32 0.5, %v6478_v30  ;;  %v4844_v33 = vadd.f32 %v13294_v13, %v13465_v20  ;;  %v13721_v8 = vpop.xlane.xlu0 %6005 }
 0x3b4   : > { %v7495_v11 = vadd.f32 0.5, %v7239_v23  ;;  %10036 = vtanh.f32 %v6733_v4  ;;  %v6193_v34 = vsel %vm5565_vm3, %v13665_v12, 0.0  ;;  %v4839_v19 = vadd.f32 %v13294_v13, %v13468_v22 }
 0x3b5   : > { %v7496_v2 = vadd.f32 0.5, %v7240_v49  ;;  %10038 = vtanh.f32 %v6734_v35  ;;  %v5262_v27 = vmax.f32 %v4844_v33, 0.0  ;;  %6194 = vadd.xlane.f32.xlu1 %v6193_v34  ;;  %v6479_v41 = vadd.f32 %v13576_v53, %v13635_v16  ;;  %v13729_v3 = vpop.f32.mrb[232].mxu1  ;;  %v13773_v49 = vld [vmem:[%s14487_s4] ss:$0 sm:$0xff] }
 0x3b6   : > { %v10029_v20 = vpop.eup %10028  ;;  %7752 = vst.msk [vmem:[%s11576_s12 + $0x418] sm:$0xff] %vm7620_vm4, %v7495_v11  ;;  %v5261_v59 = vmax.f32 %v4839_v19, 0.0  ;;  %v6196_v6 = vsel %vm5565_vm3, %v5519_v58, 0.0  ;;  %v6480_v12 = vadd.f32 %v13576_v53, %v13641_v44  ;;  %v4854_v22 = vadd.f32 %v13294_v13, %v13490_v45  ;;  %v13740_v37 = vpop.f32.mrb[233].mxu1 }
 0x3b7   : > { %v13738_v10 = vpop.xlane.xlu1 %6008  ;;  %v10031_v25 = vpop.eup %10030  ;;  %7753 = vst.msk [vmem:[%s11576_s12 + $0x420] sm:$0xff] %vm7620_vm4, %v7496_v2  ;;  %v7241_v16 = vmul.f32 0.5, %v10029_v20  ;;  %v13745_v18 = vmul.f32 %v13324_v50, %v5262_v27  ;;  %v6735_v57 = vmul.f32 0.5, %v6479_v41  ;;  %6197 = vadd.xlane.f32.xlu0 %v6196_v6  ;;  %v6199_v58 = vsel %vm5565_vm3, %v13685_v5, 0.0 }
 0x3b8   : > { %v7242_v44 = vmul.f32 0.5, %v10031_v25  ;;  %v5523_v45 = vmul.f32 %v13324_v50, %v5261_v59  ;;  %v6736_v46 = vmul.f32 0.5, %v6480_v12  ;;  %v5264_v29 = vmax.f32 %v4854_v22, 0.0  ;;  %v13750_v47 = vpop.xlane.xlu0 %6011 }
 0x3b9   : > { %v7497_v62 = vadd.f32 0.5, %v7241_v16  ;;  %10040 = vtanh.f32 %v6735_v57  ;;  %6200 = vadd.xlane.f32.xlu1 %v6199_v58  ;;  %v4849_v26 = vadd.f32 %v13294_v13, %v13501_v61  ;;  %v6481_v21 = vadd.f32 %v13576_v53, %v13660_v28  ;;  %v13797_v16 = vld [vmem:[%s14488_s5] ss:$0 sm:$0xff] }
 0x3ba   : > { %v10033_v42 = vpop.eup %10032  ;;  %v7498_v5 = vadd.f32 0.5, %v7242_v44  ;;  %10042 = vtanh.f32 %v6736_v46  ;;  %v13757_v51 = vmul.f32 %v13324_v50, %v5264_v29  ;;  %v6202_v60 = vsel %vm5565_vm3, %v5521_v0, 0.0 }
 0x3bb   : > { %v13760_v30 = vpop.xlane.xlu1 %6014  ;;  %7754 = vst.msk [vmem:[%s11576_s12 + $0x428] sm:$0xff] %vm7620_vm4, %v7497_v62  ;;  %v7243_v55 = vmul.f32 0.5, %v10033_v42  ;;  %v5263_v23 = vmax.f32 %v4849_v26, 0.0  ;;  %v6737_v4 = vmul.f32 0.5, %v6481_v21  ;;  %6203 = vadd.xlane.f32.xlu0 %v6202_v60  ;;  %v6482_v13 = vadd.f32 %v13576_v53, %v13676_v24  ;;  %v13766_v61 = vpop.f32.mrb[234].mxu1 }
 0x3bc   : > { %v10035_v28 = vpop.eup %10034  ;;  %7755 = vst.msk [vmem:[%s11576_s12 + $0x430] sm:$0xff] %vm7620_vm4, %v7498_v5  ;;  %v4864_v0 = vadd.f32 %v13773_v49, %v13529_v40  ;;  %v6205_v35 = vsel %vm5565_vm3, %v5522_v32, 0.0  ;;  %v4859_v33 = vadd.f32 %v13773_v49, %v13532_v48  ;;  %v6483_v24 = vadd.f32 %v13576_v53, %v13688_v52  ;;  %v13782_v11 = vpop.xlane.xlu0 %6017 }
 0x3bd   : > { %v13784_v34 = vpop.f32.mrb[235].mxu1  ;;  %v7499_v19 = vadd.f32 0.5, %v7243_v55  ;;  %v7244_v2 = vmul.f32 0.5, %v10035_v28  ;;  %v5525_v27 = vmul.f32 %v13324_v50, %v5263_v23  ;;  %10044 = vtanh.f32 %v6737_v4  ;;  %6206 = vadd.xlane.f32.xlu1 %v6205_v35 }
 0x3be   : > { %v10037_v40 = vpop.eup %10036  ;;  %v6738_v41 = vmul.f32 0.5, %v6482_v13  ;;  %v5266_v32 = vmax.f32 %v4864_v0, 0.0  ;;  %v5265_v20 = vmax.f32 %v4859_v33, 0.0  ;;  %v6739_v48 = vmul.f32 0.5, %v6483_v24 }
 0x3bf   : > { %v13787_v59 = vpop.xlane.xlu1 %6020  ;;  %v10039_v6 = vpop.eup %10038  ;;  %7756 = vst.msk [vmem:[%s11576_s12 + $0x438] sm:$0xff] %vm7620_vm4, %v7499_v19  ;;  %v7500_v52 = vadd.f32 0.5, %v7244_v2  ;;  %v7245_v12 = vmul.f32 0.5, %v10037_v40  ;;  %v6208_v22 = vsel %vm5565_vm3, %v5523_v45, 0.0  ;;  %v6484_v50 = vadd.f32 %v13576_v53, %v13700_v38 }
 0x3c0   : > { %v7246_v25 = vmul.f32 0.5, %v10039_v6  ;;  %10046 = vtanh.f32 %v6738_v41  ;;  %v5528_v57 = vmul.f32 %v13797_v16, %v5266_v32  ;;  %v5527_v58 = vmul.f32 %v13797_v16, %v5265_v20  ;;  %6209 = vadd.xlane.f32.xlu0 %v6208_v22  ;;  %v13801_v44 = vpop.f32.mrb[236].mxu1 }
 0x3c1   : > { %7757 = vst.msk [vmem:[%s11576_s12 + $0x440] sm:$0xff] %vm7620_vm4, %v7500_v52  ;;  %v7501_v45 = vadd.f32 0.5, %v7245_v12  ;;  %10048 = vtanh.f32 %v6739_v48  ;;  %v6740_v38 = vmul.f32 0.5, %v6484_v50  ;;  %v4874_v46 = vadd.f32 %v13773_v49, %v13547_v14  ;;  %v13807_v29 = vpop.xlane.xlu0 %6023  ;;  %v13809_v62 = vpop.f32.mrb[237].mxu1 }
 0x3c2   : > { %v7502_v26 = vadd.f32 0.5, %v7246_v25  ;;  %v6211_v21 = vsel %vm5565_vm3, %v13745_v18, 0.0  ;;  %v4869_v42 = vadd.f32 %v13773_v49, %v13557_v31  ;;  %v6485_v5 = vadd.f32 %v13576_v53, %v13714_v56 }
 0x3c3   : > { %v10041_v60 = vpop.eup %10040  ;;  %7758 = vst.msk [vmem:[%s11576_s12 + $0x448] sm:$0xff] %vm7620_vm4, %v7501_v45  ;;  %10050 = vtanh.f32 %v6740_v38  ;;  %v5268_v14 = vmax.f32 %v4874_v46, 0.0  ;;  %6212 = vadd.xlane.f32.xlu1 %v6211_v21  ;;  %v6214_v55 = vsel %vm5565_vm3, %v5525_v27, 0.0  ;;  %v6486_v23 = vadd.f32 %v13576_v53, %v13721_v8  ;;  %v13822_v4 = vpop.xlane.xlu1 %6026 }
 0x3c4   : > { %v10043_v18 = vpop.eup %10042  ;;  %7759 = vst.msk [vmem:[%s11576_s12 + $0x450] sm:$0xff] %vm7620_vm4, %v7502_v26  ;;  %v7247_v31 = vmul.f32 0.5, %v10041_v60  ;;  %v5267_v13 = vmax.f32 %v4869_v42, 0.0  ;;  %v6741_v28 = vmul.f32 0.5, %v6485_v5  ;;  %6215 = vadd.xlane.f32.xlu0 %v6214_v55  ;;  %v4884_v56 = vadd.f32 %v13773_v49, %v13582_v1 }
 0x3c5   : > { %v7248_v0 = vmul.f32 0.5, %v10043_v18  ;;  %v5530_v35 = vmul.f32 %v13797_v16, %v5268_v14  ;;  %v6742_v33 = vmul.f32 0.5, %v6486_v23  ;;  %v6217_v8 = vsel %vm5565_vm3, %v13757_v51, 0.0 }
 0x3c6   : > { %v7503_v24 = vadd.f32 0.5, %v7247_v31  ;;  %v5529_v19 = vmul.f32 %v13797_v16, %v5267_v13  ;;  %10052 = vtanh.f32 %v6741_v28  ;;  %v5270_v2 = vmax.f32 %v4884_v56, 0.0  ;;  %v13832_v27 = vpop.xlane.xlu0 %6029  ;;  %v13834_v40 = vpop.f32.mrb[238].mxu1 }
 0x3c7   : > { %v10045_v41 = vpop.eup %10044  ;;  %v7504_v1 = vadd.f32 0.5, %v7248_v0  ;;  %10054 = vtanh.f32 %v6742_v33  ;;  %6218 = vadd.xlane.f32.xlu1 %v6217_v8  ;;  %v4879_v32 = vadd.f32 %v13773_v49, %v13592_v9  ;;  %v6487_v51 = vadd.f32 %v13576_v53, %v13738_v10  ;;  %v13840_v20 = vpop.f32.mrb[239].mxu1 }
 0x3c8   : > { %7760 = vst.msk [vmem:[%s11576_s12 + $0x458] sm:$0xff] %vm7620_vm4, %v7503_v24  ;;  %v7249_v48 = vmul.f32 0.5, %v10045_v41  ;;  %v13845_v6 = vmul.f32 %v13797_v16, %v5270_v2  ;;  %v6220_v52 = vsel %vm5565_vm3, %v5527_v58, 0.0  ;;  %v6488_v12 = vadd.f32 %v13576_v53, %v13750_v47 }
 0x3c9   : > { %7761 = vst.msk [vmem:[%s11576_s12 + $0x460] sm:$0xff] %vm7620_vm4, %v7504_v1  ;;  %v5269_v22 = vmax.f32 %v4879_v32, 0.0  ;;  %v6743_v9 = vmul.f32 0.5, %v6487_v51  ;;  %6221 = vadd.xlane.f32.xlu0 %v6220_v52  ;;  %v4894_v10 = vadd.f32 %v13773_v49, %v13608_v54  ;;  %v6223_v50 = vsel %vm5565_vm3, %v5528_v57, 0.0  ;;  %v13855_v25 = vpop.xlane.xlu1 %6032 }
 0x3ca   : > { %v10047_v45 = vpop.eup %10046  ;;  %v7505_v38 = vadd.f32 0.5, %v7249_v48  ;;  %v6744_v46 = vmul.f32 0.5, %v6488_v12  ;;  %v4889_v58 = vadd.f32 %v13773_v49, %v13618_v63  ;;  %v6489_v47 = vadd.f32 %v13576_v53, %v13760_v30  ;;  %v13861_v26 = vpop.xlane.xlu0 %6035 }
 0x3cb   : > { %v10049_v21 = vpop.eup %10048  ;;  %v7250_v42 = vmul.f32 0.5, %v10047_v45  ;;  %v5531_v54 = vmul.f32 %v13797_v16, %v5269_v22  ;;  %10056 = vtanh.f32 %v6743_v9  ;;  %v5272_v5 = vmax.f32 %v4894_v10, 0.0  ;;  %6224 = vadd.xlane.f32.xlu1 %v6223_v50  ;;  %v13864_v57 = vpop.f32.mrb[240].mxu1 }
 0x3cc   : > { %7762 = vst.msk [vmem:[%s11576_s12 + $0x468] sm:$0xff] %vm7620_vm4, %v7505_v38  ;;  %v7251_v60 = vmul.f32 0.5, %v10049_v21  ;;  %10058 = vtanh.f32 %v6744_v46  ;;  %v5271_v63 = vmax.f32 %v4889_v58, 0.0  ;;  %v6745_v14 = vmul.f32 0.5, %v6489_v47  ;;  %v13868_v55 = vpop.f32.mrb[241].mxu1 }
 0x3cd   : > { %v10051_v30 = vpop.eup %10050  ;;  %v7506_v23 = vadd.f32 0.5, %v7250_v42  ;;  %v13871_v18 = vmul.f32 %v13797_v16, %v5272_v5  ;;  %v6226_v31 = vsel %vm5565_vm3, %v5529_v19, 0.0  ;;  %v6490_v13 = vadd.f32 %v13576_v53, %v13782_v11  ;;  %v13876_v28 = vpop.xlane.xlu1 %6038 }
 0x3ce   : > { %v7507_v56 = vadd.f32 0.5, %v7251_v60  ;;  %v7252_v0 = vmul.f32 0.5, %v10051_v30  ;;  %v5533_v33 = vmul.f32 %v13797_v16, %v5271_v63  ;;  %10060 = vtanh.f32 %v6745_v14  ;;  %6227 = vadd.xlane.f32.xlu0 %v6226_v31 }
 0x3cf   : > { %7763 = vst.msk [vmem:[%s11576_s12 + $0x470] sm:$0xff] %vm7620_vm4, %v7506_v23  ;;  %v6746_v8 = vmul.f32 0.5, %v6490_v13  ;;  %v4904_v24 = vadd.f32 %v13773_v49, %v13643_v39  ;;  %v6229_v2 = vsel %vm5565_vm3, %v5530_v35, 0.0  ;;  %v4899_v19 = vadd.f32 %v13773_v49, %v13649_v43  ;;  %v13886_v11 = vpop.xlane.xlu0 %6041 }
 0x3d0   : > { %v10053_v41 = vpop.eup %10052  ;;  %7764 = vst.msk [vmem:[%s11576_s12 + $0x478] sm:$0xff] %vm7620_vm4, %v7507_v56  ;;  %v7508_v1 = vadd.f32 0.5, %v7252_v0  ;;  %6230 = vadd.xlane.f32.xlu1 %v6229_v2  ;;  %v6491_v32 = vadd.f32 %v13576_v53, %v13787_v59  ;;  %v6232_v51 = vsel %vm5565_vm3, %v5531_v54, 0.0  ;;  %v6492_v39 = vadd.f32 %v13576_v53, %v13807_v29 }
 0x3d1   : > { %v10055_v35 = vpop.eup %10054  ;;  %v7253_v48 = vmul.f32 0.5, %v10053_v41  ;;  %10062 = vtanh.f32 %v6746_v8  ;;  %v5274_v43 = vmax.f32 %v4904_v24, 0.0  ;;  %v5273_v52 = vmax.f32 %v4899_v19, 0.0  ;;  %v13895_v12 = vpop.xlane.xlu1 %6044 }
 0x3d2   : > { %v13897_v22 = vpop.f32.mrb[242].mxu1  ;;  %7765 = vst.msk [vmem:[%s11576_s12 + $0x480] sm:$0xff] %vm7620_vm4, %v7508_v1  ;;  %v7254_v9 = vmul.f32 0.5, %v10055_v35  ;;  %v6747_v10 = vmul.f32 0.5, %v6491_v32  ;;  %6233 = vadd.xlane.f32.xlu0 %v6232_v51  ;;  %v6748_v59 = vmul.f32 0.5, %v6492_v39  ;;  %v4914_v50 = vadd.f32 %v13773_v49, %v13671_v7 }
 0x3d3   : > { %v13903_v29 = vpop.f32.mrb[243].mxu1  ;;  %v7509_v45 = vadd.f32 0.5, %v7253_v48  ;;  %v5536_v38 = vmul.f32 %v13797_v16, %v5274_v43  ;;  %v5535_v46 = vmul.f32 %v13797_v16, %v5273_v52  ;;  %v6235_v58 = vsel %vm5565_vm3, %v13845_v6, 0.0 }
 0x3d4   : > { %v7510_v47 = vadd.f32 0.5, %v7254_v9  ;;  %10064 = vtanh.f32 %v6747_v10  ;;  %v5276_v21 = vmax.f32 %v4914_v50, 0.0  ;;  %6236 = vadd.xlane.f32.xlu1 %v6235_v58  ;;  %v4909_v42 = vadd.f32 %v13773_v49, %v13678_v17  ;;  %v13911_v54 = vpop.xlane.xlu0 %6047 }
 0x3d5   : > { %v10057_v7 = vpop.eup %10056  ;;  %7766 = vst.msk [vmem:[%s11576_s12 + $0x488] sm:$0xff] %vm7620_vm4, %v7509_v45  ;;  %10066 = vtanh.f32 %v6748_v59  ;;  %v6493_v5 = vadd.f32 %v13576_v53, %v13822_v4  ;;  %v6238_v60 = vsel %vm5565_vm3, %v5533_v33, 0.0  ;;  %v6494_v6 = vadd.f32 %v13576_v53, %v13832_v27 }
 0x3d6   : > { %v10059_v63 = vpop.eup %10058  ;;  %7767 = vst.msk [vmem:[%s11576_s12 + $0x490] sm:$0xff] %vm7620_vm4, %v7510_v47  ;;  %v7255_v14 = vmul.f32 0.5, %v10057_v7  ;;  %v13923_v17 = vmul.f32 %v13797_v16, %v5276_v21  ;;  %v5275_v30 = vmax.f32 %v4909_v42, 0.0  ;;  %6239 = vadd.xlane.f32.xlu0 %v6238_v60  ;;  %v4924_v23 = vadd.f32 %v13773_v49, %v13706_v36  ;;  %v13927_v31 = vpop.xlane.xlu1 %6050 }
 0x3d7   : > { %v13929_v4 = vpop.f32.mrb[244].mxu1  ;;  %v7256_v13 = vmul.f32 0.5, %v10059_v63  ;;  %v6749_v56 = vmul.f32 0.5, %v6493_v5  ;;  %v6750_v27 = vmul.f32 0.5, %v6494_v6  ;;  %v6241_v0 = vsel %vm5565_vm3, %v13871_v18, 0.0 }
 0x3d8   : > { %v13933_v33 = vpop.f32.mrb[245].mxu1  ;;  %v10061_v8 = vpop.eup %10060  ;;  %v7511_v24 = vadd.f32 0.5, %v7255_v14  ;;  %v5537_v2 = vmul.f32 %v13797_v16, %v5275_v30  ;;  %v5278_v19 = vmax.f32 %v4924_v23, 0.0  ;;  %6242 = vadd.xlane.f32.xlu1 %v6241_v0  ;;  %v4919_v36 = vadd.f32 %v13773_v49, %v13711_v15 }
 0x3d9   : > { %v13938_v41 = vpop.xlane.xlu0 %6053  ;;  %v7512_v1 = vadd.f32 0.5, %v7256_v13  ;;  %v7257_v32 = vmul.f32 0.5, %v10061_v8  ;;  %10068 = vtanh.f32 %v6749_v56  ;;  %v6495_v18 = vadd.f32 %v13576_v53, %v13855_v25 }
 0x3da   : > { %7768 = vst.msk [vmem:[%s11576_s12 + $0x498] sm:$0xff] %vm7620_vm4, %v7511_v24  ;;  %10070 = vtanh.f32 %v6750_v27  ;;  %v13945_v51 = vmul.f32 %v13797_v16, %v5278_v19  ;;  %v5277_v39 = vmax.f32 %v4919_v36, 0.0  ;;  %v6244_v35 = vsel %vm5565_vm3, %v5535_v46, 0.0  ;;  %v13948_v48 = vpop.xlane.xlu1 %6056 }
 0x3db   : > { %v10063_v15 = vpop.eup %10062  ;;  %7769 = vst.msk [vmem:[%s11576_s12 + $0x4a0] sm:$0xff] %vm7620_vm4, %v7512_v1  ;;  %v7513_v43 = vadd.f32 0.5, %v7257_v32  ;;  %v6751_v52 = vmul.f32 0.5, %v6495_v18  ;;  %6245 = vadd.xlane.f32.xlu0 %v6244_v35  ;;  %v6496_v25 = vadd.f32 %v13576_v53, %v13861_v26  ;;  %v4934_v9 = vadd.f32 %v13773_v49, %v13729_v3 }
 0x3dc   : > { %v7258_v10 = vmul.f32 0.5, %v10063_v15  ;;  %v5539_v59 = vmul.f32 %v13797_v16, %v5277_v39  ;;  %v6247_v50 = vsel %vm5565_vm3, %v5536_v38, 0.0  ;;  %v4929_v45 = vadd.f32 %v13773_v49, %v13740_v37  ;;  %v13962_v58 = vpop.f32.mrb[246].mxu1 }
 0x3dd   : > { %v13960_v46 = vpop.xlane.xlu0 %6059  ;;  %7770 = vst.msk [vmem:[%s11576_s12 + $0x4a8] sm:$0xff] %vm7620_vm4, %v7513_v43  ;;  %10072 = vtanh.f32 %v6751_v52  ;;  %v6752_v47 = vmul.f32 0.5, %v6496_v25  ;;  %v5280_v26 = vmax.f32 %v4934_v9, 0.0  ;;  %6248 = vadd.xlane.f32.xlu1 %v6247_v50  ;;  %v6497_v3 = vadd.f32 %v13576_v53, %v13876_v28  ;;  %v13968_v21 = vpop.f32.mrb[247].mxu1 }
 0x3de   : > { %v10065_v38 = vpop.eup %10064  ;;  %v7514_v42 = vadd.f32 0.5, %v7258_v10  ;;  %v5279_v7 = vmax.f32 %v4929_v45, 0.0  ;;  %v6250_v37 = vsel %vm5565_vm3, %v5537_v2, 0.0  ;;  %v6498_v5 = vadd.f32 %v13576_v53, %v13886_v11  ;;  %v13973_v60 = vpop.xlane.xlu1 %6062 }
 0x3df   : > { %v10067_v6 = vpop.eup %10066  ;;  %v7259_v63 = vmul.f32 0.5, %v10065_v38  ;;  %10074 = vtanh.f32 %v6752_v47  ;;  %v5542_v14 = vmul.f32 %v13797_v16, %v5280_v26  ;;  %v6753_v30 = vmul.f32 0.5, %v6497_v3  ;;  %6251 = vadd.xlane.f32.xlu0 %v6250_v37 }
 0x3e0   : > { %7771 = vst.msk [vmem:[%s11576_s12 + $0x4b0] sm:$0xff] %vm7620_vm4, %v7514_v42  ;;  %v7260_v28 = vmul.f32 0.5, %v10067_v6  ;;  %v5541_v23 = vmul.f32 %v13797_v16, %v5279_v7  ;;  %v6754_v13 = vmul.f32 0.5, %v6498_v5  ;;  %v4944_v56 = vadd.f32 %v13773_v49, %v13766_v61 }
 0x3e1   : > { %v7515_v11 = vadd.f32 0.5, %v7259_v63  ;;  %10076 = vtanh.f32 %v6753_v30  ;;  %v6253_v27 = vsel %vm5565_vm3, %v13923_v17, 0.0  ;;  %v4939_v0 = vadd.f32 %v13773_v49, %v13784_v34  ;;  %v13985_v8 = vpop.xlane.xlu0 %6065  ;;  %v13987_v24 = vpop.f32.mrb[248].mxu1 }
 0x3e2   : > { %v7516_v2 = vadd.f32 0.5, %v7260_v28  ;;  %10078 = vtanh.f32 %v6754_v13  ;;  %v5282_v19 = vmax.f32 %v4944_v56, 0.0  ;;  %6254 = vadd.xlane.f32.xlu1 %v6253_v27  ;;  %v6499_v61 = vadd.f32 %v13576_v53, %v13895_v12  ;;  %v13991_v36 = vpop.f32.mrb[249].mxu1 }
 0x3e3   : > { %v10069_v1 = vpop.eup %10068  ;;  %7772 = vst.msk [vmem:[%s11576_s12 + $0x4b8] sm:$0xff] %vm7620_vm4, %v7515_v11  ;;  %v5281_v17 = vmax.f32 %v4939_v0, 0.0  ;;  %v6256_v34 = vsel %vm5565_vm3, %v5539_v59, 0.0  ;;  %v6500_v32 = vadd.f32 %v13576_v53, %v13911_v54  ;;  %v4954_v18 = vadd.f32 %v13773_v49, %v13801_v44  ;;  %v14000_v39 = vpop.xlane.xlu1 %6068 }
 0x3e4   : > { %v10071_v35 = vpop.eup %10070  ;;  %7773 = vst.msk [vmem:[%s11576_s12 + $0x4c0] sm:$0xff] %vm7620_vm4, %v7516_v2  ;;  %v7261_v12 = vmul.f32 0.5, %v10069_v1  ;;  %v14005_v15 = vmul.f32 %v13797_v16, %v5282_v19  ;;  %v6755_v43 = vmul.f32 0.5, %v6499_v61  ;;  %6257 = vadd.xlane.f32.xlu0 %v6256_v34  ;;  %v6259_v52 = vsel %vm5565_vm3, %v13945_v51, 0.0 }
 0x3e5   : > { %v7262_v25 = vmul.f32 0.5, %v10071_v35  ;;  %v5543_v54 = vmul.f32 %v13797_v16, %v5281_v17  ;;  %v6756_v9 = vmul.f32 0.5, %v6500_v32  ;;  %v5284_v44 = vmax.f32 %v4954_v18, 0.0  ;;  %v14010_v10 = vpop.xlane.xlu0 %6071 }
 0x3e6   : > { %v7517_v59 = vadd.f32 0.5, %v7261_v12  ;;  %10080 = vtanh.f32 %v6755_v43  ;;  %6260 = vadd.xlane.f32.xlu1 %v6259_v52  ;;  %v4949_v50 = vadd.f32 %v13773_v49, %v13809_v62  ;;  %v6501_v45 = vadd.f32 %v13576_v53, %v13927_v31 }
 0x3e7   : > { %v10073_v47 = vpop.eup %10072  ;;  %v7518_v51 = vadd.f32 0.5, %v7262_v25  ;;  %10082 = vtanh.f32 %v6756_v9  ;;  %v14017_v26 = vmul.f32 %v13797_v16, %v5284_v44  ;;  %v6262_v3 = vsel %vm5565_vm3, %v5541_v23, 0.0  ;;  %v14020_v38 = vpop.f32.mrb[250].mxu1  ;;  %v14065_v44 = vld [vmem:[#allocation2] ss:$0 sm:$0xff] }
 0x3e8   : > { %7774 = vst.msk [vmem:[%s11576_s12 + $0x4c8] sm:$0xff] %vm7620_vm4, %v7517_v59  ;;  %v7263_v42 = vmul.f32 0.5, %v10073_v47  ;;  %v5283_v7 = vmax.f32 %v4949_v50, 0.0  ;;  %v6757_v37 = vmul.f32 0.5, %v6501_v45  ;;  %6263 = vadd.xlane.f32.xlu0 %v6262_v3  ;;  %v6502_v62 = vadd.f32 %v13576_v53, %v13938_v41  ;;  %v14026_v31 = vpop.xlane.xlu1 %6074  ;;  %v14028_v5 = vpop.f32.mrb[251].mxu1 }
 0x3e9   : > { %v10075_v6 = vpop.eup %10074  ;;  %7775 = vst.msk [vmem:[%s11576_s12 + $0x4d0] sm:$0xff] %vm7620_vm4, %v7518_v51  ;;  %v4964_v63 = vadd.f32 %v13773_v49, %v13834_v40  ;;  %v6265_v30 = vsel %vm5565_vm3, %v5542_v14, 0.0  ;;  %v4959_v28 = vadd.f32 %v13773_v49, %v13840_v20  ;;  %v6503_v23 = vadd.f32 %v13576_v53, %v13948_v48 }
 0x3ea   : > { %v7519_v41 = vadd.f32 0.5, %v7263_v42  ;;  %v7264_v13 = vmul.f32 0.5, %v10075_v6  ;;  %v5545_v56 = vmul.f32 %v13797_v16, %v5283_v7  ;;  %10084 = vtanh.f32 %v6757_v37  ;;  %6266 = vadd.xlane.f32.xlu1 %v6265_v30  ;;  %v14040_v11 = vpop.xlane.xlu0 %6077 }
 0x3eb   : > { %v10077_v27 = vpop.eup %10076  ;;  %v6758_v0 = vmul.f32 0.5, %v6502_v62  ;;  %v5286_v40 = vmax.f32 %v4964_v63, 0.0  ;;  %v5285_v2 = vmax.f32 %v4959_v28, 0.0  ;;  %v6759_v14 = vmul.f32 0.5, %v6503_v23 }
 0x3ec   : > { %v10079_v19 = vpop.eup %10078  ;;  %7776 = vst.msk [vmem:[%s11576_s12 + $0x4d8] sm:$0xff] %vm7620_vm4, %v7519_v41  ;;  %v7520_v20 = vadd.f32 0.5, %v7264_v13  ;;  %v7265_v61 = vmul.f32 0.5, %v10077_v27  ;;  %v6268_v48 = vsel %vm5565_vm3, %v5543_v54, 0.0  ;;  %v6504_v1 = vadd.f32 %v13576_v53, %v13960_v46  ;;  %v14047_v17 = vpop.xlane.xlu1 %6080 }
 0x3ed   : > { %v14049_v34 = vpop.f32.mrb[252].mxu1  ;;  %v7266_v32 = vmul.f32 0.5, %v10079_v19  ;;  %10086 = vtanh.f32 %v6758_v0  ;;  %v5548_v18 = vmul.f32 %v13797_v16, %v5286_v40  ;;  %v5547_v35 = vmul.f32 %v13797_v16, %v5285_v2  ;;  %6269 = vadd.xlane.f32.xlu0 %v6268_v48 }
 0x3ee   : > { %v14053_v12 = vpop.f32.mrb[253].mxu1  ;;  %7777 = vst.msk [vmem:[%s11576_s12 + $0x4e0] sm:$0xff] %vm7620_vm4, %v7520_v20  ;;  %v7521_v43 = vadd.f32 0.5, %v7265_v61  ;;  %10088 = vtanh.f32 %v6759_v14  ;;  %v6760_v52 = vmul.f32 0.5, %v6504_v1  ;;  %v4974_v53 = vadd.f32 %v13773_v49, %v13864_v57  ;;  %v14059_v46 = vpop.xlane.xlu0 %6083 }
 0x3ef   : > { %v7522_v25 = vadd.f32 0.5, %v7266_v32  ;;  %v6271_v54 = vsel %vm5565_vm3, %v14005_v15, 0.0  ;;  %v4969_v9 = vadd.f32 %v13773_v49, %v13868_v55  ;;  %v6505_v59 = vadd.f32 %v14065_v44, %v13973_v60 }
 0x3f0   : > { %v10081_v50 = vpop.eup %10080  ;;  %7778 = vst.msk [vmem:[%s11576_s12 + $0x4e8] sm:$0xff] %vm7620_vm4, %v7521_v43  ;;  %10090 = vtanh.f32 %v6760_v52  ;;  %v5288_v57 = vmax.f32 %v4974_v53, 0.0  ;;  %6272 = vadd.xlane.f32.xlu1 %v6271_v54  ;;  %v6274_v45 = vsel %vm5565_vm3, %v5545_v56, 0.0  ;;  %v6506_v47 = vadd.f32 %v14065_v44, %v13985_v8  ;;  %v14074_v15 = vpop.xlane.xlu1 %6086 }
 0x3f1   : > { %v10083_v51 = vpop.eup %10082  ;;  %7779 = vst.msk [vmem:[%s11576_s12 + $0x4f0] sm:$0xff] %vm7620_vm4, %v7522_v25  ;;  %v7267_v55 = vmul.f32 0.5, %v10081_v50  ;;  %v5287_v3 = vmax.f32 %v4969_v9, 0.0  ;;  %v6761_v42 = vmul.f32 0.5, %v6505_v59  ;;  %6275 = vadd.xlane.f32.xlu0 %v6274_v45  ;;  %v4984_v60 = vadd.f32 %v13773_v49, %v13897_v22 }
 0x3f2   : > { %v7268_v7 = vmul.f32 0.5, %v10083_v51  ;;  %v5550_v37 = vmul.f32 %v13797_v16, %v5288_v57  ;;  %v6762_v62 = vmul.f32 0.5, %v6506_v47  ;;  %v6277_v8 = vsel %vm5565_vm3, %v14017_v26, 0.0  ;;  %v14083_v6 = vpop.f32.mrb[254].mxu1 }
 0x3f3   : > { %v7523_v63 = vadd.f32 0.5, %v7267_v55  ;;  %v5549_v30 = vmul.f32 %v13797_v16, %v5287_v3  ;;  %10092 = vtanh.f32 %v6761_v42  ;;  %v5290_v28 = vmax.f32 %v4984_v60, 0.0  ;;  %v14086_v23 = vpop.xlane.xlu0 %6089  ;;  %v14088_v41 = vpop.f32.mrb[255].mxu1 }
 0x3f4   : > { %v10085_v22 = vpop.eup %10084  ;;  %v7524_v13 = vadd.f32 0.5, %v7268_v7  ;;  %10094 = vtanh.f32 %v6762_v62  ;;  %6278 = vadd.xlane.f32.xlu1 %v6277_v8  ;;  %v4979_v56 = vadd.f32 %v13773_v49, %v13903_v29  ;;  %v6507_v26 = vadd.f32 %v14065_v44, %v14000_v39 }
 0x3f5   : > { %7780 = vst.msk [vmem:[%s11576_s12 + $0x4f8] sm:$0xff] %vm7620_vm4, %v7523_v63  ;;  %v7269_v27 = vmul.f32 0.5, %v10085_v22  ;;  %v14097_v0 = vmul.f32 %v13797_v16, %v5290_v28  ;;  %v6280_v40 = vsel %vm5565_vm3, %v5547_v35, 0.0  ;;  %v6508_v2 = vadd.f32 %v14065_v44, %v14010_v10 }
 0x3f6   : > { %7781 = vst.msk [vmem:[%s11576_s12 + $0x500] sm:$0xff] %vm7620_vm4, %v7524_v13  ;;  %v5289_v14 = vmax.f32 %v4979_v56, 0.0  ;;  %v6763_v19 = vmul.f32 0.5, %v6507_v26  ;;  %6281 = vadd.xlane.f32.xlu0 %v6280_v40  ;;  %v4994_v29 = vadd.f32 %v13773_v49, %v13929_v4  ;;  %v6283_v39 = vsel %vm5565_vm3, %v5548_v18, 0.0  ;;  %v14107_v20 = vpop.xlane.xlu1 %6092 }
 0x3f7   : > { %v10087_v61 = vpop.eup %10086  ;;  %v7525_v48 = vadd.f32 0.5, %v7269_v27  ;;  %v6764_v1 = vmul.f32 0.5, %v6508_v2  ;;  %v4989_v32 = vadd.f32 %v13773_v49, %v13933_v33  ;;  %v6509_v10 = vadd.f32 %v14065_v44, %v14026_v31  ;;  %v14113_v35 = vpop.xlane.xlu0 %6095 }
 0x3f8   : > { %v10089_v43 = vpop.eup %10088  ;;  %v7270_v52 = vmul.f32 0.5, %v10087_v61  ;;  %v5551_v53 = vmul.f32 %v13797_v16, %v5289_v14  ;;  %10096 = vtanh.f32 %v6763_v19  ;;  %v5292_v4 = vmax.f32 %v4994_v29, 0.0  ;;  %6284 = vadd.xlane.f32.xlu1 %v6283_v39 }
 0x3f9   : > { %7782 = vst.msk [vmem:[%s11576_s12 + $0x508] sm:$0xff] %vm7620_vm4, %v7525_v48  ;;  %v7271_v18 = vmul.f32 0.5, %v10089_v43  ;;  %10098 = vtanh.f32 %v6764_v1  ;;  %v5291_v25 = vmax.f32 %v4989_v32, 0.0  ;;  %v6765_v54 = vmul.f32 0.5, %v6509_v10 }
 0x3fa   : > { %v10091_v33 = vpop.eup %10090  ;;  %v7526_v9 = vadd.f32 0.5, %v7270_v52  ;;  %v5554_v31 = vmul.f32 %v13797_v16, %v5292_v4  ;;  %v6286_v59 = vsel %vm5565_vm3, %v5549_v30, 0.0  ;;  %v6510_v50 = vadd.f32 %v14065_v44, %v14040_v11  ;;  %v14122_v57 = vpop.xlane.xlu1 %6098 }
 0x3fb   : > { %v7527_v45 = vadd.f32 0.5, %v7271_v18  ;;  %v7272_v47 = vmul.f32 0.5, %v10091_v33  ;;  %v5553_v51 = vmul.f32 %v13797_v16, %v5291_v25  ;;  %10100 = vtanh.f32 %v6765_v54  ;;  %6287 = vadd.xlane.f32.xlu0 %v6286_v59 }
 0x3fc   : > { %7783 = vst.msk [vmem:[%s11576_s12 + $0x510] sm:$0xff] %vm7620_vm4, %v7526_v9  ;;  %v6766_v55 = vmul.f32 0.5, %v6510_v50  ;;  %v5004_v3 = vadd.f32 %v13773_v49, %v13962_v58  ;;  %v6289_v42 = vsel %vm5565_vm3, %v5550_v37, 0.0  ;;  %v4999_v11 = vadd.f32 %v13773_v49, %v13968_v21  ;;  %v14132_v60 = vpop.xlane.xlu0 %6101 }
 0x3fd   : > { %v10093_v7 = vpop.eup %10092  ;;  %7784 = vst.msk [vmem:[%s11576_s12 + $0x518] sm:$0xff] %vm7620_vm4, %v7527_v45  ;;  %v7528_v62 = vadd.f32 0.5, %v7272_v47  ;;  %6290 = vadd.xlane.f32.xlu1 %v6289_v42  ;;  %v6511_v8 = vadd.f32 %v14065_v44, %v14047_v17  ;;  %v6292_v63 = vsel %vm5565_vm3, %v5551_v53, 0.0  ;;  %v6512_v58 = vadd.f32 %v14065_v44, %v14059_v46 }
 0x3fe   : > { %v10095_v37 = vpop.eup %10094  ;;  %v7273_v30 = vmul.f32 0.5, %v10093_v7  ;;  %10102 = vtanh.f32 %v6766_v55  ;;  %v5294_v28 = vmax.f32 %v5004_v3, 0.0  ;;  %v5293_v21 = vmax.f32 %v4999_v11, 0.0  ;;  %v14141_v22 = vpop.xlane.xlu1 %6104 }
 0x3ff   : > { %7785 = vst.msk [vmem:[%s11576_s12 + $0x520] sm:$0xff] %vm7620_vm4, %v7528_v62  ;;  %v7274_v13 = vmul.f32 0.5, %v10095_v37  ;;  %v6767_v56 = vmul.f32 0.5, %v6511_v8  ;;  %6293 = vadd.xlane.f32.xlu0 %v6292_v63  ;;  %v6768_v26 = vmul.f32 0.5, %v6512_v58  ;;  %v5014_v17 = vadd.f32 %v13773_v49, %v13987_v24 }
 0x400   : > { %v7529_v27 = vadd.f32 0.5, %v7273_v30  ;;  %v5556_v46 = vmul.f32 %v13797_v16, %v5294_v28  ;;  %v5555_v40 = vmul.f32 %v13797_v16, %v5293_v21  ;;  %v6295_v2 = vsel %vm5565_vm3, %v14097_v0, 0.0 }
 0x401   : > { %v7530_v14 = vadd.f32 0.5, %v7274_v13  ;;  %10104 = vtanh.f32 %v6767_v56  ;;  %v5296_v19 = vmax.f32 %v5014_v17, 0.0  ;;  %6296 = vadd.xlane.f32.xlu1 %v6295_v2  ;;  %v5009_v29 = vadd.f32 %v13773_v49, %v13991_v36  ;;  %v14153_v39 = vpop.xlane.xlu0 %6107 }
 0x402   : > { %v10097_v61 = vpop.eup %10096  ;;  %7786 = vst.msk [vmem:[%s11576_s12 + $0x528] sm:$0xff] %vm7620_vm4, %v7529_v27  ;;  %10106 = vtanh.f32 %v6768_v26  ;;  %v6513_v24 = vadd.f32 %v14065_v44, %v14074_v15  ;;  %v6298_v48 = vsel %vm5565_vm3, %v5553_v51, 0.0  ;;  %v6514_v0 = vadd.f32 %v14065_v44, %v14086_v23 }
 0x403   : > { %v10099_v1 = vpop.eup %10098  ;;  %7787 = vst.msk [vmem:[%s11576_s12 + $0x530] sm:$0xff] %vm7620_vm4, %v7530_v14  ;;  %v7275_v32 = vmul.f32 0.5, %v10097_v61  ;;  %v14165_v36 = vmul.f32 %v13797_v16, %v5296_v19  ;;  %v5295_v10 = vmax.f32 %v5009_v29, 0.0  ;;  %6299 = vadd.xlane.f32.xlu0 %v6298_v48  ;;  %v5024_v43 = vadd.f32 %v13773_v49, %v14020_v38  ;;  %v14169_v52 = vpop.xlane.xlu1 %6110 }
 0x404   : > { %v7276_v15 = vmul.f32 0.5, %v10099_v1  ;;  %v6769_v53 = vmul.f32 0.5, %v6513_v24  ;;  %v6770_v4 = vmul.f32 0.5, %v6514_v0  ;;  %v6301_v23 = vsel %vm5565_vm3, %v5554_v31, 0.0 }
 0x405   : > { %v10101_v18 = vpop.eup %10100  ;;  %v7531_v25 = vadd.f32 0.5, %v7275_v32  ;;  %v5557_v54 = vmul.f32 %v13797_v16, %v5295_v10  ;;  %v5298_v33 = vmax.f32 %v5024_v43, 0.0  ;;  %6302 = vadd.xlane.f32.xlu1 %v6301_v23  ;;  %v5019_v9 = vadd.f32 %v13773_v49, %v14028_v5  ;;  %v14175_v59 = vpop.xlane.xlu0 %6113 }
 0x406   : > { %v7532_v38 = vadd.f32 0.5, %v7276_v15  ;;  %v7277_v50 = vmul.f32 0.5, %v10101_v18  ;;  %10108 = vtanh.f32 %v6769_v53  ;;  %v6515_v45 = vadd.f32 %v14065_v44, %v14107_v20 }
 0x407   : > { %7788 = vst.msk [vmem:[%s11576_s12 + $0x538] sm:$0xff] %vm7620_vm4, %v7531_v25  ;;  %10110 = vtanh.f32 %v6770_v4  ;;  %v5560_v31 = vmul.f32 %v13797_v16, %v5298_v33  ;;  %v5297_v47 = vmax.f32 %v5019_v9, 0.0  ;;  %v6304_v51 = vsel %vm5565_vm3, %v5555_v40, 0.0  ;;  %v14183_v55 = vpop.xlane.xlu1 %6116 }
 0x408   : > { %v10103_v5 = vpop.eup %10102  ;;  %7789 = vst.msk [vmem:[%s11576_s12 + $0x540] sm:$0xff] %vm7620_vm4, %v7532_v38  ;;  %v7533_v3 = vadd.f32 0.5, %v7277_v50  ;;  %v6771_v42 = vmul.f32 0.5, %v6515_v45  ;;  %6305 = vadd.xlane.f32.xlu0 %v6304_v51  ;;  %v6516_v20 = vadd.f32 %v14065_v44, %v14113_v35  ;;  %v5034_v11 = vadd.f32 %v13773_v49, %v14049_v34 }
 0x409   : > { %v7278_v7 = vmul.f32 0.5, %v10103_v5  ;;  %v5559_v62 = vmul.f32 %v13797_v16, %v5297_v47  ;;  %v6307_v8 = vsel %vm5565_vm3, %v5556_v46, 0.0  ;;  %v5029_v63 = vadd.f32 %v13773_v49, %v14053_v12  ;;  %v14195_v58 = vpop.xlane.xlu0 %6119 }
 0x40a   : > { %7790 = vst.msk [vmem:[%s11576_s12 + $0x548] sm:$0xff] %vm7620_vm4, %v7533_v3  ;;  %10112 = vtanh.f32 %v6771_v42  ;;  %v6772_v37 = vmul.f32 0.5, %v6516_v20  ;;  %v5300_v30 = vmax.f32 %v5034_v11, 0.0  ;;  %6308 = vadd.xlane.f32.xlu1 %v6307_v8  ;;  %v6517_v34 = vadd.f32 %v14065_v44, %v14122_v57 }
 0x40b   : > { %v10105_v35 = vpop.eup %10104  ;;  %v7534_v28 = vadd.f32 0.5, %v7278_v7  ;;  %v5299_v21 = vmax.f32 %v5029_v63, 0.0  ;;  %v6310_v13 = vsel %vm5565_vm3, %v5557_v54, 0.0  ;;  %v6518_v12 = vadd.f32 %v14065_v44, %v14132_v60  ;;  %v14204_v56 = vpop.xlane.xlu1 %6122 }
 0x40c   : > { %v10107_v26 = vpop.eup %10106  ;;  %v7279_v17 = vmul.f32 0.5, %v10105_v35  ;;  %10114 = vtanh.f32 %v6772_v37  ;;  %v5562_v27 = vmul.f32 %v13797_v16, %v5300_v30  ;;  %v6773_v46 = vmul.f32 0.5, %v6517_v34  ;;  %6311 = vadd.xlane.f32.xlu0 %v6310_v13 }
 0x40d   : > { %7791 = vst.msk [vmem:[%s11576_s12 + $0x550] sm:$0xff] %vm7620_vm4, %v7534_v28  ;;  %v7280_v57 = vmul.f32 0.5, %v10107_v26  ;;  %v5561_v40 = vmul.f32 %v13797_v16, %v5299_v21  ;;  %v6774_v2 = vmul.f32 0.5, %v6518_v12  ;;  %v5044_v14 = vadd.f32 %v13773_v49, %v14083_v6 }
 0x40e   : > { %v7535_v60 = vadd.f32 0.5, %v7279_v17  ;;  %10116 = vtanh.f32 %v6773_v46  ;;  %v6313_v19 = vsel %vm5565_vm3, %v14165_v36, 0.0  ;;  %v5039_v29 = vadd.f32 %v13773_v49, %v14088_v41  ;;  %v6126_v61 = vpop.xlane.xlu0 %6125 }
 0x40f   : > { %v7536_v24 = vadd.f32 0.5, %v7280_v57  ;;  %10118 = vtanh.f32 %v6774_v2  ;;  %v5302_v48 = vmax.f32 %v5044_v14, 0.0  ;;  %6314 = vadd.xlane.f32.xlu1 %v6313_v19  ;;  %v6519_v0 = vadd.f32 %v14065_v44, %v14141_v22 }
 0x410   : > { %v10109_v1 = vpop.eup %10108  ;;  %7792 = vst.msk [vmem:[%s11576_s12 + $0x558] sm:$0xff] %vm7620_vm4, %v7535_v60  ;;  %v5301_v6 = vmax.f32 %v5039_v29, 0.0  ;;  %v6316_v32 = vsel %vm5565_vm3, %v5559_v62, 0.0  ;;  %v6520_v36 = vadd.f32 %v14065_v44, %v14153_v39  ;;  %v6319_v10 = vsel %vm5565_vm3, %v5560_v31, 0.0  ;;  %v6129_v49 = vpop.xlane.xlu1 %6128 }
 0x411   : > { %v10111_v41 = vpop.eup %10110  ;;  %7793 = vst.msk [vmem:[%s11576_s12 + $0x560] sm:$0xff] %vm7620_vm4, %v7536_v24  ;;  %v7281_v43 = vmul.f32 0.5, %v10109_v1  ;;  %v5564_v15 = vmul.f32 %v13797_v16, %v5302_v48  ;;  %v6775_v53 = vmul.f32 0.5, %v6519_v0  ;;  %6317 = vadd.xlane.f32.xlu0 %v6316_v32  ;;  %v6521_v22 = vadd.f32 %v14065_v44, %v14169_v52 }
 0x412   : > { %v7282_v4 = vmul.f32 0.5, %v10111_v41  ;;  %v5563_v23 = vmul.f32 %v13797_v16, %v5301_v6  ;;  %v6776_v18 = vmul.f32 0.5, %v6520_v36  ;;  %v6322_v39 = vsel %vm5565_vm3, %v5561_v40, 0.0  ;;  %v6132_v25 = vpop.xlane.xlu0 %6131 }
 0x413   : > { %v7537_v54 = vadd.f32 0.5, %v7281_v43  ;;  %10120 = vtanh.f32 %v6775_v53  ;;  %6320 = vadd.xlane.f32.xlu1 %v6319_v10  ;;  %v6777_v33 = vmul.f32 0.5, %v6521_v22  ;;  %v6522_v9 = vadd.f32 %v14065_v44, %v14175_v59 }
 0x414   : > { %v10113_v38 = vpop.eup %10112  ;;  %v7538_v50 = vadd.f32 0.5, %v7282_v4  ;;  %10122 = vtanh.f32 %v6776_v18  ;;  %v6325_v52 = vsel %vm5565_vm3, %v5562_v27, 0.0  ;;  %v6523_v16 = vadd.f32 %v14065_v44, %v14183_v55 }
 0x415   : > { %7794 = vst.msk [vmem:[%s11576_s12 + $0x568] sm:$0xff] %vm7620_vm4, %v7537_v54  ;;  %v7283_v45 = vmul.f32 0.5, %v10113_v38  ;;  %10124 = vtanh.f32 %v6777_v33  ;;  %6323 = vadd.xlane.f32.xlu0 %v6322_v39  ;;  %v6778_v31 = vmul.f32 0.5, %v6522_v9  ;;  %v6328_v47 = vsel %vm5565_vm3, %v5563_v23, 0.0  ;;  %v6135_v51 = vpop.xlane.xlu1 %6134 }
 0x416   : > { %v10115_v5 = vpop.eup %10114  ;;  %7795 = vst.msk [vmem:[%s11576_s12 + $0x570] sm:$0xff] %vm7620_vm4, %v7538_v50  ;;  %v6779_v59 = vmul.f32 0.5, %v6523_v16  ;;  %v6524_v3 = vadd.f32 %v14065_v44, %v14195_v58  ;;  %v6331_v42 = vsel %vm5565_vm3, %v5564_v15, 0.0  ;;  %v6525_v55 = vadd.f32 %v14065_v44, %v14204_v56 }
 0x417   : > { %v7539_v20 = vadd.f32 0.5, %v7283_v45  ;;  %v7284_v11 = vmul.f32 0.5, %v10115_v5  ;;  %10126 = vtanh.f32 %v6778_v31  ;;  %6326 = vadd.xlane.f32.xlu1 %v6325_v52  ;;  %v6526_v7 = vadd.f32 %v14065_v44, %v6126_v61  ;;  %v6138_v62 = vpop.xlane.xlu0 %6137 }
 0x418   : > { %v10117_v8 = vpop.eup %10116  ;;  %10128 = vtanh.f32 %v6779_v59  ;;  %v6780_v63 = vmul.f32 0.5, %v6524_v3  ;;  %v6781_v37 = vmul.f32 0.5, %v6525_v55  ;;  %v6527_v30 = vadd.f32 %v14065_v44, %v6129_v49 }
 0x419   : > { %v10119_v58 = vpop.eup %10118  ;;  %7796 = vst.msk [vmem:[%s11576_s12 + $0x578] sm:$0xff] %vm7620_vm4, %v7539_v20  ;;  %v7540_v34 = vadd.f32 0.5, %v7284_v11  ;;  %v7285_v35 = vmul.f32 0.5, %v10117_v8  ;;  %6329 = vadd.xlane.f32.xlu0 %v6328_v47  ;;  %v6782_v28 = vmul.f32 0.5, %v6526_v7  ;;  %v6528_v21 = vadd.f32 %v14065_v44, %v6132_v25  ;;  %v6141_v13 = vpop.xlane.xlu1 %6140 }
 0x41a   : > { %v7286_v12 = vmul.f32 0.5, %v10119_v58  ;;  %10130 = vtanh.f32 %v6780_v63  ;;  %v6783_v56 = vmul.f32 0.5, %v6527_v30  ;;  %v6529_v26 = vadd.f32 %v14065_v44, %v6135_v51 }
 0x41b   : > { %7797 = vst.msk [vmem:[%s11576_s12 + $0x580] sm:$0xff] %vm7620_vm4, %v7540_v34  ;;  %v7541_v17 = vadd.f32 0.5, %v7285_v35  ;;  %6332 = vadd.xlane.f32.xlu1 %v6331_v42  ;;  %10132 = vtanh.f32 %v6781_v37  ;;  %v6784_v27 = vmul.f32 0.5, %v6528_v21  ;;  %v6530_v46 = vadd.f32 %v14065_v44, %v6138_v62  ;;  %v6144_v57 = vpop.xlane.xlu0 %6143 }
 0x41c   : > { %v7542_v40 = vadd.f32 0.5, %v7286_v12  ;;  %10134 = vtanh.f32 %v6782_v28  ;;  %v6785_v2 = vmul.f32 0.5, %v6529_v26  ;;  %v6531_v14 = vadd.f32 %v14065_v44, %v6141_v13 }
 0x41d   : > { %v10121_v60 = vpop.eup %10120  ;;  %7798 = vst.msk [vmem:[%s11576_s12 + $0x588] sm:$0xff] %vm7620_vm4, %v7541_v17  ;;  %10136 = vtanh.f32 %v6783_v56  ;;  %v6786_v19 = vmul.f32 0.5, %v6530_v46  ;;  %v6532_v29 = vadd.f32 %v14065_v44, %v6144_v57  ;;  %v6147_v61 = vpop.xlane.xlu1 %6146 }
 0x41e   : > { %v10123_v24 = vpop.eup %10122  ;;  %7799 = vst.msk [vmem:[%s11576_s12 + $0x590] sm:$0xff] %vm7620_vm4, %v7542_v40  ;;  %v7287_v48 = vmul.f32 0.5, %v10121_v60  ;;  %10138 = vtanh.f32 %v6784_v27  ;;  %v6787_v0 = vmul.f32 0.5, %v6531_v14  ;;  %v6533_v1 = vadd.f32 %v14065_v44, %v6147_v61 }
 0x41f   : > { %v10125_v6 = vpop.eup %10124  ;;  %v7288_v32 = vmul.f32 0.5, %v10123_v24  ;;  %10140 = vtanh.f32 %v6785_v2  ;;  %v6788_v36 = vmul.f32 0.5, %v6532_v29 }
 0x420   : > { %v7543_v10 = vadd.f32 0.5, %v7287_v48  ;;  %v7289_v49 = vmul.f32 0.5, %v10125_v6  ;;  %10142 = vtanh.f32 %v6786_v19  ;;  %v6789_v41 = vmul.f32 0.5, %v6533_v1  ;;  %v6150_v43 = vpop.xlane.xlu0 %6149 }
 0x421   : > { %v10127_v15 = vpop.eup %10126  ;;  %v7544_v53 = vadd.f32 0.5, %v7288_v32  ;;  %10144 = vtanh.f32 %v6787_v0  ;;  %v6534_v22 = vadd.f32 %v14065_v44, %v6150_v43 }
 0x422   : > { %v10129_v4 = vpop.eup %10128  ;;  %7800 = vst.msk [vmem:[%s11576_s12 + $0x598] sm:$0xff] %vm7620_vm4, %v7543_v10  ;;  %v7545_v23 = vadd.f32 0.5, %v7289_v49  ;;  %v7290_v18 = vmul.f32 0.5, %v10127_v15  ;;  %10146 = vtanh.f32 %v6788_v36 }
 0x423   : > { %7801 = vst.msk [vmem:[%s11576_s12 + $0x5a0] sm:$0xff] %vm7620_vm4, %v7544_v53  ;;  %v7291_v39 = vmul.f32 0.5, %v10129_v4  ;;  %10148 = vtanh.f32 %v6789_v41  ;;  %v6790_v25 = vmul.f32 0.5, %v6534_v22  ;;  %v6153_v54 = vpop.xlane.xlu1 %6152 }
 0x424   : > { %v10131_v33 = vpop.eup %10130  ;;  %7802 = vst.msk [vmem:[%s11576_s12 + $0x5a8] sm:$0xff] %vm7620_vm4, %v7545_v23  ;;  %v7546_v9 = vadd.f32 0.5, %v7290_v18  ;;  %v6535_v38 = vadd.f32 %v14065_v44, %v6153_v54  ;;  %v6156_v50 = vpop.xlane.xlu0 %6155 }
 0x425   : > { %v10133_v52 = vpop.eup %10132  ;;  %v7547_v16 = vadd.f32 0.5, %v7291_v39  ;;  %v7292_v45 = vmul.f32 0.5, %v10131_v33  ;;  %10150 = vtanh.f32 %v6790_v25  ;;  %v6536_v31 = vadd.f32 %v14065_v44, %v6156_v50 }
 0x426   : > { %v10135_v47 = vpop.eup %10134  ;;  %7803 = vst.msk [vmem:[%s11576_s12 + $0x5b0] sm:$0xff] %vm7620_vm4, %v7546_v9  ;;  %v7293_v51 = vmul.f32 0.5, %v10133_v52  ;;  %v6791_v5 = vmul.f32 0.5, %v6535_v38 }
 0x427   : > { %v10137_v59 = vpop.eup %10136  ;;  %7804 = vst.msk [vmem:[%s11576_s12 + $0x5b8] sm:$0xff] %vm7620_vm4, %v7547_v16  ;;  %v7548_v3 = vadd.f32 0.5, %v7292_v45  ;;  %v7294_v42 = vmul.f32 0.5, %v10135_v47  ;;  %v6792_v55 = vmul.f32 0.5, %v6536_v31  ;;  %v6159_v20 = vpop.xlane.xlu1 %6158 }
 0x428   : > { %v10139_v11 = vpop.eup %10138  ;;  %v7549_v7 = vadd.f32 0.5, %v7293_v51  ;;  %v7295_v62 = vmul.f32 0.5, %v10137_v59  ;;  %10152 = vtanh.f32 %v6791_v5  ;;  %v6537_v8 = vadd.f32 %v14065_v44, %v6159_v20 }
 0x429   : > { %v10141_v63 = vpop.eup %10140  ;;  %7805 = vst.msk [vmem:[%s11576_s12 + $0x5c0] sm:$0xff] %vm7620_vm4, %v7548_v3  ;;  %v7550_v37 = vadd.f32 0.5, %v7294_v42  ;;  %v7296_v30 = vmul.f32 0.5, %v10139_v11  ;;  %10154 = vtanh.f32 %v6792_v55  ;;  %v6162_v58 = vpop.xlane.xlu0 %6161 }
 0x42a   : > { %v10143_v34 = vpop.eup %10142  ;;  %7806 = vst.msk [vmem:[%s11576_s12 + $0x5c8] sm:$0xff] %vm7620_vm4, %v7549_v7  ;;  %v7551_v35 = vadd.f32 0.5, %v7295_v62  ;;  %v7297_v28 = vmul.f32 0.5, %v10141_v63  ;;  %v6793_v21 = vmul.f32 0.5, %v6537_v8  ;;  %v6538_v13 = vadd.f32 %v14065_v44, %v6162_v58 }
 0x42b   : > { %v10145_v12 = vpop.eup %10144  ;;  %7807 = vst.msk [vmem:[%s11576_s12 + $0x5d0] sm:$0xff] %vm7620_vm4, %v7550_v37  ;;  %v7552_v56 = vadd.f32 0.5, %v7296_v30  ;;  %v7298_v26 = vmul.f32 0.5, %v10143_v34  ;;  %v6165_v17 = vpop.xlane.xlu1 %6164 }
 0x42c   : > { %v10147_v27 = vpop.eup %10146  ;;  %7808 = vst.msk [vmem:[%s11576_s12 + $0x5d8] sm:$0xff] %vm7620_vm4, %v7551_v35  ;;  %v7553_v46 = vadd.f32 0.5, %v7297_v28  ;;  %v7299_v57 = vmul.f32 0.5, %v10145_v12  ;;  %10156 = vtanh.f32 %v6793_v21  ;;  %v6794_v40 = vmul.f32 0.5, %v6538_v13 }
 0x42d   : > { %v10149_v2 = vpop.eup %10148  ;;  %7809 = vst.msk [vmem:[%s11576_s12 + $0x5e0] sm:$0xff] %vm7620_vm4, %v7552_v56  ;;  %v7554_v14 = vadd.f32 0.5, %v7298_v26  ;;  %v7300_v60 = vmul.f32 0.5, %v10147_v27  ;;  %v6539_v19 = vadd.f32 %v14065_v44, %v6165_v17 }
 0x42e   : > { %7810 = vst.msk [vmem:[%s11576_s12 + $0x5e8] sm:$0xff] %vm7620_vm4, %v7553_v46  ;;  %v7555_v29 = vadd.f32 0.5, %v7299_v57  ;;  %v7301_v61 = vmul.f32 0.5, %v10149_v2  ;;  %10158 = vtanh.f32 %v6794_v40  ;;  %v6168_v24 = vpop.xlane.xlu0 %6167 }
 0x42f   : > { %v10151_v48 = vpop.eup %10150  ;;  %7811 = vst.msk [vmem:[%s11576_s12 + $0x5f0] sm:$0xff] %vm7620_vm4, %v7554_v14  ;;  %v7556_v0 = vadd.f32 0.5, %v7300_v60  ;;  %v6795_v1 = vmul.f32 0.5, %v6539_v19  ;;  %v6540_v6 = vadd.f32 %v14065_v44, %v6168_v24 }
 0x430   : > { %7812 = vst.msk [vmem:[%s11576_s12 + $0x5f8] sm:$0xff] %vm7620_vm4, %v7555_v29  ;;  %v7557_v32 = vadd.f32 0.5, %v7301_v61  ;;  %v7302_v36 = vmul.f32 0.5, %v10151_v48  ;;  %v6171_v10 = vpop.xlane.xlu1 %6170 }
 0x431   : > { %7813 = vst.msk [vmem:[%s11576_s12 + $0x600] sm:$0xff] %vm7620_vm4, %v7556_v0  ;;  %10160 = vtanh.f32 %v6795_v1  ;;  %v6796_v49 = vmul.f32 0.5, %v6540_v6  ;;  %v6541_v41 = vadd.f32 %v14065_v44, %v6171_v10 }
 0x432   : > { %v10153_v43 = vpop.eup %10152  ;;  %7814 = vst.msk [vmem:[%s11576_s12 + $0x608] sm:$0xff] %vm7620_vm4, %v7557_v32  ;;  %v7558_v15 = vadd.f32 0.5, %v7302_v36  ;;  %v6174_v53 = vpop.xlane.xlu0 %6173 }
 0x433   : > { %v10155_v22 = vpop.eup %10154  ;;  %v7303_v4 = vmul.f32 0.5, %v10153_v43  ;;  %10162 = vtanh.f32 %v6796_v49  ;;  %v6797_v23 = vmul.f32 0.5, %v6541_v41  ;;  %v6542_v18 = vadd.f32 %v14065_v44, %v6174_v53 }
 0x434   : > { %7815 = vst.msk [vmem:[%s11576_s12 + $0x610] sm:$0xff] %vm7620_vm4, %v7558_v15  ;;  %v7304_v39 = vmul.f32 0.5, %v10155_v22  ;;  %v6177_v25 = vpop.xlane.xlu1 %6176 }
 0x435   : > { %v7559_v54 = vadd.f32 0.5, %v7303_v4  ;;  %10164 = vtanh.f32 %v6797_v23  ;;  %v6798_v33 = vmul.f32 0.5, %v6542_v18  ;;  %v6543_v9 = vadd.f32 %v14065_v44, %v6177_v25 }
 0x436   : > { %v10157_v38 = vpop.eup %10156  ;;  %v7560_v50 = vadd.f32 0.5, %v7304_v39  ;;  %v6180_v52 = vpop.xlane.xlu0 %6179 }
 0x437   : > { %7816 = vst.msk [vmem:[%s11576_s12 + $0x618] sm:$0xff] %vm7620_vm4, %v7559_v54  ;;  %v7305_v16 = vmul.f32 0.5, %v10157_v38  ;;  %10166 = vtanh.f32 %v6798_v33  ;;  %v6799_v45 = vmul.f32 0.5, %v6543_v9  ;;  %v6544_v31 = vadd.f32 %v14065_v44, %v6180_v52 }
 0x438   : > { %v10159_v47 = vpop.eup %10158  ;;  %7817 = vst.msk [vmem:[%s11576_s12 + $0x620] sm:$0xff] %vm7620_vm4, %v7560_v50  ;;  %v6183_v51 = vpop.xlane.xlu1 %6182 }
 0x439   : > { %v7561_v5 = vadd.f32 0.5, %v7305_v16  ;;  %v7306_v59 = vmul.f32 0.5, %v10159_v47  ;;  %10168 = vtanh.f32 %v6799_v45  ;;  %v6800_v3 = vmul.f32 0.5, %v6544_v31 }
 0x43a   : > { %v6545_v42 = vadd.f32 %v14065_v44, %v6183_v51 }
 0x43b   : > { %v10161_v55 = vpop.eup %10160  ;;  %7818 = vst.msk [vmem:[%s11576_s12 + $0x628] sm:$0xff] %vm7620_vm4, %v7561_v5  ;;  %v7562_v20 = vadd.f32 0.5, %v7306_v59  ;;  %10170 = vtanh.f32 %v6800_v3  ;;  %v6186_v11 = vpop.xlane.xlu0 %6185 }
 0x43c   : > { %v7307_v7 = vmul.f32 0.5, %v10161_v55  ;;  %v6801_v62 = vmul.f32 0.5, %v6545_v42  ;;  %v6546_v8 = vadd.f32 %v14065_v44, %v6186_v11 }
 0x43d   : > { %v10163_v63 = vpop.eup %10162  ;;  %7819 = vst.msk [vmem:[%s11576_s12 + $0x630] sm:$0xff] %vm7620_vm4, %v7562_v20  ;;  %v6189_v37 = vpop.xlane.xlu1 %6188 }
 0x43e   : > { %v7563_v30 = vadd.f32 0.5, %v7307_v7  ;;  %v7308_v58 = vmul.f32 0.5, %v10163_v63  ;;  %10172 = vtanh.f32 %v6801_v62  ;;  %v6802_v34 = vmul.f32 0.5, %v6546_v8 }
 0x43f   : > { %v10165_v35 = vpop.eup %10164  ;;  %v6547_v28 = vadd.f32 %v14065_v44, %v6189_v37  ;;  %v6192_v21 = vpop.xlane.xlu0 %6191 }
 0x440   : > { %7820 = vst.msk [vmem:[%s11576_s12 + $0x638] sm:$0xff] %vm7620_vm4, %v7563_v30  ;;  %v7564_v13 = vadd.f32 0.5, %v7308_v58  ;;  %v7309_v12 = vmul.f32 0.5, %v10165_v35  ;;  %10174 = vtanh.f32 %v6802_v34  ;;  %v6548_v56 = vadd.f32 %v14065_v44, %v6192_v21 }
 0x441   : > { %v10167_v26 = vpop.eup %10166  ;;  %v6803_v17 = vmul.f32 0.5, %v6547_v28 }
 0x442   : > { %7821 = vst.msk [vmem:[%s11576_s12 + $0x640] sm:$0xff] %vm7620_vm4, %v7564_v13  ;;  %v7565_v27 = vadd.f32 0.5, %v7309_v12  ;;  %v7310_v46 = vmul.f32 0.5, %v10167_v26  ;;  %v6804_v57 = vmul.f32 0.5, %v6548_v56  ;;  %v6195_v40 = vpop.xlane.xlu1 %6194 }
 0x443   : > { %v10169_v2 = vpop.eup %10168  ;;  %10176 = vtanh.f32 %v6803_v17  ;;  %v6549_v14 = vadd.f32 %v14065_v44, %v6195_v40 }
 0x444   : > { %7822 = vst.msk [vmem:[%s11576_s12 + $0x648] sm:$0xff] %vm7620_vm4, %v7565_v27  ;;  %v7566_v60 = vadd.f32 0.5, %v7310_v46  ;;  %v7311_v19 = vmul.f32 0.5, %v10169_v2  ;;  %10178 = vtanh.f32 %v6804_v57  ;;  %v6198_v29 = vpop.xlane.xlu0 %6197  ;;  %v14351_v46 = vld [vmem:[#allocation2] ss:$0 sm:$0xff] }
 0x445   : > { %v10171_v61 = vpop.eup %10170  ;;  %v6805_v24 = vmul.f32 0.5, %v6549_v14  ;;  %v6550_v48 = vadd.f32 %v14065_v44, %v6198_v29 }
 0x446   : > { %7823 = vst.msk [vmem:[%s11576_s12 + $0x650] sm:$0xff] %vm7620_vm4, %v7566_v60  ;;  %v7567_v0 = vadd.f32 0.5, %v7311_v19  ;;  %v7312_v1 = vmul.f32 0.5, %v10171_v61  ;;  %v6201_v6 = vpop.xlane.xlu1 %6200 }
 0x447   : > { %10180 = vtanh.f32 %v6805_v24  ;;  %v6806_v32 = vmul.f32 0.5, %v6550_v48  ;;  %v6551_v36 = vadd.f32 %v14065_v44, %v6201_v6 }
 0x448   : > { %v10173_v10 = vpop.eup %10172  ;;  %7824 = vst.msk [vmem:[%s11576_s12 + $0x658] sm:$0xff] %vm7620_vm4, %v7567_v0  ;;  %v7568_v49 = vadd.f32 0.5, %v7312_v1  ;;  %v6204_v41 = vpop.xlane.xlu0 %6203 }
 0x449   : > { %v7313_v43 = vmul.f32 0.5, %v10173_v10  ;;  %10182 = vtanh.f32 %v6806_v32  ;;  %v6807_v15 = vmul.f32 0.5, %v6551_v36  ;;  %v6552_v53 = vadd.f32 %v14065_v44, %v6204_v41 }
 0x44a   : > { %v10175_v22 = vpop.eup %10174  ;;  %7825 = vst.msk [vmem:[%s11576_s12 + $0x660] sm:$0xff] %vm7620_vm4, %v7568_v49  ;;  %v6207_v4 = vpop.xlane.xlu1 %6206 }
 0x44b   : > { %v7569_v23 = vadd.f32 0.5, %v7313_v43  ;;  %v7314_v18 = vmul.f32 0.5, %v10175_v22  ;;  %10184 = vtanh.f32 %v6807_v15  ;;  %v6808_v39 = vmul.f32 0.5, %v6552_v53 }
 0x44c   : > { %v6553_v25 = vadd.f32 %v14065_v44, %v6207_v4 }
 0x44d   : > { %v10177_v54 = vpop.eup %10176  ;;  %7826 = vst.msk [vmem:[%s11576_s12 + $0x668] sm:$0xff] %vm7620_vm4, %v7569_v23  ;;  %v7570_v33 = vadd.f32 0.5, %v7314_v18  ;;  %10186 = vtanh.f32 %v6808_v39  ;;  %v6210_v9 = vpop.xlane.xlu0 %6209 }
 0x44e   : > { %v10179_v38 = vpop.eup %10178  ;;  %v7315_v50 = vmul.f32 0.5, %v10177_v54  ;;  %v6809_v52 = vmul.f32 0.5, %v6553_v25  ;;  %v6554_v16 = vadd.f32 %v14065_v44, %v6210_v9 }
 0x44f   : > { %7827 = vst.msk [vmem:[%s11576_s12 + $0x670] sm:$0xff] %vm7620_vm4, %v7570_v33  ;;  %v7316_v45 = vmul.f32 0.5, %v10179_v38 }
 0x450   : > { %v7571_v31 = vadd.f32 0.5, %v7315_v50  ;;  %10188 = vtanh.f32 %v6809_v52  ;;  %v6810_v47 = vmul.f32 0.5, %v6554_v16  ;;  %v6213_v51 = vpop.xlane.xlu1 %6212 }
 0x451   : > { %v10181_v5 = vpop.eup %10180  ;;  %v7572_v59 = vadd.f32 0.5, %v7316_v45  ;;  %v6555_v3 = vadd.f32 %v14065_v44, %v6213_v51  ;;  %v6216_v42 = vpop.xlane.xlu0 %6215 }
 0x452   : > { %7828 = vst.msk [vmem:[%s11576_s12 + $0x678] sm:$0xff] %vm7620_vm4, %v7571_v31  ;;  %v7317_v55 = vmul.f32 0.5, %v10181_v5  ;;  %10190 = vtanh.f32 %v6810_v47  ;;  %v6556_v20 = vadd.f32 %v14065_v44, %v6216_v42 }
 0x453   : > { %v10183_v11 = vpop.eup %10182  ;;  %7829 = vst.msk [vmem:[%s11576_s12 + $0x680] sm:$0xff] %vm7620_vm4, %v7572_v59  ;;  %v6811_v7 = vmul.f32 0.5, %v6555_v3 }
 0x454   : > { %v7573_v62 = vadd.f32 0.5, %v7317_v55  ;;  %v7318_v8 = vmul.f32 0.5, %v10183_v11  ;;  %v6812_v63 = vmul.f32 0.5, %v6556_v20  ;;  %v6219_v37 = vpop.xlane.xlu1 %6218 }
 0x455   : > { %v10185_v30 = vpop.eup %10184  ;;  %10192 = vtanh.f32 %v6811_v7  ;;  %v6557_v58 = vadd.f32 %v14065_v44, %v6219_v37 }
 0x456   : > { %7830 = vst.msk [vmem:[%s11576_s12 + $0x688] sm:$0xff] %vm7620_vm4, %v7573_v62  ;;  %v7574_v34 = vadd.f32 0.5, %v7318_v8  ;;  %v7319_v35 = vmul.f32 0.5, %v10185_v30  ;;  %10194 = vtanh.f32 %v6812_v63  ;;  %v6222_v28 = vpop.xlane.xlu0 %6221 }
 0x457   : > { %v10187_v21 = vpop.eup %10186  ;;  %v6813_v13 = vmul.f32 0.5, %v6557_v58  ;;  %v6558_v12 = vadd.f32 %v14065_v44, %v6222_v28 }
 0x458   : > { %7831 = vst.msk [vmem:[%s11576_s12 + $0x690] sm:$0xff] %vm7620_vm4, %v7574_v34  ;;  %v7575_v56 = vadd.f32 0.5, %v7319_v35  ;;  %v7320_v26 = vmul.f32 0.5, %v10187_v21  ;;  %v6225_v17 = vpop.xlane.xlu1 %6224 }
 0x459   : > { %10196 = vtanh.f32 %v6813_v13  ;;  %v6814_v27 = vmul.f32 0.5, %v6558_v12  ;;  %v6559_v57 = vadd.f32 %v14351_v46, %v6225_v17 }
 0x45a   : > { %v10189_v40 = vpop.eup %10188  ;;  %7832 = vst.msk [vmem:[%s11576_s12 + $0x698] sm:$0xff] %vm7620_vm4, %v7575_v56  ;;  %v7576_v2 = vadd.f32 0.5, %v7320_v26 }
 0x45b   : > { %v7321_v14 = vmul.f32 0.5, %v10189_v40  ;;  %10198 = vtanh.f32 %v6814_v27  ;;  %v6815_v44 = vmul.f32 0.5, %v6559_v57  ;;  %v6228_v60 = vpop.xlane.xlu0 %6227 }
 0x45c   : > { %v10191_v19 = vpop.eup %10190  ;;  %7833 = vst.msk [vmem:[%s11576_s12 + $0x6a0] sm:$0xff] %vm7620_vm4, %v7576_v2  ;;  %v6560_v29 = vadd.f32 %v14351_v46, %v6228_v60 }
 0x45d   : > { %v7577_v61 = vadd.f32 0.5, %v7321_v14  ;;  %v7322_v24 = vmul.f32 0.5, %v10191_v19  ;;  %10200 = vtanh.f32 %v6815_v44  ;;  %v6231_v48 = vpop.xlane.xlu1 %6230 }
 0x45e   : > { %v6816_v0 = vmul.f32 0.5, %v6560_v29  ;;  %v6561_v1 = vadd.f32 %v14351_v46, %v6231_v48 }
 0x45f   : > { %v10193_v6 = vpop.eup %10192  ;;  %7834 = vst.msk [vmem:[%s11576_s12 + $0x6a8] sm:$0xff] %vm7620_vm4, %v7577_v61  ;;  %v7578_v32 = vadd.f32 0.5, %v7322_v24  ;;  %v6234_v36 = vpop.xlane.xlu0 %6233 }
 0x460   : > { %v10195_v10 = vpop.eup %10194  ;;  %v7323_v49 = vmul.f32 0.5, %v10193_v6  ;;  %10202 = vtanh.f32 %v6816_v0  ;;  %v6817_v41 = vmul.f32 0.5, %v6561_v1  ;;  %v6562_v43 = vadd.f32 %v14351_v46, %v6234_v36 }
 0x461   : > { %7835 = vst.msk [vmem:[%s11576_s12 + $0x6b0] sm:$0xff] %vm7620_vm4, %v7578_v32  ;;  %v7324_v15 = vmul.f32 0.5, %v10195_v10  ;;  %v6237_v53 = vpop.xlane.xlu1 %6236 }
 0x462   : > { %v7579_v22 = vadd.f32 0.5, %v7323_v49  ;;  %10204 = vtanh.f32 %v6817_v41  ;;  %v6818_v4 = vmul.f32 0.5, %v6562_v43  ;;  %v6563_v23 = vadd.f32 %v14351_v46, %v6237_v53 }
 0x463   : > { %v10197_v18 = vpop.eup %10196  ;;  %v7580_v39 = vadd.f32 0.5, %v7324_v15  ;;  %v6240_v25 = vpop.xlane.xlu0 %6239 }
 0x464   : > { %7836 = vst.msk [vmem:[%s11576_s12 + $0x6b8] sm:$0xff] %vm7620_vm4, %v7579_v22  ;;  %v7325_v54 = vmul.f32 0.5, %v10197_v18  ;;  %10206 = vtanh.f32 %v6818_v4  ;;  %v6819_v33 = vmul.f32 0.5, %v6563_v23  ;;  %v6564_v9 = vadd.f32 %v14351_v46, %v6240_v25 }
 0x465   : > { %v10199_v38 = vpop.eup %10198  ;;  %7837 = vst.msk [vmem:[%s11576_s12 + $0x6c0] sm:$0xff] %vm7620_vm4, %v7580_v39  ;;  %v6243_v50 = vpop.xlane.xlu1 %6242 }
 0x466   : > { %v7581_v52 = vadd.f32 0.5, %v7325_v54  ;;  %v7326_v16 = vmul.f32 0.5, %v10199_v38  ;;  %10208 = vtanh.f32 %v6819_v33  ;;  %v6820_v45 = vmul.f32 0.5, %v6564_v9 }
 0x467   : > { %v10201_v31 = vpop.eup %10200  ;;  %v6565_v47 = vadd.f32 %v14351_v46, %v6243_v50 }
 0x468   : > { %7838 = vst.msk [vmem:[%s11576_s12 + $0x6c8] sm:$0xff] %vm7620_vm4, %v7581_v52  ;;  %v7582_v51 = vadd.f32 0.5, %v7326_v16  ;;  %v7327_v5 = vmul.f32 0.5, %v10201_v31  ;;  %10210 = vtanh.f32 %v6820_v45  ;;  %v6246_v59 = vpop.xlane.xlu0 %6245 }
 0x469   : > { %v6821_v3 = vmul.f32 0.5, %v6565_v47  ;;  %v6566_v42 = vadd.f32 %v14351_v46, %v6246_v59 }
 0x46a   : > { %v10203_v55 = vpop.eup %10202  ;;  %7839 = vst.msk [vmem:[%s11576_s12 + $0x6d0] sm:$0xff] %vm7620_vm4, %v7582_v51  ;;  %v7583_v20 = vadd.f32 0.5, %v7327_v5  ;;  %v6249_v11 = vpop.xlane.xlu1 %6248 }
 0x46b   : > { %v7328_v7 = vmul.f32 0.5, %v10203_v55  ;;  %10212 = vtanh.f32 %v6821_v3  ;;  %v6822_v62 = vmul.f32 0.5, %v6566_v42  ;;  %v6567_v8 = vadd.f32 %v14351_v46, %v6249_v11 }
 0x46c   : > { %v10205_v63 = vpop.eup %10204  ;;  %7840 = vst.msk [vmem:[%s11576_s12 + $0x6d8] sm:$0xff] %vm7620_vm4, %v7583_v20  ;;  %v6252_v37 = vpop.xlane.xlu0 %6251 }
 0x46d   : > { %v7584_v30 = vadd.f32 0.5, %v7328_v7  ;;  %v7329_v58 = vmul.f32 0.5, %v10205_v63  ;;  %10214 = vtanh.f32 %v6822_v62  ;;  %v6823_v34 = vmul.f32 0.5, %v6567_v8 }
 0x46e   : > { %v10207_v35 = vpop.eup %10206  ;;  %v6568_v28 = vadd.f32 %v14351_v46, %v6252_v37 }
 0x46f   : > { %7841 = vst.msk [vmem:[%s11576_s12 + $0x6e0] sm:$0xff] %vm7620_vm4, %v7584_v30  ;;  %v7585_v21 = vadd.f32 0.5, %v7329_v58  ;;  %v7330_v13 = vmul.f32 0.5, %v10207_v35  ;;  %10216 = vtanh.f32 %v6823_v34  ;;  %v6255_v12 = vpop.xlane.xlu1 %6254 }
 0x470   : > { %v10209_v56 = vpop.eup %10208  ;;  %v6824_v26 = vmul.f32 0.5, %v6568_v28  ;;  %v6569_v17 = vadd.f32 %v14351_v46, %v6255_v12 }
 0x471   : > { %7842 = vst.msk [vmem:[%s11576_s12 + $0x6e8] sm:$0xff] %vm7620_vm4, %v7585_v21  ;;  %v7586_v27 = vadd.f32 0.5, %v7330_v13  ;;  %v7331_v57 = vmul.f32 0.5, %v10209_v56  ;;  %v6258_v40 = vpop.xlane.xlu0 %6257 }
 0x472   : > { %v10211_v2 = vpop.eup %10210  ;;  %10218 = vtanh.f32 %v6824_v26  ;;  %v6825_v14 = vmul.f32 0.5, %v6569_v17  ;;  %v6570_v44 = vadd.f32 %v14351_v46, %v6258_v40 }
 0x473   : > { %7843 = vst.msk [vmem:[%s11576_s12 + $0x6f0] sm:$0xff] %vm7620_vm4, %v7586_v27  ;;  %v7587_v60 = vadd.f32 0.5, %v7331_v57  ;;  %v7332_v19 = vmul.f32 0.5, %v10211_v2  ;;  %v6261_v29 = vpop.xlane.xlu1 %6260 }
 0x474   : > { %10220 = vtanh.f32 %v6825_v14  ;;  %v6826_v61 = vmul.f32 0.5, %v6570_v44  ;;  %v6571_v24 = vadd.f32 %v14351_v46, %v6261_v29 }
 0x475   : > { %v10213_v48 = vpop.eup %10212  ;;  %7844 = vst.msk [vmem:[%s11576_s12 + $0x6f8] sm:$0xff] %vm7620_vm4, %v7587_v60  ;;  %v7588_v0 = vadd.f32 0.5, %v7332_v19  ;;  %v6264_v1 = vpop.xlane.xlu0 %6263 }
 0x476   : > { %v7333_v6 = vmul.f32 0.5, %v10213_v48  ;;  %10222 = vtanh.f32 %v6826_v61  ;;  %v6827_v32 = vmul.f32 0.5, %v6571_v24  ;;  %v6572_v36 = vadd.f32 %v14351_v46, %v6264_v1 }
 0x477   : > { %v10215_v10 = vpop.eup %10214  ;;  %7845 = vst.msk [vmem:[%s11576_s12 + $0x700] sm:$0xff] %vm7620_vm4, %v7588_v0  ;;  %v6267_v49 = vpop.xlane.xlu1 %6266 }
 0x478   : > { %v7589_v41 = vadd.f32 0.5, %v7333_v6  ;;  %v7334_v43 = vmul.f32 0.5, %v10215_v10  ;;  %10224 = vtanh.f32 %v6827_v32  ;;  %v6828_v15 = vmul.f32 0.5, %v6572_v36 }
 0x479   : > { %v10217_v53 = vpop.eup %10216  ;;  %v6573_v22 = vadd.f32 %v14351_v46, %v6267_v49 }
 0x47a   : > { %7846 = vst.msk [vmem:[%s11576_s12 + $0x708] sm:$0xff] %vm7620_vm4, %v7589_v41  ;;  %v7590_v4 = vadd.f32 0.5, %v7334_v43  ;;  %v7335_v23 = vmul.f32 0.5, %v10217_v53  ;;  %10226 = vtanh.f32 %v6828_v15  ;;  %v6270_v18 = vpop.xlane.xlu0 %6269 }
 0x47b   : > { %v6829_v39 = vmul.f32 0.5, %v6573_v22  ;;  %v6574_v25 = vadd.f32 %v14351_v46, %v6270_v18 }
 0x47c   : > { %v10219_v54 = vpop.eup %10218  ;;  %7847 = vst.msk [vmem:[%s11576_s12 + $0x710] sm:$0xff] %vm7620_vm4, %v7590_v4  ;;  %v7591_v33 = vadd.f32 0.5, %v7335_v23 }
 0x47d   : > { %v7336_v9 = vmul.f32 0.5, %v10219_v54  ;;  %10228 = vtanh.f32 %v6829_v39  ;;  %v6830_v38 = vmul.f32 0.5, %v6574_v25  ;;  %v6273_v50 = vpop.xlane.xlu1 %6272 }
 0x47e   : > { %v10221_v52 = vpop.eup %10220  ;;  %7848 = vst.msk [vmem:[%s11576_s12 + $0x718] sm:$0xff] %vm7620_vm4, %v7591_v33  ;;  %v6575_v16 = vadd.f32 %v14351_v46, %v6273_v50  ;;  %v6276_v45 = vpop.xlane.xlu0 %6275 }
 0x47f   : > { %v7592_v31 = vadd.f32 0.5, %v7336_v9  ;;  %v7337_v47 = vmul.f32 0.5, %v10221_v52  ;;  %10230 = vtanh.f32 %v6830_v38  ;;  %v6576_v51 = vadd.f32 %v14351_v46, %v6276_v45 }
 0x480   : > { %v10223_v5 = vpop.eup %10222  ;;  %v6831_v59 = vmul.f32 0.5, %v6575_v16 }
 0x481   : > { %7849 = vst.msk [vmem:[%s11576_s12 + $0x720] sm:$0xff] %vm7620_vm4, %v7592_v31  ;;  %v7593_v3 = vadd.f32 0.5, %v7337_v47  ;;  %v7338_v42 = vmul.f32 0.5, %v10223_v5  ;;  %v6832_v55 = vmul.f32 0.5, %v6576_v51  ;;  %v6279_v20 = vpop.xlane.xlu1 %6278 }
 0x482   : > { %v10225_v11 = vpop.eup %10224  ;;  %10232 = vtanh.f32 %v6831_v59  ;;  %v6577_v7 = vadd.f32 %v14351_v46, %v6279_v20 }
 0x483   : > { %7850 = vst.msk [vmem:[%s11576_s12 + $0x728] sm:$0xff] %vm7620_vm4, %v7593_v3  ;;  %v7594_v62 = vadd.f32 0.5, %v7338_v42  ;;  %v7339_v8 = vmul.f32 0.5, %v10225_v11  ;;  %10234 = vtanh.f32 %v6832_v55  ;;  %v6282_v63 = vpop.xlane.xlu0 %6281 }
 0x484   : > { %v10227_v37 = vpop.eup %10226  ;;  %v6833_v30 = vmul.f32 0.5, %v6577_v7  ;;  %v6578_v58 = vadd.f32 %v14351_v46, %v6282_v63 }
 0x485   : > { %7851 = vst.msk [vmem:[%s11576_s12 + $0x730] sm:$0xff] %vm7620_vm4, %v7594_v62  ;;  %v7595_v34 = vadd.f32 0.5, %v7339_v8  ;;  %v7340_v35 = vmul.f32 0.5, %v10227_v37  ;;  %v6285_v28 = vpop.xlane.xlu1 %6284 }
 0x486   : > { %10236 = vtanh.f32 %v6833_v30  ;;  %v6834_v21 = vmul.f32 0.5, %v6578_v58  ;;  %v6579_v13 = vadd.f32 %v14351_v46, %v6285_v28 }
 0x487   : > { %v10229_v12 = vpop.eup %10228  ;;  %7852 = vst.msk [vmem:[%s11576_s12 + $0x738] sm:$0xff] %vm7620_vm4, %v7595_v34  ;;  %v7596_v56 = vadd.f32 0.5, %v7340_v35 }
 0x488   : > { %v7341_v26 = vmul.f32 0.5, %v10229_v12  ;;  %10238 = vtanh.f32 %v6834_v21  ;;  %v6835_v17 = vmul.f32 0.5, %v6579_v13  ;;  %v6288_v27 = vpop.xlane.xlu0 %6287 }
 0x489   : > { %v10231_v57 = vpop.eup %10230  ;;  %7853 = vst.msk [vmem:[%s11576_s12 + $0x740] sm:$0xff] %vm7620_vm4, %v7596_v56  ;;  %v6580_v40 = vadd.f32 %v14351_v46, %v6288_v27 }
 0x48a   : > { %v7597_v2 = vadd.f32 0.5, %v7341_v26  ;;  %v7342_v14 = vmul.f32 0.5, %v10231_v57  ;;  %10240 = vtanh.f32 %v6835_v17  ;;  %v6291_v44 = vpop.xlane.xlu1 %6290 }
 0x48b   : > { %v6836_v60 = vmul.f32 0.5, %v6580_v40  ;;  %v6581_v19 = vadd.f32 %v14351_v46, %v6291_v44 }
 0x48c   : > { %v10233_v29 = vpop.eup %10232  ;;  %7854 = vst.msk [vmem:[%s11576_s12 + $0x748] sm:$0xff] %vm7620_vm4, %v7597_v2  ;;  %v7598_v61 = vadd.f32 0.5, %v7342_v14  ;;  %v6294_v24 = vpop.xlane.xlu0 %6293 }
 0x48d   : > { %v10235_v48 = vpop.eup %10234  ;;  %v7343_v0 = vmul.f32 0.5, %v10233_v29  ;;  %10242 = vtanh.f32 %v6836_v60  ;;  %v6837_v1 = vmul.f32 0.5, %v6581_v19  ;;  %v6582_v6 = vadd.f32 %v14351_v46, %v6294_v24 }
 0x48e   : > { %7855 = vst.msk [vmem:[%s11576_s12 + $0x750] sm:$0xff] %vm7620_vm4, %v7598_v61  ;;  %v7344_v32 = vmul.f32 0.5, %v10235_v48  ;;  %v6297_v36 = vpop.xlane.xlu1 %6296 }
 0x48f   : > { %v7599_v10 = vadd.f32 0.5, %v7343_v0  ;;  %10244 = vtanh.f32 %v6837_v1  ;;  %v6838_v49 = vmul.f32 0.5, %v6582_v6  ;;  %v6583_v41 = vadd.f32 %v14351_v46, %v6297_v36 }
 0x490   : > { %v10237_v43 = vpop.eup %10236  ;;  %v7600_v15 = vadd.f32 0.5, %v7344_v32  ;;  %v6300_v53 = vpop.xlane.xlu0 %6299 }
 0x491   : > { %7856 = vst.msk [vmem:[%s11576_s12 + $0x758] sm:$0xff] %vm7620_vm4, %v7599_v10  ;;  %v7345_v22 = vmul.f32 0.5, %v10237_v43  ;;  %10246 = vtanh.f32 %v6838_v49  ;;  %v6839_v4 = vmul.f32 0.5, %v6583_v41  ;;  %v6584_v23 = vadd.f32 %v14351_v46, %v6300_v53 }
 0x492   : > { %v10239_v18 = vpop.eup %10238  ;;  %7857 = vst.msk [vmem:[%s11576_s12 + $0x760] sm:$0xff] %vm7620_vm4, %v7600_v15  ;;  %v6303_v39 = vpop.xlane.xlu1 %6302 }
 0x493   : > { %v7601_v25 = vadd.f32 0.5, %v7345_v22  ;;  %v7346_v54 = vmul.f32 0.5, %v10239_v18  ;;  %10248 = vtanh.f32 %v6839_v4  ;;  %v6840_v33 = vmul.f32 0.5, %v6584_v23 }
 0x494   : > { %v10241_v9 = vpop.eup %10240  ;;  %v6585_v38 = vadd.f32 %v14351_v46, %v6303_v39 }
 0x495   : > { %7858 = vst.msk [vmem:[%s11576_s12 + $0x768] sm:$0xff] %vm7620_vm4, %v7601_v25  ;;  %v7602_v50 = vadd.f32 0.5, %v7346_v54  ;;  %v7347_v52 = vmul.f32 0.5, %v10241_v9  ;;  %10250 = vtanh.f32 %v6840_v33  ;;  %v6306_v16 = vpop.xlane.xlu0 %6305 }
 0x496   : > { %v6841_v45 = vmul.f32 0.5, %v6585_v38  ;;  %v6586_v31 = vadd.f32 %v14351_v46, %v6306_v16 }
 0x497   : > { %v10243_v47 = vpop.eup %10242  ;;  %7859 = vst.msk [vmem:[%s11576_s12 + $0x770] sm:$0xff] %vm7620_vm4, %v7602_v50  ;;  %v7603_v51 = vadd.f32 0.5, %v7347_v52  ;;  %v6309_v5 = vpop.xlane.xlu1 %6308 }
 0x498   : > { %v7348_v59 = vmul.f32 0.5, %v10243_v47  ;;  %10252 = vtanh.f32 %v6841_v45  ;;  %v6842_v3 = vmul.f32 0.5, %v6586_v31  ;;  %v6587_v42 = vadd.f32 %v14351_v46, %v6309_v5 }
 0x499   : > { %v10245_v55 = vpop.eup %10244  ;;  %7860 = vst.msk [vmem:[%s11576_s12 + $0x778] sm:$0xff] %vm7620_vm4, %v7603_v51  ;;  %v6312_v20 = vpop.xlane.xlu0 %6311 }
 0x49a   : > { %v7604_v11 = vadd.f32 0.5, %v7348_v59  ;;  %v7349_v7 = vmul.f32 0.5, %v10245_v55  ;;  %10254 = vtanh.f32 %v6842_v3  ;;  %v6843_v62 = vmul.f32 0.5, %v6587_v42 }
 0x49b   : > { %v10247_v8 = vpop.eup %10246  ;;  %v6588_v63 = vadd.f32 %v14351_v46, %v6312_v20 }
 0x49c   : > { %7861 = vst.msk [vmem:[%s11576_s12 + $0x780] sm:$0xff] %vm7620_vm4, %v7604_v11  ;;  %v7605_v37 = vadd.f32 0.5, %v7349_v7  ;;  %v7350_v30 = vmul.f32 0.5, %v10247_v8  ;;  %10256 = vtanh.f32 %v6843_v62  ;;  %v6315_v58 = vpop.xlane.xlu1 %6314 }
 0x49d   : > { %v10249_v34 = vpop.eup %10248  ;;  %v6844_v35 = vmul.f32 0.5, %v6588_v63  ;;  %v6589_v28 = vadd.f32 %v14351_v46, %v6315_v58 }
 0x49e   : > { %7862 = vst.msk [vmem:[%s11576_s12 + $0x788] sm:$0xff] %vm7620_vm4, %v7605_v37  ;;  %v7606_v21 = vadd.f32 0.5, %v7350_v30  ;;  %v7351_v13 = vmul.f32 0.5, %v10249_v34  ;;  %v6318_v12 = vpop.xlane.xlu0 %6317 }
 0x49f   : > { %v10251_v56 = vpop.eup %10250  ;;  %10258 = vtanh.f32 %v6844_v35  ;;  %v6845_v26 = vmul.f32 0.5, %v6589_v28  ;;  %v6590_v17 = vadd.f32 %v14351_v46, %v6318_v12 }
 0x4a0   : > { %7863 = vst.msk [vmem:[%s11576_s12 + $0x790] sm:$0xff] %vm7620_vm4, %v7606_v21  ;;  %v7607_v27 = vadd.f32 0.5, %v7351_v13  ;;  %v7352_v57 = vmul.f32 0.5, %v10251_v56  ;;  %v6321_v40 = vpop.xlane.xlu1 %6320 }
 0x4a1   : > { %10260 = vtanh.f32 %v6845_v26  ;;  %v6846_v2 = vmul.f32 0.5, %v6590_v17  ;;  %v6591_v14 = vadd.f32 %v14351_v46, %v6321_v40 }
 0x4a2   : > { %v10253_v44 = vpop.eup %10252  ;;  %7864 = vst.msk [vmem:[%s11576_s12 + $0x798] sm:$0xff] %vm7620_vm4, %v7607_v27  ;;  %v7608_v60 = vadd.f32 0.5, %v7352_v57  ;;  %v6324_v19 = vpop.xlane.xlu0 %6323 }
 0x4a3   : > { %v7353_v29 = vmul.f32 0.5, %v10253_v44  ;;  %10262 = vtanh.f32 %v6846_v2  ;;  %v6847_v61 = vmul.f32 0.5, %v6591_v14  ;;  %v6592_v24 = vadd.f32 %v14351_v46, %v6324_v19 }
 0x4a4   : > { %v10255_v48 = vpop.eup %10254  ;;  %7865 = vst.msk [vmem:[%s11576_s12 + $0x7a0] sm:$0xff] %vm7620_vm4, %v7608_v60  ;;  %v6327_v0 = vpop.xlane.xlu1 %6326 }
 0x4a5   : > { %v7609_v1 = vadd.f32 0.5, %v7353_v29  ;;  %v7354_v6 = vmul.f32 0.5, %v10255_v48  ;;  %10264 = vtanh.f32 %v6847_v61  ;;  %v6848_v32 = vmul.f32 0.5, %v6592_v24 }
 0x4a6   : > { %v10257_v36 = vpop.eup %10256  ;;  %v6593_v10 = vadd.f32 %v14351_v46, %v6327_v0  ;;  %v6330_v49 = vpop.xlane.xlu0 %6329 }
 0x4a7   : > { %7866 = vst.msk [vmem:[%s11576_s12 + $0x7a8] sm:$0xff] %vm7620_vm4, %v7609_v1  ;;  %v7610_v41 = vadd.f32 0.5, %v7354_v6  ;;  %v7355_v43 = vmul.f32 0.5, %v10257_v36  ;;  %10266 = vtanh.f32 %v6848_v32  ;;  %v6594_v15 = vadd.f32 %v14351_v46, %v6330_v49 }
 0x4a8   : > { %v6849_v53 = vmul.f32 0.5, %v6593_v10  ;;  %v6333_v22 = vpop.xlane.xlu1 %6332 }
 0x4a9   : > { %v10259_v4 = vpop.eup %10258  ;;  %7867 = vst.msk [vmem:[%s11576_s12 + $0x7b0] sm:$0xff] %vm7620_vm4, %v7610_v41  ;;  %v7611_v23 = vadd.f32 0.5, %v7355_v43  ;;  %v6850_v18 = vmul.f32 0.5, %v6594_v15  ;;  %v6595_v39 = vadd.f32 %v14351_v46, %v6333_v22 }
 0x4aa   : > { %v7356_v25 = vmul.f32 0.5, %v10259_v4  ;;  %10268 = vtanh.f32 %v6849_v53 }
 0x4ab   : > { %v10261_v54 = vpop.eup %10260  ;;  %7868 = vst.msk [vmem:[%s11576_s12 + $0x7b8] sm:$0xff] %vm7620_vm4, %v7611_v23  ;;  %10270 = vtanh.f32 %v6850_v18  ;;  %v6851_v33 = vmul.f32 0.5, %v6595_v39 }
 0x4ac   : > { %v7612_v9 = vadd.f32 0.5, %v7356_v25  ;;  %v7357_v38 = vmul.f32 0.5, %v10261_v54 }
 0x4ad   : > { %v10263_v50 = vpop.eup %10262  ;;  %10272 = vtanh.f32 %v6851_v33 }
 0x4ae   : > { %7869 = vst.msk [vmem:[%s11576_s12 + $0x7c0] sm:$0xff] %vm7620_vm4, %v7612_v9  ;;  %v7613_v52 = vadd.f32 0.5, %v7357_v38  ;;  %v7358_v16 = vmul.f32 0.5, %v10263_v50 }
 0x4af   : > { %v10265_v45 = vpop.eup %10264 }
 0x4b0   : > { %7870 = vst.msk [vmem:[%s11576_s12 + $0x7c8] sm:$0xff] %vm7620_vm4, %v7613_v52  ;;  %v7614_v46 = vadd.f32 0.5, %v7358_v16  ;;  %v7359_v31 = vmul.f32 0.5, %v10265_v45 }
 0x4b1   : > { %v10267_v47 = vpop.eup %10266 }
 0x4b2   : > { %7871 = vst.msk [vmem:[%s11576_s12 + $0x7d0] sm:$0xff] %vm7620_vm4, %v7614_v46  ;;  %v7615_v51 = vadd.f32 0.5, %v7359_v31  ;;  %v7360_v5 = vmul.f32 0.5, %v10267_v47 }
 0x4b4   : > { %v10269_v59 = vpop.eup %10268  ;;  %7872 = vst.msk [vmem:[%s11576_s12 + $0x7d8] sm:$0xff] %vm7620_vm4, %v7615_v51  ;;  %v7616_v3 = vadd.f32 0.5, %v7360_v5 }
 0x4b5   : > { %v10271_v42 = vpop.eup %10270  ;;  %v7361_v55 = vmul.f32 0.5, %v10269_v59 }
 0x4b6   : > { %7873 = vst.msk [vmem:[%s11576_s12 + $0x7e0] sm:$0xff] %vm7620_vm4, %v7616_v3  ;;  %v7362_v20 = vmul.f32 0.5, %v10271_v42 }
 0x4b7   : > { %v10273_v11 = vpop.eup %10272  ;;  %v7617_v7 = vadd.f32 0.5, %v7361_v55 }
 0x4b8   : > { %v7618_v62 = vadd.f32 0.5, %v7362_v20  ;;  %v7363_v8 = vmul.f32 0.5, %v10273_v11 }
 0x4b9   : > { %7874 = vst.msk [vmem:[%s11576_s12 + $0x7e8] sm:$0xff] %vm7620_vm4, %v7617_v7 }
 0x4ba   : > { %7875 = vst.msk [vmem:[%s11576_s12 + $0x7f0] sm:$0xff] %vm7620_vm4, %v7618_v62  ;;  %v7619_v63 = vadd.f32 0.5, %v7363_v8 }
 0x4bc   : > { %7876 = vst.msk [vmem:[%s11576_s12 + $0x7f8] sm:$0xff] %vm7620_vm4, %v7619_v63 }
 0x4bd PF: > { %s19_s26 = sadd.s32 1, %s10303_s26  }
 0x4be   : > { %p16_p4 = scmp.ge.s32.totalorder %s19_s26, 4  }
 0x4c0   :  { %18 = sbr.rel (!%p16_p4) target bundleno = 3 (0x3), region = 78 }

</bundles_post_ra>
